<compile_context>
chip_gen: v7x
topology: tpu7x:2x2x1
jax: 0.10.0
libtpu: 0.0.40
codegen_flags: <defaults>
</compile_context>

<pallas_src>
import functools
import math

import jax
import jax.numpy as jnp
from jax.experimental import pallas as pl
from jax.experimental.pallas import tpu as pltpu

AUTOENCODER_NOISE_FACTOR = 0.05
BN_EPS = 1e-5  # torch.nn.BatchNorm2d default


# ----------------------------- compiler params ------------------------------ #

@functools.lru_cache(maxsize=None)
def _vmem_limit():
    # ~75% of physical VMEM: ~48 MiB on v7x (64 MiB/TC), ~96 MiB on v5e/v6e.
    try:
        cap = int(pltpu.get_tpu_info().vmem_capacity_bytes)
    except Exception:
        cap = 64 * 1024 * 1024          # conservative fallback (v7x-sized)
    return min(cap * 3 // 4, 100 * 1024 * 1024)


def _compiler_params(semantics):
    return pltpu.CompilerParams(dimension_semantics=semantics,
                                vmem_limit_bytes=_vmem_limit())


def _pick_rows_per_block(h, wp, target_rows=2048):
    """Image rows per conv row-block: divides h, block is a multiple of 8 flat rows."""
    if h * wp <= target_rows:
        return h
    for rb in range(1, h):
        if h % rb == 0 and (rb * wp) % 8 == 0 and rb * wp >= target_rows:
            return rb
    return h


def _fc_tile(n):
    if n <= 512:
        return n
    for t in (512, 384, 256, 128):
        if n % t == 0:
            return t
    return n


# ----------------------------- Pallas kernels ------------------------------ #

def _conv_stats_kernel(x_ref, w_ref, b_ref, y_ref, stats_ref, *, wp, wd, rows):
    """3x3 'same' conv on a row-flattened padded image + per-block BN partials.

    x_ref    : ((H+3)*(W+2), Cin)  f32 zero-padded image (row stride W+2), resident
    w_ref    : (9, Cin, Cout)      bf16 taps, dy-major
    b_ref    : (1, Cout)           f32 bias
    y_ref    : (rows, Cout)        bf16 conv+bias for this row block
    stats_ref: (2, Cout)           f32 [sum, sumsq] over this block's valid pixels
    """
    j = pl.program_id(1)
    base = j * rows                                   # rows is a multiple of wp
    c_out = w_ref.shape[2]
    acc = jnp.zeros((rows, c_out), jnp.float32)
    for k in range(9):
        dy, dx = divmod(k, 3)
        lhs = x_ref[pl.ds(base + dy * wp + dx, rows), :].astype(jnp.bfloat16)
        acc = acc + jnp.dot(lhs, w_ref[k], preferred_element_type=jnp.float32)
    acc = acc + b_ref[...]
    y_ref[...] = acc.astype(y_ref.dtype)
    # in-kernel valid-column mask (the 2 wrap columns per image row are junk)
    col = jax.lax.broadcasted_iota(jnp.int32, (rows, 1), 0) % wp
    v = jnp.where(col < wd, acc, 0.0)
    stats_ref[0:1, :] = jnp.sum(v, axis=0, keepdims=True)
    stats_ref[1:2, :] = jnp.sum(v * v, axis=0, keepdims=True)


def _bn_relu_pool_pad_kernel(y_ref, sc_ref, sh_ref, o_ref, tmp_ref, *, wp, hh, wh):
    """Fused BN(scale/shift) + ReLU + 2x2 MaxPool + zero-pad, per image.

    y_ref : (H*(W+2), C)  bf16 conv output (flat, row stride W+2)
    o_ref : ((hh+3)*(wh+2), C) f32 padded-flat tile, directly consumable by the
            next conv kernel (valid row a lives at rows (a+1)*(wh+2)+1 .. +wh).
    """
    # one full-block normalize + ReLU (single VPU pass), into f32 scratch
    tmp_ref[...] = jnp.maximum(
        y_ref[...].astype(jnp.float32) * sc_ref[...] + sh_ref[...], 0.0)
    o_ref[...] = jnp.zeros_like(o_ref)                # padding zeros
    wpn = wh + 2
    # TODO(synk): at real scale (hh up to 64) switch to pl.loop + roll-based
    #             pair-max to bound unroll size / vreg live ranges.
    for a in range(hh):
        base = 2 * a * wp
        p00 = tmp_ref[pl.ds(base, wh, stride=2), :]
        p01 = tmp_ref[pl.ds(base + 1, wh, stride=2), :]
        p10 = tmp_ref[pl.ds(base + wp, wh, stride=2), :]
        p11 = tmp_ref[pl.ds(base + wp + 1, wh, stride=2), :]
        row = jnp.maximum(jnp.maximum(p00, p01), jnp.maximum(p10, p11))
        start = (a + 1) * wpn + 1
        o_ref[start:start + wh, :] = row


def _bn_relu_kernel(y_ref, sc_ref, sh_ref, o_ref):
    """Fused BatchNorm (precomputed scale/shift) + ReLU (decoder), bf16 out."""
    o_ref[...] = jnp.maximum(
        y_ref[...].astype(jnp.float32) * sc_ref[...] + sh_ref[...], 0.0
    ).astype(o_ref.dtype)


def _conv_post_kernel(x_ref, w_ref, b_ref, w2_ref, b2_ref, o_ref, *, wp, rows):
    """conv3x3(Cin->128) [pre-composed 3x3*1x1] + ReLU + 1x1(128->3)."""
    j = pl.program_id(1)
    base = j * rows
    acc = jnp.zeros((rows, w_ref.shape[2]), jnp.float32)
    for k in range(9):
        dy, dx = divmod(k, 3)
        lhs = x_ref[pl.ds(base + dy * wp + dx, rows), :].astype(jnp.bfloat16)
        acc = acc + jnp.dot(lhs, w_ref[k], preferred_element_type=jnp.float32)
    z = jnp.maximum(acc + b_ref[...], 0.0)            # (rows, 128) stays in VMEM
    o_ref[...] = (jnp.dot(z.astype(jnp.bfloat16), w2_ref[...],
                          preferred_element_type=jnp.float32) + b2_ref[...])


def _fc1_kernel(x_ref, w_ref, b_ref, n_ref, lat_ref, *, noise_scale):
    l = jnp.dot(x_ref[...], w_ref[...], preferred_element_type=jnp.float32) + b_ref[...]
    # noise is added AFTER the ReLU (matches the PyTorch forward ordering)
    lat_ref[...] = jnp.maximum(l, 0.0) + n_ref[...] * noise_scale


def _fc2_kernel(x_ref, w_ref, b_ref, h_ref):
    hv = jnp.dot(x_ref[...].astype(jnp.bfloat16), w_ref[...],
                 preferred_element_type=jnp.float32) + b_ref[...]
    h_ref[...] = jnp.maximum(hv, 0.0).astype(h_ref.dtype)


# ------------------------------ Thin wrappers ------------------------------ #

def _pad_flatten(x):
    """NHWC f32 -> zero-pad H by (1,2), W by (1,1), flatten (H,W) -> rows."""
    n, h, w, c = x.shape
    xp = jnp.pad(x, ((0, 0), (1, 2), (1, 1), (0, 0)))
    return xp.reshape(n, (h + 3) * (w + 2), c)


def _bn_scale_shift(mean, var, gamma, beta):
    # training-mode BatchNorm: biased batch variance; running stats not modeled
    inv = jax.lax.rsqrt(jnp.maximum(var, 0.0) + BN_EPS)
    scale = gamma.reshape(-1) * inv
    shift = beta.reshape(-1) - mean * scale
    return (scale.reshape(1, -1).astype(jnp.float32),
            shift.reshape(1, -1).astype(jnp.float32))


def _conv_pass(xpf, h, wd, w9, b):
    """Pass 1: conv + bias (bf16 out) + per-(image,row-block) BN partial stats."""
    n, _, c_in = xpf.shape
    c_out = w9.shape[-1]
    wp = wd + 2
    r = h * wp
    rb_h = _pick_rows_per_block(h, wp)
    rows = rb_h * wp
    n_rb = h // rb_h

    y, stats = pl.pallas_call(
        functools.partial(_conv_stats_kernel, wp=wp, wd=wd, rows=rows),
        grid=(n, n_rb),
        in_specs=[
            pl.BlockSpec((None, (h + 3) * wp, c_in), lambda i, j: (i, 0, 0)),
            pl.BlockSpec((9, c_in, c_out), lambda i, j: (0, 0, 0)),
            pl.BlockSpec((1, c_out), lambda i, j: (0, 0)),
        ],
        out_specs=(
            pl.BlockSpec((None, rows, c_out), lambda i, j: (i, j, 0)),
            pl.BlockSpec((None, 2, c_out), lambda i, j: (i * n_rb + j, 0, 0)),
        ),
        out_shape=(
            jax.ShapeDtypeStruct((n, r, c_out), jnp.bfloat16),
            jax.ShapeDtypeStruct((n * n_rb, 2, c_out), jnp.float32),
        ),
        compiler_params=_compiler_params(("parallel", "parallel")),
    )(xpf, w9, b)

    # tiny cross-block reduction of the partial stats (training-mode BatchNorm)
    s = jnp.sum(stats, axis=0)                         # (2, Cout)
    cnt = float(n * h * wd)
    mean = s[0] / cnt
    var = s[1] / cnt - mean * mean
    return y, mean, var


def conv_bn_relu_pool(xpf, h, wd, w9, b, gamma, beta):
    """Conv3x3(pad=1) -> BN(batch stats) -> ReLU -> MaxPool2x2 -> zero-padded flat."""
    n = xpf.shape[0]
    c_out = w9.shape[-1]
    wp = wd + 2
    r = h * wp
    hh, wh = h // 2, wd // 2
    wpn = wh + 2
    y, mean, var = _conv_pass(xpf, h, wd, w9, b)
    scale, shift = _bn_scale_shift(mean, var, gamma, beta)
    out = pl.pallas_call(
        functools.partial(_bn_relu_pool_pad_kernel, wp=wp, hh=hh, wh=wh),
        grid=(n,),
        in_specs=[
            pl.BlockSpec((None, r, c_out), lambda i: (i, 0, 0)),
            pl.BlockSpec((1, c_out), lambda i: (0, 0)),
            pl.BlockSpec((1, c_out), lambda i: (0, 0)),
        ],
        out_specs=pl.BlockSpec((None, (hh + 3) * wpn, c_out), lambda i: (i, 0, 0)),
        out_shape=jax.ShapeDtypeStruct((n, (hh + 3) * wpn, c_out), jnp.float32),
        scratch_shapes=[pltpu.VMEM((r, c_out), jnp.float32)],
        compiler_params=_compiler_params(("parallel",)),
    )(y, scale, shift)
    return out                  # padded flat for the next conv (hh x wh spatial)


def conv_bn_relu(xpf, h, wd, w9, b, gamma, beta):
    """Conv3x3(pad=1) -> BN(batch stats) -> ReLU (decoder), bf16 NHWC out."""
    n = xpf.shape[0]
    c_out = w9.shape[-1]
    wp = wd + 2
    r = h * wp
    y, mean, var = _conv_pass(xpf, h, wd, w9, b)
    scale, shift = _bn_scale_shift(mean, var, gamma, beta)
    out = pl.pallas_call(
        _bn_relu_kernel,
        grid=(n,),
        in_specs=[
            pl.BlockSpec((None, r, c_out), lambda i: (i, 0, 0)),
            pl.BlockSpec((1, c_out), lambda i: (0, 0)),
            pl.BlockSpec((1, c_out), lambda i: (0, 0)),
        ],
        out_specs=pl.BlockSpec((None, r, c_out), lambda i: (i, 0, 0)),
        out_shape=jax.ShapeDtypeStruct((n, r, c_out), jnp.bfloat16),
        compiler_params=_compiler_params(("parallel",)),
    )(y, scale, shift)
    return out.reshape(n, h, wp, c_out)[:, :, :wd, :]   # drop the 2 wrap columns


def conv_post(xpf, h, wd, w_eff, b_eff, w2, b2):
    """Pre-composed conv3x3(Cin->128) -> ReLU -> 1x1(128->3)."""
    n, _, c_in = xpf.shape
    wp = wd + 2
    r = h * wp
    rb_h = _pick_rows_per_block(h, wp)
    rows = rb_h * wp
    n_rb = h // rb_h
    out = pl.pallas_call(
        functools.partial(_conv_post_kernel, wp=wp, rows=rows),
        grid=(n, n_rb),
        in_specs=[
            pl.BlockSpec((None, (h + 3) * wp, c_in), lambda i, j: (i, 0, 0)),
            pl.BlockSpec((9, c_in, 128), lambda i, j: (0, 0, 0)),
            pl.BlockSpec((1, 128), lambda i, j: (0, 0)),
            pl.BlockSpec((128, 3), lambda i, j: (0, 0)),
            pl.BlockSpec((1, 3), lambda i, j: (0, 0)),
        ],
        out_specs=pl.BlockSpec((None, rows, 3), lambda i, j: (i, j, 0)),
        out_shape=jax.ShapeDtypeStruct((n, r, 3), jnp.float32),
        compiler_params=_compiler_params(("parallel", "parallel")),
    )(xpf, w_eff, b_eff, w2, b2)
    return out.reshape(n, h, wp, 3)[:, :, :wd, :]


def fc1_noise(flat, w1, b1, noise):
    bsz, k = flat.shape
    n_out = w1.shape[1]
    tn = _fc_tile(n_out)
    return pl.pallas_call(
        functools.partial(_fc1_kernel, noise_scale=AUTOENCODER_NOISE_FACTOR),
        grid=(n_out // tn,),
        in_specs=[
            pl.BlockSpec((bsz, k), lambda t: (0, 0)),
            pl.BlockSpec((k, tn), lambda t: (0, t)),
            pl.BlockSpec((1, tn), lambda t: (0, t)),
            pl.BlockSpec((bsz, tn), lambda t: (0, t)),
        ],
        out_specs=pl.BlockSpec((bsz, tn), lambda t: (0, t)),
        out_shape=jax.ShapeDtypeStruct((bsz, n_out), jnp.float32),
        compiler_params=_compiler_params(("parallel",)),
    )(flat, w1, b1, noise)


def fc2_relu(latent, w2, b2):
    bsz, k = latent.shape
    n_out = w2.shape[1]
    tn = _fc_tile(n_out)
    return pl.pallas_call(
        _fc2_kernel,
        grid=(n_out // tn,),
        in_specs=[
            pl.BlockSpec((bsz, k), lambda t: (0, 0)),
            pl.BlockSpec((k, tn), lambda t: (0, t)),
            pl.BlockSpec((1, tn), lambda t: (0, t)),
        ],
        out_specs=pl.BlockSpec((bsz, tn), lambda t: (0, t)),
        out_shape=jax.ShapeDtypeStruct((bsz, n_out), jnp.bfloat16),
        compiler_params=_compiler_params(("parallel",)),
    )(latent, w2, b2)


def upsample2x_nearest(x):
    # nn.Upsample(scale_factor=2, mode='nearest') on NHWC (XLA glue, fuses with pad).
    return jnp.repeat(jnp.repeat(x, 2, axis=1), 2, axis=2)


def _compose_post(dec_out, post1):
    # conv3x3(Cin->3) followed by 1x1(3->128) with no nonlinearity in between
    # is exactly a conv3x3(Cin->128) with composed weights/bias.
    wc = dec_out["w"].astype(jnp.float32)             # (9, Cin, 3)
    w1 = post1["w"].astype(jnp.float32)               # (3, 128)
    w_eff = jnp.einsum("kco,od->kcd", wc, w1).astype(jnp.bfloat16)
    b_eff = dec_out["b"] @ w1 + post1["b"]            # (1, 128) f32
    return w_eff, b_eff


# -------------------------- Parameters & forward --------------------------- #

def init_params(key, channels, channel_sizes, latent_dim):
    keys = iter(jax.random.split(key, 64))

    def conv_p(cin, cout):
        w = (jax.random.normal(next(keys), (9, cin, cout), jnp.float32)
             / math.sqrt(9 * cin)).astype(jnp.bfloat16)
        b = 0.01 * jax.random.normal(next(keys), (1, cout), jnp.float32)
        return {"w": w, "b": b}

    def bn_p(c):
        return {"gamma": jnp.ones((c,), jnp.float32),
                "beta": jnp.zeros((c,), jnp.float32)}

    def fc_p(din, dout):
        w = (jax.random.normal(next(keys), (din, dout), jnp.float32)
             / math.sqrt(din)).astype(jnp.bfloat16)
        b = 0.01 * jax.random.normal(next(keys), (1, dout), jnp.float32)
        return {"w": w, "b": b}

    params = {}
    enc, cin = [], channels
    for cout in channel_sizes:
        enc.append({**conv_p(cin, cout), **bn_p(cout)})
        cin = cout
    params["enc"] = enc

    c_last = channel_sizes[-1]
    params["fc1"] = fc_p(c_last * 4 * 4, latent_dim)
    params["fc2"] = fc_p(latent_dim, c_last * 4 * 4)

    dec = []
    for i in range(len(channel_sizes) - 1, 0, -1):
        dec.append({**conv_p(channel_sizes[i], channel_sizes[i - 1]),
                    **bn_p(channel_sizes[i - 1])})
    params["dec"] = dec
    params["dec_out"] = conv_p(channel_sizes[0], 3)   # 3x3, no BN / no ReLU
    params["post1"] = fc_p(3, 128)                    # 1x1 conv 3->128
    params["post2"] = fc_p(128, 3)                    # 1x1 conv 128->3
    return params


def conv_autoencoder_forward(params, x_nchw, noise_key):
    n = x_nchw.shape[0]
    x = jnp.transpose(x_nchw, (0, 2, 3, 1)).astype(jnp.float32)  # NCHW -> NHWC
    h, wd = x.shape[1], x.shape[2]

    # encoder: [Conv3x3 -> BN -> ReLU -> MaxPool2x2]*L; each layer's fused
    # pool kernel emits the zero-padded flat layout the next conv reads directly.
    xpf = _pad_flatten(x)
    for blk in params["enc"]:
        xpf = conv_bn_relu_pool(xpf, h, wd, blk["w"], blk["b"],
                                blk["gamma"], blk["beta"])
        h, wd = h // 2, wd // 2

    # extract the (4,4) center from the padded-flat encoder output; flatten in
    # (C, H, W) order to match torch's .view on an NCHW tensor.
    c_last = params["enc"][-1]["w"].shape[-1]
    enc = xpf.reshape(n, h + 3, wd + 2, c_last)[:, 1:1 + h, 1:1 + wd, :]
    flat = jnp.transpose(enc, (0, 3, 1, 2)).reshape(n, -1).astype(jnp.bfloat16)

    latent_dim = params["fc1"]["w"].shape[1]
    # TODO(synk): noise could be generated in-kernel with pltpu.prng_seed /
    # stateful_normal; kept as a (tiny) host-side input for robustness.
    noise = jax.random.normal(noise_key, (n, latent_dim), jnp.float32)
    latent = fc1_noise(flat, params["fc1"]["w"], params["fc1"]["b"], noise)
    hdec = fc2_relu(latent, params["fc2"]["w"], params["fc2"]["b"])

    x = hdec.reshape(n, c_last, h, wd)        # matches torch .view(B, -1, 4, 4)
    x = jnp.transpose(x, (0, 2, 3, 1))        # NCHW -> NHWC (bf16)

    for blk in params["dec"]:
        x = upsample2x_nearest(x)
        h, wd = h * 2, wd * 2
        xpf = _pad_flatten(x.astype(jnp.float32))
        x = conv_bn_relu(xpf, h, wd, blk["w"], blk["b"], blk["gamma"], blk["beta"])

    x = upsample2x_nearest(x)
    h, wd = h * 2, wd * 2
    xpf = _pad_flatten(x.astype(jnp.float32))
    w_eff, b_eff = _compose_post(params["dec_out"], params["post1"])
    x = conv_post(xpf, h, wd, w_eff, b_eff,
                  params["post2"]["w"], params["post2"]["b"])

    x = jnp.transpose(x, (0, 3, 1, 2))        # NHWC -> NCHW
    return x, latent


# ---------------------------------- main ----------------------------------- #

if __name__ == "__main__":
    key = jax.random.PRNGKey(0)
    k_param, k_in, k_noise = jax.random.split(key, 3)

    # fc1 hard-codes a 4x4 spatial bottleneck, so with 2 pooling stages the
    # input spatial size must be 4 * 2**2 = 16.
    channels = 3
    channel_sizes = (8, 16)   # small stand-in for the default [16, 32, 64, 128, 256]
    latent_dim = 32           # small stand-in for the default 2048
    spatial = 4 * (2 ** len(channel_sizes))

    params = init_params(k_param, channels, channel_sizes, latent_dim)
    x = jax.random.normal(k_in, (2, channels, spatial, spatial), jnp.float32)

    fwd = jax.jit(conv_autoencoder_forward)
    recon, latent = fwd(params, x, k_noise)
    jax.block_until_ready((recon, latent))

    assert recon.shape == (2, 3, spatial, spatial), recon.shape
    assert latent.shape == (2, latent_dim), latent.shape
    assert bool(jnp.all(jnp.isfinite(recon))) and bool(jnp.all(jnp.isfinite(latent)))
    print("KERNEL_OK")
</pallas_src>

<mosaic_0001>
module attributes {stable_mosaic.version = 11 : i64} {
  func.func @_bn_relu_pool_pad_kernel(%arg0: i32, %arg1: memref<1x288x8xbf16, #tpu.memory_space<vmem>>, %arg2: memref<1x8xf32, #tpu.memory_space<vmem>>, %arg3: memref<1x8xf32, #tpu.memory_space<vmem>>, %arg4: memref<1x110x8xf32, #tpu.memory_space<vmem>>, %arg5: memref<288x8xf32, #tpu.memory_space<vmem>>) attributes {dimension_semantics = [#tpu.dimension_semantics<parallel>], iteration_bounds = array<i64: 2>, scalar_prefetch = 0 : i64, scratch_operands = 1 : i64, tpu.core_type = #tpu.core_type<tc>, window_params = [{transform_indices = @transform_0, window_bounds = array<i64: 1, 288, 8>}, {pipeline_mode = #tpu.pipeline_mode<synchronous>, transform_indices = @transform_1, window_bounds = array<i64: 1, 8>}, {pipeline_mode = #tpu.pipeline_mode<synchronous>, transform_indices = @transform_2, window_bounds = array<i64: 1, 8>}, {transform_indices = @transform_3, window_bounds = array<i64: 1, 110, 8>}]} {
    %c0 = arith.constant 0 : index
    %c0_0 = arith.constant 0 : index
    %c0_1 = arith.constant 0 : index
    %0 = vector.load %arg1[%c0, %c0_0, %c0_1] : memref<1x288x8xbf16, #tpu.memory_space<vmem>>, vector<1x288x8xbf16>
    %1 = vector.shape_cast %0 : vector<1x288x8xbf16> to vector<288x8xbf16>
    %2 = arith.extf %1 : vector<288x8xbf16> to vector<288x8xf32>
    %c0_2 = arith.constant 0 : index
    %c0_3 = arith.constant 0 : index
    %3 = vector.load %arg2[%c0_2, %c0_3] : memref<1x8xf32, #tpu.memory_space<vmem>>, vector<1x8xf32>
    %4 = vector.broadcast %3 : vector<1x8xf32> to vector<288x8xf32>
    %5 = arith.mulf %2, %4 : vector<288x8xf32>
    %c0_4 = arith.constant 0 : index
    %c0_5 = arith.constant 0 : index
    %6 = vector.load %arg3[%c0_4, %c0_5] : memref<1x8xf32, #tpu.memory_space<vmem>>, vector<1x8xf32>
    %7 = vector.broadcast %6 : vector<1x8xf32> to vector<288x8xf32>
    %8 = arith.addf %5, %7 : vector<288x8xf32>
    %cst = arith.constant 0.000000e+00 : f32
    %9 = vector.broadcast %cst : f32 to vector<288x8xf32>
    %10 = arith.maximumf %8, %9 : vector<288x8xf32>
    %c0_6 = arith.constant 0 : index
    %c0_7 = arith.constant 0 : index
    %11 = vector.load %arg5[%c0_6, %c0_7] : memref<288x8xf32, #tpu.memory_space<vmem>>, vector<288x8xf32>
    tpu.vector_store %arg5[%c0_6, %c0_7], %10 {strides = array<i32>} : memref<288x8xf32, #tpu.memory_space<vmem>>, vector<288x8xf32>,
    %cst_8 = arith.constant 0.000000e+00 : f32
    %12 = vector.broadcast %cst_8 : f32 to vector<110x8xf32>
    %c0_9 = arith.constant 0 : index
    %c0_10 = arith.constant 0 : index
    %c0_11 = arith.constant 0 : index
    %13 = vector.load %arg4[%c0_9, %c0_10, %c0_11] : memref<1x110x8xf32, #tpu.memory_space<vmem>>, vector<1x110x8xf32>
    %14 = vector.shape_cast %13 : vector<1x110x8xf32> to vector<110x8xf32>
    %15 = vector.shape_cast %12 : vector<110x8xf32> to vector<1x110x8xf32>
    tpu.vector_store %arg4[%c0_9, %c0_10, %c0_11], %15 {strides = array<i32>} : memref<1x110x8xf32, #tpu.memory_space<vmem>>, vector<1x110x8xf32>,
    %c0_12 = arith.constant 0 : index
    %c0_13 = arith.constant 0 : index
    %16 = tpu.strided_load %arg5[%c0_12, %c0_13] {strides = array<i32: 2, 1>} : memref<288x8xf32, #tpu.memory_space<vmem>>, vector<8x8xf32>
    %c1 = arith.constant 1 : index
    %c0_14 = arith.constant 0 : index
    %17 = tpu.strided_load %arg5[%c1, %c0_14] {strides = array<i32: 2, 1>} : memref<288x8xf32, #tpu.memory_space<vmem>>, vector<8x8xf32>
    %c18 = arith.constant 18 : index
    %c0_15 = arith.constant 0 : index
    %18 = tpu.strided_load %arg5[%c18, %c0_15] {strides = array<i32: 2, 1>} : memref<288x8xf32, #tpu.memory_space<vmem>>, vector<8x8xf32>
    %c19 = arith.constant 19 : index
    %c0_16 = arith.constant 0 : index
    %19 = tpu.strided_load %arg5[%c19, %c0_16] {strides = array<i32: 2, 1>} : memref<288x8xf32, #tpu.memory_space<vmem>>, vector<8x8xf32>
    %20 = arith.maximumf %16, %17 : vector<8x8xf32>
    %21 = arith.maximumf %18, %19 : vector<8x8xf32>
    %22 = arith.maximumf %20, %21 : vector<8x8xf32>
    %c0_17 = arith.constant 0 : index
    %c11 = arith.constant 11 : index
    %c0_18 = arith.constant 0 : index
    %23 = vector.load %arg4[%c0_17, %c11, %c0_18] : memref<1x110x8xf32, #tpu.memory_space<vmem>>, vector<1x8x8xf32>
    %24 = vector.shape_cast %23 : vector<1x8x8xf32> to vector<8x8xf32>
    %25 = vector.shape_cast %22 : vector<8x8xf32> to vector<1x8x8xf32>
    tpu.vector_store %arg4[%c0_17, %c11, %c0_18], %25 {strides = array<i32>} : memref<1x110x8xf32, #tpu.memory_space<vmem>>, vector<1x8x8xf32>,
    %c36 = arith.constant 36 : index
    %c0_19 = arith.constant 0 : index
    %26 = tpu.strided_load %arg5[%c36, %c0_19] {strides = array<i32: 2, 1>} : memref<288x8xf32, #tpu.memory_space<vmem>>, vector<8x8xf32>
    %c37 = arith.constant 37 : index
    %c0_20 = arith.constant 0 : index
    %27 = tpu.strided_load %arg5[%c37, %c0_20] {strides = array<i32: 2, 1>} : memref<288x8xf32, #tpu.memory_space<vmem>>, vector<8x8xf32>
    %c54 = arith.constant 54 : index
    %c0_21 = arith.constant 0 : index
    %28 = tpu.strided_load %arg5[%c54, %c0_21] {strides = array<i32: 2, 1>} : memref<288x8xf32, #tpu.memory_space<vmem>>, vector<8x8xf32>
    %c55 = arith.constant 55 : index
    %c0_22 = arith.constant 0 : index
    %29 = tpu.strided_load %arg5[%c55, %c0_22] {strides = array<i32: 2, 1>} : memref<288x8xf32, #tpu.memory_space<vmem>>, vector<8x8xf32>
    %30 = arith.maximumf %26, %27 : vector<8x8xf32>
    %31 = arith.maximumf %28, %29 : vector<8x8xf32>
    %32 = arith.maximumf %30, %31 : vector<8x8xf32>
    %c0_23 = arith.constant 0 : index
    %c21 = arith.constant 21 : index
    %c0_24 = arith.constant 0 : index
    %33 = vector.load %arg4[%c0_23, %c21, %c0_24] : memref<1x110x8xf32, #tpu.memory_space<vmem>>, vector<1x8x8xf32>
    %34 = vector.shape_cast %33 : vector<1x8x8xf32> to vector<8x8xf32>
    %35 = vector.shape_cast %32 : vector<8x8xf32> to vector<1x8x8xf32>
    tpu.vector_store %arg4[%c0_23, %c21, %c0_24], %35 {strides = array<i32>} : memref<1x110x8xf32, #tpu.memory_space<vmem>>, vector<1x8x8xf32>,
    %c72 = arith.constant 72 : index
    %c0_25 = arith.constant 0 : index
    %36 = tpu.strided_load %arg5[%c72, %c0_25] {strides = array<i32: 2, 1>} : memref<288x8xf32, #tpu.memory_space<vmem>>, vector<8x8xf32>
    %c73 = arith.constant 73 : index
    %c0_26 = arith.constant 0 : index
    %37 = tpu.strided_load %arg5[%c73, %c0_26] {strides = array<i32: 2, 1>} : memref<288x8xf32, #tpu.memory_space<vmem>>, vector<8x8xf32>
    %c90 = arith.constant 90 : index
    %c0_27 = arith.constant 0 : index
    %38 = tpu.strided_load %arg5[%c90, %c0_27] {strides = array<i32: 2, 1>} : memref<288x8xf32, #tpu.memory_space<vmem>>, vector<8x8xf32>
    %c91 = arith.constant 91 : index
    %c0_28 = arith.constant 0 : index
    %39 = tpu.strided_load %arg5[%c91, %c0_28] {strides = array<i32: 2, 1>} : memref<288x8xf32, #tpu.memory_space<vmem>>, vector<8x8xf32>
    %40 = arith.maximumf %36, %37 : vector<8x8xf32>
    %41 = arith.maximumf %38, %39 : vector<8x8xf32>
    %42 = arith.maximumf %40, %41 : vector<8x8xf32>
    %c0_29 = arith.constant 0 : index
    %c31 = arith.constant 31 : index
    %c0_30 = arith.constant 0 : index
    %43 = vector.load %arg4[%c0_29, %c31, %c0_30] : memref<1x110x8xf32, #tpu.memory_space<vmem>>, vector<1x8x8xf32>
    %44 = vector.shape_cast %43 : vector<1x8x8xf32> to vector<8x8xf32>
    %45 = vector.shape_cast %42 : vector<8x8xf32> to vector<1x8x8xf32>
    tpu.vector_store %arg4[%c0_29, %c31, %c0_30], %45 {strides = array<i32>} : memref<1x110x8xf32, #tpu.memory_space<vmem>>, vector<1x8x8xf32>,
    %c108 = arith.constant 108 : index
    %c0_31 = arith.constant 0 : index
    %46 = tpu.strided_load %arg5[%c108, %c0_31] {strides = array<i32: 2, 1>} : memref<288x8xf32, #tpu.memory_space<vmem>>, vector<8x8xf32>
    %c109 = arith.constant 109 : index
    %c0_32 = arith.constant 0 : index
    %47 = tpu.strided_load %arg5[%c109, %c0_32] {strides = array<i32: 2, 1>} : memref<288x8xf32, #tpu.memory_space<vmem>>, vector<8x8xf32>
    %c126 = arith.constant 126 : index
    %c0_33 = arith.constant 0 : index
    %48 = tpu.strided_load %arg5[%c126, %c0_33] {strides = array<i32: 2, 1>} : memref<288x8xf32, #tpu.memory_space<vmem>>, vector<8x8xf32>
    %c127 = arith.constant 127 : index
    %c0_34 = arith.constant 0 : index
    %49 = tpu.strided_load %arg5[%c127, %c0_34] {strides = array<i32: 2, 1>} : memref<288x8xf32, #tpu.memory_space<vmem>>, vector<8x8xf32>
    %50 = arith.maximumf %46, %47 : vector<8x8xf32>
    %51 = arith.maximumf %48, %49 : vector<8x8xf32>
    %52 = arith.maximumf %50, %51 : vector<8x8xf32>
    %c0_35 = arith.constant 0 : index
    %c41 = arith.constant 41 : index
    %c0_36 = arith.constant 0 : index
    %53 = vector.load %arg4[%c0_35, %c41, %c0_36] : memref<1x110x8xf32, #tpu.memory_space<vmem>>, vector<1x8x8xf32>
    %54 = vector.shape_cast %53 : vector<1x8x8xf32> to vector<8x8xf32>
    %55 = vector.shape_cast %52 : vector<8x8xf32> to vector<1x8x8xf32>
    tpu.vector_store %arg4[%c0_35, %c41, %c0_36], %55 {strides = array<i32>} : memref<1x110x8xf32, #tpu.memory_space<vmem>>, vector<1x8x8xf32>,
    %c144 = arith.constant 144 : index
    %c0_37 = arith.constant 0 : index
    %56 = tpu.strided_load %arg5[%c144, %c0_37] {strides = array<i32: 2, 1>} : memref<288x8xf32, #tpu.memory_space<vmem>>, vector<8x8xf32>
    %c145 = arith.constant 145 : index
    %c0_38 = arith.constant 0 : index
    %57 = tpu.strided_load %arg5[%c145, %c0_38] {strides = array<i32: 2, 1>} : memref<288x8xf32, #tpu.memory_space<vmem>>, vector<8x8xf32>
    %c162 = arith.constant 162 : index
    %c0_39 = arith.constant 0 : index
    %58 = tpu.strided_load %arg5[%c162, %c0_39] {strides = array<i32: 2, 1>} : memref<288x8xf32, #tpu.memory_space<vmem>>, vector<8x8xf32>
    %c163 = arith.constant 163 : index
    %c0_40 = arith.constant 0 : index
    %59 = tpu.strided_load %arg5[%c163, %c0_40] {strides = array<i32: 2, 1>} : memref<288x8xf32, #tpu.memory_space<vmem>>, vector<8x8xf32>
    %60 = arith.maximumf %56, %57 : vector<8x8xf32>
    %61 = arith.maximumf %58, %59 : vector<8x8xf32>
    %62 = arith.maximumf %60, %61 : vector<8x8xf32>
    %c0_41 = arith.constant 0 : index
    %c51 = arith.constant 51 : index
    %c0_42 = arith.constant 0 : index
    %63 = vector.load %arg4[%c0_41, %c51, %c0_42] : memref<1x110x8xf32, #tpu.memory_space<vmem>>, vector<1x8x8xf32>
    %64 = vector.shape_cast %63 : vector<1x8x8xf32> to vector<8x8xf32>
    %65 = vector.shape_cast %62 : vector<8x8xf32> to vector<1x8x8xf32>
    tpu.vector_store %arg4[%c0_41, %c51, %c0_42], %65 {strides = array<i32>} : memref<1x110x8xf32, #tpu.memory_space<vmem>>, vector<1x8x8xf32>,
    %c180 = arith.constant 180 : index
    %c0_43 = arith.constant 0 : index
    %66 = tpu.strided_load %arg5[%c180, %c0_43] {strides = array<i32: 2, 1>} : memref<288x8xf32, #tpu.memory_space<vmem>>, vector<8x8xf32>
    %c181 = arith.constant 181 : index
    %c0_44 = arith.constant 0 : index
    %67 = tpu.strided_load %arg5[%c181, %c0_44] {strides = array<i32: 2, 1>} : memref<288x8xf32, #tpu.memory_space<vmem>>, vector<8x8xf32>
    %c198 = arith.constant 198 : index
    %c0_45 = arith.constant 0 : index
    %68 = tpu.strided_load %arg5[%c198, %c0_45] {strides = array<i32: 2, 1>} : memref<288x8xf32, #tpu.memory_space<vmem>>, vector<8x8xf32>
    %c199 = arith.constant 199 : index
    %c0_46 = arith.constant 0 : index
    %69 = tpu.strided_load %arg5[%c199, %c0_46] {strides = array<i32: 2, 1>} : memref<288x8xf32, #tpu.memory_space<vmem>>, vector<8x8xf32>
    %70 = arith.maximumf %66, %67 : vector<8x8xf32>
    %71 = arith.maximumf %68, %69 : vector<8x8xf32>
    %72 = arith.maximumf %70, %71 : vector<8x8xf32>
    %c0_47 = arith.constant 0 : index
    %c61 = arith.constant 61 : index
    %c0_48 = arith.constant 0 : index
    %73 = vector.load %arg4[%c0_47, %c61, %c0_48] : memref<1x110x8xf32, #tpu.memory_space<vmem>>, vector<1x8x8xf32>
    %74 = vector.shape_cast %73 : vector<1x8x8xf32> to vector<8x8xf32>
    %75 = vector.shape_cast %72 : vector<8x8xf32> to vector<1x8x8xf32>
    tpu.vector_store %arg4[%c0_47, %c61, %c0_48], %75 {strides = array<i32>} : memref<1x110x8xf32, #tpu.memory_space<vmem>>, vector<1x8x8xf32>,
    %c216 = arith.constant 216 : index
    %c0_49 = arith.constant 0 : index
    %76 = tpu.strided_load %arg5[%c216, %c0_49] {strides = array<i32: 2, 1>} : memref<288x8xf32, #tpu.memory_space<vmem>>, vector<8x8xf32>
    %c217 = arith.constant 217 : index
    %c0_50 = arith.constant 0 : index
    %77 = tpu.strided_load %arg5[%c217, %c0_50] {strides = array<i32: 2, 1>} : memref<288x8xf32, #tpu.memory_space<vmem>>, vector<8x8xf32>
    %c234 = arith.constant 234 : index
    %c0_51 = arith.constant 0 : index
    %78 = tpu.strided_load %arg5[%c234, %c0_51] {strides = array<i32: 2, 1>} : memref<288x8xf32, #tpu.memory_space<vmem>>, vector<8x8xf32>
    %c235 = arith.constant 235 : index
    %c0_52 = arith.constant 0 : index
    %79 = tpu.strided_load %arg5[%c235, %c0_52] {strides = array<i32: 2, 1>} : memref<288x8xf32, #tpu.memory_space<vmem>>, vector<8x8xf32>
    %80 = arith.maximumf %76, %77 : vector<8x8xf32>
    %81 = arith.maximumf %78, %79 : vector<8x8xf32>
    %82 = arith.maximumf %80, %81 : vector<8x8xf32>
    %c0_53 = arith.constant 0 : index
    %c71 = arith.constant 71 : index
    %c0_54 = arith.constant 0 : index
    %83 = vector.load %arg4[%c0_53, %c71, %c0_54] : memref<1x110x8xf32, #tpu.memory_space<vmem>>, vector<1x8x8xf32>
    %84 = vector.shape_cast %83 : vector<1x8x8xf32> to vector<8x8xf32>
    %85 = vector.shape_cast %82 : vector<8x8xf32> to vector<1x8x8xf32>
    tpu.vector_store %arg4[%c0_53, %c71, %c0_54], %85 {strides = array<i32>} : memref<1x110x8xf32, #tpu.memory_space<vmem>>, vector<1x8x8xf32>,
    %c252 = arith.constant 252 : index
    %c0_55 = arith.constant 0 : index
    %86 = tpu.strided_load %arg5[%c252, %c0_55] {strides = array<i32: 2, 1>} : memref<288x8xf32, #tpu.memory_space<vmem>>, vector<8x8xf32>
    %c253 = arith.constant 253 : index
    %c0_56 = arith.constant 0 : index
    %87 = tpu.strided_load %arg5[%c253, %c0_56] {strides = array<i32: 2, 1>} : memref<288x8xf32, #tpu.memory_space<vmem>>, vector<8x8xf32>
    %c270 = arith.constant 270 : index
    %c0_57 = arith.constant 0 : index
    %88 = tpu.strided_load %arg5[%c270, %c0_57] {strides = array<i32: 2, 1>} : memref<288x8xf32, #tpu.memory_space<vmem>>, vector<8x8xf32>
    %c271 = arith.constant 271 : index
    %c0_58 = arith.constant 0 : index
    %89 = tpu.strided_load %arg5[%c271, %c0_58] {strides = array<i32: 2, 1>} : memref<288x8xf32, #tpu.memory_space<vmem>>, vector<8x8xf32>
    %90 = arith.maximumf %86, %87 : vector<8x8xf32>
    %91 = arith.maximumf %88, %89 : vector<8x8xf32>
    %92 = arith.maximumf %90, %91 : vector<8x8xf32>
    %c0_59 = arith.constant 0 : index
    %c81 = arith.constant 81 : index
    %c0_60 = arith.constant 0 : index
    %93 = vector.load %arg4[%c0_59, %c81, %c0_60] : memref<1x110x8xf32, #tpu.memory_space<vmem>>, vector<1x8x8xf32>
    %94 = vector.shape_cast %93 : vector<1x8x8xf32> to vector<8x8xf32>
    %95 = vector.shape_cast %92 : vector<8x8xf32> to vector<1x8x8xf32>
    tpu.vector_store %arg4[%c0_59, %c81, %c0_60], %95 {strides = array<i32>} : memref<1x110x8xf32, #tpu.memory_space<vmem>>, vector<1x8x8xf32>,
    return
  }
  func.func @transform_0(%arg0: i32) -> (i32, i32, i32) {
    %c0_i32 = arith.constant 0 : i32
    %c0_i32_0 = arith.constant 0 : i32
    %c0_i32_1 = arith.constant 0 : i32
    return %arg0, %c0_i32, %c0_i32_0 : i32, i32, i32
  }
  func.func @transform_1(%arg0: i32) -> (i32, i32) {
    %c0_i32 = arith.constant 0 : i32
    %c0_i32_0 = arith.constant 0 : i32
    %c0_i32_1 = arith.constant 0 : i32
    return %c0_i32, %c0_i32_0 : i32, i32
  }
  func.func @transform_2(%arg0: i32) -> (i32, i32) {
    %c0_i32 = arith.constant 0 : i32
    %c0_i32_0 = arith.constant 0 : i32
    %c0_i32_1 = arith.constant 0 : i32
    return %c0_i32, %c0_i32_0 : i32, i32
  }
  func.func @transform_3(%arg0: i32) -> (i32, i32, i32) {
    %c0_i32 = arith.constant 0 : i32
    %c0_i32_0 = arith.constant 0 : i32
    %c0_i32_1 = arith.constant 0 : i32
    return %arg0, %c0_i32, %c0_i32_0 : i32, i32, i32
  }
}

module attributes {stable_mosaic.version = 11 : i64} {
  func.func @_conv_stats_kernel(%arg0: i32, %arg1: i32, %arg2: memref<1x342x3xf32, #tpu.memory_space<vmem>>, %arg3: memref<9x3x8xbf16, #tpu.memory_space<vmem>>, %arg4: memref<1x8xf32, #tpu.memory_space<vmem>>, %arg5: memref<1x288x8xbf16, #tpu.memory_space<vmem>>, %arg6: memref<1x2x8xf32, #tpu.memory_space<vmem>>) attributes {dimension_semantics = [#tpu.dimension_semantics<parallel>, #tpu.dimension_semantics<parallel>], iteration_bounds = array<i64: 2, 1>, scalar_prefetch = 0 : i64, scratch_operands = 0 : i64, tpu.core_type = #tpu.core_type<tc>, window_params = [{transform_indices = @transform_0, window_bounds = array<i64: 1, 342, 3>}, {pipeline_mode = #tpu.pipeline_mode<synchronous>, transform_indices = @transform_1, window_bounds = array<i64: 9, 3, 8>}, {pipeline_mode = #tpu.pipeline_mode<synchronous>, transform_indices = @transform_2, window_bounds = array<i64: 1, 8>}, {transform_indices = @transform_3, window_bounds = array<i64: 1, 288, 8>}, {transform_indices = @transform_4, window_bounds = array<i64: 1, 2, 8>}]} {
    %c288_i32 = arith.constant 288 : i32
    %0 = arith.muli %arg1, %c288_i32 : i32
    %cst = arith.constant 0.000000e+00 : f32
    %1 = vector.broadcast %cst : f32 to vector<288x8xf32>
    %c0_i32 = arith.constant 0 : i32
    %2 = arith.addi %0, %c0_i32 : i32
    %c0_i32_0 = arith.constant 0 : i32
    %3 = arith.addi %2, %c0_i32_0 : i32
    %c0 = arith.constant 0 : index
    %4 = arith.index_cast %3 : i32 to index
    %c0_1 = arith.constant 0 : index
    %5 = vector.load %arg2[%c0, %4, %c0_1] : memref<1x342x3xf32, #tpu.memory_space<vmem>>, vector<1x288x3xf32>
    %6 = vector.shape_cast %5 : vector<1x288x3xf32> to vector<288x3xf32>
    %7 = arith.truncf %6 : vector<288x3xf32> to vector<288x3xbf16>
    %c0_2 = arith.constant 0 : index
    %c0_3 = arith.constant 0 : index
    %c0_4 = arith.constant 0 : index
    %8 = vector.load %arg3[%c0_2, %c0_3, %c0_4] : memref<9x3x8xbf16, #tpu.memory_space<vmem>>, vector<1x3x8xbf16>
    %9 = vector.shape_cast %8 : vector<1x3x8xbf16> to vector<3x8xbf16>
    %cst_5 = arith.constant dense<0.000000e+00> : vector<288x8xf32>
    %10 = tpu.matmul %7, %9, %cst_5 {dimension_numbers = #tpu.dot_dimension_numbers<[1], [0], [0], [1], [0, 0, 1, 1], [], []>} : vector<288x3xbf16>, vector<3x8xbf16>, vector<288x8xf32> -> vector<288x8xf32>
    %11 = arith.addf %1, %10 : vector<288x8xf32>
    %c0_i32_6 = arith.constant 0 : i32
    %12 = arith.addi %0, %c0_i32_6 : i32
    %c1_i32 = arith.constant 1 : i32
    %13 = arith.addi %12, %c1_i32 : i32
    %c0_7 = arith.constant 0 : index
    %14 = arith.index_cast %13 : i32 to index
    %c0_8 = arith.constant 0 : index
    %15 = vector.load %arg2[%c0_7, %14, %c0_8] : memref<1x342x3xf32, #tpu.memory_space<vmem>>, vector<1x288x3xf32>
    %16 = vector.shape_cast %15 : vector<1x288x3xf32> to vector<288x3xf32>
    %17 = arith.truncf %16 : vector<288x3xf32> to vector<288x3xbf16>
    %c1 = arith.constant 1 : index
    %c0_9 = arith.constant 0 : index
    %c0_10 = arith.constant 0 : index
    %18 = vector.load %arg3[%c1, %c0_9, %c0_10] : memref<9x3x8xbf16, #tpu.memory_space<vmem>>, vector<1x3x8xbf16>
    %19 = vector.shape_cast %18 : vector<1x3x8xbf16> to vector<3x8xbf16>
    %cst_11 = arith.constant dense<0.000000e+00> : vector<288x8xf32>
    %20 = tpu.matmul %17, %19, %cst_11 {dimension_numbers = #tpu.dot_dimension_numbers<[1], [0], [0], [1], [0, 0, 1, 1], [], []>} : vector<288x3xbf16>, vector<3x8xbf16>, vector<288x8xf32> -> vector<288x8xf32>
    %21 = arith.addf %11, %20 : vector<288x8xf32>
    %c0_i32_12 = arith.constant 0 : i32
    %22 = arith.addi %0, %c0_i32_12 : i32
    %c2_i32 = arith.constant 2 : i32
    %23 = arith.addi %22, %c2_i32 : i32
    %c0_13 = arith.constant 0 : index
    %24 = arith.index_cast %23 : i32 to index
    %c0_14 = arith.constant 0 : index
    %25 = vector.load %arg2[%c0_13, %24, %c0_14] : memref<1x342x3xf32, #tpu.memory_space<vmem>>, vector<1x288x3xf32>
    %26 = vector.shape_cast %25 : vector<1x288x3xf32> to vector<288x3xf32>
    %27 = arith.truncf %26 : vector<288x3xf32> to vector<288x3xbf16>
    %c2 = arith.constant 2 : index
    %c0_15 = arith.constant 0 : index
    %c0_16 = arith.constant 0 : index
    %28 = vector.load %arg3[%c2, %c0_15, %c0_16] : memref<9x3x8xbf16, #tpu.memory_space<vmem>>, vector<1x3x8xbf16>
    %29 = vector.shape_cast %28 : vector<1x3x8xbf16> to vector<3x8xbf16>
    %cst_17 = arith.constant dense<0.000000e+00> : vector<288x8xf32>
    %30 = tpu.matmul %27, %29, %cst_17 {dimension_numbers = #tpu.dot_dimension_numbers<[1], [0], [0], [1], [0, 0, 1, 1], [], []>} : vector<288x3xbf16>, vector<3x8xbf16>, vector<288x8xf32> -> vector<288x8xf32>
    %31 = arith.addf %21, %30 : vector<288x8xf32>
    %c18_i32 = arith.constant 18 : i32
    %32 = arith.addi %0, %c18_i32 : i32
    %c0_i32_18 = arith.constant 0 : i32
    %33 = arith.addi %32, %c0_i32_18 : i32
    %c0_19 = arith.constant 0 : index
    %34 = arith.index_cast %33 : i32 to index
    %c0_20 = arith.constant 0 : index
    %35 = vector.load %arg2[%c0_19, %34, %c0_20] : memref<1x342x3xf32, #tpu.memory_space<vmem>>, vector<1x288x3xf32>
    %36 = vector.shape_cast %35 : vector<1x288x3xf32> to vector<288x3xf32>
    %37 = arith.truncf %36 : vector<288x3xf32> to vector<288x3xbf16>
    %c3 = arith.constant 3 : index
    %c0_21 = arith.constant 0 : index
    %c0_22 = arith.constant 0 : index
    %38 = vector.load %arg3[%c3, %c0_21, %c0_22] : memref<9x3x8xbf16, #tpu.memory_space<vmem>>, vector<1x3x8xbf16>
    %39 = vector.shape_cast %38 : vector<1x3x8xbf16> to vector<3x8xbf16>
    %cst_23 = arith.constant dense<0.000000e+00> : vector<288x8xf32>
    %40 = tpu.matmul %37, %39, %cst_23 {dimension_numbers = #tpu.dot_dimension_numbers<[1], [0], [0], [1], [0, 0, 1, 1], [], []>} : vector<288x3xbf16>, vector<3x8xbf16>, vector<288x8xf32> -> vector<288x8xf32>
    %41 = arith.addf %31, %40 : vector<288x8xf32>
    %c18_i32_24 = arith.constant 18 : i32
    %42 = arith.addi %0, %c18_i32_24 : i32
    %c1_i32_25 = arith.constant 1 : i32
    %43 = arith.addi %42, %c1_i32_25 : i32
    %c0_26 = arith.constant 0 : index
    %44 = arith.index_cast %43 : i32 to index
    %c0_27 = arith.constant 0 : index
    %45 = vector.load %arg2[%c0_26, %44, %c0_27] : memref<1x342x3xf32, #tpu.memory_space<vmem>>, vector<1x288x3xf32>
    %46 = vector.shape_cast %45 : vector<1x288x3xf32> to vector<288x3xf32>
    %47 = arith.truncf %46 : vector<288x3xf32> to vector<288x3xbf16>
    %c4 = arith.constant 4 : index
    %c0_28 = arith.constant 0 : index
    %c0_29 = arith.constant 0 : index
    %48 = vector.load %arg3[%c4, %c0_28, %c0_29] : memref<9x3x8xbf16, #tpu.memory_space<vmem>>, vector<1x3x8xbf16>
    %49 = vector.shape_cast %48 : vector<1x3x8xbf16> to vector<3x8xbf16>
    %cst_30 = arith.constant dense<0.000000e+00> : vector<288x8xf32>
    %50 = tpu.matmul %47, %49, %cst_30 {dimension_numbers = #tpu.dot_dimension_numbers<[1], [0], [0], [1], [0, 0, 1, 1], [], []>} : vector<288x3xbf16>, vector<3x8xbf16>, vector<288x8xf32> -> vector<288x8xf32>
    %51 = arith.addf %41, %50 : vector<288x8xf32>
    %c18_i32_31 = arith.constant 18 : i32
    %52 = arith.addi %0, %c18_i32_31 : i32
    %c2_i32_32 = arith.constant 2 : i32
    %53 = arith.addi %52, %c2_i32_32 : i32
    %c0_33 = arith.constant 0 : index
    %54 = arith.index_cast %53 : i32 to index
    %c0_34 = arith.constant 0 : index
    %55 = vector.load %arg2[%c0_33, %54, %c0_34] : memref<1x342x3xf32, #tpu.memory_space<vmem>>, vector<1x288x3xf32>
    %56 = vector.shape_cast %55 : vector<1x288x3xf32> to vector<288x3xf32>
    %57 = arith.truncf %56 : vector<288x3xf32> to vector<288x3xbf16>
    %c5 = arith.constant 5 : index
    %c0_35 = arith.constant 0 : index
    %c0_36 = arith.constant 0 : index
    %58 = vector.load %arg3[%c5, %c0_35, %c0_36] : memref<9x3x8xbf16, #tpu.memory_space<vmem>>, vector<1x3x8xbf16>
    %59 = vector.shape_cast %58 : vector<1x3x8xbf16> to vector<3x8xbf16>
    %cst_37 = arith.constant dense<0.000000e+00> : vector<288x8xf32>
    %60 = tpu.matmul %57, %59, %cst_37 {dimension_numbers = #tpu.dot_dimension_numbers<[1], [0], [0], [1], [0, 0, 1, 1], [], []>} : vector<288x3xbf16>, vector<3x8xbf16>, vector<288x8xf32> -> vector<288x8xf32>
    %61 = arith.addf %51, %60 : vector<288x8xf32>
    %c36_i32 = arith.constant 36 : i32
    %62 = arith.addi %0, %c36_i32 : i32
    %c0_i32_38 = arith.constant 0 : i32
    %63 = arith.addi %62, %c0_i32_38 : i32
    %c0_39 = arith.constant 0 : index
    %64 = arith.index_cast %63 : i32 to index
    %c0_40 = arith.constant 0 : index
    %65 = vector.load %arg2[%c0_39, %64, %c0_40] : memref<1x342x3xf32, #tpu.memory_space<vmem>>, vector<1x288x3xf32>
    %66 = vector.shape_cast %65 : vector<1x288x3xf32> to vector<288x3xf32>
    %67 = arith.truncf %66 : vector<288x3xf32> to vector<288x3xbf16>
    %c6 = arith.constant 6 : index
    %c0_41 = arith.constant 0 : index
    %c0_42 = arith.constant 0 : index
    %68 = vector.load %arg3[%c6, %c0_41, %c0_42] : memref<9x3x8xbf16, #tpu.memory_space<vmem>>, vector<1x3x8xbf16>
    %69 = vector.shape_cast %68 : vector<1x3x8xbf16> to vector<3x8xbf16>
    %cst_43 = arith.constant dense<0.000000e+00> : vector<288x8xf32>
    %70 = tpu.matmul %67, %69, %cst_43 {dimension_numbers = #tpu.dot_dimension_numbers<[1], [0], [0], [1], [0, 0, 1, 1], [], []>} : vector<288x3xbf16>, vector<3x8xbf16>, vector<288x8xf32> -> vector<288x8xf32>
    %71 = arith.addf %61, %70 : vector<288x8xf32>
    %c36_i32_44 = arith.constant 36 : i32
    %72 = arith.addi %0, %c36_i32_44 : i32
    %c1_i32_45 = arith.constant 1 : i32
    %73 = arith.addi %72, %c1_i32_45 : i32
    %c0_46 = arith.constant 0 : index
    %74 = arith.index_cast %73 : i32 to index
    %c0_47 = arith.constant 0 : index
    %75 = vector.load %arg2[%c0_46, %74, %c0_47] : memref<1x342x3xf32, #tpu.memory_space<vmem>>, vector<1x288x3xf32>
    %76 = vector.shape_cast %75 : vector<1x288x3xf32> to vector<288x3xf32>
    %77 = arith.truncf %76 : vector<288x3xf32> to vector<288x3xbf16>
    %c7 = arith.constant 7 : index
    %c0_48 = arith.constant 0 : index
    %c0_49 = arith.constant 0 : index
    %78 = vector.load %arg3[%c7, %c0_48, %c0_49] : memref<9x3x8xbf16, #tpu.memory_space<vmem>>, vector<1x3x8xbf16>
    %79 = vector.shape_cast %78 : vector<1x3x8xbf16> to vector<3x8xbf16>
    %cst_50 = arith.constant dense<0.000000e+00> : vector<288x8xf32>
    %80 = tpu.matmul %77, %79, %cst_50 {dimension_numbers = #tpu.dot_dimension_numbers<[1], [0], [0], [1], [0, 0, 1, 1], [], []>} : vector<288x3xbf16>, vector<3x8xbf16>, vector<288x8xf32> -> vector<288x8xf32>
    %81 = arith.addf %71, %80 : vector<288x8xf32>
    %c36_i32_51 = arith.constant 36 : i32
    %82 = arith.addi %0, %c36_i32_51 : i32
    %c2_i32_52 = arith.constant 2 : i32
    %83 = arith.addi %82, %c2_i32_52 : i32
    %c0_53 = arith.constant 0 : index
    %84 = arith.index_cast %83 : i32 to index
    %c0_54 = arith.constant 0 : index
    %85 = vector.load %arg2[%c0_53, %84, %c0_54] : memref<1x342x3xf32, #tpu.memory_space<vmem>>, vector<1x288x3xf32>
    %86 = vector.shape_cast %85 : vector<1x288x3xf32> to vector<288x3xf32>
    %87 = arith.truncf %86 : vector<288x3xf32> to vector<288x3xbf16>
    %c8 = arith.constant 8 : index
    %c0_55 = arith.constant 0 : index
    %c0_56 = arith.constant 0 : index
    %88 = vector.load %arg3[%c8, %c0_55, %c0_56] : memref<9x3x8xbf16, #tpu.memory_space<vmem>>, vector<1x3x8xbf16>
    %89 = vector.shape_cast %88 : vector<1x3x8xbf16> to vector<3x8xbf16>
    %cst_57 = arith.constant dense<0.000000e+00> : vector<288x8xf32>
    %90 = tpu.matmul %87, %89, %cst_57 {dimension_numbers = #tpu.dot_dimension_numbers<[1], [0], [0], [1], [0, 0, 1, 1], [], []>} : vector<288x3xbf16>, vector<3x8xbf16>, vector<288x8xf32> -> vector<288x8xf32>
    %91 = arith.addf %81, %90 : vector<288x8xf32>
    %c0_58 = arith.constant 0 : index
    %c0_59 = arith.constant 0 : index
    %92 = vector.load %arg4[%c0_58, %c0_59] : memref<1x8xf32, #tpu.memory_space<vmem>>, vector<1x8xf32>
    %93 = vector.broadcast %92 : vector<1x8xf32> to vector<288x8xf32>
    %94 = arith.addf %91, %93 : vector<288x8xf32>
    %95 = arith.truncf %94 : vector<288x8xf32> to vector<288x8xbf16>
    %c0_60 = arith.constant 0 : index
    %c0_61 = arith.constant 0 : index
    %c0_62 = arith.constant 0 : index
    %96 = vector.load %arg5[%c0_60, %c0_61, %c0_62] : memref<1x288x8xbf16, #tpu.memory_space<vmem>>, vector<1x288x8xbf16>
    %97 = vector.shape_cast %96 : vector<1x288x8xbf16> to vector<288x8xbf16>
    %98 = vector.shape_cast %95 : vector<288x8xbf16> to vector<1x288x8xbf16>
    tpu.vector_store %arg5[%c0_60, %c0_61, %c0_62], %98 {strides = array<i32>} : memref<1x288x8xbf16, #tpu.memory_space<vmem>>, vector<1x288x8xbf16>,
    %99 = tpu.iota {dimensions = array<i32: 0>} : vector<288x1xi32>
    %c18_i32_63 = arith.constant 18 : i32
    %c0_i32_64 = arith.constant 0 : i32
    %100 = arith.cmpi eq, %c18_i32_63, %c0_i32_64 : i32
    %c1_i32_65 = arith.constant 1 : i32
    %101 = arith.select %100, %c1_i32_65, %c18_i32_63 : i32
    %102 = vector.broadcast %101 : i32 to vector<288x1xi32>
    %103 = arith.remsi %99, %102 : vector<288x1xi32>
    %c0_i32_66 = arith.constant 0 : i32
    %104 = vector.broadcast %c0_i32_66 : i32 to vector<288x1xi32>
    %105 = arith.cmpi ne, %103, %104 : vector<288x1xi32>
    %c0_i32_67 = arith.constant 0 : i32
    %106 = vector.broadcast %c0_i32_67 : i32 to vector<288x1xi32>
    %107 = arith.cmpi slt, %103, %106 : vector<288x1xi32>
    %c0_i32_68 = arith.constant 0 : i32
    %108 = arith.cmpi slt, %101, %c0_i32_68 : i32
    %109 = vector.broadcast %108 : i1 to vector<288x1xi1>
    %110 = vector.broadcast %109 : vector<288x1xi1> to vector<288x1xi1>
    %111 = arith.xori %107, %110 : vector<288x1xi1>
    %112 = arith.andi %111, %105 : vector<288x1xi1>
    %113 = vector.broadcast %101 : i32 to vector<288x1xi32>
    %114 = arith.addi %103, %113 : vector<288x1xi32>
    %115 = arith.select %112, %114, %103 : vector<288x1xi1>, vector<288x1xi32>
    %c16_i32 = arith.constant 16 : i32
    %116 = vector.broadcast %c16_i32 : i32 to vector<288x1xi32>
    %117 = arith.cmpi slt, %115, %116 : vector<288x1xi32>
    %cst_69 = arith.constant 0.000000e+00 : f32
    %118 = vector.shape_cast %117 : vector<288x1xi1> to vector<288x1xi1>
    %119 = vector.broadcast %118 : vector<288x1xi1> to vector<288x8xi1>
    %120 = vector.broadcast %cst_69 : f32 to vector<288x8xf32>
    %121 = arith.select %119, %94, %120 : vector<288x8xi1>, vector<288x8xf32>
    %cst_70 = arith.constant dense<0.000000e+00> : vector<8xf32>
    %122 = vector.multi_reduction <add>, %121, %cst_70 [0] : vector<288x8xf32> to vector<8xf32>
    %123 = vector.shape_cast %122 : vector<8xf32> to vector<1x8xf32>
    %c0_71 = arith.constant 0 : index
    %c0_72 = arith.constant 0 : index
    %c0_73 = arith.constant 0 : index
    %124 = vector.load %arg6[%c0_71, %c0_72, %c0_73] : memref<1x2x8xf32, #tpu.memory_space<vmem>>, vector<1x1x8xf32>
    %125 = vector.shape_cast %124 : vector<1x1x8xf32> to vector<1x8xf32>
    %126 = vector.shape_cast %123 : vector<1x8xf32> to vector<1x1x8xf32>
    tpu.vector_store %arg6[%c0_71, %c0_72, %c0_73], %126 {strides = array<i32>} : memref<1x2x8xf32, #tpu.memory_space<vmem>>, vector<1x1x8xf32>,
    %127 = arith.mulf %121, %121 : vector<288x8xf32>
    %cst_74 = arith.constant dense<0.000000e+00> : vector<8xf32>
    %128 = vector.multi_reduction <add>, %127, %cst_74 [0] : vector<288x8xf32> to vector<8xf32>
    %129 = vector.shape_cast %128 : vector<8xf32> to vector<1x8xf32>
    %c0_75 = arith.constant 0 : index
    %c1_76 = arith.constant 1 : index
    %c0_77 = arith.constant 0 : index
    %130 = vector.load %arg6[%c0_75, %c1_76, %c0_77] : memref<1x2x8xf32, #tpu.memory_space<vmem>>, vector<1x1x8xf32>
    %131 = vector.shape_cast %130 : vector<1x1x8xf32> to vector<1x8xf32>
    %132 = vector.shape_cast %129 : vector<1x8xf32> to vector<1x1x8xf32>
    tpu.vector_store %arg6[%c0_75, %c1_76, %c0_77], %132 {strides = array<i32>} : memref<1x2x8xf32, #tpu.memory_space<vmem>>, vector<1x1x8xf32>,
    return
  }
  func.func @transform_0(%arg0: i32, %arg1: i32) -> (i32, i32, i32) {
    %c0_i32 = arith.constant 0 : i32
    %c0_i32_0 = arith.constant 0 : i32
    %c0_i32_1 = arith.constant 0 : i32
    return %arg0, %c0_i32, %c0_i32_0 : i32, i32, i32
  }
  func.func @transform_1(%arg0: i32, %arg1: i32) -> (i32, i32, i32) {
    %c0_i32 = arith.constant 0 : i32
    %c0_i32_0 = arith.constant 0 : i32
    %c0_i32_1 = arith.constant 0 : i32
    %c0_i32_2 = arith.constant 0 : i32
    return %c0_i32, %c0_i32_0, %c0_i32_1 : i32, i32, i32
  }
  func.func @transform_2(%arg0: i32, %arg1: i32) -> (i32, i32) {
    %c0_i32 = arith.constant 0 : i32
    %c0_i32_0 = arith.constant 0 : i32
    %c0_i32_1 = arith.constant 0 : i32
    return %c0_i32, %c0_i32_0 : i32, i32
  }
  func.func @transform_3(%arg0: i32, %arg1: i32) -> (i32, i32, i32) {
    %c0_i32 = arith.constant 0 : i32
    %c0_i32_0 = arith.constant 0 : i32
    return %arg0, %arg1, %c0_i32 : i32, i32, i32
  }
  func.func @transform_4(%arg0: i32, %arg1: i32) -> (i32, i32, i32) {
    %c1_i32 = arith.constant 1 : i32
    %0 = arith.muli %arg0, %c1_i32 : i32
    %1 = arith.addi %0, %arg1 : i32
    %c0_i32 = arith.constant 0 : i32
    %c0_i32_0 = arith.constant 0 : i32
    %c0_i32_1 = arith.constant 0 : i32
    return %1, %c0_i32, %c0_i32_0 : i32, i32, i32
  }
}

module attributes {stable_mosaic.version = 11 : i64} {
  func.func @_conv_stats_kernel(%arg0: i32, %arg1: i32, %arg2: memref<1x110x8xf32, #tpu.memory_space<vmem>>, %arg3: memref<9x8x16xbf16, #tpu.memory_space<vmem>>, %arg4: memref<1x16xf32, #tpu.memory_space<vmem>>, %arg5: memref<1x80x16xbf16, #tpu.memory_space<vmem>>, %arg6: memref<1x2x16xf32, #tpu.memory_space<vmem>>) attributes {dimension_semantics = [#tpu.dimension_semantics<parallel>, #tpu.dimension_semantics<parallel>], iteration_bounds = array<i64: 2, 1>, scalar_prefetch = 0 : i64, scratch_operands = 0 : i64, tpu.core_type = #tpu.core_type<tc>, window_params = [{transform_indices = @transform_0, window_bounds = array<i64: 1, 110, 8>}, {pipeline_mode = #tpu.pipeline_mode<synchronous>, transform_indices = @transform_1, window_bounds = array<i64: 9, 8, 16>}, {pipeline_mode = #tpu.pipeline_mode<synchronous>, transform_indices = @transform_2, window_bounds = array<i64: 1, 16>}, {transform_indices = @transform_3, window_bounds = array<i64: 1, 80, 16>}, {transform_indices = @transform_4, window_bounds = array<i64: 1, 2, 16>}]} {
    %c80_i32 = arith.constant 80 : i32
    %0 = arith.muli %arg1, %c80_i32 : i32
    %cst = arith.constant 0.000000e+00 : f32
    %1 = vector.broadcast %cst : f32 to vector<80x16xf32>
    %c0_i32 = arith.constant 0 : i32
    %2 = arith.addi %0, %c0_i32 : i32
    %c0_i32_0 = arith.constant 0 : i32
    %3 = arith.addi %2, %c0_i32_0 : i32
    %c0 = arith.constant 0 : index
    %4 = arith.index_cast %3 : i32 to index
    %c0_1 = arith.constant 0 : index
    %5 = vector.load %arg2[%c0, %4, %c0_1] : memref<1x110x8xf32, #tpu.memory_space<vmem>>, vector<1x80x8xf32>
    %6 = vector.shape_cast %5 : vector<1x80x8xf32> to vector<80x8xf32>
    %7 = arith.truncf %6 : vector<80x8xf32> to vector<80x8xbf16>
    %c0_2 = arith.constant 0 : index
    %c0_3 = arith.constant 0 : index
    %c0_4 = arith.constant 0 : index
    %8 = vector.load %arg3[%c0_2, %c0_3, %c0_4] : memref<9x8x16xbf16, #tpu.memory_space<vmem>>, vector<1x8x16xbf16>
    %9 = vector.shape_cast %8 : vector<1x8x16xbf16> to vector<8x16xbf16>
    %cst_5 = arith.constant dense<0.000000e+00> : vector<80x16xf32>
    %10 = tpu.matmul %7, %9, %cst_5 {dimension_numbers = #tpu.dot_dimension_numbers<[1], [0], [0], [1], [0, 0, 1, 1], [], []>} : vector<80x8xbf16>, vector<8x16xbf16>, vector<80x16xf32> -> vector<80x16xf32>
    %11 = arith.addf %1, %10 : vector<80x16xf32>
    %c0_i32_6 = arith.constant 0 : i32
    %12 = arith.addi %0, %c0_i32_6 : i32
    %c1_i32 = arith.constant 1 : i32
    %13 = arith.addi %12, %c1_i32 : i32
    %c0_7 = arith.constant 0 : index
    %14 = arith.index_cast %13 : i32 to index
    %c0_8 = arith.constant 0 : index
    %15 = vector.load %arg2[%c0_7, %14, %c0_8] : memref<1x110x8xf32, #tpu.memory_space<vmem>>, vector<1x80x8xf32>
    %16 = vector.shape_cast %15 : vector<1x80x8xf32> to vector<80x8xf32>
    %17 = arith.truncf %16 : vector<80x8xf32> to vector<80x8xbf16>
    %c1 = arith.constant 1 : index
    %c0_9 = arith.constant 0 : index
    %c0_10 = arith.constant 0 : index
    %18 = vector.load %arg3[%c1, %c0_9, %c0_10] : memref<9x8x16xbf16, #tpu.memory_space<vmem>>, vector<1x8x16xbf16>
    %19 = vector.shape_cast %18 : vector<1x8x16xbf16> to vector<8x16xbf16>
    %cst_11 = arith.constant dense<0.000000e+00> : vector<80x16xf32>
    %20 = tpu.matmul %17, %19, %cst_11 {dimension_numbers = #tpu.dot_dimension_numbers<[1], [0], [0], [1], [0, 0, 1, 1], [], []>} : vector<80x8xbf16>, vector<8x16xbf16>, vector<80x16xf32> -> vector<80x16xf32>
    %21 = arith.addf %11, %20 : vector<80x16xf32>
    %c0_i32_12 = arith.constant 0 : i32
    %22 = arith.addi %0, %c0_i32_12 : i32
    %c2_i32 = arith.constant 2 : i32
    %23 = arith.addi %22, %c2_i32 : i32
    %c0_13 = arith.constant 0 : index
    %24 = arith.index_cast %23 : i32 to index
    %c0_14 = arith.constant 0 : index
    %25 = vector.load %arg2[%c0_13, %24, %c0_14] : memref<1x110x8xf32, #tpu.memory_space<vmem>>, vector<1x80x8xf32>
    %26 = vector.shape_cast %25 : vector<1x80x8xf32> to vector<80x8xf32>
    %27 = arith.truncf %26 : vector<80x8xf32> to vector<80x8xbf16>
    %c2 = arith.constant 2 : index
    %c0_15 = arith.constant 0 : index
    %c0_16 = arith.constant 0 : index
    %28 = vector.load %arg3[%c2, %c0_15, %c0_16] : memref<9x8x16xbf16, #tpu.memory_space<vmem>>, vector<1x8x16xbf16>
    %29 = vector.shape_cast %28 : vector<1x8x16xbf16> to vector<8x16xbf16>
    %cst_17 = arith.constant dense<0.000000e+00> : vector<80x16xf32>
    %30 = tpu.matmul %27, %29, %cst_17 {dimension_numbers = #tpu.dot_dimension_numbers<[1], [0], [0], [1], [0, 0, 1, 1], [], []>} : vector<80x8xbf16>, vector<8x16xbf16>, vector<80x16xf32> -> vector<80x16xf32>
    %31 = arith.addf %21, %30 : vector<80x16xf32>
    %c10_i32 = arith.constant 10 : i32
    %32 = arith.addi %0, %c10_i32 : i32
    %c0_i32_18 = arith.constant 0 : i32
    %33 = arith.addi %32, %c0_i32_18 : i32
    %c0_19 = arith.constant 0 : index
    %34 = arith.index_cast %33 : i32 to index
    %c0_20 = arith.constant 0 : index
    %35 = vector.load %arg2[%c0_19, %34, %c0_20] : memref<1x110x8xf32, #tpu.memory_space<vmem>>, vector<1x80x8xf32>
    %36 = vector.shape_cast %35 : vector<1x80x8xf32> to vector<80x8xf32>
    %37 = arith.truncf %36 : vector<80x8xf32> to vector<80x8xbf16>
    %c3 = arith.constant 3 : index
    %c0_21 = arith.constant 0 : index
    %c0_22 = arith.constant 0 : index
    %38 = vector.load %arg3[%c3, %c0_21, %c0_22] : memref<9x8x16xbf16, #tpu.memory_space<vmem>>, vector<1x8x16xbf16>
    %39 = vector.shape_cast %38 : vector<1x8x16xbf16> to vector<8x16xbf16>
    %cst_23 = arith.constant dense<0.000000e+00> : vector<80x16xf32>
    %40 = tpu.matmul %37, %39, %cst_23 {dimension_numbers = #tpu.dot_dimension_numbers<[1], [0], [0], [1], [0, 0, 1, 1], [], []>} : vector<80x8xbf16>, vector<8x16xbf16>, vector<80x16xf32> -> vector<80x16xf32>
    %41 = arith.addf %31, %40 : vector<80x16xf32>
    %c10_i32_24 = arith.constant 10 : i32
    %42 = arith.addi %0, %c10_i32_24 : i32
    %c1_i32_25 = arith.constant 1 : i32
    %43 = arith.addi %42, %c1_i32_25 : i32
    %c0_26 = arith.constant 0 : index
    %44 = arith.index_cast %43 : i32 to index
    %c0_27 = arith.constant 0 : index
    %45 = vector.load %arg2[%c0_26, %44, %c0_27] : memref<1x110x8xf32, #tpu.memory_space<vmem>>, vector<1x80x8xf32>
    %46 = vector.shape_cast %45 : vector<1x80x8xf32> to vector<80x8xf32>
    %47 = arith.truncf %46 : vector<80x8xf32> to vector<80x8xbf16>
    %c4 = arith.constant 4 : index
    %c0_28 = arith.constant 0 : index
    %c0_29 = arith.constant 0 : index
    %48 = vector.load %arg3[%c4, %c0_28, %c0_29] : memref<9x8x16xbf16, #tpu.memory_space<vmem>>, vector<1x8x16xbf16>
    %49 = vector.shape_cast %48 : vector<1x8x16xbf16> to vector<8x16xbf16>
    %cst_30 = arith.constant dense<0.000000e+00> : vector<80x16xf32>
    %50 = tpu.matmul %47, %49, %cst_30 {dimension_numbers = #tpu.dot_dimension_numbers<[1], [0], [0], [1], [0, 0, 1, 1], [], []>} : vector<80x8xbf16>, vector<8x16xbf16>, vector<80x16xf32> -> vector<80x16xf32>
    %51 = arith.addf %41, %50 : vector<80x16xf32>
    %c10_i32_31 = arith.constant 10 : i32
    %52 = arith.addi %0, %c10_i32_31 : i32
    %c2_i32_32 = arith.constant 2 : i32
    %53 = arith.addi %52, %c2_i32_32 : i32
    %c0_33 = arith.constant 0 : index
    %54 = arith.index_cast %53 : i32 to index
    %c0_34 = arith.constant 0 : index
    %55 = vector.load %arg2[%c0_33, %54, %c0_34] : memref<1x110x8xf32, #tpu.memory_space<vmem>>, vector<1x80x8xf32>
    %56 = vector.shape_cast %55 : vector<1x80x8xf32> to vector<80x8xf32>
    %57 = arith.truncf %56 : vector<80x8xf32> to vector<80x8xbf16>
    %c5 = arith.constant 5 : index
    %c0_35 = arith.constant 0 : index
    %c0_36 = arith.constant 0 : index
    %58 = vector.load %arg3[%c5, %c0_35, %c0_36] : memref<9x8x16xbf16, #tpu.memory_space<vmem>>, vector<1x8x16xbf16>
    %59 = vector.shape_cast %58 : vector<1x8x16xbf16> to vector<8x16xbf16>
    %cst_37 = arith.constant dense<0.000000e+00> : vector<80x16xf32>
    %60 = tpu.matmul %57, %59, %cst_37 {dimension_numbers = #tpu.dot_dimension_numbers<[1], [0], [0], [1], [0, 0, 1, 1], [], []>} : vector<80x8xbf16>, vector<8x16xbf16>, vector<80x16xf32> -> vector<80x16xf32>
    %61 = arith.addf %51, %60 : vector<80x16xf32>
    %c20_i32 = arith.constant 20 : i32
    %62 = arith.addi %0, %c20_i32 : i32
    %c0_i32_38 = arith.constant 0 : i32
    %63 = arith.addi %62, %c0_i32_38 : i32
    %c0_39 = arith.constant 0 : index
    %64 = arith.index_cast %63 : i32 to index
    %c0_40 = arith.constant 0 : index
    %65 = vector.load %arg2[%c0_39, %64, %c0_40] : memref<1x110x8xf32, #tpu.memory_space<vmem>>, vector<1x80x8xf32>
    %66 = vector.shape_cast %65 : vector<1x80x8xf32> to vector<80x8xf32>
    %67 = arith.truncf %66 : vector<80x8xf32> to vector<80x8xbf16>
    %c6 = arith.constant 6 : index
    %c0_41 = arith.constant 0 : index
    %c0_42 = arith.constant 0 : index
    %68 = vector.load %arg3[%c6, %c0_41, %c0_42] : memref<9x8x16xbf16, #tpu.memory_space<vmem>>, vector<1x8x16xbf16>
    %69 = vector.shape_cast %68 : vector<1x8x16xbf16> to vector<8x16xbf16>
    %cst_43 = arith.constant dense<0.000000e+00> : vector<80x16xf32>
    %70 = tpu.matmul %67, %69, %cst_43 {dimension_numbers = #tpu.dot_dimension_numbers<[1], [0], [0], [1], [0, 0, 1, 1], [], []>} : vector<80x8xbf16>, vector<8x16xbf16>, vector<80x16xf32> -> vector<80x16xf32>
    %71 = arith.addf %61, %70 : vector<80x16xf32>
    %c20_i32_44 = arith.constant 20 : i32
    %72 = arith.addi %0, %c20_i32_44 : i32
    %c1_i32_45 = arith.constant 1 : i32
    %73 = arith.addi %72, %c1_i32_45 : i32
    %c0_46 = arith.constant 0 : index
    %74 = arith.index_cast %73 : i32 to index
    %c0_47 = arith.constant 0 : index
    %75 = vector.load %arg2[%c0_46, %74, %c0_47] : memref<1x110x8xf32, #tpu.memory_space<vmem>>, vector<1x80x8xf32>
    %76 = vector.shape_cast %75 : vector<1x80x8xf32> to vector<80x8xf32>
    %77 = arith.truncf %76 : vector<80x8xf32> to vector<80x8xbf16>
    %c7 = arith.constant 7 : index
    %c0_48 = arith.constant 0 : index
    %c0_49 = arith.constant 0 : index
    %78 = vector.load %arg3[%c7, %c0_48, %c0_49] : memref<9x8x16xbf16, #tpu.memory_space<vmem>>, vector<1x8x16xbf16>
    %79 = vector.shape_cast %78 : vector<1x8x16xbf16> to vector<8x16xbf16>
    %cst_50 = arith.constant dense<0.000000e+00> : vector<80x16xf32>
    %80 = tpu.matmul %77, %79, %cst_50 {dimension_numbers = #tpu.dot_dimension_numbers<[1], [0], [0], [1], [0, 0, 1, 1], [], []>} : vector<80x8xbf16>, vector<8x16xbf16>, vector<80x16xf32> -> vector<80x16xf32>
    %81 = arith.addf %71, %80 : vector<80x16xf32>
    %c20_i32_51 = arith.constant 20 : i32
    %82 = arith.addi %0, %c20_i32_51 : i32
    %c2_i32_52 = arith.constant 2 : i32
    %83 = arith.addi %82, %c2_i32_52 : i32
    %c0_53 = arith.constant 0 : index
    %84 = arith.index_cast %83 : i32 to index
    %c0_54 = arith.constant 0 : index
    %85 = vector.load %arg2[%c0_53, %84, %c0_54] : memref<1x110x8xf32, #tpu.memory_space<vmem>>, vector<1x80x8xf32>
    %86 = vector.shape_cast %85 : vector<1x80x8xf32> to vector<80x8xf32>
    %87 = arith.truncf %86 : vector<80x8xf32> to vector<80x8xbf16>
    %c8 = arith.constant 8 : index
    %c0_55 = arith.constant 0 : index
    %c0_56 = arith.constant 0 : index
    %88 = vector.load %arg3[%c8, %c0_55, %c0_56] : memref<9x8x16xbf16, #tpu.memory_space<vmem>>, vector<1x8x16xbf16>
    %89 = vector.shape_cast %88 : vector<1x8x16xbf16> to vector<8x16xbf16>
    %cst_57 = arith.constant dense<0.000000e+00> : vector<80x16xf32>
    %90 = tpu.matmul %87, %89, %cst_57 {dimension_numbers = #tpu.dot_dimension_numbers<[1], [0], [0], [1], [0, 0, 1, 1], [], []>} : vector<80x8xbf16>, vector<8x16xbf16>, vector<80x16xf32> -> vector<80x16xf32>
    %91 = arith.addf %81, %90 : vector<80x16xf32>
    %c0_58 = arith.constant 0 : index
    %c0_59 = arith.constant 0 : index
    %92 = vector.load %arg4[%c0_58, %c0_59] : memref<1x16xf32, #tpu.memory_space<vmem>>, vector<1x16xf32>
    %93 = vector.broadcast %92 : vector<1x16xf32> to vector<80x16xf32>
    %94 = arith.addf %91, %93 : vector<80x16xf32>
    %95 = arith.truncf %94 : vector<80x16xf32> to vector<80x16xbf16>
    %c0_60 = arith.constant 0 : index
    %c0_61 = arith.constant 0 : index
    %c0_62 = arith.constant 0 : index
    %96 = vector.load %arg5[%c0_60, %c0_61, %c0_62] : memref<1x80x16xbf16, #tpu.memory_space<vmem>>, vector<1x80x16xbf16>
    %97 = vector.shape_cast %96 : vector<1x80x16xbf16> to vector<80x16xbf16>
    %98 = vector.shape_cast %95 : vector<80x16xbf16> to vector<1x80x16xbf16>
    tpu.vector_store %arg5[%c0_60, %c0_61, %c0_62], %98 {strides = array<i32>} : memref<1x80x16xbf16, #tpu.memory_space<vmem>>, vector<1x80x16xbf16>,
    %99 = tpu.iota {dimensions = array<i32: 0>} : vector<80x1xi32>
    %c10_i32_63 = arith.constant 10 : i32
    %c0_i32_64 = arith.constant 0 : i32
    %100 = arith.cmpi eq, %c10_i32_63, %c0_i32_64 : i32
    %c1_i32_65 = arith.constant 1 : i32
    %101 = arith.select %100, %c1_i32_65, %c10_i32_63 : i32
    %102 = vector.broadcast %101 : i32 to vector<80x1xi32>
    %103 = arith.remsi %99, %102 : vector<80x1xi32>
    %c0_i32_66 = arith.constant 0 : i32
    %104 = vector.broadcast %c0_i32_66 : i32 to vector<80x1xi32>
    %105 = arith.cmpi ne, %103, %104 : vector<80x1xi32>
    %c0_i32_67 = arith.constant 0 : i32
    %106 = vector.broadcast %c0_i32_67 : i32 to vector<80x1xi32>
    %107 = arith.cmpi slt, %103, %106 : vector<80x1xi32>
    %c0_i32_68 = arith.constant 0 : i32
    %108 = arith.cmpi slt, %101, %c0_i32_68 : i32
    %109 = vector.broadcast %108 : i1 to vector<80x1xi1>
    %110 = vector.broadcast %109 : vector<80x1xi1> to vector<80x1xi1>
    %111 = arith.xori %107, %110 : vector<80x1xi1>
    %112 = arith.andi %111, %105 : vector<80x1xi1>
    %113 = vector.broadcast %101 : i32 to vector<80x1xi32>
    %114 = arith.addi %103, %113 : vector<80x1xi32>
    %115 = arith.select %112, %114, %103 : vector<80x1xi1>, vector<80x1xi32>
    %c8_i32 = arith.constant 8 : i32
    %116 = vector.broadcast %c8_i32 : i32 to vector<80x1xi32>
    %117 = arith.cmpi slt, %115, %116 : vector<80x1xi32>
    %cst_69 = arith.constant 0.000000e+00 : f32
    %118 = vector.shape_cast %117 : vector<80x1xi1> to vector<80x1xi1>
    %119 = vector.broadcast %118 : vector<80x1xi1> to vector<80x16xi1>
    %120 = vector.broadcast %cst_69 : f32 to vector<80x16xf32>
    %121 = arith.select %119, %94, %120 : vector<80x16xi1>, vector<80x16xf32>
    %cst_70 = arith.constant dense<0.000000e+00> : vector<16xf32>
    %122 = vector.multi_reduction <add>, %121, %cst_70 [0] : vector<80x16xf32> to vector<16xf32>
    %123 = vector.shape_cast %122 : vector<16xf32> to vector<1x16xf32>
    %c0_71 = arith.constant 0 : index
    %c0_72 = arith.constant 0 : index
    %c0_73 = arith.constant 0 : index
    %124 = vector.load %arg6[%c0_71, %c0_72, %c0_73] : memref<1x2x16xf32, #tpu.memory_space<vmem>>, vector<1x1x16xf32>
    %125 = vector.shape_cast %124 : vector<1x1x16xf32> to vector<1x16xf32>
    %126 = vector.shape_cast %123 : vector<1x16xf32> to vector<1x1x16xf32>
    tpu.vector_store %arg6[%c0_71, %c0_72, %c0_73], %126 {strides = array<i32>} : memref<1x2x16xf32, #tpu.memory_space<vmem>>, vector<1x1x16xf32>,
    %127 = arith.mulf %121, %121 : vector<80x16xf32>
    %cst_74 = arith.constant dense<0.000000e+00> : vector<16xf32>
    %128 = vector.multi_reduction <add>, %127, %cst_74 [0] : vector<80x16xf32> to vector<16xf32>
    %129 = vector.shape_cast %128 : vector<16xf32> to vector<1x16xf32>
    %c0_75 = arith.constant 0 : index
    %c1_76 = arith.constant 1 : index
    %c0_77 = arith.constant 0 : index
    %130 = vector.load %arg6[%c0_75, %c1_76, %c0_77] : memref<1x2x16xf32, #tpu.memory_space<vmem>>, vector<1x1x16xf32>
    %131 = vector.shape_cast %130 : vector<1x1x16xf32> to vector<1x16xf32>
    %132 = vector.shape_cast %129 : vector<1x16xf32> to vector<1x1x16xf32>
    tpu.vector_store %arg6[%c0_75, %c1_76, %c0_77], %132 {strides = array<i32>} : memref<1x2x16xf32, #tpu.memory_space<vmem>>, vector<1x1x16xf32>,
    return
  }
  func.func @transform_0(%arg0: i32, %arg1: i32) -> (i32, i32, i32) {
    %c0_i32 = arith.constant 0 : i32
    %c0_i32_0 = arith.constant 0 : i32
    %c0_i32_1 = arith.constant 0 : i32
    return %arg0, %c0_i32, %c0_i32_0 : i32, i32, i32
  }
  func.func @transform_1(%arg0: i32, %arg1: i32) -> (i32, i32, i32) {
    %c0_i32 = arith.constant 0 : i32
    %c0_i32_0 = arith.constant 0 : i32
    %c0_i32_1 = arith.constant 0 : i32
    %c0_i32_2 = arith.constant 0 : i32
    return %c0_i32, %c0_i32_0, %c0_i32_1 : i32, i32, i32
  }
  func.func @transform_2(%arg0: i32, %arg1: i32) -> (i32, i32) {
    %c0_i32 = arith.constant 0 : i32
    %c0_i32_0 = arith.constant 0 : i32
    %c0_i32_1 = arith.constant 0 : i32
    return %c0_i32, %c0_i32_0 : i32, i32
  }
  func.func @transform_3(%arg0: i32, %arg1: i32) -> (i32, i32, i32) {
    %c0_i32 = arith.constant 0 : i32
    %c0_i32_0 = arith.constant 0 : i32
    return %arg0, %arg1, %c0_i32 : i32, i32, i32
  }
  func.func @transform_4(%arg0: i32, %arg1: i32) -> (i32, i32, i32) {
    %c1_i32 = arith.constant 1 : i32
    %0 = arith.muli %arg0, %c1_i32 : i32
    %1 = arith.addi %0, %arg1 : i32
    %c0_i32 = arith.constant 0 : i32
    %c0_i32_0 = arith.constant 0 : i32
    %c0_i32_1 = arith.constant 0 : i32
    return %1, %c0_i32, %c0_i32_0 : i32, i32, i32
  }
}

module attributes {stable_mosaic.version = 11 : i64} {
  func.func @_bn_relu_pool_pad_kernel(%arg0: i32, %arg1: memref<1x80x16xbf16, #tpu.memory_space<vmem>>, %arg2: memref<1x16xf32, #tpu.memory_space<vmem>>, %arg3: memref<1x16xf32, #tpu.memory_space<vmem>>, %arg4: memref<1x42x16xf32, #tpu.memory_space<vmem>>, %arg5: memref<80x16xf32, #tpu.memory_space<vmem>>) attributes {dimension_semantics = [#tpu.dimension_semantics<parallel>], iteration_bounds = array<i64: 2>, scalar_prefetch = 0 : i64, scratch_operands = 1 : i64, tpu.core_type = #tpu.core_type<tc>, window_params = [{transform_indices = @transform_0, window_bounds = array<i64: 1, 80, 16>}, {pipeline_mode = #tpu.pipeline_mode<synchronous>, transform_indices = @transform_1, window_bounds = array<i64: 1, 16>}, {pipeline_mode = #tpu.pipeline_mode<synchronous>, transform_indices = @transform_2, window_bounds = array<i64: 1, 16>}, {transform_indices = @transform_3, window_bounds = array<i64: 1, 42, 16>}]} {
    %c0 = arith.constant 0 : index
    %c0_0 = arith.constant 0 : index
    %c0_1 = arith.constant 0 : index
    %0 = vector.load %arg1[%c0, %c0_0, %c0_1] : memref<1x80x16xbf16, #tpu.memory_space<vmem>>, vector<1x80x16xbf16>
    %1 = vector.shape_cast %0 : vector<1x80x16xbf16> to vector<80x16xbf16>
    %2 = arith.extf %1 : vector<80x16xbf16> to vector<80x16xf32>
    %c0_2 = arith.constant 0 : index
    %c0_3 = arith.constant 0 : index
    %3 = vector.load %arg2[%c0_2, %c0_3] : memref<1x16xf32, #tpu.memory_space<vmem>>, vector<1x16xf32>
    %4 = vector.broadcast %3 : vector<1x16xf32> to vector<80x16xf32>
    %5 = arith.mulf %2, %4 : vector<80x16xf32>
    %c0_4 = arith.constant 0 : index
    %c0_5 = arith.constant 0 : index
    %6 = vector.load %arg3[%c0_4, %c0_5] : memref<1x16xf32, #tpu.memory_space<vmem>>, vector<1x16xf32>
    %7 = vector.broadcast %6 : vector<1x16xf32> to vector<80x16xf32>
    %8 = arith.addf %5, %7 : vector<80x16xf32>
    %cst = arith.constant 0.000000e+00 : f32
    %9 = vector.broadcast %cst : f32 to vector<80x16xf32>
    %10 = arith.maximumf %8, %9 : vector<80x16xf32>
    %c0_6 = arith.constant 0 : index
    %c0_7 = arith.constant 0 : index
    %11 = vector.load %arg5[%c0_6, %c0_7] : memref<80x16xf32, #tpu.memory_space<vmem>>, vector<80x16xf32>
    tpu.vector_store %arg5[%c0_6, %c0_7], %10 {strides = array<i32>} : memref<80x16xf32, #tpu.memory_space<vmem>>, vector<80x16xf32>,
    %cst_8 = arith.constant 0.000000e+00 : f32
    %12 = vector.broadcast %cst_8 : f32 to vector<42x16xf32>
    %c0_9 = arith.constant 0 : index
    %c0_10 = arith.constant 0 : index
    %c0_11 = arith.constant 0 : index
    %13 = vector.load %arg4[%c0_9, %c0_10, %c0_11] : memref<1x42x16xf32, #tpu.memory_space<vmem>>, vector<1x42x16xf32>
    %14 = vector.shape_cast %13 : vector<1x42x16xf32> to vector<42x16xf32>
    %15 = vector.shape_cast %12 : vector<42x16xf32> to vector<1x42x16xf32>
    tpu.vector_store %arg4[%c0_9, %c0_10, %c0_11], %15 {strides = array<i32>} : memref<1x42x16xf32, #tpu.memory_space<vmem>>, vector<1x42x16xf32>,
    %c0_12 = arith.constant 0 : index
    %c0_13 = arith.constant 0 : index
    %16 = tpu.strided_load %arg5[%c0_12, %c0_13] {strides = array<i32: 2, 1>} : memref<80x16xf32, #tpu.memory_space<vmem>>, vector<4x16xf32>
    %c1 = arith.constant 1 : index
    %c0_14 = arith.constant 0 : index
    %17 = tpu.strided_load %arg5[%c1, %c0_14] {strides = array<i32: 2, 1>} : memref<80x16xf32, #tpu.memory_space<vmem>>, vector<4x16xf32>
    %c10 = arith.constant 10 : index
    %c0_15 = arith.constant 0 : index
    %18 = tpu.strided_load %arg5[%c10, %c0_15] {strides = array<i32: 2, 1>} : memref<80x16xf32, #tpu.memory_space<vmem>>, vector<4x16xf32>
    %c11 = arith.constant 11 : index
    %c0_16 = arith.constant 0 : index
    %19 = tpu.strided_load %arg5[%c11, %c0_16] {strides = array<i32: 2, 1>} : memref<80x16xf32, #tpu.memory_space<vmem>>, vector<4x16xf32>
    %20 = arith.maximumf %16, %17 : vector<4x16xf32>
    %21 = arith.maximumf %18, %19 : vector<4x16xf32>
    %22 = arith.maximumf %20, %21 : vector<4x16xf32>
    %c0_17 = arith.constant 0 : index
    %c7 = arith.constant 7 : index
    %c0_18 = arith.constant 0 : index
    %23 = vector.load %arg4[%c0_17, %c7, %c0_18] : memref<1x42x16xf32, #tpu.memory_space<vmem>>, vector<1x4x16xf32>
    %24 = vector.shape_cast %23 : vector<1x4x16xf32> to vector<4x16xf32>
    %25 = vector.shape_cast %22 : vector<4x16xf32> to vector<1x4x16xf32>
    tpu.vector_store %arg4[%c0_17, %c7, %c0_18], %25 {strides = array<i32>} : memref<1x42x16xf32, #tpu.memory_space<vmem>>, vector<1x4x16xf32>,
    %c20 = arith.constant 20 : index
    %c0_19 = arith.constant 0 : index
    %26 = tpu.strided_load %arg5[%c20, %c0_19] {strides = array<i32: 2, 1>} : memref<80x16xf32, #tpu.memory_space<vmem>>, vector<4x16xf32>
    %c21 = arith.constant 21 : index
    %c0_20 = arith.constant 0 : index
    %27 = tpu.strided_load %arg5[%c21, %c0_20] {strides = array<i32: 2, 1>} : memref<80x16xf32, #tpu.memory_space<vmem>>, vector<4x16xf32>
    %c30 = arith.constant 30 : index
    %c0_21 = arith.constant 0 : index
    %28 = tpu.strided_load %arg5[%c30, %c0_21] {strides = array<i32: 2, 1>} : memref<80x16xf32, #tpu.memory_space<vmem>>, vector<4x16xf32>
    %c31 = arith.constant 31 : index
    %c0_22 = arith.constant 0 : index
    %29 = tpu.strided_load %arg5[%c31, %c0_22] {strides = array<i32: 2, 1>} : memref<80x16xf32, #tpu.memory_space<vmem>>, vector<4x16xf32>
    %30 = arith.maximumf %26, %27 : vector<4x16xf32>
    %31 = arith.maximumf %28, %29 : vector<4x16xf32>
    %32 = arith.maximumf %30, %31 : vector<4x16xf32>
    %c0_23 = arith.constant 0 : index
    %c13 = arith.constant 13 : index
    %c0_24 = arith.constant 0 : index
    %33 = vector.load %arg4[%c0_23, %c13, %c0_24] : memref<1x42x16xf32, #tpu.memory_space<vmem>>, vector<1x4x16xf32>
    %34 = vector.shape_cast %33 : vector<1x4x16xf32> to vector<4x16xf32>
    %35 = vector.shape_cast %32 : vector<4x16xf32> to vector<1x4x16xf32>
    tpu.vector_store %arg4[%c0_23, %c13, %c0_24], %35 {strides = array<i32>} : memref<1x42x16xf32, #tpu.memory_space<vmem>>, vector<1x4x16xf32>,
    %c40 = arith.constant 40 : index
    %c0_25 = arith.constant 0 : index
    %36 = tpu.strided_load %arg5[%c40, %c0_25] {strides = array<i32: 2, 1>} : memref<80x16xf32, #tpu.memory_space<vmem>>, vector<4x16xf32>
    %c41 = arith.constant 41 : index
    %c0_26 = arith.constant 0 : index
    %37 = tpu.strided_load %arg5[%c41, %c0_26] {strides = array<i32: 2, 1>} : memref<80x16xf32, #tpu.memory_space<vmem>>, vector<4x16xf32>
    %c50 = arith.constant 50 : index
    %c0_27 = arith.constant 0 : index
    %38 = tpu.strided_load %arg5[%c50, %c0_27] {strides = array<i32: 2, 1>} : memref<80x16xf32, #tpu.memory_space<vmem>>, vector<4x16xf32>
    %c51 = arith.constant 51 : index
    %c0_28 = arith.constant 0 : index
    %39 = tpu.strided_load %arg5[%c51, %c0_28] {strides = array<i32: 2, 1>} : memref<80x16xf32, #tpu.memory_space<vmem>>, vector<4x16xf32>
    %40 = arith.maximumf %36, %37 : vector<4x16xf32>
    %41 = arith.maximumf %38, %39 : vector<4x16xf32>
    %42 = arith.maximumf %40, %41 : vector<4x16xf32>
    %c0_29 = arith.constant 0 : index
    %c19 = arith.constant 19 : index
    %c0_30 = arith.constant 0 : index
    %43 = vector.load %arg4[%c0_29, %c19, %c0_30] : memref<1x42x16xf32, #tpu.memory_space<vmem>>, vector<1x4x16xf32>
    %44 = vector.shape_cast %43 : vector<1x4x16xf32> to vector<4x16xf32>
    %45 = vector.shape_cast %42 : vector<4x16xf32> to vector<1x4x16xf32>
    tpu.vector_store %arg4[%c0_29, %c19, %c0_30], %45 {strides = array<i32>} : memref<1x42x16xf32, #tpu.memory_space<vmem>>, vector<1x4x16xf32>,
    %c60 = arith.constant 60 : index
    %c0_31 = arith.constant 0 : index
    %46 = tpu.strided_load %arg5[%c60, %c0_31] {strides = array<i32: 2, 1>} : memref<80x16xf32, #tpu.memory_space<vmem>>, vector<4x16xf32>
    %c61 = arith.constant 61 : index
    %c0_32 = arith.constant 0 : index
    %47 = tpu.strided_load %arg5[%c61, %c0_32] {strides = array<i32: 2, 1>} : memref<80x16xf32, #tpu.memory_space<vmem>>, vector<4x16xf32>
    %c70 = arith.constant 70 : index
    %c0_33 = arith.constant 0 : index
    %48 = tpu.strided_load %arg5[%c70, %c0_33] {strides = array<i32: 2, 1>} : memref<80x16xf32, #tpu.memory_space<vmem>>, vector<4x16xf32>
    %c71 = arith.constant 71 : index
    %c0_34 = arith.constant 0 : index
    %49 = tpu.strided_load %arg5[%c71, %c0_34] {strides = array<i32: 2, 1>} : memref<80x16xf32, #tpu.memory_space<vmem>>, vector<4x16xf32>
    %50 = arith.maximumf %46, %47 : vector<4x16xf32>
    %51 = arith.maximumf %48, %49 : vector<4x16xf32>
    %52 = arith.maximumf %50, %51 : vector<4x16xf32>
    %c0_35 = arith.constant 0 : index
    %c25 = arith.constant 25 : index
    %c0_36 = arith.constant 0 : index
    %53 = vector.load %arg4[%c0_35, %c25, %c0_36] : memref<1x42x16xf32, #tpu.memory_space<vmem>>, vector<1x4x16xf32>
    %54 = vector.shape_cast %53 : vector<1x4x16xf32> to vector<4x16xf32>
    %55 = vector.shape_cast %52 : vector<4x16xf32> to vector<1x4x16xf32>
    tpu.vector_store %arg4[%c0_35, %c25, %c0_36], %55 {strides = array<i32>} : memref<1x42x16xf32, #tpu.memory_space<vmem>>, vector<1x4x16xf32>,
    return
  }
  func.func @transform_0(%arg0: i32) -> (i32, i32, i32) {
    %c0_i32 = arith.constant 0 : i32
    %c0_i32_0 = arith.constant 0 : i32
    %c0_i32_1 = arith.constant 0 : i32
    return %arg0, %c0_i32, %c0_i32_0 : i32, i32, i32
  }
  func.func @transform_1(%arg0: i32) -> (i32, i32) {
    %c0_i32 = arith.constant 0 : i32
    %c0_i32_0 = arith.constant 0 : i32
    %c0_i32_1 = arith.constant 0 : i32
    return %c0_i32, %c0_i32_0 : i32, i32
  }
  func.func @transform_2(%arg0: i32) -> (i32, i32) {
    %c0_i32 = arith.constant 0 : i32
    %c0_i32_0 = arith.constant 0 : i32
    %c0_i32_1 = arith.constant 0 : i32
    return %c0_i32, %c0_i32_0 : i32, i32
  }
  func.func @transform_3(%arg0: i32) -> (i32, i32, i32) {
    %c0_i32 = arith.constant 0 : i32
    %c0_i32_0 = arith.constant 0 : i32
    %c0_i32_1 = arith.constant 0 : i32
    return %arg0, %c0_i32, %c0_i32_0 : i32, i32, i32
  }
}

module attributes {stable_mosaic.version = 11 : i64} {
  func.func @_fc1_kernel(%arg0: i32, %arg1: memref<2x256xbf16, #tpu.memory_space<vmem>>, %arg2: memref<256x32xbf16, #tpu.memory_space<vmem>>, %arg3: memref<1x32xf32, #tpu.memory_space<vmem>>, %arg4: memref<2x32xf32, #tpu.memory_space<vmem>>, %arg5: memref<2x32xf32, #tpu.memory_space<vmem>>) attributes {dimension_semantics = [#tpu.dimension_semantics<parallel>], iteration_bounds = array<i64: 1>, scalar_prefetch = 0 : i64, scratch_operands = 0 : i64, tpu.core_type = #tpu.core_type<tc>, window_params = [{pipeline_mode = #tpu.pipeline_mode<synchronous>, transform_indices = @transform_0, window_bounds = array<i64: 2, 256>}, {transform_indices = @transform_1, window_bounds = array<i64: 256, 32>}, {transform_indices = @transform_2, window_bounds = array<i64: 1, 32>}, {transform_indices = @transform_3, window_bounds = array<i64: 2, 32>}, {transform_indices = @transform_4, window_bounds = array<i64: 2, 32>}]} {
    %c0 = arith.constant 0 : index
    %c0_0 = arith.constant 0 : index
    %0 = vector.load %arg1[%c0, %c0_0] : memref<2x256xbf16, #tpu.memory_space<vmem>>, vector<2x256xbf16>
    %c0_1 = arith.constant 0 : index
    %c0_2 = arith.constant 0 : index
    %1 = vector.load %arg2[%c0_1, %c0_2] : memref<256x32xbf16, #tpu.memory_space<vmem>>, vector<256x32xbf16>
    %cst = arith.constant dense<0.000000e+00> : vector<2x32xf32>
    %2 = tpu.matmul %0, %1, %cst {dimension_numbers = #tpu.dot_dimension_numbers<[1], [0], [0], [1], [0, 0, 1, 1], [], []>} : vector<2x256xbf16>, vector<256x32xbf16>, vector<2x32xf32> -> vector<2x32xf32>
    %c0_3 = arith.constant 0 : index
    %c0_4 = arith.constant 0 : index
    %3 = vector.load %arg3[%c0_3, %c0_4] : memref<1x32xf32, #tpu.memory_space<vmem>>, vector<1x32xf32>
    %4 = vector.broadcast %3 : vector<1x32xf32> to vector<2x32xf32>
    %5 = arith.addf %2, %4 : vector<2x32xf32>
    %cst_5 = arith.constant 0.000000e+00 : f32
    %6 = vector.broadcast %cst_5 : f32 to vector<2x32xf32>
    %7 = arith.maximumf %5, %6 : vector<2x32xf32>
    %c0_6 = arith.constant 0 : index
    %c0_7 = arith.constant 0 : index
    %8 = vector.load %arg4[%c0_6, %c0_7] : memref<2x32xf32, #tpu.memory_space<vmem>>, vector<2x32xf32>
    %cst_8 = arith.constant 5.000000e-02 : f32
    %9 = vector.broadcast %cst_8 : f32 to vector<2x32xf32>
    %10 = arith.mulf %8, %9 : vector<2x32xf32>
    %11 = arith.addf %7, %10 : vector<2x32xf32>
    %c0_9 = arith.constant 0 : index
    %c0_10 = arith.constant 0 : index
    %12 = vector.load %arg5[%c0_9, %c0_10] : memref<2x32xf32, #tpu.memory_space<vmem>>, vector<2x32xf32>
    tpu.vector_store %arg5[%c0_9, %c0_10], %11 {strides = array<i32>} : memref<2x32xf32, #tpu.memory_space<vmem>>, vector<2x32xf32>,
    return
  }
  func.func @transform_0(%arg0: i32) -> (i32, i32) {
    %c0_i32 = arith.constant 0 : i32
    %c0_i32_0 = arith.constant 0 : i32
    %c0_i32_1 = arith.constant 0 : i32
    return %c0_i32, %c0_i32_0 : i32, i32
  }
  func.func @transform_1(%arg0: i32) -> (i32, i32) {
    %c0_i32 = arith.constant 0 : i32
    %c0_i32_0 = arith.constant 0 : i32
    return %c0_i32, %arg0 : i32, i32
  }
  func.func @transform_2(%arg0: i32) -> (i32, i32) {
    %c0_i32 = arith.constant 0 : i32
    %c0_i32_0 = arith.constant 0 : i32
    return %c0_i32, %arg0 : i32, i32
  }
  func.func @transform_3(%arg0: i32) -> (i32, i32) {
    %c0_i32 = arith.constant 0 : i32
    %c0_i32_0 = arith.constant 0 : i32
    return %c0_i32, %arg0 : i32, i32
  }
  func.func @transform_4(%arg0: i32) -> (i32, i32) {
    %c0_i32 = arith.constant 0 : i32
    %c0_i32_0 = arith.constant 0 : i32
    return %c0_i32, %arg0 : i32, i32
  }
}

module attributes {stable_mosaic.version = 11 : i64} {
  func.func @_fc2_kernel(%arg0: i32, %arg1: memref<2x32xf32, #tpu.memory_space<vmem>>, %arg2: memref<32x256xbf16, #tpu.memory_space<vmem>>, %arg3: memref<1x256xf32, #tpu.memory_space<vmem>>, %arg4: memref<2x256xbf16, #tpu.memory_space<vmem>>) attributes {dimension_semantics = [#tpu.dimension_semantics<parallel>], iteration_bounds = array<i64: 1>, scalar_prefetch = 0 : i64, scratch_operands = 0 : i64, tpu.core_type = #tpu.core_type<tc>, window_params = [{pipeline_mode = #tpu.pipeline_mode<synchronous>, transform_indices = @transform_0, window_bounds = array<i64: 2, 32>}, {transform_indices = @transform_1, window_bounds = array<i64: 32, 256>}, {transform_indices = @transform_2, window_bounds = array<i64: 1, 256>}, {transform_indices = @transform_3, window_bounds = array<i64: 2, 256>}]} {
    %c0 = arith.constant 0 : index
    %c0_0 = arith.constant 0 : index
    %0 = vector.load %arg1[%c0, %c0_0] : memref<2x32xf32, #tpu.memory_space<vmem>>, vector<2x32xf32>
    %1 = arith.truncf %0 : vector<2x32xf32> to vector<2x32xbf16>
    %c0_1 = arith.constant 0 : index
    %c0_2 = arith.constant 0 : index
    %2 = vector.load %arg2[%c0_1, %c0_2] : memref<32x256xbf16, #tpu.memory_space<vmem>>, vector<32x256xbf16>
    %cst = arith.constant dense<0.000000e+00> : vector<2x256xf32>
    %3 = tpu.matmul %1, %2, %cst {dimension_numbers = #tpu.dot_dimension_numbers<[1], [0], [0], [1], [0, 0, 1, 1], [], []>} : vector<2x32xbf16>, vector<32x256xbf16>, vector<2x256xf32> -> vector<2x256xf32>
    %c0_3 = arith.constant 0 : index
    %c0_4 = arith.constant 0 : index
    %4 = vector.load %arg3[%c0_3, %c0_4] : memref<1x256xf32, #tpu.memory_space<vmem>>, vector<1x256xf32>
    %5 = vector.broadcast %4 : vector<1x256xf32> to vector<2x256xf32>
    %6 = arith.addf %3, %5 : vector<2x256xf32>
    %cst_5 = arith.constant 0.000000e+00 : f32
    %7 = vector.broadcast %cst_5 : f32 to vector<2x256xf32>
    %8 = arith.maximumf %6, %7 : vector<2x256xf32>
    %9 = arith.truncf %8 : vector<2x256xf32> to vector<2x256xbf16>
    %c0_6 = arith.constant 0 : index
    %c0_7 = arith.constant 0 : index
    %10 = vector.load %arg4[%c0_6, %c0_7] : memref<2x256xbf16, #tpu.memory_space<vmem>>, vector<2x256xbf16>
    tpu.vector_store %arg4[%c0_6, %c0_7], %9 {strides = array<i32>} : memref<2x256xbf16, #tpu.memory_space<vmem>>, vector<2x256xbf16>,
    return
  }
  func.func @transform_0(%arg0: i32) -> (i32, i32) {
    %c0_i32 = arith.constant 0 : i32
    %c0_i32_0 = arith.constant 0 : i32
    %c0_i32_1 = arith.constant 0 : i32
    return %c0_i32, %c0_i32_0 : i32, i32
  }
  func.func @transform_1(%arg0: i32) -> (i32, i32) {
    %c0_i32 = arith.constant 0 : i32
    %c0_i32_0 = arith.constant 0 : i32
    return %c0_i32, %arg0 : i32, i32
  }
  func.func @transform_2(%arg0: i32) -> (i32, i32) {
    %c0_i32 = arith.constant 0 : i32
    %c0_i32_0 = arith.constant 0 : i32
    return %c0_i32, %arg0 : i32, i32
  }
  func.func @transform_3(%arg0: i32) -> (i32, i32) {
    %c0_i32 = arith.constant 0 : i32
    %c0_i32_0 = arith.constant 0 : i32
    return %c0_i32, %arg0 : i32, i32
  }
}

module attributes {stable_mosaic.version = 11 : i64} {
  func.func @_conv_stats_kernel(%arg0: i32, %arg1: i32, %arg2: memref<1x110x16xf32, #tpu.memory_space<vmem>>, %arg3: memref<9x16x8xbf16, #tpu.memory_space<vmem>>, %arg4: memref<1x8xf32, #tpu.memory_space<vmem>>, %arg5: memref<1x80x8xbf16, #tpu.memory_space<vmem>>, %arg6: memref<1x2x8xf32, #tpu.memory_space<vmem>>) attributes {dimension_semantics = [#tpu.dimension_semantics<parallel>, #tpu.dimension_semantics<parallel>], iteration_bounds = array<i64: 2, 1>, scalar_prefetch = 0 : i64, scratch_operands = 0 : i64, tpu.core_type = #tpu.core_type<tc>, window_params = [{transform_indices = @transform_0, window_bounds = array<i64: 1, 110, 16>}, {pipeline_mode = #tpu.pipeline_mode<synchronous>, transform_indices = @transform_1, window_bounds = array<i64: 9, 16, 8>}, {pipeline_mode = #tpu.pipeline_mode<synchronous>, transform_indices = @transform_2, window_bounds = array<i64: 1, 8>}, {transform_indices = @transform_3, window_bounds = array<i64: 1, 80, 8>}, {transform_indices = @transform_4, window_bounds = array<i64: 1, 2, 8>}]} {
    %c80_i32 = arith.constant 80 : i32
    %0 = arith.muli %arg1, %c80_i32 : i32
    %cst = arith.constant 0.000000e+00 : f32
    %1 = vector.broadcast %cst : f32 to vector<80x8xf32>
    %c0_i32 = arith.constant 0 : i32
    %2 = arith.addi %0, %c0_i32 : i32
    %c0_i32_0 = arith.constant 0 : i32
    %3 = arith.addi %2, %c0_i32_0 : i32
    %c0 = arith.constant 0 : index
    %4 = arith.index_cast %3 : i32 to index
    %c0_1 = arith.constant 0 : index
    %5 = vector.load %arg2[%c0, %4, %c0_1] : memref<1x110x16xf32, #tpu.memory_space<vmem>>, vector<1x80x16xf32>
    %6 = vector.shape_cast %5 : vector<1x80x16xf32> to vector<80x16xf32>
    %7 = arith.truncf %6 : vector<80x16xf32> to vector<80x16xbf16>
    %c0_2 = arith.constant 0 : index
    %c0_3 = arith.constant 0 : index
    %c0_4 = arith.constant 0 : index
    %8 = vector.load %arg3[%c0_2, %c0_3, %c0_4] : memref<9x16x8xbf16, #tpu.memory_space<vmem>>, vector<1x16x8xbf16>
    %9 = vector.shape_cast %8 : vector<1x16x8xbf16> to vector<16x8xbf16>
    %cst_5 = arith.constant dense<0.000000e+00> : vector<80x8xf32>
    %10 = tpu.matmul %7, %9, %cst_5 {dimension_numbers = #tpu.dot_dimension_numbers<[1], [0], [0], [1], [0, 0, 1, 1], [], []>} : vector<80x16xbf16>, vector<16x8xbf16>, vector<80x8xf32> -> vector<80x8xf32>
    %11 = arith.addf %1, %10 : vector<80x8xf32>
    %c0_i32_6 = arith.constant 0 : i32
    %12 = arith.addi %0, %c0_i32_6 : i32
    %c1_i32 = arith.constant 1 : i32
    %13 = arith.addi %12, %c1_i32 : i32
    %c0_7 = arith.constant 0 : index
    %14 = arith.index_cast %13 : i32 to index
    %c0_8 = arith.constant 0 : index
    %15 = vector.load %arg2[%c0_7, %14, %c0_8] : memref<1x110x16xf32, #tpu.memory_space<vmem>>, vector<1x80x16xf32>
    %16 = vector.shape_cast %15 : vector<1x80x16xf32> to vector<80x16xf32>
    %17 = arith.truncf %16 : vector<80x16xf32> to vector<80x16xbf16>
    %c1 = arith.constant 1 : index
    %c0_9 = arith.constant 0 : index
    %c0_10 = arith.constant 0 : index
    %18 = vector.load %arg3[%c1, %c0_9, %c0_10] : memref<9x16x8xbf16, #tpu.memory_space<vmem>>, vector<1x16x8xbf16>
    %19 = vector.shape_cast %18 : vector<1x16x8xbf16> to vector<16x8xbf16>
    %cst_11 = arith.constant dense<0.000000e+00> : vector<80x8xf32>
    %20 = tpu.matmul %17, %19, %cst_11 {dimension_numbers = #tpu.dot_dimension_numbers<[1], [0], [0], [1], [0, 0, 1, 1], [], []>} : vector<80x16xbf16>, vector<16x8xbf16>, vector<80x8xf32> -> vector<80x8xf32>
    %21 = arith.addf %11, %20 : vector<80x8xf32>
    %c0_i32_12 = arith.constant 0 : i32
    %22 = arith.addi %0, %c0_i32_12 : i32
    %c2_i32 = arith.constant 2 : i32
    %23 = arith.addi %22, %c2_i32 : i32
    %c0_13 = arith.constant 0 : index
    %24 = arith.index_cast %23 : i32 to index
    %c0_14 = arith.constant 0 : index
    %25 = vector.load %arg2[%c0_13, %24, %c0_14] : memref<1x110x16xf32, #tpu.memory_space<vmem>>, vector<1x80x16xf32>
    %26 = vector.shape_cast %25 : vector<1x80x16xf32> to vector<80x16xf32>
    %27 = arith.truncf %26 : vector<80x16xf32> to vector<80x16xbf16>
    %c2 = arith.constant 2 : index
    %c0_15 = arith.constant 0 : index
    %c0_16 = arith.constant 0 : index
    %28 = vector.load %arg3[%c2, %c0_15, %c0_16] : memref<9x16x8xbf16, #tpu.memory_space<vmem>>, vector<1x16x8xbf16>
    %29 = vector.shape_cast %28 : vector<1x16x8xbf16> to vector<16x8xbf16>
    %cst_17 = arith.constant dense<0.000000e+00> : vector<80x8xf32>
    %30 = tpu.matmul %27, %29, %cst_17 {dimension_numbers = #tpu.dot_dimension_numbers<[1], [0], [0], [1], [0, 0, 1, 1], [], []>} : vector<80x16xbf16>, vector<16x8xbf16>, vector<80x8xf32> -> vector<80x8xf32>
    %31 = arith.addf %21, %30 : vector<80x8xf32>
    %c10_i32 = arith.constant 10 : i32
    %32 = arith.addi %0, %c10_i32 : i32
    %c0_i32_18 = arith.constant 0 : i32
    %33 = arith.addi %32, %c0_i32_18 : i32
    %c0_19 = arith.constant 0 : index
    %34 = arith.index_cast %33 : i32 to index
    %c0_20 = arith.constant 0 : index
    %35 = vector.load %arg2[%c0_19, %34, %c0_20] : memref<1x110x16xf32, #tpu.memory_space<vmem>>, vector<1x80x16xf32>
    %36 = vector.shape_cast %35 : vector<1x80x16xf32> to vector<80x16xf32>
    %37 = arith.truncf %36 : vector<80x16xf32> to vector<80x16xbf16>
    %c3 = arith.constant 3 : index
    %c0_21 = arith.constant 0 : index
    %c0_22 = arith.constant 0 : index
    %38 = vector.load %arg3[%c3, %c0_21, %c0_22] : memref<9x16x8xbf16, #tpu.memory_space<vmem>>, vector<1x16x8xbf16>
    %39 = vector.shape_cast %38 : vector<1x16x8xbf16> to vector<16x8xbf16>
    %cst_23 = arith.constant dense<0.000000e+00> : vector<80x8xf32>
    %40 = tpu.matmul %37, %39, %cst_23 {dimension_numbers = #tpu.dot_dimension_numbers<[1], [0], [0], [1], [0, 0, 1, 1], [], []>} : vector<80x16xbf16>, vector<16x8xbf16>, vector<80x8xf32> -> vector<80x8xf32>
    %41 = arith.addf %31, %40 : vector<80x8xf32>
    %c10_i32_24 = arith.constant 10 : i32
    %42 = arith.addi %0, %c10_i32_24 : i32
    %c1_i32_25 = arith.constant 1 : i32
    %43 = arith.addi %42, %c1_i32_25 : i32
    %c0_26 = arith.constant 0 : index
    %44 = arith.index_cast %43 : i32 to index
    %c0_27 = arith.constant 0 : index
    %45 = vector.load %arg2[%c0_26, %44, %c0_27] : memref<1x110x16xf32, #tpu.memory_space<vmem>>, vector<1x80x16xf32>
    %46 = vector.shape_cast %45 : vector<1x80x16xf32> to vector<80x16xf32>
    %47 = arith.truncf %46 : vector<80x16xf32> to vector<80x16xbf16>
    %c4 = arith.constant 4 : index
    %c0_28 = arith.constant 0 : index
    %c0_29 = arith.constant 0 : index
    %48 = vector.load %arg3[%c4, %c0_28, %c0_29] : memref<9x16x8xbf16, #tpu.memory_space<vmem>>, vector<1x16x8xbf16>
    %49 = vector.shape_cast %48 : vector<1x16x8xbf16> to vector<16x8xbf16>
    %cst_30 = arith.constant dense<0.000000e+00> : vector<80x8xf32>
    %50 = tpu.matmul %47, %49, %cst_30 {dimension_numbers = #tpu.dot_dimension_numbers<[1], [0], [0], [1], [0, 0, 1, 1], [], []>} : vector<80x16xbf16>, vector<16x8xbf16>, vector<80x8xf32> -> vector<80x8xf32>
    %51 = arith.addf %41, %50 : vector<80x8xf32>
    %c10_i32_31 = arith.constant 10 : i32
    %52 = arith.addi %0, %c10_i32_31 : i32
    %c2_i32_32 = arith.constant 2 : i32
    %53 = arith.addi %52, %c2_i32_32 : i32
    %c0_33 = arith.constant 0 : index
    %54 = arith.index_cast %53 : i32 to index
    %c0_34 = arith.constant 0 : index
    %55 = vector.load %arg2[%c0_33, %54, %c0_34] : memref<1x110x16xf32, #tpu.memory_space<vmem>>, vector<1x80x16xf32>
    %56 = vector.shape_cast %55 : vector<1x80x16xf32> to vector<80x16xf32>
    %57 = arith.truncf %56 : vector<80x16xf32> to vector<80x16xbf16>
    %c5 = arith.constant 5 : index
    %c0_35 = arith.constant 0 : index
    %c0_36 = arith.constant 0 : index
    %58 = vector.load %arg3[%c5, %c0_35, %c0_36] : memref<9x16x8xbf16, #tpu.memory_space<vmem>>, vector<1x16x8xbf16>
    %59 = vector.shape_cast %58 : vector<1x16x8xbf16> to vector<16x8xbf16>
    %cst_37 = arith.constant dense<0.000000e+00> : vector<80x8xf32>
    %60 = tpu.matmul %57, %59, %cst_37 {dimension_numbers = #tpu.dot_dimension_numbers<[1], [0], [0], [1], [0, 0, 1, 1], [], []>} : vector<80x16xbf16>, vector<16x8xbf16>, vector<80x8xf32> -> vector<80x8xf32>
    %61 = arith.addf %51, %60 : vector<80x8xf32>
    %c20_i32 = arith.constant 20 : i32
    %62 = arith.addi %0, %c20_i32 : i32
    %c0_i32_38 = arith.constant 0 : i32
    %63 = arith.addi %62, %c0_i32_38 : i32
    %c0_39 = arith.constant 0 : index
    %64 = arith.index_cast %63 : i32 to index
    %c0_40 = arith.constant 0 : index
    %65 = vector.load %arg2[%c0_39, %64, %c0_40] : memref<1x110x16xf32, #tpu.memory_space<vmem>>, vector<1x80x16xf32>
    %66 = vector.shape_cast %65 : vector<1x80x16xf32> to vector<80x16xf32>
    %67 = arith.truncf %66 : vector<80x16xf32> to vector<80x16xbf16>
    %c6 = arith.constant 6 : index
    %c0_41 = arith.constant 0 : index
    %c0_42 = arith.constant 0 : index
    %68 = vector.load %arg3[%c6, %c0_41, %c0_42] : memref<9x16x8xbf16, #tpu.memory_space<vmem>>, vector<1x16x8xbf16>
    %69 = vector.shape_cast %68 : vector<1x16x8xbf16> to vector<16x8xbf16>
    %cst_43 = arith.constant dense<0.000000e+00> : vector<80x8xf32>
    %70 = tpu.matmul %67, %69, %cst_43 {dimension_numbers = #tpu.dot_dimension_numbers<[1], [0], [0], [1], [0, 0, 1, 1], [], []>} : vector<80x16xbf16>, vector<16x8xbf16>, vector<80x8xf32> -> vector<80x8xf32>
    %71 = arith.addf %61, %70 : vector<80x8xf32>
    %c20_i32_44 = arith.constant 20 : i32
    %72 = arith.addi %0, %c20_i32_44 : i32
    %c1_i32_45 = arith.constant 1 : i32
    %73 = arith.addi %72, %c1_i32_45 : i32
    %c0_46 = arith.constant 0 : index
    %74 = arith.index_cast %73 : i32 to index
    %c0_47 = arith.constant 0 : index
    %75 = vector.load %arg2[%c0_46, %74, %c0_47] : memref<1x110x16xf32, #tpu.memory_space<vmem>>, vector<1x80x16xf32>
    %76 = vector.shape_cast %75 : vector<1x80x16xf32> to vector<80x16xf32>
    %77 = arith.truncf %76 : vector<80x16xf32> to vector<80x16xbf16>
    %c7 = arith.constant 7 : index
    %c0_48 = arith.constant 0 : index
    %c0_49 = arith.constant 0 : index
    %78 = vector.load %arg3[%c7, %c0_48, %c0_49] : memref<9x16x8xbf16, #tpu.memory_space<vmem>>, vector<1x16x8xbf16>
    %79 = vector.shape_cast %78 : vector<1x16x8xbf16> to vector<16x8xbf16>
    %cst_50 = arith.constant dense<0.000000e+00> : vector<80x8xf32>
    %80 = tpu.matmul %77, %79, %cst_50 {dimension_numbers = #tpu.dot_dimension_numbers<[1], [0], [0], [1], [0, 0, 1, 1], [], []>} : vector<80x16xbf16>, vector<16x8xbf16>, vector<80x8xf32> -> vector<80x8xf32>
    %81 = arith.addf %71, %80 : vector<80x8xf32>
    %c20_i32_51 = arith.constant 20 : i32
    %82 = arith.addi %0, %c20_i32_51 : i32
    %c2_i32_52 = arith.constant 2 : i32
    %83 = arith.addi %82, %c2_i32_52 : i32
    %c0_53 = arith.constant 0 : index
    %84 = arith.index_cast %83 : i32 to index
    %c0_54 = arith.constant 0 : index
    %85 = vector.load %arg2[%c0_53, %84, %c0_54] : memref<1x110x16xf32, #tpu.memory_space<vmem>>, vector<1x80x16xf32>
    %86 = vector.shape_cast %85 : vector<1x80x16xf32> to vector<80x16xf32>
    %87 = arith.truncf %86 : vector<80x16xf32> to vector<80x16xbf16>
    %c8 = arith.constant 8 : index
    %c0_55 = arith.constant 0 : index
    %c0_56 = arith.constant 0 : index
    %88 = vector.load %arg3[%c8, %c0_55, %c0_56] : memref<9x16x8xbf16, #tpu.memory_space<vmem>>, vector<1x16x8xbf16>
    %89 = vector.shape_cast %88 : vector<1x16x8xbf16> to vector<16x8xbf16>
    %cst_57 = arith.constant dense<0.000000e+00> : vector<80x8xf32>
    %90 = tpu.matmul %87, %89, %cst_57 {dimension_numbers = #tpu.dot_dimension_numbers<[1], [0], [0], [1], [0, 0, 1, 1], [], []>} : vector<80x16xbf16>, vector<16x8xbf16>, vector<80x8xf32> -> vector<80x8xf32>
    %91 = arith.addf %81, %90 : vector<80x8xf32>
    %c0_58 = arith.constant 0 : index
    %c0_59 = arith.constant 0 : index
    %92 = vector.load %arg4[%c0_58, %c0_59] : memref<1x8xf32, #tpu.memory_space<vmem>>, vector<1x8xf32>
    %93 = vector.broadcast %92 : vector<1x8xf32> to vector<80x8xf32>
    %94 = arith.addf %91, %93 : vector<80x8xf32>
    %95 = arith.truncf %94 : vector<80x8xf32> to vector<80x8xbf16>
    %c0_60 = arith.constant 0 : index
    %c0_61 = arith.constant 0 : index
    %c0_62 = arith.constant 0 : index
    %96 = vector.load %arg5[%c0_60, %c0_61, %c0_62] : memref<1x80x8xbf16, #tpu.memory_space<vmem>>, vector<1x80x8xbf16>
    %97 = vector.shape_cast %96 : vector<1x80x8xbf16> to vector<80x8xbf16>
    %98 = vector.shape_cast %95 : vector<80x8xbf16> to vector<1x80x8xbf16>
    tpu.vector_store %arg5[%c0_60, %c0_61, %c0_62], %98 {strides = array<i32>} : memref<1x80x8xbf16, #tpu.memory_space<vmem>>, vector<1x80x8xbf16>,
    %99 = tpu.iota {dimensions = array<i32: 0>} : vector<80x1xi32>
    %c10_i32_63 = arith.constant 10 : i32
    %c0_i32_64 = arith.constant 0 : i32
    %100 = arith.cmpi eq, %c10_i32_63, %c0_i32_64 : i32
    %c1_i32_65 = arith.constant 1 : i32
    %101 = arith.select %100, %c1_i32_65, %c10_i32_63 : i32
    %102 = vector.broadcast %101 : i32 to vector<80x1xi32>
    %103 = arith.remsi %99, %102 : vector<80x1xi32>
    %c0_i32_66 = arith.constant 0 : i32
    %104 = vector.broadcast %c0_i32_66 : i32 to vector<80x1xi32>
    %105 = arith.cmpi ne, %103, %104 : vector<80x1xi32>
    %c0_i32_67 = arith.constant 0 : i32
    %106 = vector.broadcast %c0_i32_67 : i32 to vector<80x1xi32>
    %107 = arith.cmpi slt, %103, %106 : vector<80x1xi32>
    %c0_i32_68 = arith.constant 0 : i32
    %108 = arith.cmpi slt, %101, %c0_i32_68 : i32
    %109 = vector.broadcast %108 : i1 to vector<80x1xi1>
    %110 = vector.broadcast %109 : vector<80x1xi1> to vector<80x1xi1>
    %111 = arith.xori %107, %110 : vector<80x1xi1>
    %112 = arith.andi %111, %105 : vector<80x1xi1>
    %113 = vector.broadcast %101 : i32 to vector<80x1xi32>
    %114 = arith.addi %103, %113 : vector<80x1xi32>
    %115 = arith.select %112, %114, %103 : vector<80x1xi1>, vector<80x1xi32>
    %c8_i32 = arith.constant 8 : i32
    %116 = vector.broadcast %c8_i32 : i32 to vector<80x1xi32>
    %117 = arith.cmpi slt, %115, %116 : vector<80x1xi32>
    %cst_69 = arith.constant 0.000000e+00 : f32
    %118 = vector.shape_cast %117 : vector<80x1xi1> to vector<80x1xi1>
    %119 = vector.broadcast %118 : vector<80x1xi1> to vector<80x8xi1>
    %120 = vector.broadcast %cst_69 : f32 to vector<80x8xf32>
    %121 = arith.select %119, %94, %120 : vector<80x8xi1>, vector<80x8xf32>
    %cst_70 = arith.constant dense<0.000000e+00> : vector<8xf32>
    %122 = vector.multi_reduction <add>, %121, %cst_70 [0] : vector<80x8xf32> to vector<8xf32>
    %123 = vector.shape_cast %122 : vector<8xf32> to vector<1x8xf32>
    %c0_71 = arith.constant 0 : index
    %c0_72 = arith.constant 0 : index
    %c0_73 = arith.constant 0 : index
    %124 = vector.load %arg6[%c0_71, %c0_72, %c0_73] : memref<1x2x8xf32, #tpu.memory_space<vmem>>, vector<1x1x8xf32>
    %125 = vector.shape_cast %124 : vector<1x1x8xf32> to vector<1x8xf32>
    %126 = vector.shape_cast %123 : vector<1x8xf32> to vector<1x1x8xf32>
    tpu.vector_store %arg6[%c0_71, %c0_72, %c0_73], %126 {strides = array<i32>} : memref<1x2x8xf32, #tpu.memory_space<vmem>>, vector<1x1x8xf32>,
    %127 = arith.mulf %121, %121 : vector<80x8xf32>
    %cst_74 = arith.constant dense<0.000000e+00> : vector<8xf32>
    %128 = vector.multi_reduction <add>, %127, %cst_74 [0] : vector<80x8xf32> to vector<8xf32>
    %129 = vector.shape_cast %128 : vector<8xf32> to vector<1x8xf32>
    %c0_75 = arith.constant 0 : index
    %c1_76 = arith.constant 1 : index
    %c0_77 = arith.constant 0 : index
    %130 = vector.load %arg6[%c0_75, %c1_76, %c0_77] : memref<1x2x8xf32, #tpu.memory_space<vmem>>, vector<1x1x8xf32>
    %131 = vector.shape_cast %130 : vector<1x1x8xf32> to vector<1x8xf32>
    %132 = vector.shape_cast %129 : vector<1x8xf32> to vector<1x1x8xf32>
    tpu.vector_store %arg6[%c0_75, %c1_76, %c0_77], %132 {strides = array<i32>} : memref<1x2x8xf32, #tpu.memory_space<vmem>>, vector<1x1x8xf32>,
    return
  }
  func.func @transform_0(%arg0: i32, %arg1: i32) -> (i32, i32, i32) {
    %c0_i32 = arith.constant 0 : i32
    %c0_i32_0 = arith.constant 0 : i32
    %c0_i32_1 = arith.constant 0 : i32
    return %arg0, %c0_i32, %c0_i32_0 : i32, i32, i32
  }
  func.func @transform_1(%arg0: i32, %arg1: i32) -> (i32, i32, i32) {
    %c0_i32 = arith.constant 0 : i32
    %c0_i32_0 = arith.constant 0 : i32
    %c0_i32_1 = arith.constant 0 : i32
    %c0_i32_2 = arith.constant 0 : i32
    return %c0_i32, %c0_i32_0, %c0_i32_1 : i32, i32, i32
  }
  func.func @transform_2(%arg0: i32, %arg1: i32) -> (i32, i32) {
    %c0_i32 = arith.constant 0 : i32
    %c0_i32_0 = arith.constant 0 : i32
    %c0_i32_1 = arith.constant 0 : i32
    return %c0_i32, %c0_i32_0 : i32, i32
  }
  func.func @transform_3(%arg0: i32, %arg1: i32) -> (i32, i32, i32) {
    %c0_i32 = arith.constant 0 : i32
    %c0_i32_0 = arith.constant 0 : i32
    return %arg0, %arg1, %c0_i32 : i32, i32, i32
  }
  func.func @transform_4(%arg0: i32, %arg1: i32) -> (i32, i32, i32) {
    %c1_i32 = arith.constant 1 : i32
    %0 = arith.muli %arg0, %c1_i32 : i32
    %1 = arith.addi %0, %arg1 : i32
    %c0_i32 = arith.constant 0 : i32
    %c0_i32_0 = arith.constant 0 : i32
    %c0_i32_1 = arith.constant 0 : i32
    return %1, %c0_i32, %c0_i32_0 : i32, i32, i32
  }
}

module attributes {stable_mosaic.version = 11 : i64} {
  func.func @_bn_relu_kernel(%arg0: i32, %arg1: memref<1x80x8xbf16, #tpu.memory_space<vmem>>, %arg2: memref<1x8xf32, #tpu.memory_space<vmem>>, %arg3: memref<1x8xf32, #tpu.memory_space<vmem>>, %arg4: memref<1x80x8xbf16, #tpu.memory_space<vmem>>) attributes {dimension_semantics = [#tpu.dimension_semantics<parallel>], iteration_bounds = array<i64: 2>, scalar_prefetch = 0 : i64, scratch_operands = 0 : i64, tpu.core_type = #tpu.core_type<tc>, window_params = [{transform_indices = @transform_0, window_bounds = array<i64: 1, 80, 8>}, {pipeline_mode = #tpu.pipeline_mode<synchronous>, transform_indices = @transform_1, window_bounds = array<i64: 1, 8>}, {pipeline_mode = #tpu.pipeline_mode<synchronous>, transform_indices = @transform_2, window_bounds = array<i64: 1, 8>}, {transform_indices = @transform_3, window_bounds = array<i64: 1, 80, 8>}]} {
    %c0 = arith.constant 0 : index
    %c0_0 = arith.constant 0 : index
    %c0_1 = arith.constant 0 : index
    %0 = vector.load %arg1[%c0, %c0_0, %c0_1] : memref<1x80x8xbf16, #tpu.memory_space<vmem>>, vector<1x80x8xbf16>
    %1 = vector.shape_cast %0 : vector<1x80x8xbf16> to vector<80x8xbf16>
    %2 = arith.extf %1 : vector<80x8xbf16> to vector<80x8xf32>
    %c0_2 = arith.constant 0 : index
    %c0_3 = arith.constant 0 : index
    %3 = vector.load %arg2[%c0_2, %c0_3] : memref<1x8xf32, #tpu.memory_space<vmem>>, vector<1x8xf32>
    %4 = vector.broadcast %3 : vector<1x8xf32> to vector<80x8xf32>
    %5 = arith.mulf %2, %4 : vector<80x8xf32>
    %c0_4 = arith.constant 0 : index
    %c0_5 = arith.constant 0 : index
    %6 = vector.load %arg3[%c0_4, %c0_5] : memref<1x8xf32, #tpu.memory_space<vmem>>, vector<1x8xf32>
    %7 = vector.broadcast %6 : vector<1x8xf32> to vector<80x8xf32>
    %8 = arith.addf %5, %7 : vector<80x8xf32>
    %cst = arith.constant 0.000000e+00 : f32
    %9 = vector.broadcast %cst : f32 to vector<80x8xf32>
    %10 = arith.maximumf %8, %9 : vector<80x8xf32>
    %11 = arith.truncf %10 : vector<80x8xf32> to vector<80x8xbf16>
    %c0_6 = arith.constant 0 : index
    %c0_7 = arith.constant 0 : index
    %c0_8 = arith.constant 0 : index
    %12 = vector.load %arg4[%c0_6, %c0_7, %c0_8] : memref<1x80x8xbf16, #tpu.memory_space<vmem>>, vector<1x80x8xbf16>
    %13 = vector.shape_cast %12 : vector<1x80x8xbf16> to vector<80x8xbf16>
    %14 = vector.shape_cast %11 : vector<80x8xbf16> to vector<1x80x8xbf16>
    tpu.vector_store %arg4[%c0_6, %c0_7, %c0_8], %14 {strides = array<i32>} : memref<1x80x8xbf16, #tpu.memory_space<vmem>>, vector<1x80x8xbf16>,
    return
  }
  func.func @transform_0(%arg0: i32) -> (i32, i32, i32) {
    %c0_i32 = arith.constant 0 : i32
    %c0_i32_0 = arith.constant 0 : i32
    %c0_i32_1 = arith.constant 0 : i32
    return %arg0, %c0_i32, %c0_i32_0 : i32, i32, i32
  }
  func.func @transform_1(%arg0: i32) -> (i32, i32) {
    %c0_i32 = arith.constant 0 : i32
    %c0_i32_0 = arith.constant 0 : i32
    %c0_i32_1 = arith.constant 0 : i32
    return %c0_i32, %c0_i32_0 : i32, i32
  }
  func.func @transform_2(%arg0: i32) -> (i32, i32) {
    %c0_i32 = arith.constant 0 : i32
    %c0_i32_0 = arith.constant 0 : i32
    %c0_i32_1 = arith.constant 0 : i32
    return %c0_i32, %c0_i32_0 : i32, i32
  }
  func.func @transform_3(%arg0: i32) -> (i32, i32, i32) {
    %c0_i32 = arith.constant 0 : i32
    %c0_i32_0 = arith.constant 0 : i32
    %c0_i32_1 = arith.constant 0 : i32
    return %arg0, %c0_i32, %c0_i32_0 : i32, i32, i32
  }
}

module attributes {stable_mosaic.version = 11 : i64} {
  func.func @_conv_post_kernel(%arg0: i32, %arg1: i32, %arg2: memref<1x342x8xf32, #tpu.memory_space<vmem>>, %arg3: memref<9x8x128xbf16, #tpu.memory_space<vmem>>, %arg4: memref<1x128xf32, #tpu.memory_space<vmem>>, %arg5: memref<128x3xbf16, #tpu.memory_space<vmem>>, %arg6: memref<1x3xf32, #tpu.memory_space<vmem>>, %arg7: memref<1x288x3xf32, #tpu.memory_space<vmem>>) attributes {dimension_semantics = [#tpu.dimension_semantics<parallel>, #tpu.dimension_semantics<parallel>], iteration_bounds = array<i64: 2, 1>, scalar_prefetch = 0 : i64, scratch_operands = 0 : i64, tpu.core_type = #tpu.core_type<tc>, window_params = [{transform_indices = @transform_0, window_bounds = array<i64: 1, 342, 8>}, {pipeline_mode = #tpu.pipeline_mode<synchronous>, transform_indices = @transform_1, window_bounds = array<i64: 9, 8, 128>}, {pipeline_mode = #tpu.pipeline_mode<synchronous>, transform_indices = @transform_2, window_bounds = array<i64: 1, 128>}, {pipeline_mode = #tpu.pipeline_mode<synchronous>, transform_indices = @transform_3, window_bounds = array<i64: 128, 3>}, {pipeline_mode = #tpu.pipeline_mode<synchronous>, transform_indices = @transform_4, window_bounds = array<i64: 1, 3>}, {transform_indices = @transform_5, window_bounds = array<i64: 1, 288, 3>}]} {
    %c288_i32 = arith.constant 288 : i32
    %0 = arith.muli %arg1, %c288_i32 : i32
    %cst = arith.constant 0.000000e+00 : f32
    %1 = vector.broadcast %cst : f32 to vector<288x128xf32>
    %c0_i32 = arith.constant 0 : i32
    %2 = arith.addi %0, %c0_i32 : i32
    %c0_i32_0 = arith.constant 0 : i32
    %3 = arith.addi %2, %c0_i32_0 : i32
    %c0 = arith.constant 0 : index
    %4 = arith.index_cast %3 : i32 to index
    %c0_1 = arith.constant 0 : index
    %5 = vector.load %arg2[%c0, %4, %c0_1] : memref<1x342x8xf32, #tpu.memory_space<vmem>>, vector<1x288x8xf32>
    %6 = vector.shape_cast %5 : vector<1x288x8xf32> to vector<288x8xf32>
    %7 = arith.truncf %6 : vector<288x8xf32> to vector<288x8xbf16>
    %c0_2 = arith.constant 0 : index
    %c0_3 = arith.constant 0 : index
    %c0_4 = arith.constant 0 : index
    %8 = vector.load %arg3[%c0_2, %c0_3, %c0_4] : memref<9x8x128xbf16, #tpu.memory_space<vmem>>, vector<1x8x128xbf16>
    %9 = vector.shape_cast %8 : vector<1x8x128xbf16> to vector<8x128xbf16>
    %cst_5 = arith.constant dense<0.000000e+00> : vector<288x128xf32>
    %10 = tpu.matmul %7, %9, %cst_5 {dimension_numbers = #tpu.dot_dimension_numbers<[1], [0], [0], [1], [0, 0, 1, 1], [], []>} : vector<288x8xbf16>, vector<8x128xbf16>, vector<288x128xf32> -> vector<288x128xf32>
    %11 = arith.addf %1, %10 : vector<288x128xf32>
    %c0_i32_6 = arith.constant 0 : i32
    %12 = arith.addi %0, %c0_i32_6 : i32
    %c1_i32 = arith.constant 1 : i32
    %13 = arith.addi %12, %c1_i32 : i32
    %c0_7 = arith.constant 0 : index
    %14 = arith.index_cast %13 : i32 to index
    %c0_8 = arith.constant 0 : index
    %15 = vector.load %arg2[%c0_7, %14, %c0_8] : memref<1x342x8xf32, #tpu.memory_space<vmem>>, vector<1x288x8xf32>
    %16 = vector.shape_cast %15 : vector<1x288x8xf32> to vector<288x8xf32>
    %17 = arith.truncf %16 : vector<288x8xf32> to vector<288x8xbf16>
    %c1 = arith.constant 1 : index
    %c0_9 = arith.constant 0 : index
    %c0_10 = arith.constant 0 : index
    %18 = vector.load %arg3[%c1, %c0_9, %c0_10] : memref<9x8x128xbf16, #tpu.memory_space<vmem>>, vector<1x8x128xbf16>
    %19 = vector.shape_cast %18 : vector<1x8x128xbf16> to vector<8x128xbf16>
    %cst_11 = arith.constant dense<0.000000e+00> : vector<288x128xf32>
    %20 = tpu.matmul %17, %19, %cst_11 {dimension_numbers = #tpu.dot_dimension_numbers<[1], [0], [0], [1], [0, 0, 1, 1], [], []>} : vector<288x8xbf16>, vector<8x128xbf16>, vector<288x128xf32> -> vector<288x128xf32>
    %21 = arith.addf %11, %20 : vector<288x128xf32>
    %c0_i32_12 = arith.constant 0 : i32
    %22 = arith.addi %0, %c0_i32_12 : i32
    %c2_i32 = arith.constant 2 : i32
    %23 = arith.addi %22, %c2_i32 : i32
    %c0_13 = arith.constant 0 : index
    %24 = arith.index_cast %23 : i32 to index
    %c0_14 = arith.constant 0 : index
    %25 = vector.load %arg2[%c0_13, %24, %c0_14] : memref<1x342x8xf32, #tpu.memory_space<vmem>>, vector<1x288x8xf32>
    %26 = vector.shape_cast %25 : vector<1x288x8xf32> to vector<288x8xf32>
    %27 = arith.truncf %26 : vector<288x8xf32> to vector<288x8xbf16>
    %c2 = arith.constant 2 : index
    %c0_15 = arith.constant 0 : index
    %c0_16 = arith.constant 0 : index
    %28 = vector.load %arg3[%c2, %c0_15, %c0_16] : memref<9x8x128xbf16, #tpu.memory_space<vmem>>, vector<1x8x128xbf16>
    %29 = vector.shape_cast %28 : vector<1x8x128xbf16> to vector<8x128xbf16>
    %cst_17 = arith.constant dense<0.000000e+00> : vector<288x128xf32>
    %30 = tpu.matmul %27, %29, %cst_17 {dimension_numbers = #tpu.dot_dimension_numbers<[1], [0], [0], [1], [0, 0, 1, 1], [], []>} : vector<288x8xbf16>, vector<8x128xbf16>, vector<288x128xf32> -> vector<288x128xf32>
    %31 = arith.addf %21, %30 : vector<288x128xf32>
    %c18_i32 = arith.constant 18 : i32
    %32 = arith.addi %0, %c18_i32 : i32
    %c0_i32_18 = arith.constant 0 : i32
    %33 = arith.addi %32, %c0_i32_18 : i32
    %c0_19 = arith.constant 0 : index
    %34 = arith.index_cast %33 : i32 to index
    %c0_20 = arith.constant 0 : index
    %35 = vector.load %arg2[%c0_19, %34, %c0_20] : memref<1x342x8xf32, #tpu.memory_space<vmem>>, vector<1x288x8xf32>
    %36 = vector.shape_cast %35 : vector<1x288x8xf32> to vector<288x8xf32>
    %37 = arith.truncf %36 : vector<288x8xf32> to vector<288x8xbf16>
    %c3 = arith.constant 3 : index
    %c0_21 = arith.constant 0 : index
    %c0_22 = arith.constant 0 : index
    %38 = vector.load %arg3[%c3, %c0_21, %c0_22] : memref<9x8x128xbf16, #tpu.memory_space<vmem>>, vector<1x8x128xbf16>
    %39 = vector.shape_cast %38 : vector<1x8x128xbf16> to vector<8x128xbf16>
    %cst_23 = arith.constant dense<0.000000e+00> : vector<288x128xf32>
    %40 = tpu.matmul %37, %39, %cst_23 {dimension_numbers = #tpu.dot_dimension_numbers<[1], [0], [0], [1], [0, 0, 1, 1], [], []>} : vector<288x8xbf16>, vector<8x128xbf16>, vector<288x128xf32> -> vector<288x128xf32>
    %41 = arith.addf %31, %40 : vector<288x128xf32>
    %c18_i32_24 = arith.constant 18 : i32
    %42 = arith.addi %0, %c18_i32_24 : i32
    %c1_i32_25 = arith.constant 1 : i32
    %43 = arith.addi %42, %c1_i32_25 : i32
    %c0_26 = arith.constant 0 : index
    %44 = arith.index_cast %43 : i32 to index
    %c0_27 = arith.constant 0 : index
    %45 = vector.load %arg2[%c0_26, %44, %c0_27] : memref<1x342x8xf32, #tpu.memory_space<vmem>>, vector<1x288x8xf32>
    %46 = vector.shape_cast %45 : vector<1x288x8xf32> to vector<288x8xf32>
    %47 = arith.truncf %46 : vector<288x8xf32> to vector<288x8xbf16>
    %c4 = arith.constant 4 : index
    %c0_28 = arith.constant 0 : index
    %c0_29 = arith.constant 0 : index
    %48 = vector.load %arg3[%c4, %c0_28, %c0_29] : memref<9x8x128xbf16, #tpu.memory_space<vmem>>, vector<1x8x128xbf16>
    %49 = vector.shape_cast %48 : vector<1x8x128xbf16> to vector<8x128xbf16>
    %cst_30 = arith.constant dense<0.000000e+00> : vector<288x128xf32>
    %50 = tpu.matmul %47, %49, %cst_30 {dimension_numbers = #tpu.dot_dimension_numbers<[1], [0], [0], [1], [0, 0, 1, 1], [], []>} : vector<288x8xbf16>, vector<8x128xbf16>, vector<288x128xf32> -> vector<288x128xf32>
    %51 = arith.addf %41, %50 : vector<288x128xf32>
    %c18_i32_31 = arith.constant 18 : i32
    %52 = arith.addi %0, %c18_i32_31 : i32
    %c2_i32_32 = arith.constant 2 : i32
    %53 = arith.addi %52, %c2_i32_32 : i32
    %c0_33 = arith.constant 0 : index
    %54 = arith.index_cast %53 : i32 to index
    %c0_34 = arith.constant 0 : index
    %55 = vector.load %arg2[%c0_33, %54, %c0_34] : memref<1x342x8xf32, #tpu.memory_space<vmem>>, vector<1x288x8xf32>
    %56 = vector.shape_cast %55 : vector<1x288x8xf32> to vector<288x8xf32>
    %57 = arith.truncf %56 : vector<288x8xf32> to vector<288x8xbf16>
    %c5 = arith.constant 5 : index
    %c0_35 = arith.constant 0 : index
    %c0_36 = arith.constant 0 : index
    %58 = vector.load %arg3[%c5, %c0_35, %c0_36] : memref<9x8x128xbf16, #tpu.memory_space<vmem>>, vector<1x8x128xbf16>
    %59 = vector.shape_cast %58 : vector<1x8x128xbf16> to vector<8x128xbf16>
    %cst_37 = arith.constant dense<0.000000e+00> : vector<288x128xf32>
    %60 = tpu.matmul %57, %59, %cst_37 {dimension_numbers = #tpu.dot_dimension_numbers<[1], [0], [0], [1], [0, 0, 1, 1], [], []>} : vector<288x8xbf16>, vector<8x128xbf16>, vector<288x128xf32> -> vector<288x128xf32>
    %61 = arith.addf %51, %60 : vector<288x128xf32>
    %c36_i32 = arith.constant 36 : i32
    %62 = arith.addi %0, %c36_i32 : i32
    %c0_i32_38 = arith.constant 0 : i32
    %63 = arith.addi %62, %c0_i32_38 : i32
    %c0_39 = arith.constant 0 : index
    %64 = arith.index_cast %63 : i32 to index
    %c0_40 = arith.constant 0 : index
    %65 = vector.load %arg2[%c0_39, %64, %c0_40] : memref<1x342x8xf32, #tpu.memory_space<vmem>>, vector<1x288x8xf32>
    %66 = vector.shape_cast %65 : vector<1x288x8xf32> to vector<288x8xf32>
    %67 = arith.truncf %66 : vector<288x8xf32> to vector<288x8xbf16>
    %c6 = arith.constant 6 : index
    %c0_41 = arith.constant 0 : index
    %c0_42 = arith.constant 0 : index
    %68 = vector.load %arg3[%c6, %c0_41, %c0_42] : memref<9x8x128xbf16, #tpu.memory_space<vmem>>, vector<1x8x128xbf16>
    %69 = vector.shape_cast %68 : vector<1x8x128xbf16> to vector<8x128xbf16>
    %cst_43 = arith.constant dense<0.000000e+00> : vector<288x128xf32>
    %70 = tpu.matmul %67, %69, %cst_43 {dimension_numbers = #tpu.dot_dimension_numbers<[1], [0], [0], [1], [0, 0, 1, 1], [], []>} : vector<288x8xbf16>, vector<8x128xbf16>, vector<288x128xf32> -> vector<288x128xf32>
    %71 = arith.addf %61, %70 : vector<288x128xf32>
    %c36_i32_44 = arith.constant 36 : i32
    %72 = arith.addi %0, %c36_i32_44 : i32
    %c1_i32_45 = arith.constant 1 : i32
    %73 = arith.addi %72, %c1_i32_45 : i32
    %c0_46 = arith.constant 0 : index
    %74 = arith.index_cast %73 : i32 to index
    %c0_47 = arith.constant 0 : index
    %75 = vector.load %arg2[%c0_46, %74, %c0_47] : memref<1x342x8xf32, #tpu.memory_space<vmem>>, vector<1x288x8xf32>
    %76 = vector.shape_cast %75 : vector<1x288x8xf32> to vector<288x8xf32>
    %77 = arith.truncf %76 : vector<288x8xf32> to vector<288x8xbf16>
    %c7 = arith.constant 7 : index
    %c0_48 = arith.constant 0 : index
    %c0_49 = arith.constant 0 : index
    %78 = vector.load %arg3[%c7, %c0_48, %c0_49] : memref<9x8x128xbf16, #tpu.memory_space<vmem>>, vector<1x8x128xbf16>
    %79 = vector.shape_cast %78 : vector<1x8x128xbf16> to vector<8x128xbf16>
    %cst_50 = arith.constant dense<0.000000e+00> : vector<288x128xf32>
    %80 = tpu.matmul %77, %79, %cst_50 {dimension_numbers = #tpu.dot_dimension_numbers<[1], [0], [0], [1], [0, 0, 1, 1], [], []>} : vector<288x8xbf16>, vector<8x128xbf16>, vector<288x128xf32> -> vector<288x128xf32>
    %81 = arith.addf %71, %80 : vector<288x128xf32>
    %c36_i32_51 = arith.constant 36 : i32
    %82 = arith.addi %0, %c36_i32_51 : i32
    %c2_i32_52 = arith.constant 2 : i32
    %83 = arith.addi %82, %c2_i32_52 : i32
    %c0_53 = arith.constant 0 : index
    %84 = arith.index_cast %83 : i32 to index
    %c0_54 = arith.constant 0 : index
    %85 = vector.load %arg2[%c0_53, %84, %c0_54] : memref<1x342x8xf32, #tpu.memory_space<vmem>>, vector<1x288x8xf32>
    %86 = vector.shape_cast %85 : vector<1x288x8xf32> to vector<288x8xf32>
    %87 = arith.truncf %86 : vector<288x8xf32> to vector<288x8xbf16>
    %c8 = arith.constant 8 : index
    %c0_55 = arith.constant 0 : index
    %c0_56 = arith.constant 0 : index
    %88 = vector.load %arg3[%c8, %c0_55, %c0_56] : memref<9x8x128xbf16, #tpu.memory_space<vmem>>, vector<1x8x128xbf16>
    %89 = vector.shape_cast %88 : vector<1x8x128xbf16> to vector<8x128xbf16>
    %cst_57 = arith.constant dense<0.000000e+00> : vector<288x128xf32>
    %90 = tpu.matmul %87, %89, %cst_57 {dimension_numbers = #tpu.dot_dimension_numbers<[1], [0], [0], [1], [0, 0, 1, 1], [], []>} : vector<288x8xbf16>, vector<8x128xbf16>, vector<288x128xf32> -> vector<288x128xf32>
    %91 = arith.addf %81, %90 : vector<288x128xf32>
    %c0_58 = arith.constant 0 : index
    %c0_59 = arith.constant 0 : index
    %92 = vector.load %arg4[%c0_58, %c0_59] : memref<1x128xf32, #tpu.memory_space<vmem>>, vector<1x128xf32>
    %93 = vector.broadcast %92 : vector<1x128xf32> to vector<288x128xf32>
    %94 = arith.addf %91, %93 : vector<288x128xf32>
    %cst_60 = arith.constant 0.000000e+00 : f32
    %95 = vector.broadcast %cst_60 : f32 to vector<288x128xf32>
    %96 = arith.maximumf %94, %95 : vector<288x128xf32>
    %97 = arith.truncf %96 : vector<288x128xf32> to vector<288x128xbf16>
    %c0_61 = arith.constant 0 : index
    %c0_62 = arith.constant 0 : index
    %98 = vector.load %arg5[%c0_61, %c0_62] : memref<128x3xbf16, #tpu.memory_space<vmem>>, vector<128x3xbf16>
    %cst_63 = arith.constant dense<0.000000e+00> : vector<288x3xf32>
    %99 = tpu.matmul %97, %98, %cst_63 {dimension_numbers = #tpu.dot_dimension_numbers<[1], [0], [0], [1], [0, 0, 1, 1], [], []>} : vector<288x128xbf16>, vector<128x3xbf16>, vector<288x3xf32> -> vector<288x3xf32>
    %c0_64 = arith.constant 0 : index
    %c0_65 = arith.constant 0 : index
    %100 = vector.load %arg6[%c0_64, %c0_65] : memref<1x3xf32, #tpu.memory_space<vmem>>, vector<1x3xf32>
    %101 = vector.broadcast %100 : vector<1x3xf32> to vector<288x3xf32>
    %102 = arith.addf %99, %101 : vector<288x3xf32>
    %c0_66 = arith.constant 0 : index
    %c0_67 = arith.constant 0 : index
    %c0_68 = arith.constant 0 : index
    %103 = vector.load %arg7[%c0_66, %c0_67, %c0_68] : memref<1x288x3xf32, #tpu.memory_space<vmem>>, vector<1x288x3xf32>
    %104 = vector.shape_cast %103 : vector<1x288x3xf32> to vector<288x3xf32>
    %105 = vector.shape_cast %102 : vector<288x3xf32> to vector<1x288x3xf32>
    tpu.vector_store %arg7[%c0_66, %c0_67, %c0_68], %105 {strides = array<i32>} : memref<1x288x3xf32, #tpu.memory_space<vmem>>, vector<1x288x3xf32>,
    return
  }
  func.func @transform_0(%arg0: i32, %arg1: i32) -> (i32, i32, i32) {
    %c0_i32 = arith.constant 0 : i32
    %c0_i32_0 = arith.constant 0 : i32
    %c0_i32_1 = arith.constant 0 : i32
    return %arg0, %c0_i32, %c0_i32_0 : i32, i32, i32
  }
  func.func @transform_1(%arg0: i32, %arg1: i32) -> (i32, i32, i32) {
    %c0_i32 = arith.constant 0 : i32
    %c0_i32_0 = arith.constant 0 : i32
    %c0_i32_1 = arith.constant 0 : i32
    %c0_i32_2 = arith.constant 0 : i32
    return %c0_i32, %c0_i32_0, %c0_i32_1 : i32, i32, i32
  }
  func.func @transform_2(%arg0: i32, %arg1: i32) -> (i32, i32) {
    %c0_i32 = arith.constant 0 : i32
    %c0_i32_0 = arith.constant 0 : i32
    %c0_i32_1 = arith.constant 0 : i32
    return %c0_i32, %c0_i32_0 : i32, i32
  }
  func.func @transform_3(%arg0: i32, %arg1: i32) -> (i32, i32) {
    %c0_i32 = arith.constant 0 : i32
    %c0_i32_0 = arith.constant 0 : i32
    %c0_i32_1 = arith.constant 0 : i32
    return %c0_i32, %c0_i32_0 : i32, i32
  }
  func.func @transform_4(%arg0: i32, %arg1: i32) -> (i32, i32) {
    %c0_i32 = arith.constant 0 : i32
    %c0_i32_0 = arith.constant 0 : i32
    %c0_i32_1 = arith.constant 0 : i32
    return %c0_i32, %c0_i32_0 : i32, i32
  }
  func.func @transform_5(%arg0: i32, %arg1: i32) -> (i32, i32, i32) {
    %c0_i32 = arith.constant 0 : i32
    %c0_i32_0 = arith.constant 0 : i32
    return %arg0, %arg1, %c0_i32 : i32, i32, i32
  }
}

</mosaic_0001>

<bundles_post_ra>
// kernel: conv_autoencoder_forward.12
= control target key start
LH: loop header
LB: loop body
LE: loop exit
PB: predicated region body
PF: predicated region fallthrough
CT: control target
= control target key end

     0   :  { %s431_s12 = smov 0   ;;  %s493_s0 = inlined_call_operand.vmem [shape: bf16[2,80,16], index: 0, kind: input, shape index: {}]   ;;  %s494_s1 = inlined_call_operand.vmem [shape: f32[1,16], index: 1, kind: input, shape index: {}]   ;;  %s495_s2 = inlined_call_operand.vmem [shape: f32[1,16], index: 2, kind: input, shape index: {}]   ;;  %s496_s3 = inlined_call_operand.vmem [shape: f32[2,42,16], index: 3, kind: output, shape index: {}]  }
   0x1 LB: > { %s356_s13 = sadd.s32 4294967295, %s408_s12   ;;  %p360_p0 = scmp.ge.s32.totalorder %s408_s12, 1  ;;  %s408_s12 = sphi %s431_s12, %s13_s12  }
   0x2   : > { %p137_p1 = scmp.lt.s32.totalorder %s408_s12, 3 }
   0x4   : > { %p138_p2 = pnand %p360_p0, %p137_p1 }
   0x5   : > { %p161_p3 = scmp.lt.s32.totalorder (!%p138_p2), %s356_s13, 1  ;;  %vm251_vm0 = vcmask (!%p138_p2), 123904   ;;  %v363_v0 = vld [vmem:[%s494_s1] ss:$0 sm:$0xff] (!%p138_p2)  ;;  %vm235_vm1 = vcmask (!%p138_p2), 130048   ;;  %v410_v9 = vmov (!%p138_p2), 0.0  }
   0x6   : > { %141 = sbr.rel (%p138_p2) target bundleno = 49 (0x31), region = 32  ;;  %v364_v10 = vld [vmem:[%s495_s2] ss:$0 sm:$0xff] (!%p138_p2)  ;;  %vm263_vm2 = vcmask (!%p138_p2), 125952  }
   0xd   : > { %s498_s13 = smov (!%p161_p3, %s356_s13), 1 }
   0xe   : > { %s391_s14 = smul.u32 40, %s498_s13 }
   0xf   : > { %s392_s15 = smul.u32 48, %s498_s13 }
  0x10   : > { %s442_s18 = scalar_lea.vmem %s493_s0, %s391_s14 }
  0x11   : > { %s450_s23 = scalar_lea.vmem %s496_s3, %s392_s15  ;;  %v368_v1 = vld [vmem:[%s442_s18] sm:$0xff]   ;;  %v387_v2 = vld [vmem:[%s442_s18 + $0x8] sm:$0xff]   ;;  %v388_v3 = vld [vmem:[%s442_s18 + $0x10] sm:$0xff]  }
  0x12   : > { %v369_v4 = vunpack.c.l.bf16 %v368_v1  ;;  %v370_v5 = vunpack.c.h.bf16 %v368_v1  ;;  %v373_v6 = vunpack.c.l.bf16 %v387_v2  ;;  %v374_v7 = vunpack.c.h.bf16 %v387_v2  ;;  %v389_v8 = vld [vmem:[%s442_s18 + $0x18] sm:$0xff]   ;;  %246 = vst.msk [vmem:[%s450_s23] sm:$0xff] %vm235_vm1, %v410_v9  ;;  %247 = vst.msk [vmem:[%s450_s23 + $0x8] sm:$0xff] %vm235_vm1, %v410_v9  ;;  %v390_v31 = vld [vmem:[%s442_s18 + $0x20] sm:$0xff]  }
  0x13   : > { %248 = vst.msk [vmem:[%s450_s23 + $0x10] sm:$0xff] %vm235_vm1, %v410_v9  ;;  %249 = vst.msk [vmem:[%s450_s23 + $0x18] sm:$0xff] %vm235_vm1, %v410_v9  ;;  %v377_v11 = vunpack.c.l.bf16 %v388_v3  ;;  %v378_v12 = vunpack.c.h.bf16 %v388_v3  ;;  %v381_v13 = vunpack.c.l.bf16 %v389_v8  ;;  %v382_v14 = vunpack.c.h.bf16 %v389_v8 }
  0x14   : > { %250 = vst.msk [vmem:[%s450_s23 + $0x20] sm:$0xff] %vm235_vm1, %v410_v9  ;;  %v198_v15 = vmul.f32 %v369_v4, %v363_v0  ;;  %v199_v16 = vmul.f32 %v370_v5, %v363_v0  ;;  %v200_v17 = vmul.f32 %v373_v6, %v363_v0  ;;  %v201_v18 = vmul.f32 %v374_v7, %v363_v0 }
  0x15   : > { %252 = vst.msk [vmem:[%s450_s23 + $0x28] sm:$0x3] %vm251_vm0, %v410_v9  ;;  %v202_v19 = vmul.f32 %v377_v11, %v363_v0  ;;  %v203_v20 = vmul.f32 %v378_v12, %v363_v0  ;;  %v204_v21 = vmul.f32 %v381_v13, %v363_v0  ;;  %v205_v22 = vmul.f32 %v382_v14, %v363_v0 }
  0x16   : > { %v215_v23 = vadd.f32 %v364_v10, %v198_v15  ;;  %v216_v24 = vadd.f32 %v364_v10, %v199_v16  ;;  %v217_v25 = vadd.f32 %v364_v10, %v200_v17  ;;  %v218_v26 = vadd.f32 %v364_v10, %v201_v18 }
  0x17   : > { %v219_v27 = vadd.f32 %v364_v10, %v202_v19  ;;  %v220_v28 = vadd.f32 %v364_v10, %v203_v20  ;;  %v221_v29 = vadd.f32 %v364_v10, %v204_v21  ;;  %v222_v30 = vadd.f32 %v364_v10, %v205_v22 }
  0x18   : > { %v225_v32 = vmax.f32 %v215_v23, 0.0  ;;  %v226_v33 = vmax.f32 %v216_v24, 0.0  ;;  %v227_v34 = vmax.f32 %v217_v25, 0.0  ;;  %v228_v35 = vmax.f32 %v218_v26, 0.0 }
  0x19   : > { %v229_v36 = vmax.f32 %v219_v27, 0.0  ;;  %v230_v37 = vmax.f32 %v220_v28, 0.0  ;;  %v231_v38 = vmax.f32 %v221_v29, 0.0  ;;  %v232_v39 = vmax.f32 %v222_v30, 0.0 }
  0x1a   : > { %236 = vst.msk [vmem:[#allocation2] sm:$0xff] %vm235_vm1, %v225_v32  ;;  %237 = vst.msk [vmem:[#allocation2 + $0x8] sm:$0xff] %vm235_vm1, %v226_v33  ;;  %v385_v40 = vunpack.c.l.bf16 %v390_v31  ;;  %v386_v41 = vunpack.c.h.bf16 %v390_v31 }
  0x1b   : > { %238 = vst.msk [vmem:[#allocation2 + $0x10] sm:$0xff] %vm235_vm1, %v227_v34  ;;  %239 = vst.msk [vmem:[#allocation2 + $0x18] sm:$0xff] %vm235_vm1, %v228_v35 }
  0x1c   : > { %240 = vst.msk [vmem:[#allocation2 + $0x20] sm:$0xff] %vm235_vm1, %v229_v36  ;;  %241 = vst.msk [vmem:[#allocation2 + $0x28] sm:$0xff] %vm235_vm1, %v230_v37  ;;  %v206_v42 = vmul.f32 %v385_v40, %v363_v0  ;;  %v207_v43 = vmul.f32 %v386_v41, %v363_v0 }
  0x1d   : > { %242 = vst.msk [vmem:[#allocation2 + $0x30] sm:$0xff] %vm235_vm1, %v231_v38  ;;  %243 = vst.msk [vmem:[#allocation2 + $0x38] sm:$0xff] %vm235_vm1, %v232_v39 }
  0x1e   : > { %v223_v44 = vadd.f32 %v364_v10, %v206_v42  ;;  %v224_v45 = vadd.f32 %v364_v10, %v207_v43 }
  0x20   : > { %v233_v46 = vmax.f32 %v223_v44, 0.0  ;;  %v234_v47 = vmax.f32 %v224_v45, 0.0 }
  0x21   : > { %v253_v48 = vld [vmem:[#allocation2] ss:$2 sm:$0xf]  ;;  %v255_v49 = vld [vmem:[#allocation2 + $0x1] ss:$2 sm:$0xf] }
  0x22   : > { %244 = vst.msk [vmem:[#allocation2 + $0x40] sm:$0xff] %vm235_vm1, %v233_v46  ;;  %245 = vst.msk [vmem:[#allocation2 + $0x48] sm:$0xff] %vm235_vm1, %v234_v47  ;;  %v257_v50 = vld [vmem:[#allocation2 + $0xa] ss:$2 sm:$0xf]  ;;  %v260_v52 = vmax.f32 %v253_v48, %v255_v49 }
  0x23   : > { %v259_v51 = vld [vmem:[#allocation2 + $0xb] ss:$2 sm:$0xf]  ;;  %v266_v54 = vld [vmem:[#allocation2 + $0x14] ss:$2 sm:$0xf] }
  0x24   : > { %v261_v53 = vmax.f32 %v257_v50, %v259_v51  ;;  %v268_v55 = vld [vmem:[#allocation2 + $0x15] ss:$2 sm:$0xf]  ;;  %v270_v56 = vld [vmem:[#allocation2 + $0x1e] ss:$2 sm:$0xf] }
  0x25   : > { %v272_v57 = vld [vmem:[#allocation2 + $0x1f] ss:$2 sm:$0xf]  ;;  %v273_v58 = vmax.f32 %v266_v54, %v268_v55  ;;  %v278_v61 = vld [vmem:[#allocation2 + $0x28] ss:$2 sm:$0xf] }
  0x26   : > { %v262_v59 = vmax.f32 %v260_v52, %v261_v53  ;;  %v274_v60 = vmax.f32 %v270_v56, %v272_v57  ;;  %v280_v62 = vld [vmem:[#allocation2 + $0x29] ss:$2 sm:$0xf]  ;;  %v282_v63 = vld [vmem:[#allocation2 + $0x32] ss:$2 sm:$0xf] }
  0x27   : > { %v284_v0 = vld [vmem:[#allocation2 + $0x33] ss:$2 sm:$0xf]  ;;  %v285_v1 = vmax.f32 %v278_v61, %v280_v62 }
  0x28   : > { %264 = vst.msk [vmem:[%s450_s23 + $0x7] sm:$0xf] %vm263_vm2, %v262_v59  ;;  %v275_v2 = vmax.f32 %v273_v58, %v274_v60  ;;  %v286_v3 = vmax.f32 %v282_v63, %v284_v0 }
  0x29   : > { %v290_v5 = vld [vmem:[#allocation2 + $0x3c] ss:$2 sm:$0xf]  ;;  %v292_v6 = vld [vmem:[#allocation2 + $0x3d] ss:$2 sm:$0xf] }
  0x2a   : > { %276 = vst.msk [vmem:[%s450_s23 + $0xd] sm:$0xf] %vm263_vm2, %v275_v2  ;;  %v287_v4 = vmax.f32 %v285_v1, %v286_v3  ;;  %v294_v7 = vld [vmem:[#allocation2 + $0x46] ss:$2 sm:$0xf]  ;;  %v297_v9 = vmax.f32 %v290_v5, %v292_v6 }
  0x2b   : > { %v296_v8 = vld [vmem:[#allocation2 + $0x47] ss:$2 sm:$0xf] }
  0x2c   : > { %288 = vst.msk [vmem:[%s450_s23 + $0x13] sm:$0xf] %vm263_vm2, %v287_v4  ;;  %v298_v10 = vmax.f32 %v294_v7, %v296_v8 }
  0x2e   : > { %v299_v11 = vmax.f32 %v297_v9, %v298_v10 }
  0x30   : > { %300 = vst.msk [vmem:[%s450_s23 + $0x19] sm:$0xf] %vm263_vm2, %v299_v11 }
  0x31 PF: > { %s13_s12 = sadd.s32 1, %s408_s12  }
  0x32   : > { %p10_p4 = scmp.ge.s32.totalorder %s13_s12, 4  }
  0x34   :  { %12 = sbr.rel (!%p10_p4) target bundleno = 1 (0x1), region = 77 }

// kernel: conv_autoencoder_forward.10
= control target key start
LH: loop header
LB: loop body
LE: loop exit
PB: predicated region body
PF: predicated region fallthrough
CT: control target
= control target key end

     0   :  { %s707_s12 = smov 0   ;;  %s908_s0 = inlined_call_operand.vmem [shape: bf16[2,288,8], index: 0, kind: input, shape index: {}]   ;;  %s909_s1 = inlined_call_operand.vmem [shape: f32[1,8], index: 1, kind: input, shape index: {}]   ;;  %s910_s2 = inlined_call_operand.vmem [shape: f32[1,8], index: 2, kind: input, shape index: {}]   ;;  %s911_s3 = inlined_call_operand.vmem [shape: f32[2,110,8], index: 3, kind: output, shape index: {}]  }
   0x1 LB: > { %s567_s13 = sadd.s32 4294967295, %s684_s12   ;;  %p571_p0 = scmp.ge.s32.totalorder %s684_s12, 1  ;;  %s684_s12 = sphi %s707_s12, %s13_s12  }
   0x2   : > { %p137_p1 = scmp.lt.s32.totalorder %s684_s12, 3 }
   0x4   : > { %p138_p2 = pnand %p571_p0, %p137_p1 }
   0x5   : > { %p161_p3 = scmp.lt.s32.totalorder (!%p138_p2), %s567_s13, 1  ;;  %vm415_vm0 = vcmask (!%p138_p2), 62464   ;;  %v723_v0 = vld [vmem:[%s909_s1] ss:$0 sm:$0xff] (!%p138_p2)  ;;  %vm365_vm1 = vcmask (!%p138_p2), 64512   ;;  %v686_v9 = vmov (!%p138_p2), 0.0  }
   0x6   : > { %141 = sbr.rel (%p138_p2) target bundleno = 73 (0x49), region = 32  ;;  %v765_v10 = vld [vmem:[%s910_s2] ss:$0 sm:$0xff] (!%p138_p2) }
   0xd   : > { %s913_s13 = smov (!%p161_p3, %s567_s13), 1 }
   0xe   : > { %s667_s14 = smul.u32 144, %s913_s13 }
   0xf   : > { %s668_s15 = smul.u32 112, %s913_s13 }
  0x10   : > { %s718_s18 = scalar_lea.vmem %s908_s0, %s667_s14 }
  0x11   : > { %s728_s23 = scalar_lea.vmem %s911_s3, %s668_s15  ;;  %v579_v1 = vld [vmem:[%s718_s18] sm:$0xff]   ;;  %v650_v2 = vld [vmem:[%s718_s18 + $0x8] sm:$0xff]   ;;  %v651_v3 = vld [vmem:[%s718_s18 + $0x10] sm:$0xff]  }
  0x12   : > { %v580_v4 = vunpack.c.l.bf16 %v579_v1  ;;  %v581_v5 = vunpack.c.h.bf16 %v579_v1  ;;  %v584_v6 = vunpack.c.l.bf16 %v650_v2  ;;  %v585_v7 = vunpack.c.h.bf16 %v650_v2  ;;  %v652_v8 = vld [vmem:[%s718_s18 + $0x18] sm:$0xff]   ;;  %403 = vst.msk [vmem:[%s728_s23 + $0x8] sm:$0xff] %vm365_vm1, %v686_v9  ;;  %402 = vst.msk [vmem:[%s728_s23] sm:$0xff] %vm365_vm1, %v686_v9  ;;  %v653_v31 = vld [vmem:[%s718_s18 + $0x20] sm:$0xff]  }
  0x13   : > { %404 = vst.msk [vmem:[%s728_s23 + $0x10] sm:$0xff] %vm365_vm1, %v686_v9  ;;  %405 = vst.msk [vmem:[%s728_s23 + $0x18] sm:$0xff] %vm365_vm1, %v686_v9  ;;  %v588_v11 = vunpack.c.l.bf16 %v651_v3  ;;  %v589_v12 = vunpack.c.h.bf16 %v651_v3  ;;  %v592_v13 = vunpack.c.l.bf16 %v652_v8  ;;  %v593_v14 = vunpack.c.h.bf16 %v652_v8  ;;  %v654_v32 = vld [vmem:[%s718_s18 + $0x28] sm:$0xff]   ;;  %v655_v37 = vld [vmem:[%s718_s18 + $0x30] sm:$0xff]  }
  0x14   : > { %406 = vst.msk [vmem:[%s728_s23 + $0x20] sm:$0xff] %vm365_vm1, %v686_v9  ;;  %407 = vst.msk [vmem:[%s728_s23 + $0x28] sm:$0xff] %vm365_vm1, %v686_v9  ;;  %v250_v15 = vmul.f32 %v580_v4, %v723_v0  ;;  %v251_v16 = vmul.f32 %v581_v5, %v723_v0  ;;  %v252_v17 = vmul.f32 %v584_v6, %v723_v0  ;;  %v656_v38 = vld [vmem:[%s718_s18 + $0x38] sm:$0xff]   ;;  %v596_v43 = vunpack.c.l.bf16 %v653_v31  ;;  %v657_v4 = vld [vmem:[%s718_s18 + $0x40] sm:$0xff]  }
  0x15   : > { %408 = vst.msk [vmem:[%s728_s23 + $0x30] sm:$0xff] %vm365_vm1, %v686_v9  ;;  %409 = vst.msk [vmem:[%s728_s23 + $0x38] sm:$0xff] %vm365_vm1, %v686_v9  ;;  %v253_v18 = vmul.f32 %v585_v7, %v723_v0  ;;  %v254_v19 = vmul.f32 %v588_v11, %v723_v0  ;;  %v255_v20 = vmul.f32 %v589_v12, %v723_v0  ;;  %v597_v44 = vunpack.c.h.bf16 %v653_v31  ;;  %v658_v5 = vld [vmem:[%s718_s18 + $0x48] sm:$0xff]   ;;  %v659_v11 = vld [vmem:[%s718_s18 + $0x50] sm:$0xff]  }
  0x16   : > { %410 = vst.msk [vmem:[%s728_s23 + $0x40] sm:$0xff] %vm365_vm1, %v686_v9  ;;  %411 = vst.msk [vmem:[%s728_s23 + $0x48] sm:$0xff] %vm365_vm1, %v686_v9  ;;  %v256_v21 = vmul.f32 %v592_v13, %v723_v0  ;;  %v257_v22 = vmul.f32 %v593_v14, %v723_v0  ;;  %v293_v23 = vadd.f32 %v765_v10, %v250_v15  ;;  %v600_v45 = vunpack.c.l.bf16 %v654_v32  ;;  %v660_v12 = vld [vmem:[%s718_s18 + $0x58] sm:$0xff]  }
  0x17   : > { %412 = vst.msk [vmem:[%s728_s23 + $0x50] sm:$0xff] %vm365_vm1, %v686_v9  ;;  %413 = vst.msk [vmem:[%s728_s23 + $0x58] sm:$0xff] %vm365_vm1, %v686_v9  ;;  %v294_v24 = vadd.f32 %v765_v10, %v251_v16  ;;  %v295_v25 = vadd.f32 %v765_v10, %v252_v17  ;;  %v296_v26 = vadd.f32 %v765_v10, %v253_v18  ;;  %v601_v46 = vunpack.c.h.bf16 %v654_v32 }
  0x18   : > { %414 = vst.msk [vmem:[%s728_s23 + $0x60] sm:$0xff] %vm365_vm1, %v686_v9  ;;  %v297_v27 = vadd.f32 %v765_v10, %v254_v19  ;;  %v298_v28 = vadd.f32 %v765_v10, %v255_v20  ;;  %v299_v29 = vadd.f32 %v765_v10, %v256_v21  ;;  %v300_v30 = vadd.f32 %v765_v10, %v257_v22 }
  0x19   : > { %416 = vst.msk [vmem:[%s728_s23 + $0x68] sm:$0x3f] %vm415_vm0, %v686_v9  ;;  %v329_v33 = vmax.f32 %v293_v23, 0.0  ;;  %v330_v34 = vmax.f32 %v294_v24, 0.0  ;;  %v331_v35 = vmax.f32 %v295_v25, 0.0  ;;  %v332_v36 = vmax.f32 %v296_v26, 0.0 }
  0x1a   : > { %v333_v39 = vmax.f32 %v297_v27, 0.0  ;;  %v334_v40 = vmax.f32 %v298_v28, 0.0  ;;  %v335_v41 = vmax.f32 %v299_v29, 0.0  ;;  %v336_v42 = vmax.f32 %v300_v30, 0.0 }
  0x1b   : > { %366 = vst.msk [vmem:[#allocation2] sm:$0xff] %vm365_vm1, %v329_v33  ;;  %367 = vst.msk [vmem:[#allocation2 + $0x8] sm:$0xff] %vm365_vm1, %v330_v34  ;;  %v604_v47 = vunpack.c.l.bf16 %v655_v37  ;;  %v605_v48 = vunpack.c.h.bf16 %v655_v37  ;;  %v608_v49 = vunpack.c.l.bf16 %v656_v38  ;;  %v609_v50 = vunpack.c.h.bf16 %v656_v38 }
  0x1c   : > { %368 = vst.msk [vmem:[#allocation2 + $0x10] sm:$0xff] %vm365_vm1, %v331_v35  ;;  %369 = vst.msk [vmem:[#allocation2 + $0x18] sm:$0xff] %vm365_vm1, %v332_v36  ;;  %v258_v51 = vmul.f32 %v596_v43, %v723_v0  ;;  %v259_v52 = vmul.f32 %v597_v44, %v723_v0  ;;  %v260_v53 = vmul.f32 %v600_v45, %v723_v0  ;;  %v612_v17 = vunpack.c.l.bf16 %v657_v4 }
  0x1d   : > { %370 = vst.msk [vmem:[#allocation2 + $0x20] sm:$0xff] %vm365_vm1, %v333_v39  ;;  %371 = vst.msk [vmem:[#allocation2 + $0x28] sm:$0xff] %vm365_vm1, %v334_v40  ;;  %v261_v54 = vmul.f32 %v601_v46, %v723_v0  ;;  %v262_v55 = vmul.f32 %v604_v47, %v723_v0  ;;  %v263_v56 = vmul.f32 %v605_v48, %v723_v0  ;;  %v613_v18 = vunpack.c.h.bf16 %v657_v4  ;;  %v663_v47 = vld [vmem:[%s718_s18 + $0x70] sm:$0xff]   ;;  %v664_v48 = vld [vmem:[%s718_s18 + $0x78] sm:$0xff]  }
  0x1e   : > { %372 = vst.msk [vmem:[#allocation2 + $0x30] sm:$0xff] %vm365_vm1, %v335_v41  ;;  %373 = vst.msk [vmem:[#allocation2 + $0x38] sm:$0xff] %vm365_vm1, %v336_v42  ;;  %v264_v57 = vmul.f32 %v608_v49, %v723_v0  ;;  %v265_v58 = vmul.f32 %v609_v50, %v723_v0  ;;  %v301_v59 = vadd.f32 %v765_v10, %v258_v51  ;;  %v616_v19 = vunpack.c.l.bf16 %v658_v5  ;;  %v661_v41 = vld [vmem:[%s718_s18 + $0x60] sm:$0xff]   ;;  %v662_v42 = vld [vmem:[%s718_s18 + $0x68] sm:$0xff]  }
  0x1f   : > { %v302_v60 = vadd.f32 %v765_v10, %v259_v52  ;;  %v303_v61 = vadd.f32 %v765_v10, %v260_v53  ;;  %v304_v62 = vadd.f32 %v765_v10, %v261_v54  ;;  %v305_v63 = vadd.f32 %v765_v10, %v262_v55 }
  0x20   : > { %v306_v1 = vadd.f32 %v765_v10, %v263_v56  ;;  %v307_v2 = vadd.f32 %v765_v10, %v264_v57  ;;  %v308_v3 = vadd.f32 %v765_v10, %v265_v58  ;;  %v337_v6 = vmax.f32 %v301_v59, 0.0 }
  0x21   : > { %v338_v7 = vmax.f32 %v302_v60, 0.0  ;;  %v339_v8 = vmax.f32 %v303_v61, 0.0  ;;  %v340_v9 = vmax.f32 %v304_v62, 0.0  ;;  %v341_v13 = vmax.f32 %v305_v63, 0.0 }
  0x22   : > { %v342_v14 = vmax.f32 %v306_v1, 0.0  ;;  %v343_v15 = vmax.f32 %v307_v2, 0.0  ;;  %v344_v16 = vmax.f32 %v308_v3, 0.0  ;;  %374 = vst.msk [vmem:[#allocation2 + $0x40] sm:$0xff] %vm365_vm1, %v337_v6  ;;  %v617_v20 = vunpack.c.h.bf16 %v658_v5  ;;  %v665_v6 = vld [vmem:[%s718_s18 + $0x80] sm:$0xff]  }
  0x23   : > { %375 = vst.msk [vmem:[#allocation2 + $0x48] sm:$0xff] %vm365_vm1, %v338_v7  ;;  %376 = vst.msk [vmem:[#allocation2 + $0x50] sm:$0xff] %vm365_vm1, %v339_v8  ;;  %v620_v21 = vunpack.c.l.bf16 %v659_v11  ;;  %v621_v22 = vunpack.c.h.bf16 %v659_v11  ;;  %v624_v23 = vunpack.c.l.bf16 %v660_v12  ;;  %v625_v24 = vunpack.c.h.bf16 %v660_v12  ;;  %v666_v7 = vld [vmem:[%s718_s18 + $0x88] sm:$0xff]  }
  0x24   : > { %377 = vst.msk [vmem:[#allocation2 + $0x58] sm:$0xff] %vm365_vm1, %v340_v9  ;;  %378 = vst.msk [vmem:[#allocation2 + $0x60] sm:$0xff] %vm365_vm1, %v341_v13  ;;  %v266_v25 = vmul.f32 %v612_v17, %v723_v0  ;;  %v267_v26 = vmul.f32 %v613_v18, %v723_v0  ;;  %v268_v27 = vmul.f32 %v616_v19, %v723_v0  ;;  %v628_v53 = vunpack.c.l.bf16 %v661_v41  ;;  %v417_v13 = vld [vmem:[#allocation2] ss:$2 sm:$0xff] }
  0x25   : > { %379 = vst.msk [vmem:[#allocation2 + $0x68] sm:$0xff] %vm365_vm1, %v342_v14  ;;  %380 = vst.msk [vmem:[#allocation2 + $0x70] sm:$0xff] %vm365_vm1, %v343_v15  ;;  %v269_v28 = vmul.f32 %v617_v20, %v723_v0  ;;  %v270_v29 = vmul.f32 %v620_v21, %v723_v0  ;;  %v271_v30 = vmul.f32 %v621_v22, %v723_v0  ;;  %v629_v54 = vunpack.c.h.bf16 %v661_v41  ;;  %v419_v14 = vld [vmem:[#allocation2 + $0x1] ss:$2 sm:$0xff]  ;;  %v421_v15 = vld [vmem:[#allocation2 + $0x12] ss:$2 sm:$0xff] }
  0x26   : > { %381 = vst.msk [vmem:[#allocation2 + $0x78] sm:$0xff] %vm365_vm1, %v344_v16  ;;  %v272_v31 = vmul.f32 %v624_v23, %v723_v0  ;;  %v273_v32 = vmul.f32 %v625_v24, %v723_v0  ;;  %v309_v33 = vadd.f32 %v765_v10, %v266_v25  ;;  %v310_v34 = vadd.f32 %v765_v10, %v267_v26  ;;  %v423_v16 = vld [vmem:[#allocation2 + $0x13] ss:$2 sm:$0xff]  ;;  %v429_v21 = vld [vmem:[#allocation2 + $0x24] ss:$2 sm:$0xff] }
  0x27   : > { %v311_v35 = vadd.f32 %v765_v10, %v268_v27  ;;  %v312_v36 = vadd.f32 %v765_v10, %v269_v28  ;;  %v313_v37 = vadd.f32 %v765_v10, %v270_v29  ;;  %v314_v38 = vadd.f32 %v765_v10, %v271_v30  ;;  %v431_v22 = vld [vmem:[#allocation2 + $0x25] ss:$2 sm:$0xff] }
  0x28   : > { %v315_v39 = vadd.f32 %v765_v10, %v272_v31  ;;  %v316_v40 = vadd.f32 %v765_v10, %v273_v32  ;;  %v345_v43 = vmax.f32 %v309_v33, 0.0  ;;  %v346_v44 = vmax.f32 %v310_v34, 0.0 }
  0x29   : > { %v347_v45 = vmax.f32 %v311_v35, 0.0  ;;  %v348_v46 = vmax.f32 %v312_v36, 0.0  ;;  %v349_v49 = vmax.f32 %v313_v37, 0.0  ;;  %v350_v50 = vmax.f32 %v314_v38, 0.0  ;;  %v433_v23 = vld [vmem:[#allocation2 + $0x36] ss:$2 sm:$0xff] }
  0x2a   : > { %v351_v51 = vmax.f32 %v315_v39, 0.0  ;;  %v352_v52 = vmax.f32 %v316_v40, 0.0  ;;  %382 = vst.msk [vmem:[#allocation2 + $0x80] sm:$0xff] %vm365_vm1, %v345_v43  ;;  %383 = vst.msk [vmem:[#allocation2 + $0x88] sm:$0xff] %vm365_vm1, %v346_v44  ;;  %v632_v55 = vunpack.c.l.bf16 %v662_v42  ;;  %v633_v56 = vunpack.c.h.bf16 %v662_v42  ;;  %v435_v28 = vld [vmem:[#allocation2 + $0x37] ss:$2 sm:$0xff] }
  0x2b   : > { %384 = vst.msk [vmem:[#allocation2 + $0x90] sm:$0xff] %vm365_vm1, %v347_v45  ;;  %385 = vst.msk [vmem:[#allocation2 + $0x98] sm:$0xff] %vm365_vm1, %v348_v46  ;;  %v636_v57 = vunpack.c.l.bf16 %v663_v47  ;;  %v637_v58 = vunpack.c.h.bf16 %v663_v47  ;;  %v640_v59 = vunpack.c.l.bf16 %v664_v48  ;;  %v641_v60 = vunpack.c.h.bf16 %v664_v48  ;;  %v441_v33 = vld [vmem:[#allocation2 + $0x48] ss:$2 sm:$0xff]  ;;  %v443_v38 = vld [vmem:[#allocation2 + $0x49] ss:$2 sm:$0xff] }
  0x2c   : > { %386 = vst.msk [vmem:[#allocation2 + $0xa0] sm:$0xff] %vm365_vm1, %v349_v49  ;;  %387 = vst.msk [vmem:[#allocation2 + $0xa8] sm:$0xff] %vm365_vm1, %v350_v50  ;;  %v274_v61 = vmul.f32 %v628_v53, %v723_v0  ;;  %v275_v62 = vmul.f32 %v629_v54, %v723_v0  ;;  %v276_v63 = vmul.f32 %v632_v55, %v723_v0  ;;  %v644_v34 = vunpack.c.l.bf16 %v665_v6  ;;  %v445_v39 = vld [vmem:[#allocation2 + $0x5a] ss:$2 sm:$0xff]  ;;  %v447_v40 = vld [vmem:[#allocation2 + $0x5b] ss:$2 sm:$0xff] }
  0x2d   : > { %388 = vst.msk [vmem:[#allocation2 + $0xb0] sm:$0xff] %vm365_vm1, %v351_v51  ;;  %389 = vst.msk [vmem:[#allocation2 + $0xb8] sm:$0xff] %vm365_vm1, %v352_v52  ;;  %v277_v1 = vmul.f32 %v633_v56, %v723_v0  ;;  %v278_v2 = vmul.f32 %v636_v57, %v723_v0  ;;  %v279_v3 = vmul.f32 %v637_v58, %v723_v0  ;;  %v645_v35 = vunpack.c.h.bf16 %v665_v6  ;;  %v453_v45 = vld [vmem:[#allocation2 + $0x6c] ss:$2 sm:$0xff]  ;;  %v455_v46 = vld [vmem:[#allocation2 + $0x6d] ss:$2 sm:$0xff] }
  0x2e   : > { %v280_v4 = vmul.f32 %v640_v59, %v723_v0  ;;  %v281_v5 = vmul.f32 %v641_v60, %v723_v0  ;;  %v317_v8 = vadd.f32 %v765_v10, %v274_v61  ;;  %v318_v9 = vadd.f32 %v765_v10, %v275_v62 }
  0x2f   : > { %v319_v11 = vadd.f32 %v765_v10, %v276_v63  ;;  %v320_v12 = vadd.f32 %v765_v10, %v277_v1  ;;  %v321_v17 = vadd.f32 %v765_v10, %v278_v2  ;;  %v322_v18 = vadd.f32 %v765_v10, %v279_v3 }
  0x30   : > { %v323_v19 = vadd.f32 %v765_v10, %v280_v4  ;;  %v324_v20 = vadd.f32 %v765_v10, %v281_v5  ;;  %v353_v24 = vmax.f32 %v317_v8, 0.0  ;;  %v354_v25 = vmax.f32 %v318_v9, 0.0 }
  0x31   : > { %v355_v26 = vmax.f32 %v319_v11, 0.0  ;;  %v356_v27 = vmax.f32 %v320_v12, 0.0  ;;  %v357_v29 = vmax.f32 %v321_v17, 0.0  ;;  %v358_v30 = vmax.f32 %v322_v18, 0.0  ;;  %v457_v47 = vld [vmem:[#allocation2 + $0x7e] ss:$2 sm:$0xff] }
  0x32   : > { %v359_v31 = vmax.f32 %v323_v19, 0.0  ;;  %v360_v32 = vmax.f32 %v324_v20, 0.0  ;;  %390 = vst.msk [vmem:[#allocation2 + $0xc0] sm:$0xff] %vm365_vm1, %v353_v24  ;;  %391 = vst.msk [vmem:[#allocation2 + $0xc8] sm:$0xff] %vm365_vm1, %v354_v25  ;;  %v648_v36 = vunpack.c.l.bf16 %v666_v7  ;;  %v649_v37 = vunpack.c.h.bf16 %v666_v7  ;;  %v459_v52 = vld [vmem:[#allocation2 + $0x7f] ss:$2 sm:$0xff] }
  0x33   : > { %392 = vst.msk [vmem:[#allocation2 + $0xd0] sm:$0xff] %vm365_vm1, %v355_v26  ;;  %393 = vst.msk [vmem:[#allocation2 + $0xd8] sm:$0xff] %vm365_vm1, %v356_v27  ;;  %v424_v41 = vmax.f32 %v417_v13, %v419_v14  ;;  %v425_v42 = vmax.f32 %v421_v15, %v423_v16  ;;  %v436_v43 = vmax.f32 %v429_v21, %v431_v22  ;;  %v465_v53 = vld [vmem:[#allocation2 + $0x90] ss:$2 sm:$0xff]  ;;  %v467_v54 = vld [vmem:[#allocation2 + $0x91] ss:$2 sm:$0xff] }
  0x34   : > { %394 = vst.msk [vmem:[#allocation2 + $0xe0] sm:$0xff] %vm365_vm1, %v357_v29  ;;  %395 = vst.msk [vmem:[#allocation2 + $0xe8] sm:$0xff] %vm365_vm1, %v358_v30  ;;  %v437_v44 = vmax.f32 %v433_v23, %v435_v28  ;;  %v282_v48 = vmul.f32 %v644_v34, %v723_v0  ;;  %v283_v49 = vmul.f32 %v645_v35, %v723_v0  ;;  %v469_v63 = vld [vmem:[#allocation2 + $0xa2] ss:$2 sm:$0xff]  ;;  %v471_v1 = vld [vmem:[#allocation2 + $0xa3] ss:$2 sm:$0xff] }
  0x35   : > { %396 = vst.msk [vmem:[#allocation2 + $0xf0] sm:$0xff] %vm365_vm1, %v359_v31  ;;  %397 = vst.msk [vmem:[#allocation2 + $0xf8] sm:$0xff] %vm365_vm1, %v360_v32  ;;  %v284_v50 = vmul.f32 %v648_v36, %v723_v0  ;;  %v285_v51 = vmul.f32 %v649_v37, %v723_v0  ;;  %v426_v55 = vmax.f32 %v424_v41, %v425_v42 }
  0x36   : > { %v438_v56 = vmax.f32 %v436_v43, %v437_v44  ;;  %v448_v57 = vmax.f32 %v441_v33, %v443_v38  ;;  %v449_v58 = vmax.f32 %v445_v39, %v447_v40  ;;  %v325_v59 = vadd.f32 %v765_v10, %v282_v48 }
  0x37   : > { %v326_v60 = vadd.f32 %v765_v10, %v283_v49  ;;  %v327_v61 = vadd.f32 %v765_v10, %v284_v50  ;;  %v328_v62 = vadd.f32 %v765_v10, %v285_v51  ;;  %427 = vst.msk [vmem:[%s728_s23 + $0xb] sm:$0xff] %vm365_vm1, %v426_v55  ;;  %v460_v2 = vmax.f32 %v453_v45, %v455_v46 }
  0x38   : > { %439 = vst.msk [vmem:[%s728_s23 + $0x15] sm:$0xff] %vm365_vm1, %v438_v56  ;;  %v450_v0 = vmax.f32 %v448_v57, %v449_v58  ;;  %v461_v3 = vmax.f32 %v457_v47, %v459_v52  ;;  %v472_v4 = vmax.f32 %v465_v53, %v467_v54  ;;  %v361_v5 = vmax.f32 %v325_v59, 0.0 }
  0x39   : > { %v362_v6 = vmax.f32 %v326_v60, 0.0  ;;  %v363_v7 = vmax.f32 %v327_v61, 0.0  ;;  %v364_v8 = vmax.f32 %v328_v62, 0.0  ;;  %v473_v11 = vmax.f32 %v469_v63, %v471_v1  ;;  %v477_v10 = vld [vmem:[#allocation2 + $0xb4] ss:$2 sm:$0xff] }
  0x3a   : > { %451 = vst.msk [vmem:[%s728_s23 + $0x1f] sm:$0xff] %vm365_vm1, %v450_v0  ;;  %v462_v9 = vmax.f32 %v460_v2, %v461_v3  ;;  %v479_v12 = vld [vmem:[#allocation2 + $0xb5] ss:$2 sm:$0xff]  ;;  %v481_v13 = vld [vmem:[#allocation2 + $0xc6] ss:$2 sm:$0xff]  ;;  %398 = vst.msk [vmem:[#allocation2 + $0x100] sm:$0xff] %vm365_vm1, %v361_v5 }
  0x3b   : > { %399 = vst.msk [vmem:[#allocation2 + $0x108] sm:$0xff] %vm365_vm1, %v362_v6  ;;  %400 = vst.msk [vmem:[#allocation2 + $0x110] sm:$0xff] %vm365_vm1, %v363_v7  ;;  %v483_v14 = vld [vmem:[#allocation2 + $0xc7] ss:$2 sm:$0xff]  ;;  %v484_v15 = vmax.f32 %v477_v10, %v479_v12  ;;  %v489_v16 = vld [vmem:[#allocation2 + $0xd8] ss:$2 sm:$0xff]  ;;  %v474_v18 = vmax.f32 %v472_v4, %v473_v11 }
  0x3c   : > { %401 = vst.msk [vmem:[#allocation2 + $0x118] sm:$0xff] %vm365_vm1, %v364_v8  ;;  %v491_v17 = vld [vmem:[#allocation2 + $0xd9] ss:$2 sm:$0xff]  ;;  %463 = vst.msk [vmem:[%s728_s23 + $0x29] sm:$0xff] %vm365_vm1, %v462_v9  ;;  %v485_v19 = vmax.f32 %v481_v13, %v483_v14  ;;  %v493_v20 = vld [vmem:[#allocation2 + $0xea] ss:$2 sm:$0xff] }
  0x3d   : > { %v495_v21 = vld [vmem:[#allocation2 + $0xeb] ss:$2 sm:$0xff]  ;;  %v496_v22 = vmax.f32 %v489_v16, %v491_v17  ;;  %475 = vst.msk [vmem:[%s728_s23 + $0x33] sm:$0xff] %vm365_vm1, %v474_v18 }
  0x3e   : > { %v497_v23 = vmax.f32 %v493_v20, %v495_v21  ;;  %v486_v24 = vmax.f32 %v484_v15, %v485_v19 }
  0x40   : > { %v498_v25 = vmax.f32 %v496_v22, %v497_v23  ;;  %487 = vst.msk [vmem:[%s728_s23 + $0x3d] sm:$0xff] %vm365_vm1, %v486_v24 }
  0x42   : > { %499 = vst.msk [vmem:[%s728_s23 + $0x47] sm:$0xff] %vm365_vm1, %v498_v25  ;;  %v501_v26 = vld [vmem:[#allocation2 + $0xfc] ss:$2 sm:$0xff]  ;;  %v503_v27 = vld [vmem:[#allocation2 + $0xfd] ss:$2 sm:$0xff] }
  0x43   : > { %v505_v28 = vld [vmem:[#allocation2 + $0x10e] ss:$2 sm:$0xff]  ;;  %v507_v29 = vld [vmem:[#allocation2 + $0x10f] ss:$2 sm:$0xff]  ;;  %v508_v30 = vmax.f32 %v501_v26, %v503_v27 }
  0x44   : > { %v509_v31 = vmax.f32 %v505_v28, %v507_v29 }
  0x46   : > { %v510_v32 = vmax.f32 %v508_v30, %v509_v31 }
  0x48   : > { %511 = vst.msk [vmem:[%s728_s23 + $0x51] sm:$0xff] %vm365_vm1, %v510_v32 }
  0x49 PF: > { %s13_s12 = sadd.s32 1, %s684_s12  }
  0x4a   : > { %p10_p4 = scmp.ge.s32.totalorder %s13_s12, 4  }
  0x4c   :  { %12 = sbr.rel (!%p10_p4) target bundleno = 1 (0x1), region = 93 }

// kernel: conv_autoencoder_forward.11
= control target key start
LH: loop header
LB: loop body
LE: loop exit
PB: predicated region body
PF: predicated region fallthrough
CT: control target
= control target key end

     0   :  { %s2300_s15 = smov 0   ;;  %s2302_s16 = smov 0   ;;  %s2942_s0 = inlined_call_operand.vmem [shape: f32[2,110,8], index: 0, kind: input, shape index: {}]   ;;  %s2943_s1 = inlined_call_operand.vmem [shape: bf16[9,8,16], index: 1, kind: input, shape index: {}]   ;;  %s2944_s2 = inlined_call_operand.vmem [shape: f32[1,16], index: 2, kind: input, shape index: {}]   ;;  %s2945_s3 = inlined_call_operand.vmem [shape: bf16[2,80,16], index: 3, kind: output, shape index: {0}]   ;;  %s2946_s4 = inlined_call_operand.vmem [shape: f32[2,2,16], index: 4, kind: output, shape index: {1}]  }
   0x1   :  { %s2304_s17 = smov 0  }
   0x2 LB: > { %s27_s18 = sadd.s32 1, %s2267_s16  ;;  %p1787_p0 = scmp.ge.s32.totalorder %s2271_s17, 1  ;;  %s2271_s17 = sphi %s2304_s17, %s15_s17   ;;  %s2267_s16 = sphi %s2302_s16, %s2980_s16   ;;  %s2263_s15 = sphi %s2300_s15, %s2979_s15  }
   0x3   : > { %p29_p1 = scmp.ge.s32.totalorder %s27_s18, 2  ;;  %p181_p2 = scmp.lt.s32.totalorder %s2271_s17, 3 }
   0x5   : > { %s2982_s18 = smov (%p29_p1, %s27_s18), 0  ;;  %p182_p3 = pnand %p1787_p0, %p181_p2 }
   0x6   : > { %v1801_v0 = vld [vmem:[%s2943_s1 + $0x4] sm:$0xf] (!%p182_p3)  ;;  %vm291_vm0 = vcmask (!%p182_p3), 1043456   ;;  %p216_p4 = scmp.lt.s32.totalorder (!%p182_p3), %s2263_s15, 1  ;;  %v2273_v1 = vmov (!%p182_p3), 0.0   ;;  %vm2274_vm1 = vmmov (!%p182_p3), 0  }
   0x7   : > { %185 = sbr.rel (%p182_p3) target bundleno = 434 (0x1b2), region = 32  ;;  %2001 = vmatprep.subr.bf16.mxu0 (!%p182_p3), %v2273_v1  ;;  %2199 = vmatprep.subr.bf16.mxu1 (!%p182_p3), %v2273_v1  ;;  %v293_v2 = vsel (!%p182_p3), %vm291_vm0, %v1801_v0, 0  ;;  %v1822_v3 = vld [vmem:[%s2943_s1 + $0x8] sm:$0xf] (!%p182_p3)  ;;  %v255_v4 = vld [vmem:[%s2943_s1] sm:$0xf] (!%p182_p3) }
   0x8   : > { %2002 = vmatpush3.bf16.msra.mxu0 (!%p182_p3), %v293_v2  ;;  %2200 = vmatpush3.bf16.msra.mxu1 (!%p182_p3), %v293_v2  ;;  %vm275_vm2 = vcmask (!%p182_p3), 64512   ;;  %v494_v10 = vsel (!%p182_p3), %vm291_vm0, %v1822_v3, 0  ;;  %v384_v12 = vsel (!%p182_p3), %vm291_vm0, %v255_v4, 0  ;;  %v1838_v24 = vld [vmem:[%s2943_s1 + $0xc] sm:$0xf] (!%p182_p3) }
   0x9   : > { %2003 = vmatprep.mubr.msk.bf16.mxu0 (!%p182_p3), %vm2274_vm1, %v2273_v1  ;;  %2015 = vmatprep.mubr.msk.bf16.mxu1 (!%p182_p3), %vm2274_vm1, %v2273_v1  ;;  %v614_v26 = vsel (!%p182_p3), %vm291_vm0, %v1838_v24, 0  ;;  %v1854_v31 = vld [vmem:[%s2943_s1 + $0x10] sm:$0xf] (!%p182_p3)  ;;  %v1870_v56 = vld [vmem:[%s2943_s1 + $0x14] sm:$0xf] (!%p182_p3) }
   0xa   : > { %2045 = vmatprep.subr.bf16.mxu0 (!%p182_p3), %v2273_v1  ;;  %2023 = vmatprep.subr.bf16.mxu1 (!%p182_p3), %v2273_v1  ;;  %v734_v34 = vsel (!%p182_p3), %vm291_vm0, %v1854_v31, 0  ;;  %v854_v58 = vsel (!%p182_p3), %vm291_vm0, %v1870_v56, 0  ;;  %v1886_v61 = vld [vmem:[%s2943_s1 + $0x18] sm:$0xf] (!%p182_p3) }
   0xb   : > { %v974_v0 = vsel (!%p182_p3), %vm291_vm0, %v1886_v61, 0 }
   0xe   : > { %s2984_s15 = smov (!%p216_p4, %s2263_s15), 1 }
   0xf   : > { %s2201_s21 = smul.u32 112, %s2984_s15  ;;  %s1790_s25 = sshll.u32 %s2984_s15, 1 }
  0x10   : > { %s235_s28 = scalar_lea.vmem %s2946_s4, %s1790_s25 }
  0x11   : > { %s2339_s26 = scalar_lea.vmem %s2942_s0, %s2201_s21  ;;  %s2202_s21 = smul.u32 40, %s2984_s15 }
  0x12   : > { %v1791_v5 = vld [vmem:[%s2339_s26 + $0x1] sm:$0xff]  ;;  %v1792_v6 = vld [vmem:[%s2339_s26 + $0x9] sm:$0xff]  ;;  %v1797_v7 = vld [vmem:[%s2339_s26 + $0x31] sm:$0xff] }
  0x13   : > { %v268_v8 = vpack.c.bf16 %v1792_v6, %v1791_v5  ;;  %v1798_v9 = vld [vmem:[%s2339_s26 + $0x39] sm:$0xff]  ;;  %v1793_v13 = vld [vmem:[%s2339_s26 + $0x11] sm:$0xff]  ;;  %v1799_v15 = vld [vmem:[%s2339_s26 + $0x41] sm:$0xff]  ;;  %s2752_s24 = scalar_lea.vmem %s2945_s3, %s2202_s21 }
  0x14   : > { %v271_v11 = vpack.c.bf16 %v1798_v9, %v1797_v7  ;;  %v1794_v14 = vld [vmem:[%s2339_s26 + $0x19] sm:$0xff]  ;;  %v1800_v16 = vld [vmem:[%s2339_s26 + $0x49] sm:$0xff]  ;;  %v1795_v19 = vld [vmem:[%s2339_s26 + $0x21] sm:$0xff] }
  0x15   : > { %2004 = vmatmul.mubr.msk.bf16.vlgmr.msra.gmra.mrb[0].mxu0 %vm275_vm2, %v268_v8  ;;  %v269_v17 = vpack.c.bf16 %v1794_v14, %v1793_v13  ;;  %v272_v18 = vpack.c.bf16 %v1800_v16, %v1799_v15  ;;  %v1796_v20 = vld [vmem:[%s2339_s26 + $0x29] sm:$0xff]  ;;  %v240_v21 = vld [vmem:[%s2339_s26] sm:$0xff]  ;;  %v243_v30 = vld [vmem:[%s2339_s26 + $0x18] sm:$0xff] }
  0x16   : > { %2016 = vmatmul.mubr.msk.bf16.vlgmr.msra.gmra.mrb[0].mxu1 %vm275_vm2, %v271_v11  ;;  %2046 = vmatpush3.bf16.msra.mxu0 %v494_v10  ;;  %v241_v22 = vld [vmem:[%s2339_s26 + $0x8] sm:$0xff]  ;;  %v270_v23 = vpack.c.bf16 %v1796_v20, %v1795_v19  ;;  %v242_v29 = vld [vmem:[%s2339_s26 + $0x10] sm:$0xff]  ;;  %v1815_v36 = vld [vmem:[%s2339_s26 + $0x1a] sm:$0xff] }
  0x17   : > { %2024 = vmatpush3.bf16.msra.mxu1 %v384_v12  ;;  %2007 = vmatprep.mubr.msk.bf16.mxu0 %vm2274_vm1, %v2273_v1  ;;  %v250_v25 = vpack.c.bf16 %v241_v22, %v240_v21  ;;  %v1812_v27 = vld [vmem:[%s2339_s26 + $0x2] sm:$0xff]  ;;  %v1813_v28 = vld [vmem:[%s2339_s26 + $0xa] sm:$0xff]  ;;  %v251_v33 = vpack.c.bf16 %v243_v30, %v242_v29  ;;  %v1814_v35 = vld [vmem:[%s2339_s26 + $0x12] sm:$0xff] }
  0x18   : > { %2019 = vmatprep.mubr.msk.bf16.mxu1 %vm2274_vm1, %v2273_v1  ;;  %2067 = vmatprep.subr.bf16.mxu1 %v2273_v1  ;;  %v471_v32 = vpack.c.bf16 %v1813_v28, %v1812_v27  ;;  %v244_v37 = vld [vmem:[%s2339_s26 + $0x20] sm:$0xff]  ;;  %v245_v38 = vld [vmem:[%s2339_s26 + $0x28] sm:$0xff]  ;;  %v472_v39 = vpack.c.bf16 %v1815_v36, %v1814_v35  ;;  %v246_v43 = vld [vmem:[%s2339_s26 + $0x30] sm:$0xff]  ;;  %v591_v57 = vpack.c.bf16 %v1814_v35, %v1813_v28 }
  0x19   : > { %2089 = vmatprep.subr.bf16.mxu0 %v2273_v1  ;;  %v252_v40 = vpack.c.bf16 %v245_v38, %v244_v37  ;;  %v1816_v41 = vld [vmem:[%s2339_s26 + $0x22] sm:$0xff]  ;;  %v1817_v42 = vld [vmem:[%s2339_s26 + $0x2a] sm:$0xff]  ;;  %v247_v44 = vld [vmem:[%s2339_s26 + $0x38] sm:$0xff] }
  0x1a   : > { %v473_v45 = vpack.c.bf16 %v1817_v42, %v1816_v41  ;;  %v253_v46 = vpack.c.bf16 %v247_v44, %v246_v43  ;;  %v1818_v47 = vld [vmem:[%s2339_s26 + $0x32] sm:$0xff]  ;;  %v1819_v48 = vld [vmem:[%s2339_s26 + $0x3a] sm:$0xff]  ;;  %v249_v50 = vld [vmem:[%s2339_s26 + $0x48] sm:$0xff]  ;;  %v592_v63 = vpack.c.bf16 %v1816_v41, %v1815_v36 }
  0x1b   : > { %v248_v49 = vld [vmem:[%s2339_s26 + $0x40] sm:$0xff]  ;;  %v474_v51 = vpack.c.bf16 %v1819_v48, %v1818_v47  ;;  %v1821_v54 = vld [vmem:[%s2339_s26 + $0x4a] sm:$0xff]  ;;  %v1845_v60 = vld [vmem:[%s2339_s26 + $0x13] sm:$0xff]  ;;  %v593_v5 = vpack.c.bf16 %v1818_v47, %v1817_v42 }
  0x1c   : > { %v254_v52 = vpack.c.bf16 %v249_v50, %v248_v49  ;;  %v1820_v53 = vld [vmem:[%s2339_s26 + $0x42] sm:$0xff]  ;;  %v1844_v59 = vld [vmem:[%s2339_s26 + $0xb] sm:$0xff]  ;;  %v1849_v7 = vld [vmem:[%s2339_s26 + $0x33] sm:$0xff] }
  0x1d   : > { %2008 = vmatmul.mubr.msk.bf16.gmra.mrb[4].mxu0 %vm275_vm2, %v269_v17  ;;  %v475_v55 = vpack.c.bf16 %v1821_v54, %v1820_v53  ;;  %v711_v62 = vpack.c.bf16 %v1845_v60, %v1844_v59  ;;  %v1846_v2 = vld [vmem:[%s2339_s26 + $0x1b] sm:$0xff]  ;;  %v1847_v3 = vld [vmem:[%s2339_s26 + $0x23] sm:$0xff]  ;;  %v1848_v6 = vld [vmem:[%s2339_s26 + $0x2b] sm:$0xff]  ;;  %v594_v9 = vpack.c.bf16 %v1820_v53, %v1819_v48 }
  0x1e   : > { %2020 = vmatmul.mubr.msk.bf16.gmra.mrb[4].mxu1 %vm275_vm2, %v272_v18  ;;  %2011 = vmatprep.mubr.msk.bf16.mxu0 %vm2274_vm1, %v2273_v1  ;;  %v712_v4 = vpack.c.bf16 %v1847_v3, %v1846_v2  ;;  %v713_v8 = vpack.c.bf16 %v1849_v7, %v1848_v6  ;;  %v1850_v10 = vld [vmem:[%s2339_s26 + $0x3b] sm:$0xff]  ;;  %v1851_v11 = vld [vmem:[%s2339_s26 + $0x43] sm:$0xff]  ;;  %v1837_v12 = vld [vmem:[%s2339_s26 + $0x52] sm:$0xff] }
  0x1f   : > { %2025 = vmatprep.mubr.msk.bf16.mxu1 %vm2274_vm1, %v2273_v1  ;;  %v714_v13 = vpack.c.bf16 %v1851_v11, %v1850_v10  ;;  %v595_v14 = vpack.c.bf16 %v1837_v12, %v1821_v54  ;;  %v1852_v15 = vld [vmem:[%s2339_s26 + $0x4b] sm:$0xff]  ;;  %v1853_v16 = vld [vmem:[%s2339_s26 + $0x53] sm:$0xff]  ;;  %v1902_v20 = vld [vmem:[%s2943_s1 + $0x1c] sm:$0xf] }
  0x20   : > { %v1860_v17 = vld [vmem:[%s2339_s26 + $0xc] sm:$0xff]  ;;  %v1861_v18 = vld [vmem:[%s2339_s26 + $0x14] sm:$0xff]  ;;  %v715_v19 = vpack.c.bf16 %v1853_v16, %v1852_v15  ;;  %v1094_v22 = vsel %vm291_vm0, %v1902_v20, 0  ;;  %v1863_v24 = vld [vmem:[%s2339_s26 + $0x24] sm:$0xff] }
  0x21   : > { %v831_v21 = vpack.c.bf16 %v1861_v18, %v1860_v17  ;;  %v1864_v29 = vld [vmem:[%s2339_s26 + $0x2c] sm:$0xff]  ;;  %v1865_v30 = vld [vmem:[%s2339_s26 + $0x34] sm:$0xff]  ;;  %v1885_v41 = vld [vmem:[%s2339_s26 + $0x5c] sm:$0xff] }
  0x22   : > { %v952_v31 = vpack.c.bf16 %v1864_v29, %v1863_v24  ;;  %v1868_v37 = vld [vmem:[%s2339_s26 + $0x4c] sm:$0xff]  ;;  %v1869_v38 = vld [vmem:[%s2339_s26 + $0x54] sm:$0xff]  ;;  %v1893_v43 = vld [vmem:[%s2339_s26 + $0x1d] sm:$0xff] }
  0x23   : > { %v1892_v42 = vld [vmem:[%s2339_s26 + $0x15] sm:$0xff]  ;;  %v955_v44 = vpack.c.bf16 %v1885_v41, %v1869_v38  ;;  %v1909_v47 = vld [vmem:[%s2339_s26 + $0x1e] sm:$0xff]  ;;  %v1895_v49 = vld [vmem:[%s2339_s26 + $0x2d] sm:$0xff] }
  0x24   : > { %v1894_v48 = vld [vmem:[%s2339_s26 + $0x25] sm:$0xff]  ;;  %v1911_v53 = vld [vmem:[%s2339_s26 + $0x2e] sm:$0xff]  ;;  %v1916_v7 = vld [vmem:[%s2339_s26 + $0x56] sm:$0xff] }
  0x25   : > { %2012 = vmatmul.mubr.msk.bf16.gmra.mrb[8].mxu0 %vm275_vm2, %v270_v23  ;;  %v1862_v23 = vld [vmem:[%s2339_s26 + $0x1c] sm:$0xff]  ;;  %v1898_v60 = vld [vmem:[%s2339_s26 + $0x45] sm:$0xff]  ;;  %v1899_v61 = vld [vmem:[%s2339_s26 + $0x4d] sm:$0xff] }
  0x26   : > { %2026 = vmatmul.mubr.msk.bf16.vlgmr.msra.gmra.mrb[8].mxu1 %vm275_vm2, %v250_v25  ;;  %2047 = vmatprep.mubr.msk.bf16.mxu0 %vm2274_vm1, %v2273_v1  ;;  %v1918_v25 = vld [vmem:[%s2943_s1 + $0x20] sm:$0xf]  ;;  %v832_v27 = vpack.c.bf16 %v1863_v24, %v1862_v23  ;;  %v1896_v54 = vld [vmem:[%s2339_s26 + $0x35] sm:$0xff] }
  0x27   : > { %2068 = vmatpush3.bf16.msra.mxu1 %v614_v26  ;;  %2029 = vmatprep.mubr.msk.bf16.mxu1 %vm2274_vm1, %v2273_v1  ;;  %v951_v26 = vpack.c.bf16 %v1862_v23, %v1861_v18  ;;  %v1214_v28 = vsel %vm291_vm0, %v1918_v25, 0  ;;  %v1913_v59 = vld [vmem:[%s2339_s26 + $0x3e] sm:$0xff]  ;;  %v1915_v2 = vld [vmem:[%s2339_s26 + $0x4e] sm:$0xff] }
  0x28   : > { %2111 = vmatprep.subr.bf16.mxu1 %v2273_v1  ;;  %v1900_v3 = vld [vmem:[%s2339_s26 + $0x55] sm:$0xff] }
  0x2d   : > { %2048 = vmatmul.mubr.msk.bf16.vlgmr.msra.gmra.mrb[12].mxu0 %vm275_vm2, %v471_v32  ;;  %v833_v32 = vpack.c.bf16 %v1865_v30, %v1864_v29 }
  0x2e   : > { %2030 = vmatmul.mubr.msk.bf16.gmra.mrb[12].mxu1 %vm275_vm2, %v251_v33  ;;  %2090 = vmatpush3.bf16.msra.mxu0 %v734_v34  ;;  %v1866_v33 = vld [vmem:[%s2339_s26 + $0x3c] sm:$0xff]  ;;  %v1867_v34 = vld [vmem:[%s2339_s26 + $0x44] sm:$0xff] }
  0x2f   : > { %2033 = vmatprep.mubr.msk.bf16.mxu1 %vm2274_vm1, %v2273_v1  ;;  %2051 = vmatprep.mubr.msk.bf16.mxu0 %vm2274_vm1, %v2273_v1  ;;  %v953_v35 = vpack.c.bf16 %v1866_v33, %v1865_v30  ;;  %v834_v36 = vpack.c.bf16 %v1867_v34, %v1866_v33 }
  0x30   : > { %2133 = vmatprep.subr.bf16.mxu0 %v2273_v1 }
  0x35   : > { %2052 = vmatmul.mubr.msk.bf16.gmra.mrb[16].mxu0 %vm275_vm2, %v472_v39  ;;  %v954_v39 = vpack.c.bf16 %v1868_v37, %v1867_v34 }
  0x36   : > { %2034 = vmatmul.mubr.msk.bf16.gmra.mrb[16].mxu1 %vm275_vm2, %v252_v40  ;;  %2055 = vmatprep.mubr.msk.bf16.mxu0 %vm2274_vm1, %v2273_v1  ;;  %v835_v40 = vpack.c.bf16 %v1869_v38, %v1868_v37 }
  0x37   : > { %2037 = vmatprep.mubr.msk.bf16.mxu1 %vm2274_vm1, %v2273_v1 }
  0x3d   : > { %2056 = vmatmul.mubr.msk.bf16.gmra.mrb[20].mxu0 %vm275_vm2, %v473_v45  ;;  %v1071_v45 = vpack.c.bf16 %v1893_v43, %v1892_v42 }
  0x3e   : > { %2038 = vmatmul.mubr.msk.bf16.gmra.mrb[20].mxu1 %vm275_vm2, %v253_v46  ;;  %2059 = vmatprep.mubr.msk.bf16.mxu0 %vm2274_vm1, %v2273_v1  ;;  %v1908_v46 = vld [vmem:[%s2339_s26 + $0x16] sm:$0xff] }
  0x3f   : > { %2041 = vmatprep.mubr.msk.bf16.mxu1 %vm2274_vm1, %v2273_v1  ;;  %v1191_v50 = vpack.c.bf16 %v1909_v47, %v1908_v46 }
  0x45   : > { %2060 = vmatmul.mubr.msk.bf16.gmra.mrb[24].mxu0 %vm275_vm2, %v474_v51  ;;  %v1072_v51 = vpack.c.bf16 %v1895_v49, %v1894_v48 }
  0x46   : > { %2042 = vmatmul.mubr.msk.bf16.gmra.mrb[24].mxu1 %vm275_vm2, %v254_v52  ;;  %2063 = vmatprep.mubr.msk.bf16.mxu0 %vm2274_vm1, %v2273_v1  ;;  %v1910_v52 = vld [vmem:[%s2339_s26 + $0x26] sm:$0xff] }
  0x47   : > { %2069 = vmatprep.mubr.msk.bf16.mxu1 %vm2274_vm1, %v2273_v1  ;;  %v1192_v56 = vpack.c.bf16 %v1911_v53, %v1910_v52 }
  0x4d   : > { %2064 = vmatmul.mubr.msk.bf16.gmra.mrb[28].mxu0 %vm275_vm2, %v475_v55  ;;  %v1897_v55 = vld [vmem:[%s2339_s26 + $0x3d] sm:$0xff] }
  0x4e   : > { %2070 = vmatmul.mubr.msk.bf16.vlgmr.msra.gmra.mrb[28].mxu1 %vm275_vm2, %v591_v57  ;;  %2091 = vmatprep.mubr.msk.bf16.mxu0 %vm2274_vm1, %v2273_v1  ;;  %v1073_v57 = vpack.c.bf16 %v1897_v55, %v1896_v54 }
  0x4f   : > { %2112 = vmatpush3.bf16.msra.mxu1 %v854_v58  ;;  %2073 = vmatprep.mubr.msk.bf16.mxu1 %vm2274_vm1, %v2273_v1  ;;  %v1912_v58 = vld [vmem:[%s2339_s26 + $0x36] sm:$0xff] }
  0x50   : > { %2155 = vmatprep.subr.bf16.mxu1 %v2273_v1 }
  0x55   : > { %2092 = vmatmul.mubr.msk.bf16.vlgmr.msra.gmra.mrb[32].mxu0 %vm275_vm2, %v711_v62  ;;  %v1193_v62 = vpack.c.bf16 %v1913_v59, %v1912_v58 }
  0x56   : > { %2074 = vmatmul.mubr.msk.bf16.gmra.mrb[32].mxu1 %vm275_vm2, %v592_v63  ;;  %2134 = vmatpush3.bf16.msra.mxu0 %v974_v0  ;;  %v1074_v63 = vpack.c.bf16 %v1899_v61, %v1898_v60  ;;  %v1914_v0 = vld [vmem:[%s2339_s26 + $0x46] sm:$0xff] }
  0x57   : > { %2077 = vmatprep.mubr.msk.bf16.mxu1 %vm2274_vm1, %v2273_v1  ;;  %2095 = vmatprep.mubr.msk.bf16.mxu0 %vm2274_vm1, %v2273_v1 }
  0x58   : > { %2177 = vmatprep.subr.bf16.mxu0 %v2273_v1 }
  0x5d   : > { %2096 = vmatmul.mubr.msk.bf16.gmra.mrb[36].mxu0 %vm275_vm2, %v712_v4  ;;  %v1901_v4 = vld [vmem:[%s2339_s26 + $0x5d] sm:$0xff] }
  0x5e   : > { %2078 = vmatmul.mubr.msk.bf16.gmra.mrb[36].mxu1 %vm275_vm2, %v593_v5  ;;  %2099 = vmatprep.mubr.msk.bf16.mxu0 %vm2274_vm1, %v2273_v1  ;;  %v1194_v5 = vpack.c.bf16 %v1915_v2, %v1914_v0  ;;  %v1075_v6 = vpack.c.bf16 %v1901_v4, %v1900_v3 }
  0x5f   : > { %2081 = vmatprep.mubr.msk.bf16.mxu1 %vm2274_vm1, %v2273_v1 }
  0x65   : > { %2100 = vmatmul.mubr.msk.bf16.gmra.mrb[40].mxu0 %vm275_vm2, %v713_v8  ;;  %v1917_v8 = vld [vmem:[%s2339_s26 + $0x5e] sm:$0xff] }
  0x66   : > { %2082 = vmatmul.mubr.msk.bf16.gmra.mrb[40].mxu1 %vm275_vm2, %v594_v9  ;;  %2103 = vmatprep.mubr.msk.bf16.mxu0 %vm2274_vm1, %v2273_v1  ;;  %v1195_v9 = vpack.c.bf16 %v1917_v8, %v1916_v7 }
  0x67   : > { %2085 = vmatprep.mubr.msk.bf16.mxu1 %vm2274_vm1, %v2273_v1 }
  0x6d   : > { %2104 = vmatmul.mubr.msk.bf16.gmra.mrb[44].mxu0 %vm275_vm2, %v714_v13 }
  0x6e   : > { %2086 = vmatmul.mubr.msk.bf16.gmra.mrb[44].mxu1 %vm275_vm2, %v595_v14  ;;  %2107 = vmatprep.mubr.msk.bf16.mxu0 %vm2274_vm1, %v2273_v1 }
  0x6f   : > { %2113 = vmatprep.mubr.msk.bf16.mxu1 %vm2274_vm1, %v2273_v1 }
  0x75   : > { %2108 = vmatmul.mubr.msk.bf16.gmra.mrb[48].mxu0 %vm275_vm2, %v715_v19 }
  0x76   : > { %2114 = vmatmul.mubr.msk.bf16.vlgmr.msra.gmra.mrb[48].mxu1 %vm275_vm2, %v831_v21  ;;  %2135 = vmatprep.mubr.msk.bf16.mxu0 %vm2274_vm1, %v2273_v1 }
  0x77   : > { %2156 = vmatpush3.bf16.msra.mxu1 %v1094_v22  ;;  %2117 = vmatprep.mubr.msk.bf16.mxu1 %vm2274_vm1, %v2273_v1 }
  0x7d   : > { %2136 = vmatmul.mubr.msk.bf16.vlgmr.msra.gmra.mrb[52].mxu0 %vm275_vm2, %v951_v26 }
  0x7e   : > { %2118 = vmatmul.mubr.msk.bf16.gmra.mrb[52].mxu1 %vm275_vm2, %v832_v27  ;;  %2178 = vmatpush3.bf16.msra.mxu0 %v1214_v28 }
  0x7f   : > { %2121 = vmatprep.mubr.msk.bf16.mxu1 %vm2274_vm1, %v2273_v1  ;;  %2139 = vmatprep.mubr.msk.bf16.mxu0 %vm2274_vm1, %v2273_v1 }
  0x85   : > { %2140 = vmatmul.mubr.msk.bf16.gmra.mrb[56].mxu0 %vm275_vm2, %v952_v31 }
  0x86   : > { %2122 = vmatmul.mubr.msk.bf16.gmra.mrb[56].mxu1 %vm275_vm2, %v833_v32  ;;  %2143 = vmatprep.mubr.msk.bf16.mxu0 %vm2274_vm1, %v2273_v1 }
  0x87   : > { %2125 = vmatprep.mubr.msk.bf16.mxu1 %vm2274_vm1, %v2273_v1 }
  0x8d   : > { %2144 = vmatmul.mubr.msk.bf16.gmra.mrb[60].mxu0 %vm275_vm2, %v953_v35 }
  0x8e   : > { %2126 = vmatmul.mubr.msk.bf16.gmra.mrb[60].mxu1 %vm275_vm2, %v834_v36  ;;  %2147 = vmatprep.mubr.msk.bf16.mxu0 %vm2274_vm1, %v2273_v1 }
  0x8f   : > { %2129 = vmatprep.mubr.msk.bf16.mxu1 %vm2274_vm1, %v2273_v1 }
  0x95   : > { %2148 = vmatmul.mubr.msk.bf16.gmra.mrb[64].mxu0 %vm275_vm2, %v954_v39 }
  0x96   : > { %2130 = vmatmul.mubr.msk.bf16.gmra.mrb[64].mxu1 %vm275_vm2, %v835_v40  ;;  %2151 = vmatprep.mubr.msk.bf16.mxu0 %vm2274_vm1, %v2273_v1 }
  0x97   : > { %2157 = vmatprep.mubr.msk.bf16.mxu1 %vm2274_vm1, %v2273_v1 }
  0x9d   : > { %2152 = vmatmul.mubr.msk.bf16.gmra.mrb[68].mxu0 %vm275_vm2, %v955_v44 }
  0x9e   : > { %2158 = vmatmul.mubr.msk.bf16.vlgmr.msra.gmra.mrb[68].mxu1 %vm275_vm2, %v1071_v45  ;;  %2179 = vmatprep.mubr.msk.bf16.mxu0 %vm2274_vm1, %v2273_v1 }
  0x9f   : > { %2161 = vmatprep.mubr.msk.bf16.mxu1 %vm2274_vm1, %v2273_v1 }
  0xa5   : > { %2180 = vmatmul.mubr.msk.bf16.vlgmr.msra.gmra.mrb[72].mxu0 %vm275_vm2, %v1191_v50 }
  0xa6   : > { %2162 = vmatmul.mubr.msk.bf16.gmra.mrb[72].mxu1 %vm275_vm2, %v1072_v51  ;;  %2183 = vmatprep.mubr.msk.bf16.mxu0 %vm2274_vm1, %v2273_v1 }
  0xa7   : > { %2165 = vmatprep.mubr.msk.bf16.mxu1 %vm2274_vm1, %v2273_v1 }
  0xad   : > { %2184 = vmatmul.mubr.msk.bf16.gmra.mrb[76].mxu0 %vm275_vm2, %v1192_v56 }
  0xae   : > { %2166 = vmatmul.mubr.msk.bf16.gmra.mrb[76].mxu1 %vm275_vm2, %v1073_v57  ;;  %2187 = vmatprep.mubr.msk.bf16.mxu0 %vm2274_vm1, %v2273_v1 }
  0xaf   : > { %2169 = vmatprep.mubr.msk.bf16.mxu1 %vm2274_vm1, %v2273_v1 }
  0xb5   : > { %2188 = vmatmul.mubr.msk.bf16.gmra.mrb[80].mxu0 %vm275_vm2, %v1193_v62 }
  0xb6   : > { %2170 = vmatmul.mubr.msk.bf16.gmra.mrb[80].mxu1 %vm275_vm2, %v1074_v63  ;;  %2191 = vmatprep.mubr.msk.bf16.mxu0 %vm2274_vm1, %v2273_v1 }
  0xb7   : > { %2173 = vmatprep.mubr.msk.bf16.mxu1 %vm2274_vm1, %v2273_v1 }
  0xbd   : > { %2192 = vmatmul.mubr.msk.bf16.gmra.mrb[84].mxu0 %vm275_vm2, %v1194_v5 }
  0xbe   : > { %2174 = vmatmul.mubr.msk.bf16.gmra.mrb[84].mxu1 %vm275_vm2, %v1075_v6  ;;  %2195 = vmatprep.mubr.msk.bf16.mxu0 %vm2274_vm1, %v2273_v1  ;;  %vm1356_vm1 = vcmask 125952  }
  0xc5   : > { %2196 = vmatmul.mubr.msk.bf16.gmra.mrb[88].mxu0 %vm275_vm2, %v1195_v9 }
  0xe8   : > { %v329_v10 = vpop.f32.mrb[0].mxu0 }
  0xe9   : > { %v2005_v11 = vpop.f32.mrb[1].mxu0  ;;  %v353_v12 = vpop.f32.mrb[0].mxu1 }
  0xea   : > { %v332_v13 = vpop.f32.mrb[2].mxu0  ;;  %v2017_v14 = vpop.f32.mrb[1].mxu1 }
  0xeb   : > { %v2006_v15 = vpop.f32.mrb[3].mxu0  ;;  %v356_v16 = vpop.f32.mrb[2].mxu1 }
  0xec   : > { %v2018_v17 = vpop.f32.mrb[3].mxu1 }
  0xf0   : > { %v337_v18 = vpop.f32.mrb[4].mxu0 }
  0xf1   : > { %v2009_v19 = vpop.f32.mrb[5].mxu0  ;;  %v361_v20 = vpop.f32.mrb[4].mxu1 }
  0xf2   : > { %v340_v21 = vpop.f32.mrb[6].mxu0  ;;  %v2021_v22 = vpop.f32.mrb[5].mxu1 }
  0xf3   : > { %v2010_v23 = vpop.f32.mrb[7].mxu0  ;;  %v364_v1 = vpop.f32.mrb[6].mxu1 }
  0xf4   : > { %v2022_v24 = vpop.f32.mrb[7].mxu1 }
  0xf8   : > { %v345_v25 = vpop.f32.mrb[8].mxu0 }
  0xf9   : > { %v420_v26 = vpop.f32.mrb[8].mxu1  ;;  %v2013_v27 = vpop.f32.mrb[9].mxu0 }
  0xfa   : > { %v421_v28 = vadd.f32 %v420_v26, %v329_v10  ;;  %v2027_v29 = vpop.f32.mrb[9].mxu1  ;;  %v348_v30 = vpop.f32.mrb[10].mxu0 }
  0xfb   : > { %v423_v31 = vpop.f32.mrb[10].mxu1  ;;  %v2014_v32 = vpop.f32.mrb[11].mxu0 }
  0xfc   : > { %v424_v33 = vadd.f32 %v423_v31, %v332_v13  ;;  %v2028_v34 = vpop.f32.mrb[11].mxu1 }
 0x100   : > { %v530_v35 = vpop.f32.mrb[12].mxu0 }
 0x101   : > { %v428_v36 = vpop.f32.mrb[12].mxu1  ;;  %v569_v37 = vadd.f32 %v530_v35, %v421_v28  ;;  %v2049_v38 = vpop.f32.mrb[13].mxu0 }
 0x102   : > { %v429_v39 = vadd.f32 %v428_v36, %v337_v18  ;;  %v2031_v40 = vpop.f32.mrb[13].mxu1  ;;  %v533_v41 = vpop.f32.mrb[14].mxu0 }
 0x103   : > { %v431_v42 = vpop.f32.mrb[14].mxu1  ;;  %v570_v43 = vadd.f32 %v533_v41, %v424_v33  ;;  %v2050_v44 = vpop.f32.mrb[15].mxu0 }
 0x104   : > { %v432_v45 = vadd.f32 %v431_v42, %v340_v21  ;;  %v2032_v46 = vpop.f32.mrb[15].mxu1 }
 0x108   : > { %v538_v47 = vpop.f32.mrb[16].mxu0 }
 0x109   : > { %v436_v48 = vpop.f32.mrb[16].mxu1  ;;  %v571_v49 = vadd.f32 %v538_v47, %v429_v39  ;;  %v2053_v50 = vpop.f32.mrb[17].mxu0 }
 0x10a   : > { %v437_v51 = vadd.f32 %v436_v48, %v345_v25  ;;  %v2035_v52 = vpop.f32.mrb[17].mxu1  ;;  %v541_v53 = vpop.f32.mrb[18].mxu0 }
 0x10b   : > { %v439_v54 = vpop.f32.mrb[18].mxu1  ;;  %v572_v55 = vadd.f32 %v541_v53, %v432_v45  ;;  %v2054_v56 = vpop.f32.mrb[19].mxu0 }
 0x10c   : > { %v440_v57 = vadd.f32 %v439_v54, %v348_v30  ;;  %v2036_v58 = vpop.f32.mrb[19].mxu1 }
 0x110   : > { %v546_v59 = vpop.f32.mrb[20].mxu0 }
 0x111   : > { %v444_v60 = vpop.f32.mrb[20].mxu1  ;;  %v573_v61 = vadd.f32 %v546_v59, %v437_v51  ;;  %v2057_v62 = vpop.f32.mrb[21].mxu0 }
 0x112   : > { %v445_v63 = vadd.f32 %v444_v60, %v353_v12  ;;  %v2039_v0 = vpop.f32.mrb[21].mxu1  ;;  %v549_v2 = vpop.f32.mrb[22].mxu0 }
 0x113   : > { %v447_v3 = vpop.f32.mrb[22].mxu1  ;;  %v574_v4 = vadd.f32 %v549_v2, %v440_v57  ;;  %v2058_v5 = vpop.f32.mrb[23].mxu0 }
 0x114   : > { %v448_v6 = vadd.f32 %v447_v3, %v356_v16  ;;  %v2040_v7 = vpop.f32.mrb[23].mxu1 }
 0x118   : > { %v554_v8 = vpop.f32.mrb[24].mxu0 }
 0x119   : > { %v452_v9 = vpop.f32.mrb[24].mxu1  ;;  %v575_v10 = vadd.f32 %v554_v8, %v445_v63  ;;  %v2061_v11 = vpop.f32.mrb[25].mxu0 }
 0x11a   : > { %v453_v13 = vadd.f32 %v452_v9, %v361_v20  ;;  %v2043_v14 = vpop.f32.mrb[25].mxu1  ;;  %v557_v15 = vpop.f32.mrb[26].mxu0 }
 0x11b   : > { %v455_v17 = vpop.f32.mrb[26].mxu1  ;;  %v576_v18 = vadd.f32 %v557_v15, %v448_v6  ;;  %v2062_v19 = vpop.f32.mrb[27].mxu0 }
 0x11c   : > { %v456_v21 = vadd.f32 %v455_v17, %v364_v1  ;;  %v2044_v22 = vpop.f32.mrb[27].mxu1 }
 0x120   : > { %v562_v12 = vpop.f32.mrb[28].mxu0 }
 0x121   : > { %v577_v23 = vadd.f32 %v562_v12, %v453_v13  ;;  %v650_v24 = vpop.f32.mrb[28].mxu1  ;;  %v2065_v25 = vpop.f32.mrb[29].mxu0 }
 0x122   : > { %v689_v26 = vadd.f32 %v650_v24, %v569_v37  ;;  %v2071_v27 = vpop.f32.mrb[29].mxu1  ;;  %v565_v16 = vpop.f32.mrb[30].mxu0 }
 0x123   : > { %v578_v28 = vadd.f32 %v565_v16, %v456_v21  ;;  %v653_v29 = vpop.f32.mrb[30].mxu1  ;;  %v2066_v30 = vpop.f32.mrb[31].mxu0 }
 0x124   : > { %v690_v31 = vadd.f32 %v653_v29, %v570_v43  ;;  %v2072_v32 = vpop.f32.mrb[31].mxu1  ;;  %v1367_v30 = vlaneseq }
 0x128   : > { %v770_v20 = vpop.f32.mrb[32].mxu0 }
 0x129   : > { %v658_v33 = vpop.f32.mrb[32].mxu1  ;;  %v809_v34 = vadd.f32 %v770_v20, %v689_v26  ;;  %v2093_v35 = vpop.f32.mrb[33].mxu0 }
 0x12a   : > { %v691_v36 = vadd.f32 %v658_v33, %v571_v49  ;;  %v2075_v38 = vpop.f32.mrb[33].mxu1  ;;  %v773_v1 = vpop.f32.mrb[34].mxu0 }
 0x12b   : > { %v661_v39 = vpop.f32.mrb[34].mxu1  ;;  %v810_v40 = vadd.f32 %v773_v1, %v690_v31  ;;  %v2094_v41 = vpop.f32.mrb[35].mxu0 }
 0x12c   : > { %v692_v42 = vadd.f32 %v661_v39, %v572_v55  ;;  %v2076_v44 = vpop.f32.mrb[35].mxu1  ;;  %v2591_v39 = vshrl.u32 %v1367_v30, 7 }
 0x130   : > { %v778_v37 = vpop.f32.mrb[36].mxu0 }
 0x131   : > { %v666_v45 = vpop.f32.mrb[36].mxu1  ;;  %v811_v46 = vadd.f32 %v778_v37, %v691_v36  ;;  %v2097_v47 = vpop.f32.mrb[37].mxu0 }
 0x132   : > { %v693_v48 = vadd.f32 %v666_v45, %v573_v61  ;;  %v2079_v50 = vpop.f32.mrb[37].mxu1  ;;  %v781_v43 = vpop.f32.mrb[38].mxu0 }
 0x133   : > { %v669_v51 = vpop.f32.mrb[38].mxu1  ;;  %v812_v52 = vadd.f32 %v781_v43, %v692_v42  ;;  %v2098_v53 = vpop.f32.mrb[39].mxu0 }
 0x134   : > { %v694_v54 = vadd.f32 %v669_v51, %v574_v4  ;;  %v2080_v56 = vpop.f32.mrb[39].mxu1  ;;  %v2597_v43 = vmul.u32.u64.low 3435973837, %v2591_v39  ;;  %v2598_v51 = vmul.u32.u64.high 3435973837, %v2591_v39, %v2597_v43  ;;  %v1370_v53 = vadd.s32 16, %v2591_v39 }
 0x138   : > { %v786_v49 = vpop.f32.mrb[40].mxu0 }
 0x139   : > { %v674_v57 = vpop.f32.mrb[40].mxu1  ;;  %v813_v58 = vadd.f32 %v786_v49, %v693_v48  ;;  %v2101_v59 = vpop.f32.mrb[41].mxu0 }
 0x13a   : > { %v695_v60 = vadd.f32 %v674_v57, %v575_v10  ;;  %v2083_v62 = vpop.f32.mrb[41].mxu1  ;;  %v789_v55 = vpop.f32.mrb[42].mxu0 }
 0x13b   : > { %v677_v63 = vpop.f32.mrb[42].mxu1  ;;  %v814_v0 = vadd.f32 %v789_v55, %v694_v54  ;;  %v2102_v2 = vpop.f32.mrb[43].mxu0  ;;  %v1371_v62 = vadd.s32 24, %v2591_v39 }
 0x13c   : > { %v696_v3 = vadd.f32 %v677_v63, %v576_v18  ;;  %v2084_v5 = vpop.f32.mrb[43].mxu1  ;;  %v2608_v55 = vmul.u32.u64.low 3435973837, %v1370_v53  ;;  %v2609_v63 = vmul.u32.u64.high 3435973837, %v1370_v53, %v2608_v55 }
 0x140   : > { %v794_v61 = vpop.f32.mrb[44].mxu0 }
 0x141   : > { %v682_v6 = vpop.f32.mrb[44].mxu1  ;;  %v2579_v7 = vadd.f32 %v794_v61, %v695_v60  ;;  %v2105_v8 = vpop.f32.mrb[45].mxu0 }
 0x142   : > { %v697_v9 = vadd.f32 %v682_v6, %v577_v23  ;;  %v2087_v4 = vpop.f32.mrb[45].mxu1  ;;  %v797_v11 = vpop.f32.mrb[46].mxu0 }
 0x143   : > { %v685_v13 = vpop.f32.mrb[46].mxu1  ;;  %v2581_v14 = vadd.f32 %v797_v11, %v696_v3  ;;  %v2106_v15 = vpop.f32.mrb[47].mxu0  ;;  %v2611_v3 = vmul.u32.u64.low 3435973837, %v1371_v62  ;;  %v2612_v5 = vmul.u32.u64.high 3435973837, %v1371_v62, %v2611_v3 }
 0x144   : > { %v698_v10 = vadd.f32 %v685_v13, %v578_v28  ;;  %v2088_v17 = vpop.f32.mrb[47].mxu1 }
 0x148   : > { %v802_v19 = vpop.f32.mrb[48].mxu0 }
 0x149   : > { %v2583_v21 = vadd.f32 %v802_v19, %v697_v9  ;;  %v890_v22 = vpop.f32.mrb[48].mxu1  ;;  %v2109_v18 = vpop.f32.mrb[49].mxu0  ;;  %v1384_v19 = vshrl.u32 %v2598_v51, 3 }
 0x14a   : > { %v929_v12 = vadd.f32 %v890_v22, %v809_v34  ;;  %v2115_v24 = vpop.f32.mrb[49].mxu1  ;;  %v805_v25 = vpop.f32.mrb[50].mxu0 }
 0x14b   : > { %v2585_v26 = vadd.f32 %v805_v25, %v698_v10  ;;  %v893_v27 = vpop.f32.mrb[50].mxu1  ;;  %v2110_v23 = vpop.f32.mrb[51].mxu0  ;;  %v2626_v24 = vadd.s32 40, %v2591_v39  ;;  %v1406_v25 = vshrl.u32 %v2609_v63, 3 }
 0x14c   : > { %v930_v16 = vadd.f32 %v893_v27, %v810_v40  ;;  %v2116_v29 = vpop.f32.mrb[51].mxu1  ;;  %v1369_v40 = vadd.s32 8, %v2591_v39  ;;  %v1385_v27 = vmul.u32 10, %v1384_v19 }
 0x14e   : > { %v2603_v49 = vmul.u32.u64.low 3435973837, %v1369_v40  ;;  %v2604_v57 = vmul.u32.u64.high 3435973837, %v1369_v40, %v2603_v49 }
 0x150   : > { %v1010_v31 = vpop.f32.mrb[52].mxu0  ;;  %v1395_v22 = vshrl.u32 %v2604_v57, 3 }
 0x151   : > { %v898_v32 = vpop.f32.mrb[52].mxu1  ;;  %v2587_v20 = vadd.f32 %v1010_v31, %v929_v12  ;;  %v2137_v28 = vpop.f32.mrb[53].mxu0 }
 0x152   : > { %v931_v33 = vadd.f32 %v898_v32, %v811_v46  ;;  %v2119_v35 = vpop.f32.mrb[53].mxu1  ;;  %v1013_v36 = vpop.f32.mrb[54].mxu0 }
 0x153   : > { %v901_v38 = vpop.f32.mrb[54].mxu1  ;;  %v2589_v1 = vadd.f32 %v1013_v36, %v930_v16  ;;  %v2138_v34 = vpop.f32.mrb[55].mxu0  ;;  %v1417_v16 = vshrl.u32 %v2612_v5, 3 }
 0x154   : > { %v932_v41 = vadd.f32 %v901_v38, %v812_v52  ;;  %v2120_v42 = vpop.f32.mrb[55].mxu1  ;;  %v1407_v38 = vmul.u32 10, %v1406_v25 }
 0x156   : > { %v2645_v51 = vsub.s32 %v1370_v53, %v1407_v38 }
 0x158   : > { %v1018_v44 = vpop.f32.mrb[56].mxu0  ;;  %vm1490_vm8 = vcmp.ne.s32.totalorder %v2645_v51, 0  ;;  %vm1500_vm10 = vcmp.lt.s32.totalorder %v2645_v51, 0  ;;  %v1520_v19 = vadd.s32 10, %v2645_v51 }
 0x159   : > { %v906_v37 = vpop.f32.mrb[56].mxu1  ;;  %v2594_v45 = vadd.f32 %v1018_v44, %v931_v33  ;;  %v2141_v47 = vpop.f32.mrb[57].mxu0  ;;  %v1386_v44 = vsub.s32 %v2591_v39, %v1385_v27  ;;  %vm2693_vm15 = vmand %vm1500_vm10, %vm1490_vm8 }
 0x15a   : > { %v933_v48 = vadd.f32 %v906_v37, %v813_v58  ;;  %v2123_v50 = vpop.f32.mrb[57].mxu1  ;;  %v1021_v46 = vpop.f32.mrb[58].mxu0  ;;  %v1372_v58 = vadd.s32 32, %v2591_v39 }
 0x15b   : > { %v909_v54 = vpop.f32.mrb[58].mxu1  ;;  %v2601_v56 = vadd.f32 %v1021_v46, %v932_v41  ;;  %v2142_v52 = vpop.f32.mrb[59].mxu0  ;;  %v1418_v50 = vmul.u32 10, %v1417_v16  ;;  %v2643_v46 = vadd.s32 48, %v2591_v39  ;;  %vm1488_vm3 = vcmp.ne.s32.totalorder %v1386_v44, 0 }
 0x15c   : > { %v934_v59 = vadd.f32 %v909_v54, %v814_v0  ;;  %v2124_v60 = vpop.f32.mrb[59].mxu1  ;;  %v2616_v9 = vmul.u32.u64.low 3435973837, %v1372_v58  ;;  %v2617_v4 = vmul.u32.u64.high 3435973837, %v1372_v58, %v2616_v9  ;;  %vm1498_vm4 = vcmp.lt.s32.totalorder %v1386_v44, 0 }
 0x15d   : > { %v2650_v52 = vsub.s32 %v1371_v62, %v1418_v50  ;;  %v1518_v53 = vadd.s32 10, %v1386_v44  ;;  %vm2664_vm7 = vmand %vm1498_vm4, %vm1488_vm3  ;;  %vm1578_vm4 = vcmask 130048  }
 0x15e   : > { %v1428_v32 = vshrl.u32 %v2617_v4, 3 }
 0x15f   : > { %vm1491_vm11 = vcmp.ne.s32.totalorder %v2650_v52, 0  ;;  %vm1501_vm12 = vcmp.lt.s32.totalorder %v2650_v52, 0 }
 0x160   : > { %v1026_v2 = vpop.f32.mrb[60].mxu0  ;;  %v1429_v43 = vmul.u32 10, %v1428_v32  ;;  %vm2704_vm0 = vmand %vm1501_vm12, %vm1491_vm11 }
 0x161   : > { %v914_v61 = vpop.f32.mrb[60].mxu1  ;;  %v2614_v6 = vadd.f32 %v1026_v2, %v933_v48  ;;  %v2145_v8 = vpop.f32.mrb[61].mxu0 }
 0x162   : > { %v935_v0 = vadd.f32 %v914_v61, %v2579_v7  ;;  %v2127_v11 = vpop.f32.mrb[61].mxu1  ;;  %v1029_v13 = vpop.f32.mrb[62].mxu0  ;;  %v1396_v7 = vmul.u32 10, %v1395_v22  ;;  %v2658_v60 = vsub.s32 %v1372_v58, %v1429_v43  ;;  %v1521_v22 = vadd.s32 10, %v2650_v52 }
 0x163   : > { %v917_v15 = vpop.f32.mrb[62].mxu1  ;;  %v2620_v10 = vadd.f32 %v1029_v13, %v934_v59  ;;  %v2146_v17 = vpop.f32.mrb[63].mxu0  ;;  %v1528_v13 = vsel %vm2664_vm7, %v1518_v53, %v1386_v44  ;;  %v2741_v44 = vadd.s32 72, %v2591_v39 }
 0x164   : > { %v936_v18 = vadd.f32 %v917_v15, %v2581_v14  ;;  %v2128_v12 = vpop.f32.mrb[63].mxu1  ;;  %v2634_v28 = vmul.u32.u64.low 3435973837, %v2626_v24  ;;  %v2635_v14 = vmul.u32.u64.high 3435973837, %v2626_v24, %v2634_v28  ;;  %v1397_v37 = vsub.s32 %v1369_v40, %v1396_v7 }
 0x165   : > { %vm1492_vm13 = vcmp.ne.s32.totalorder %v2658_v60, 0  ;;  %vm1502_vm14 = vcmp.lt.s32.totalorder %v2658_v60, 0  ;;  %v2709_v25 = vadd.s32 10, %v2658_v60  ;;  %vm2712_vm2 = vcmp.lt.s32.totalorder %v1528_v13, 8 }
 0x166   : > { %vm1489_vm5 = vcmp.ne.s32.totalorder %v1397_v37, 0  ;;  %vm1499_vm6 = vcmp.lt.s32.totalorder %v1397_v37, 0  ;;  %v1439_v55 = vshrl.u32 %v2635_v14, 3  ;;  %v1519_v5 = vadd.s32 10, %v1397_v37  ;;  %vm2718_vm3 = vmand %vm1502_vm14, %vm1492_vm13 }
 0x167   : > { %vm2673_vm9 = vmand %vm1499_vm6, %vm1489_vm5 }
 0x168   : > { %v1034_v23 = vpop.f32.mrb[64].mxu0  ;;  %v1440_v15 = vmul.u32 10, %v1439_v55  ;;  %v1529_v17 = vsel %vm2673_vm9, %v1519_v5, %v1397_v37 }
 0x169   : > { %v922_v29 = vpop.f32.mrb[64].mxu1  ;;  %v2630_v30 = vadd.f32 %v1034_v23, %v935_v0  ;;  %v2149_v31 = vpop.f32.mrb[65].mxu0  ;;  %vm2726_vm5 = vcmp.lt.s32.totalorder %v1529_v17, 8 }
 0x16a   : > { %v937_v33 = vadd.f32 %v922_v29, %v2583_v21  ;;  %v2131_v35 = vpop.f32.mrb[65].mxu1  ;;  %v1037_v36 = vpop.f32.mrb[66].mxu0  ;;  %v2648_v21 = vadd.s32 56, %v2591_v39  ;;  %v2724_v29 = vadd.s32 64, %v2591_v39 }
 0x16b   : > { %v925_v34 = vpop.f32.mrb[66].mxu1  ;;  %v2638_v41 = vadd.f32 %v1037_v36, %v936_v18  ;;  %v2150_v42 = vpop.f32.mrb[67].mxu0  ;;  %v2702_v18 = vld [vmem:[%s2944_s2] ss:$0 sm:$0xff] }
 0x16c   : > { %v938_v47 = vadd.f32 %v925_v34, %v2585_v26  ;;  %v2132_v48 = vpop.f32.mrb[67].mxu1  ;;  %v2653_v26 = vmul.u32.u64.low 3435973837, %v2643_v46  ;;  %v2654_v40 = vmul.u32.u64.high 3435973837, %v2643_v46, %v2653_v26  ;;  %v1530_v34 = vsel %vm2693_vm15, %v1520_v19, %v2645_v51 }
 0x16d   : > { %v1531_v42 = vsel %vm2704_vm0, %v1521_v22, %v2650_v52  ;;  %vm2782_vm8 = vcmp.lt.s32.totalorder %v1530_v34, 8 }
 0x16e   : > { %v1450_v16 = vshrl.u32 %v2654_v40, 3  ;;  %vm2786_vm9 = vcmp.lt.s32.totalorder %v1531_v42, 8 }
 0x170   : > { %v1042_v54 = vpop.f32.mrb[68].mxu0  ;;  %v1451_v51 = vmul.u32 10, %v1450_v16 }
 0x171   : > { %v2656_v49 = vadd.f32 %v1042_v54, %v937_v33  ;;  %v1130_v57 = vpop.f32.mrb[68].mxu1  ;;  %v2153_v59 = vpop.f32.mrb[69].mxu0  ;;  %v2731_v33 = vsub.s32 %v2626_v24, %v1440_v15  ;;  %v2756_v54 = vmul.u32.u64.low 3435973837, %v2724_v29  ;;  %v2757_v52 = vmul.u32.u64.high 3435973837, %v2724_v29, %v2756_v54 }
 0x172   : > { %v1169_v63 = vadd.f32 %v1130_v57, %v2587_v20  ;;  %v2159_v2 = vpop.f32.mrb[69].mxu1  ;;  %v1045_v3 = vpop.f32.mrb[70].mxu0  ;;  %v2679_v20 = vmul.u32.u64.low 3435973837, %v2648_v21  ;;  %v2680_v4 = vmul.u32.u64.high 3435973837, %v2648_v21, %v2679_v20 }
 0x173   : > { %v2669_v61 = vadd.f32 %v1045_v3, %v938_v47  ;;  %v1133_v8 = vpop.f32.mrb[70].mxu1  ;;  %v2154_v58 = vpop.f32.mrb[71].mxu0  ;;  %vm1493_vm6 = vcmp.ne.s32.totalorder %v2731_v33, 0  ;;  %vm1503_vm7 = vcmp.lt.s32.totalorder %v2731_v33, 0  ;;  %v1472_v14 = vshrl.u32 %v2757_v52, 3 }
 0x174   : > { %v1170_v0 = vadd.f32 %v1133_v8, %v2589_v1  ;;  %v2160_v11 = vpop.f32.mrb[71].mxu1  ;;  %v1461_v50 = vshrl.u32 %v2680_v4, 3  ;;  %v2778_v58 = vsub.s32 %v2643_v46, %v1451_v51  ;;  %vm2794_vm10 = vmand %vm1503_vm7, %vm1493_vm6 }
 0x176   : > { %v1462_v2 = vmul.u32 10, %v1461_v50  ;;  %vm1494_vm12 = vcmp.ne.s32.totalorder %v2778_v58, 0  ;;  %vm1504_vm13 = vcmp.lt.s32.totalorder %v2778_v58, 0  ;;  %v1524_v34 = vadd.s32 10, %v2778_v58 }
 0x177   : > { %vm2832_vm15 = vmand %vm1504_vm13, %vm1494_vm12 }
 0x178   : > { %v1250_v27 = vpop.f32.mrb[72].mxu0 }
 0x179   : > { %v1138_v31 = vpop.f32.mrb[72].mxu1  ;;  %v1289_v32 = vadd.f32 %v1250_v27, %v1169_v63  ;;  %v2181_v28 = vpop.f32.mrb[73].mxu0  ;;  %v2773_v63 = vadd.s32 10, %v2731_v33 }
 0x17a   : > { %v1171_v35 = vadd.f32 %v1138_v31, %v2594_v45  ;;  %v2163_v36 = vpop.f32.mrb[73].mxu1  ;;  %v1253_v38 = vpop.f32.mrb[74].mxu0  ;;  %v1532_v45 = vsel %vm2718_vm3, %v2709_v25, %v2658_v60  ;;  %v2807_v31 = vsub.s32 %v2648_v21, %v1462_v2 }
 0x17b   : > { %v1306_v37 = vadd.f32 %v2702_v18, %v1289_v32  ;;  %v1141_v47 = vpop.f32.mrb[74].mxu1  ;;  %v1290_v24 = vadd.f32 %v1253_v38, %v1170_v0  ;;  %v2182_v48 = vpop.f32.mrb[75].mxu0  ;;  %vm2801_vm11 = vcmp.lt.s32.totalorder %v1532_v45, 8 }
 0x17c   : > { %v1172_v39 = vadd.f32 %v1141_v47, %v2601_v56  ;;  %v2164_v43 = vpop.f32.mrb[75].mxu1  ;;  %v2765_v56 = vmul.u32.u64.low 3435973837, %v2741_v44  ;;  %v2766_v53 = vmul.u32.u64.high 3435973837, %v2741_v44, %v2765_v56  ;;  %vm1495_vm14 = vcmp.ne.s32.totalorder %v2807_v31, 0 }
 0x17d   : > { %v1937_v26 = vpack.c.bf16 %v1306_v37, %v1306_v37  ;;  %v1568_v40 = vsel %vm2712_vm2, %v1306_v37, 0.0  ;;  %v1307_v57 = vadd.f32 %v2702_v18, %v1290_v24  ;;  %v1473_v43 = vmul.u32 10, %v1472_v14 }
 0x17e   : > { %v1606_v59 = vmul.f32 %v1568_v40, %v1568_v40  ;;  %v1579_v3 = vsel %vm1578_vm4, %v1568_v40, 0.0  ;;  %vm1505_vm0 = vcmp.lt.s32.totalorder %v2807_v31, 0 }
 0x17f   : > { %1357 = vst.msk [vmem:[%s2752_s24] sm:$0xf] %vm1356_vm1, %v1937_v26  ;;  %v1938_v60 = vpack.c.bf16 %v1307_v57, %v1307_v57  ;;  %v1569_v55 = vsel %vm2726_vm5, %v1307_v57, 0.0  ;;  %vm2851_vm3 = vmand %vm1505_vm0, %vm1495_vm14 }
 0x180   : > { %v1580_v62 = vsel %vm1578_vm4, %v1569_v55, 0.0  ;;  %v1607_v5 = vmul.f32 %v1569_v55, %v1569_v55  ;;  %v1258_v8 = vpop.f32.mrb[76].mxu0  ;;  %v1616_v15 = vsel %vm1578_vm4, %v1606_v59, 0.0 }
 0x181   : > { %1358 = vst.msk [vmem:[%s2752_s24 + $0x4] sm:$0xf] %vm1356_vm1, %v1938_v60  ;;  %v1581_v9 = vadd.f32 %v1580_v62, %v1579_v3  ;;  %v1146_v20 = vpop.f32.mrb[76].mxu1  ;;  %v1291_v4 = vadd.f32 %v1258_v8, %v1171_v35  ;;  %v2185_v11 = vpop.f32.mrb[77].mxu0  ;;  %v1525_v60 = vadd.s32 10, %v2807_v31  ;;  %v1534_v8 = vsel %vm2832_vm15, %v1524_v34, %v2778_v58 }
 0x182   : > { %v1617_v17 = vsel %vm1578_vm4, %v1607_v5, 0.0  ;;  %v1173_v1 = vadd.f32 %v1146_v20, %v2614_v6  ;;  %v2167_v19 = vpop.f32.mrb[77].mxu1  ;;  %v1261_v22 = vpop.f32.mrb[78].mxu0  ;;  %v1533_v6 = vsel %vm2794_vm10, %v2773_v63, %v2731_v33  ;;  %v1483_v33 = vshrl.u32 %v2766_v53, 3 }
 0x183   : > { %v1618_v25 = vadd.f32 %v1617_v17, %v1616_v15  ;;  %v1308_v27 = vadd.f32 %v2702_v18, %v1291_v4  ;;  %v1149_v7 = vpop.f32.mrb[78].mxu1  ;;  %v1292_v23 = vadd.f32 %v1261_v22, %v1172_v39  ;;  %v2186_v16 = vpop.f32.mrb[79].mxu0  ;;  %vm1543_vm2 = vcmp.lt.s32.totalorder %v1533_v6, 8 }
 0x184   : > { %v1174_v32 = vadd.f32 %v1149_v7, %v2620_v10  ;;  %v2168_v28 = vpop.f32.mrb[79].mxu1  ;;  %v1484_v55 = vmul.u32 10, %v1483_v33  ;;  %v2856_v4 = vsub.s32 %v2724_v29, %v1473_v43  ;;  %vm2862_vm5 = vcmp.lt.s32.totalorder %v1534_v8, 8 }
 0x185   : > { %v1939_v35 = vpack.c.bf16 %v1308_v27, %v1308_v27  ;;  %v1570_v36 = vsel %vm2782_vm8, %v1308_v27, 0.0  ;;  %v1309_v38 = vadd.f32 %v2702_v18, %v1292_v23  ;;  %v1535_v19 = vsel %vm2851_vm3, %v1525_v60, %v2807_v31 }
 0x186   : > { %v1582_v10 = vsel %vm1578_vm4, %v1570_v36, 0.0  ;;  %v1608_v21 = vmul.f32 %v1570_v36, %v1570_v36  ;;  %v2867_v15 = vsub.s32 %v2741_v44, %v1484_v55  ;;  %vm1496_vm6 = vcmp.ne.s32.totalorder %v2856_v4, 0 }
 0x187   : > { %1359 = vst.msk [vmem:[%s2752_s24 + $0x8] sm:$0xf] %vm1356_vm1, %v1939_v35  ;;  %v1583_v42 = vadd.f32 %v1582_v10, %v1581_v9  ;;  %v1940_v37 = vpack.c.bf16 %v1309_v38, %v1309_v38  ;;  %v1571_v47 = vsel %vm2786_vm9, %v1309_v38, 0.0  ;;  %vm1506_vm7 = vcmp.lt.s32.totalorder %v2856_v4, 0 }
 0x188   : > { %v1619_v24 = vsel %vm1578_vm4, %v1608_v21, 0.0  ;;  %v1584_v48 = vsel %vm1578_vm4, %v1571_v47, 0.0  ;;  %v1609_v45 = vmul.f32 %v1571_v47, %v1571_v47  ;;  %v1266_v50 = vpop.f32.mrb[80].mxu0  ;;  %v1526_v35 = vadd.s32 10, %v2856_v4 }
 0x189   : > { %v1620_v51 = vadd.f32 %v1619_v24, %v1618_v25  ;;  %1360 = vst.msk [vmem:[%s2752_s24 + $0xc] sm:$0xf] %vm1356_vm1, %v1940_v37  ;;  %v1585_v54 = vadd.f32 %v1584_v48, %v1583_v42  ;;  %v1154_v52 = vpop.f32.mrb[80].mxu1  ;;  %v1293_v26 = vadd.f32 %v1266_v50, %v1173_v1  ;;  %v2189_v40 = vpop.f32.mrb[81].mxu0  ;;  %vm1497_vm8 = vcmp.ne.s32.totalorder %v2867_v15, 0 }
 0x18a   : > { %v1621_v57 = vsel %vm1578_vm4, %v1609_v45, 0.0  ;;  %v1175_v59 = vadd.f32 %v1154_v52, %v2630_v30  ;;  %v2171_v56 = vpop.f32.mrb[81].mxu1  ;;  %v1269_v53 = vpop.f32.mrb[82].mxu0  ;;  %vm1507_vm9 = vcmp.lt.s32.totalorder %v2867_v15, 0  ;;  %vm1545_vm10 = vcmp.lt.s32.totalorder %v1535_v19, 8 }
 0x18b   : > { %v1622_v63 = vadd.f32 %v1621_v57, %v1620_v51  ;;  %v1310_v2 = vadd.f32 %v2702_v18, %v1293_v26  ;;  %v1157_v3 = vpop.f32.mrb[82].mxu1  ;;  %v1294_v62 = vadd.f32 %v1269_v53, %v1174_v32  ;;  %v2190_v5 = vpop.f32.mrb[83].mxu0  ;;  %v1527_v48 = vadd.s32 10, %v2867_v15  ;;  %vm2902_vm12 = vmand %vm1507_vm9, %vm1497_vm8 }
 0x18c   : > { %v1176_v9 = vadd.f32 %v1157_v3, %v2638_v41  ;;  %v2172_v30 = vpop.f32.mrb[83].mxu1  ;;  %vm1604_vm15 = vcmask 122880  }
 0x18d   : > { %v1941_v0 = vpack.c.bf16 %v1310_v2, %v1310_v2  ;;  %v1572_v11 = vsel %vm2801_vm11, %v1310_v2, 0.0  ;;  %v1311_v58 = vadd.f32 %v2702_v18, %v1294_v62  ;;  %vm2891_vm11 = vmand %vm1506_vm7, %vm1496_vm6  ;;  %v1537_v55 = vsel %vm2902_vm12, %v1527_v48, %v2867_v15 }
 0x18e   : > { %v1586_v41 = vsel %vm1578_vm4, %v1572_v11, 0.0  ;;  %v1610_v13 = vmul.f32 %v1572_v11, %v1572_v11  ;;  %vm1547_vm14 = vcmp.lt.s32.totalorder %v1537_v55, 8 }
 0x18f   : > { %1361 = vst.msk [vmem:[%s2752_s24 + $0x10] sm:$0xf] %vm1356_vm1, %v1941_v0  ;;  %v1587_v29 = vadd.f32 %v1586_v41, %v1585_v54  ;;  %v1942_v17 = vpack.c.bf16 %v1311_v58, %v1311_v58  ;;  %v1573_v1 = vsel %vm1543_vm2, %v1311_v58, 0.0  ;;  %v1536_v54 = vsel %vm2891_vm11, %v1526_v35, %v2856_v4 }
 0x190   : > { %v1623_v22 = vsel %vm1578_vm4, %v1610_v13, 0.0  ;;  %v1588_v12 = vsel %vm1578_vm4, %v1573_v1, 0.0  ;;  %v1611_v25 = vmul.f32 %v1573_v1, %v1573_v1  ;;  %v1274_v27 = vpop.f32.mrb[84].mxu0  ;;  %vm1546_vm13 = vcmp.lt.s32.totalorder %v1536_v54, 8 }
 0x191   : > { %v1624_v7 = vadd.f32 %v1623_v22, %v1622_v63  ;;  %1362 = vst.msk [vmem:[%s2752_s24 + $0x14] sm:$0xf] %vm1356_vm1, %v1942_v17  ;;  %v1589_v44 = vadd.f32 %v1588_v12, %v1587_v29  ;;  %v1162_v23 = vpop.f32.mrb[84].mxu1  ;;  %v1295_v16 = vadd.f32 %v1274_v27, %v1175_v59  ;;  %v2193_v32 = vpop.f32.mrb[85].mxu0 }
 0x192   : > { %v1625_v28 = vsel %vm1578_vm4, %v1611_v25, 0.0  ;;  %v1177_v31 = vadd.f32 %v1162_v23, %v2656_v49  ;;  %v2175_v6 = vpop.f32.mrb[85].mxu1  ;;  %v1277_v14 = vpop.f32.mrb[86].mxu0 }
 0x193   : > { %v1626_v36 = vadd.f32 %v1625_v28, %v1624_v7  ;;  %v1312_v38 = vadd.f32 %v2702_v18, %v1295_v16  ;;  %v1165_v10 = vpop.f32.mrb[86].mxu1  ;;  %v1296_v21 = vadd.f32 %v1277_v14, %v1176_v9  ;;  %v2194_v34 = vpop.f32.mrb[87].mxu0 }
 0x194   : > { %v1178_v33 = vadd.f32 %v1165_v10, %v2669_v61  ;;  %v2176_v42 = vpop.f32.mrb[87].mxu1 }
 0x195   : > { %v1943_v37 = vpack.c.bf16 %v1312_v38, %v1312_v38  ;;  %v1574_v47 = vsel %vm2862_vm5, %v1312_v38, 0.0  ;;  %v1313_v24 = vadd.f32 %v2702_v18, %v1296_v21 }
 0x196   : > { %v1590_v61 = vsel %vm1578_vm4, %v1574_v47, 0.0  ;;  %v1612_v45 = vmul.f32 %v1574_v47, %v1574_v47 }
 0x197   : > { %1363 = vst.msk [vmem:[%s2752_s24 + $0x18] sm:$0xf] %vm1356_vm1, %v1943_v37  ;;  %v1591_v39 = vadd.f32 %v1590_v61, %v1589_v44  ;;  %v1944_v43 = vpack.c.bf16 %v1313_v24, %v1313_v24  ;;  %v1575_v51 = vsel %vm1545_vm10, %v1313_v24, 0.0 }
 0x198   : > { %v1627_v52 = vsel %vm1578_vm4, %v1612_v45, 0.0  ;;  %v1592_v26 = vsel %vm1578_vm4, %v1575_v51, 0.0  ;;  %v1613_v40 = vmul.f32 %v1575_v51, %v1575_v51  ;;  %v1282_v57 = vpop.f32.mrb[88].mxu0 }
 0x199   : > { %v1628_v59 = vadd.f32 %v1627_v52, %v1626_v36  ;;  %1364 = vst.msk [vmem:[%s2752_s24 + $0x1c] sm:$0xf] %vm1356_vm1, %v1944_v43  ;;  %v1593_v56 = vadd.f32 %v1592_v26, %v1591_v39  ;;  %v1297_v53 = vadd.f32 %v1282_v57, %v1177_v31  ;;  %v2197_v60 = vpop.f32.mrb[89].mxu0 }
 0x19a   : > { %v1629_v63 = vsel %vm1578_vm4, %v1613_v40, 0.0  ;;  %v1285_v2 = vpop.f32.mrb[90].mxu0 }
 0x19b   : > { %v1630_v3 = vadd.f32 %v1629_v63, %v1628_v59  ;;  %v1314_v62 = vadd.f32 %v2702_v18, %v1297_v53  ;;  %v1298_v5 = vadd.f32 %v1285_v2, %v1178_v33  ;;  %v2198_v8 = vpop.f32.mrb[91].mxu0 }
 0x19d   : > { %v1945_v9 = vpack.c.bf16 %v1314_v62, %v1314_v62  ;;  %v1576_v30 = vsel %vm1546_vm13, %v1314_v62, 0.0  ;;  %v1315_v20 = vadd.f32 %v2702_v18, %v1298_v5 }
 0x19e   : > { %v1594_v4 = vsel %vm1578_vm4, %v1576_v30, 0.0  ;;  %v1614_v0 = vmul.f32 %v1576_v30, %v1576_v30 }
 0x19f   : > { %1365 = vst.msk [vmem:[%s2752_s24 + $0x20] sm:$0xf] %vm1356_vm1, %v1945_v9  ;;  %v1595_v11 = vadd.f32 %v1594_v4, %v1593_v56  ;;  %v1946_v58 = vpack.c.bf16 %v1315_v20, %v1315_v20  ;;  %v1577_v41 = vsel %vm1547_vm14, %v1315_v20, 0.0 }
 0x1a0   : > { %v1631_v13 = vsel %vm1578_vm4, %v1614_v0, 0.0  ;;  %v1596_v46 = vsel %vm1578_vm4, %v1577_v41, 0.0  ;;  %v1615_v15 = vmul.f32 %v1577_v41, %v1577_v41 }
 0x1a1   : > { %v1632_v29 = vadd.f32 %v1631_v13, %v1630_v3  ;;  %1366 = vst.msk [vmem:[%s2752_s24 + $0x24] sm:$0xf] %vm1356_vm1, %v1946_v58  ;;  %v1597_v17 = vadd.f32 %v1596_v46, %v1595_v11 }
 0x1a2   : > { %v1633_v18 = vsel %vm1578_vm4, %v1615_v15, 0.0 }
 0x1a3   : > { %v1598_v1 = vrot.slane %v1597_v17, 4  ;;  %v1634_v19 = vadd.f32 %v1633_v18, %v1632_v29 }
 0x1a5   : > { %v1599_v22 = vadd.f32 %v1598_v1, %v1597_v17  ;;  %v1635_v12 = vrot.slane %v1634_v19, 4 }
 0x1a7   : > { %v1600_v25 = vrot.slane %v1599_v22, 2  ;;  %v1636_v27 = vadd.f32 %v1635_v12, %v1634_v19 }
 0x1a9   : > { %v1601_v7 = vadd.f32 %v1600_v25, %v1599_v22  ;;  %v1637_v44 = vrot.slane %v1636_v27, 2 }
 0x1ab   : > { %v1602_v23 = vrot.slane %v1601_v7, 1  ;;  %v1638_v16 = vadd.f32 %v1637_v44, %v1636_v27 }
 0x1ad   : > { %v1603_v32 = vadd.f32 %v1602_v23, %v1601_v7  ;;  %v1639_v28 = vrot.slane %v1638_v16, 1 }
 0x1af   : > { %1605 = vst.msk [vmem:[%s235_s28] sm:$0x1] %vm1604_vm15, %v1603_v32  ;;  %v1640_v31 = vadd.f32 %v1639_v28, %v1638_v16 }
 0x1b1   : > { %1641 = vst.msk [vmem:[%s235_s28 + $0x1] sm:$0x1] %vm1604_vm15, %v1640_v31 }
 0x1b2 PF: > { %s15_s17 = sadd.s32 1, %s2271_s17   ;;  %s2979_s15 = smov %s2267_s16 }
 0x1b3   : > { %p12_p5 = scmp.ge.s32.totalorder %s15_s17, 4   ;;  %s2980_s16 = smov %s2982_s18 }
 0x1b5   :  { %14 = sbr.rel (!%p12_p5) target bundleno = 2 (0x2), region = 91 }

// kernel: conv_autoencoder_forward.13
= control target key start
LH: loop header
LB: loop body
LE: loop exit
PB: predicated region body
PF: predicated region fallthrough
CT: control target
= control target key end

     0   :  { %v286_v6 = vmov 1966171168   ;;  %v70_v8 = vlaneseq  ;;  %vm223_vm0 = vcmask 254976   ;;  %s372_s1 = inlined_call_operand.vmem [shape: bf16[256,32], index: 1, kind: input, shape index: {}]   ;;  %s373_s0 = inlined_call_operand.vmem [shape: bf16[2,256], index: 0, kind: input, shape index: {}]   ;;  %s374_s2 = inlined_call_operand.vmem [shape: f32[1,32], index: 2, kind: input, shape index: {}]   ;;  %s375_s3 = inlined_call_operand.vmem [shape: f32[2,32], index: 3, kind: input, shape index: {}]   ;;  %s376_s4 = inlined_call_operand.vmem [shape: f32[2,32], index: 4, kind: output, shape index: {}]  }
   0x1   :  { %v270_v0 = vld [vmem:[%s372_s1 + $0x40] sm:$0xff]   ;;  %v272_v2 = vld [vmem:[%s372_s1 + $0x48] sm:$0xff]   ;;  %v274_v4 = vld [vmem:[%s372_s1 + $0x50] sm:$0xff]   ;;  %v68_v7 = vunpack.c.l.s4 %v286_v6 }
   0x2   :  { %v271_v1 = vld [vmem:[%s372_s1] sm:$0xff]   ;;  %247 = vmatprep.subr.bf16.mxu0 %v270_v0  ;;  %v273_v3 = vld [vmem:[%s372_s1 + $0x8] sm:$0xff]   ;;  %v275_v5 = vld [vmem:[%s372_s1 + $0x10] sm:$0xff]   ;;  %v71_v12 = vshrl.u32 %v70_v8, 7 }
   0x3   :  { %248 = vmatpush3.bf16.msra.mxu0 %v271_v1  ;;  %v276_v9 = vld [vmem:[%s372_s1 + $0x58] sm:$0xff]   ;;  %v69_v11 = vunpack.c.0.s8 %v68_v7  ;;  %v278_v13 = vld [vmem:[%s372_s1 + $0x60] sm:$0xff]   ;;  %v280_v16 = vld [vmem:[%s372_s1 + $0x68] sm:$0xff]  }
   0x4   :  { %249 = vmatprep.subr.bf16.mxu0 %v272_v2  ;;  %v277_v10 = vld [vmem:[%s372_s1 + $0x18] sm:$0xff]   ;;  %v279_v14 = vld [vmem:[%s372_s1 + $0x20] sm:$0xff]   ;;  %v281_v19 = vld [vmem:[%s372_s1 + $0x28] sm:$0xff]  }
   0x5   :  { %v72_v15 = vsub.s32 %v69_v11, %v71_v12  ;;  %v230_v17 = vld.sshfl [vmem:[%s373_s0] sm:$0x11 pattern:$0x75316420]  ;;  %v282_v21 = vld [vmem:[%s372_s1 + $0x70] sm:$0xff]   ;;  %v284_v23 = vld [vmem:[%s372_s1 + $0x78] sm:$0xff]  }
   0x6   :  { %v66_v18 = vcombine.high %v230_v17, %v230_v17  ;;  %v283_v22 = vld [vmem:[%s372_s1 + $0x30] sm:$0xff]   ;;  %v285_v24 = vld [vmem:[%s372_s1 + $0x38] sm:$0xff]   ;;  %v229_v27 = vld [vmem:[%s374_s2] ss:$0 sm:$0xff] }
   0x7   :  { %250 = vmatpush3.bf16.msra.mxu0 %v273_v3  ;;  %v73_v25 = vrot.slane %v230_v17, %v72_v15  ;;  %v220_v29 = vld [vmem:[%s375_s3] sm:$0x3] }
   0x8   :  { %251 = vmatprep.subr.bf16.mxu0 %v274_v4  ;;  %v80_v20 = vrot.slane %v66_v18, %v72_v15  ;;  %v221_v34 = vmul.f32 0.05, %v220_v29 }
   0xa   :  { %211 = vmatprep.mubr.bf16.mxu0 %v80_v20 }
   0xb   :  { %252 = vmatpush3.bf16.msra.mxu0 %v275_v5 }
   0xc   :  { %253 = vmatprep.subr.bf16.mxu0 %v276_v9 }
   0xf   :  { %254 = vmatpush3.bf16.msra.mxu0 %v277_v10 }
  0x10   :  { %255 = vmatprep.subr.bf16.mxu0 %v278_v13 }
  0x13   :  { %256 = vmatpush3.bf16.msra.mxu0 %v279_v14 }
  0x14   :  { %257 = vmatprep.subr.bf16.mxu0 %v280_v16 }
  0x17   :  { %258 = vmatpush3.bf16.msra.mxu0 %v281_v19 }
  0x18   :  { %259 = vmatprep.subr.bf16.mxu0 %v282_v21 }
  0x1b   :  { %260 = vmatpush3.bf16.msra.mxu0 %v283_v22 }
  0x1c   :  { %261 = vmatprep.subr.bf16.mxu0 %v284_v23 }
  0x1f   :  { %262 = vmatpush3.bf16.msra.mxu0 %v285_v24 }
  0x22   :  { %212 = vmatmul.mubr.bf16.vlgmr.msra.gmra.mrb[0].mxu0 %v73_v25 }
  0xf5   :  { %v263_v26 = vpop.f32.mrb[0].mxu0 }
  0xf6   :  { %v264_v28 = vpop.f32.mrb[1].mxu0 }
  0xf7   :  { %v265_v30 = vadd.f32 %v264_v28, %v263_v26  ;;  %v266_v31 = vpop.f32.mrb[2].mxu0 }
  0xf8   :  { %v267_v32 = vpop.f32.mrb[3].mxu0 }
  0xf9   :  { %v214_v33 = vadd.f32 %v265_v30, %v229_v27 }
  0xfb   :  { %v219_v35 = vmax.f32 %v214_v33, 0.0 }
  0xfd   :  { %v222_v36 = vadd.f32 %v221_v34, %v219_v35 }
  0xff   :  { %224 = vst.msk [vmem:[%s376_s4] sm:$0x3] %vm223_vm0, %v222_v36 }

// kernel: conv_autoencoder_forward.14
= control target key start
LH: loop header
LB: loop body
LE: loop exit
PB: predicated region body
PF: predicated region fallthrough
CT: control target
= control target key end

     0   :  { %v140_v1 = vmov 0   ;;  %vm53_vm0 = vcmask 261120   ;;  %v23_v7 = vlaneseq  ;;  %v141_v12 = vmov 1966171168   ;;  %s183_s1 = inlined_call_operand.vmem [shape: bf16[32,256], index: 1, kind: input, shape index: {}]   ;;  %s184_s0 = inlined_call_operand.vmem [shape: f32[2,32], index: 0, kind: input, shape index: {}]   ;;  %s185_s2 = inlined_call_operand.vmem [shape: f32[1,256], index: 2, kind: input, shape index: {}]   ;;  %s186_s3 = inlined_call_operand.vmem [shape: bf16[2,256], index: 3, kind: output, shape index: {}]  }
   0x1   :  { %v134_v0 = vld [vmem:[%s183_s1 + $0x4] ss:$8 sps:$4 sm:$0xff]   ;;  %89 = vmatprep.mubr.bf16.mxu0 %v140_v1  ;;  %v136_v2 = vld [vmem:[%s183_s1] ss:$8 sps:$4 sm:$0xff]   ;;  %v137_v3 = vld [vmem:[%s183_s1 + $0x14] ss:$8 sps:$4 sm:$0xff]   ;;  %v106_v13 = vunpack.c.l.s4 %v141_v12 }
   0x2   :  { %57 = vmatprep.subr.bf16.mxu0 %v134_v0  ;;  %v139_v4 = vld [vmem:[%s183_s1 + $0x10] ss:$8 sps:$4 sm:$0xff]   ;;  %v15_v5 = vld [vmem:[%s184_s0] sm:$0x3]  ;;  %v24_v8 = vshrl.u32 %v23_v7, 7 }
   0x3   :  { %58 = vmatpush1.bf16.msra.mxu0 %v136_v2  ;;  %v16_v6 = vpack.c.bf16 %v15_v5, %v15_v5  ;;  %v21_v10 = vld [vmem:[%s185_s2] sm:$0x3]  ;;  %v107_v17 = vunpack.c.0.s8 %v106_v13 }
   0x4   :  { %59 = vmatprep.subr.bf16.mxu0 %v137_v3  ;;  %v25_v9 = vsub.s32 0, %v24_v8  ;;  %v29_v11 = vsub.s32 1, %v24_v8 }
   0x5   :  { %v110_v25 = vsub.s32 %v107_v17, %v24_v8 }
   0x6   :  { %v26_v14 = vrot.slane %v21_v10, %v25_v9  ;;  %v30_v15 = vrot.slane %v21_v10, %v29_v11 }
   0x7   :  { %60 = vmatpush1.bf16.msra.mxu0 %v139_v4 }
   0xa   :  { %129 = vmatmul.mubr.msk.bf16.vlgmr.msra.gmra.mrb[0].mxu0 %vm53_vm0, %v16_v6 }
  0xdd   :  { %v91_v16 = vpop.f32.mrb[0].mxu0 }
  0xde   :  { %v92_v18 = vadd.f32 %v91_v16, %v26_v14  ;;  %v93_v19 = vpop.f32.mrb[1].mxu0 }
  0xdf   :  { %v94_v20 = vadd.f32 %v93_v19, %v30_v15  ;;  %v95_v21 = vpop.f32.mrb[2].mxu0 }
  0xe0   :  { %v98_v22 = vmax.f32 %v92_v18, 0.0  ;;  %v96_v23 = vpop.f32.mrb[3].mxu0 }
  0xe1   :  { %v99_v24 = vmax.f32 %v94_v20, 0.0 }
  0xe3   :  { %v130_v26 = vpack.c.bf16 %v99_v24, %v98_v22 }
  0xe5   :  { %v111_v27 = vrot.slane %v130_v26, %v110_v25 }
  0xe7   :  { %131 = vst.sshfl [vmem:[%s186_s3] sm:$0x5 pattern:$0x73625140] %v111_v27 }

// kernel: conv_autoencoder_forward.9
= control target key start
LH: loop header
LB: loop body
LE: loop exit
PB: predicated region body
PF: predicated region fallthrough
CT: control target
= control target key end

     0   :  { %s5931_s15 = smov 0   ;;  %s5933_s16 = smov 0   ;;  %s8249_s0 = inlined_call_operand.vmem [shape: f32[2,342,3], index: 0, kind: input, shape index: {}]   ;;  %s8250_s1 = inlined_call_operand.vmem [shape: bf16[9,3,8], index: 1, kind: input, shape index: {}]   ;;  %s8251_s2 = inlined_call_operand.vmem [shape: f32[1,8], index: 2, kind: input, shape index: {}]   ;;  %s8252_s3 = inlined_call_operand.vmem [shape: bf16[2,288,8], index: 3, kind: output, shape index: {0}]   ;;  %s8253_s4 = inlined_call_operand.vmem [shape: f32[2,2,8], index: 4, kind: output, shape index: {1}]  }
   0x1   :  { %s5935_s17 = smov 0  }
   0x2 LB: > { %s27_s18 = sadd.s32 1, %s5899_s16  ;;  %p4442_p0 = scmp.ge.s32.totalorder %s5903_s17, 1  ;;  %s5903_s17 = sphi %s5935_s17, %s15_s17   ;;  %s5899_s16 = sphi %s5933_s16, %s8825_s16   ;;  %s5895_s15 = sphi %s5931_s15, %s8824_s15  }
   0x3   : > { %p29_p1 = scmp.ge.s32.totalorder %s27_s18, 2  ;;  %p181_p2 = scmp.lt.s32.totalorder %s5903_s17, 3 }
   0x5   : > { %s8827_s18 = smov (%p29_p1, %s27_s18), 0  ;;  %p182_p3 = pnand %p4442_p0, %p181_p2 }
   0x7   : > { %185 = sbr.rel (%p182_p3) target bundleno = 627 (0x273), region = 32 }
   0xe   : > { %vm408_vm0 = vcmask 1040384   ;;  %vm409_vm1 = vcmask 1041408   ;;  %v4665_v0 = vld [vmem:[%s8250_s1 + $0x8] sm:$0x3]  ;;  %p216_p4 = scmp.lt.s32.totalorder %s5895_s15, 1  ;;  %v5905_v1 = vmov 65535  }
   0xf   : > { %v410_v2 = vsel %vm408_vm0, 4294967295, %v5905_v1  ;;  %v4482_v3 = vld [vmem:[%s8250_s1 + $0x2] sm:$0x3]  ;;  %v4720_v4 = vld [vmem:[%s8250_s1 + $0xa] sm:$0x3]  ;;  %vm353_vm2 = vcmask 23552  }
  0x10   : > { %v5958_v5 = vsel %vm409_vm1, %v410_v2, 0  ;;  %s8829_s15 = smov (!%p216_p4, %s5895_s15), 1  ;;  %v294_v6 = vld [vmem:[%s8250_s1] sm:$0x3]  ;;  %v4775_v11 = vld [vmem:[%s8250_s1 + $0xc] sm:$0x3] }
  0x11   : > { %v5966_v7 = vand.u32 %v4665_v0, %v5958_v5  ;;  %v413_v8 = vand.u32 %v4482_v3, %v5958_v5  ;;  %v1923_v9 = vand.u32 %v4720_v4, %v5958_v5  ;;  %v647_v10 = vand.u32 %v5958_v5, %v294_v6  ;;  %s5782_s27 = smul.u32 344, %s8829_s15  ;;  %v4555_v12 = vld [vmem:[%s8250_s1 + $0x4] sm:$0x3]  ;;  %s4445_s25 = sshll.u32 %s8829_s15, 1 }
  0x12   : > { %v5999_v29 = vand.u32 %v4775_v11, %v5958_v5  ;;  %v6004_v32 = vand.u32 %v4555_v12, %v5958_v5  ;;  %s5783_s21 = smul.u32 144, %s8829_s15  ;;  %s235_s28 = scalar_lea.vmem %s8253_s4, %s4445_s25 }
  0x13   : > { %5302 = vmatprep.subr.bf16.mxu0 %v5966_v7  ;;  %5150 = vmatprep.subr.bf16.mxu1 %v413_v8  ;;  %s5977_s30 = scalar_lea.vmem %s8249_s0, %s5782_s27 }
  0x14   : > { %5303 = vmatpush3.bf16.msra.mxu0 %v5966_v7  ;;  %5151 = vmatpush3.bf16.msra.mxu1 %v413_v8  ;;  %v4446_v13 = vld [vmem:[%s5977_s30 + $0x1] sm:$0xff]  ;;  %v4447_v14 = vld [vmem:[%s5977_s30 + $0x9] sm:$0xff]  ;;  %v4629_v15 = vld [vmem:[%s5977_s30 + $0x13] sm:$0xff]  ;;  %s7570_s24 = scalar_lea.vmem %s8252_s3, %s5783_s21 }
  0x15   : > { %5340 = vmatprep.subr.bf16.mxu0 %v1923_v9  ;;  %5188 = vmatprep.subr.bf16.mxu1 %v647_v10  ;;  %v333_v16 = vpack.c.bf16 %v4447_v14, %v4446_v13  ;;  %v4630_v17 = vld [vmem:[%s5977_s30 + $0x1b] sm:$0xff]  ;;  %v4448_v18 = vld [vmem:[%s5977_s30 + $0x11] sm:$0xff]  ;;  %v4631_v22 = vld [vmem:[%s5977_s30 + $0x23] sm:$0xff] }
  0x16   : > { %v4449_v19 = vld [vmem:[%s5977_s30 + $0x19] sm:$0xff]  ;;  %v1520_v20 = vpack.c.bf16 %v4630_v17, %v4629_v15  ;;  %v4632_v23 = vld [vmem:[%s5977_s30 + $0x2b] sm:$0xff]  ;;  %v4450_v24 = vld [vmem:[%s5977_s30 + $0x21] sm:$0xff] }
  0x17   : > { %v334_v21 = vpack.c.bf16 %v4449_v19, %v4448_v18  ;;  %5152 = vmatprep.mubr.msk.bf16.mxu1 %vm353_vm2, %v333_v16  ;;  %v1521_v25 = vpack.c.bf16 %v4632_v23, %v4631_v22  ;;  %v4451_v26 = vld [vmem:[%s5977_s30 + $0x29] sm:$0xff]  ;;  %v4633_v27 = vld [vmem:[%s5977_s30 + $0x33] sm:$0xff]  ;;  %v4634_v28 = vld [vmem:[%s5977_s30 + $0x3b] sm:$0xff] }
  0x18   : > { %5304 = vmatprep.mubr.msk.bf16.mxu0 %vm353_vm2, %v1520_v20  ;;  %v335_v30 = vpack.c.bf16 %v4451_v26, %v4450_v24  ;;  %v1522_v31 = vpack.c.bf16 %v4634_v28, %v4633_v27  ;;  %v4452_v33 = vld [vmem:[%s5977_s30 + $0x31] sm:$0xff]  ;;  %v4453_v34 = vld [vmem:[%s5977_s30 + $0x39] sm:$0xff]  ;;  %v4635_v35 = vld [vmem:[%s5977_s30 + $0x43] sm:$0xff] }
  0x19   : > { %5153 = vmatmul.mubr.msk.bf16.vlgmr.msra.gmra.mrb[0].mxu1 %vm353_vm2, %v334_v21  ;;  %5305 = vmatmul.mubr.msk.bf16.vlgmr.msra.gmra.mrb[0].mxu0 %vm353_vm2, %v1521_v25  ;;  %v4636_v36 = vld [vmem:[%s5977_s30 + $0x4b] sm:$0xff]  ;;  %v4454_v37 = vld [vmem:[%s5977_s30 + $0x41] sm:$0xff]  ;;  %v4637_v39 = vld [vmem:[%s5977_s30 + $0x53] sm:$0xff]  ;;  %v336_v41 = vpack.c.bf16 %v4453_v34, %v4452_v33 }
  0x1a   : > { %5189 = vmatpush3.bf16.msra.mxu1 %v647_v10  ;;  %5341 = vmatpush3.bf16.msra.mxu0 %v1923_v9  ;;  %v4455_v38 = vld [vmem:[%s5977_s30 + $0x49] sm:$0xff]  ;;  %v4638_v40 = vld [vmem:[%s5977_s30 + $0x5b] sm:$0xff]  ;;  %v1523_v42 = vpack.c.bf16 %v4636_v36, %v4635_v35  ;;  %v4456_v45 = vld [vmem:[%s5977_s30 + $0x51] sm:$0xff] }
  0x1b   : > { %5156 = vmatprep.mubr.msk.bf16.mxu1 %vm353_vm2, %v335_v30  ;;  %5308 = vmatprep.mubr.msk.bf16.mxu0 %vm353_vm2, %v1522_v31  ;;  %v337_v43 = vpack.c.bf16 %v4455_v38, %v4454_v37  ;;  %v1524_v44 = vpack.c.bf16 %v4638_v40, %v4637_v39  ;;  %v4457_v46 = vld [vmem:[%s5977_s30 + $0x59] sm:$0xff]  ;;  %v4639_v47 = vld [vmem:[%s5977_s30 + $0x63] sm:$0xff]  ;;  %v4640_v48 = vld [vmem:[%s5977_s30 + $0x6b] sm:$0xff] }
  0x1c   : > { %5378 = vmatprep.subr.bf16.mxu0 %v5999_v29  ;;  %5226 = vmatprep.subr.bf16.mxu1 %v6004_v32  ;;  %v4458_v49 = vld [vmem:[%s5977_s30 + $0x61] sm:$0xff]  ;;  %v4459_v50 = vld [vmem:[%s5977_s30 + $0x69] sm:$0xff]  ;;  %v4641_v51 = vld [vmem:[%s5977_s30 + $0x73] sm:$0xff]  ;;  %v338_v53 = vpack.c.bf16 %v4457_v46, %v4456_v45  ;;  %v1525_v54 = vpack.c.bf16 %v4640_v48, %v4639_v47 }
  0x1d   : > { %v4642_v52 = vld [vmem:[%s5977_s30 + $0x7b] sm:$0xff]  ;;  %v339_v55 = vpack.c.bf16 %v4459_v50, %v4458_v49  ;;  %v4460_v57 = vld [vmem:[%s5977_s30 + $0x71] sm:$0xff]  ;;  %v4643_v59 = vld [vmem:[%s5977_s30 + $0x83] sm:$0xff] }
  0x1e   : > { %v1526_v56 = vpack.c.bf16 %v4642_v52, %v4641_v51  ;;  %v4461_v58 = vld [vmem:[%s5977_s30 + $0x79] sm:$0xff]  ;;  %v4644_v60 = vld [vmem:[%s5977_s30 + $0x8b] sm:$0xff]  ;;  %v4462_v61 = vld [vmem:[%s5977_s30 + $0x81] sm:$0xff] }
  0x1f   : > { %v4463_v62 = vld [vmem:[%s5977_s30 + $0x89] sm:$0xff]  ;;  %v4645_v63 = vld [vmem:[%s5977_s30 + $0x93] sm:$0xff]  ;;  %v4646_v0 = vld [vmem:[%s5977_s30 + $0x9b] sm:$0xff]  ;;  %v340_v1 = vpack.c.bf16 %v4461_v58, %v4460_v57  ;;  %v1527_v2 = vpack.c.bf16 %v4644_v60, %v4643_v59 }
  0x20   : > { %v341_v3 = vpack.c.bf16 %v4463_v62, %v4462_v61  ;;  %v1528_v4 = vpack.c.bf16 %v4646_v0, %v4645_v63  ;;  %v4464_v6 = vld [vmem:[%s5977_s30 + $0x91] sm:$0xff]  ;;  %v4465_v8 = vld [vmem:[%s5977_s30 + $0x99] sm:$0xff]  ;;  %v4647_v9 = vld [vmem:[%s5977_s30 + $0xa3] sm:$0xff] }
  0x21   : > { %5157 = vmatmul.mubr.msk.bf16.gmra.mrb[4].mxu1 %vm353_vm2, %v336_v41  ;;  %5309 = vmatmul.mubr.msk.bf16.gmra.mrb[4].mxu0 %vm353_vm2, %v1523_v42  ;;  %v4648_v10 = vld [vmem:[%s5977_s30 + $0xab] sm:$0xff]  ;;  %v4466_v11 = vld [vmem:[%s5977_s30 + $0xa1] sm:$0xff]  ;;  %v4684_v13 = vld [vmem:[%s5977_s30 + $0x14] sm:$0xff]  ;;  %v342_v15 = vpack.c.bf16 %v4465_v8, %v4464_v6 }
  0x22   : > { %5160 = vmatprep.mubr.msk.bf16.mxu1 %vm353_vm2, %v337_v43  ;;  %5312 = vmatprep.mubr.msk.bf16.mxu0 %vm353_vm2, %v1524_v44  ;;  %v4467_v12 = vld [vmem:[%s5977_s30 + $0xa9] sm:$0xff]  ;;  %v4685_v14 = vld [vmem:[%s5977_s30 + $0x1c] sm:$0xff]  ;;  %v1529_v16 = vpack.c.bf16 %v4648_v10, %v4647_v9  ;;  %v4468_v19 = vld [vmem:[%s5977_s30 + $0xb1] sm:$0xff] }
  0x23   : > { %v343_v17 = vpack.c.bf16 %v4467_v12, %v4466_v11  ;;  %v1848_v18 = vpack.c.bf16 %v4685_v14, %v4684_v13  ;;  %v4469_v20 = vld [vmem:[%s5977_s30 + $0xb9] sm:$0xff]  ;;  %v4686_v21 = vld [vmem:[%s5977_s30 + $0x24] sm:$0xff]  ;;  %v4687_v22 = vld [vmem:[%s5977_s30 + $0x2c] sm:$0xff] }
  0x24   : > { %v4470_v23 = vld [vmem:[%s5977_s30 + $0xc1] sm:$0xff]  ;;  %v4471_v24 = vld [vmem:[%s5977_s30 + $0xc9] sm:$0xff]  ;;  %v4688_v25 = vld [vmem:[%s5977_s30 + $0x34] sm:$0xff]  ;;  %v344_v27 = vpack.c.bf16 %v4469_v20, %v4468_v19  ;;  %v6070_v30 = vpack.c.bf16 %v4687_v22, %v4686_v21 }
  0x25   : > { %v4689_v26 = vld [vmem:[%s5977_s30 + $0x3c] sm:$0xff]  ;;  %v4830_v28 = vld [vmem:[%s8250_s1 + $0xe] sm:$0x3]  ;;  %v345_v31 = vpack.c.bf16 %v4471_v24, %v4470_v23  ;;  %v4472_v35 = vld [vmem:[%s5977_s30 + $0xd1] sm:$0xff] }
  0x26   : > { %v6072_v33 = vpack.c.bf16 %v4689_v26, %v4688_v25  ;;  %v6075_v34 = vand.u32 %v4830_v28, %v5958_v5  ;;  %v4473_v36 = vld [vmem:[%s5977_s30 + $0xd9] sm:$0xff]  ;;  %v4690_v37 = vld [vmem:[%s5977_s30 + $0x44] sm:$0xff]  ;;  %v4691_v38 = vld [vmem:[%s5977_s30 + $0x4c] sm:$0xff] }
  0x27   : > { %v4474_v39 = vld [vmem:[%s5977_s30 + $0xe1] sm:$0xff]  ;;  %v4475_v40 = vld [vmem:[%s5977_s30 + $0xe9] sm:$0xff]  ;;  %v4692_v41 = vld [vmem:[%s5977_s30 + $0x54] sm:$0xff]  ;;  %v346_v43 = vpack.c.bf16 %v4473_v36, %v4472_v35  ;;  %v6093_v44 = vpack.c.bf16 %v4691_v38, %v4690_v37 }
  0x28   : > { %v4693_v42 = vld [vmem:[%s5977_s30 + $0x5c] sm:$0xff]  ;;  %v4476_v46 = vld [vmem:[%s5977_s30 + $0xf1] sm:$0xff]  ;;  %v4694_v48 = vld [vmem:[%s5977_s30 + $0x64] sm:$0xff] }
  0x29   : > { %5161 = vmatmul.mubr.msk.bf16.gmra.mrb[8].mxu1 %vm353_vm2, %v338_v53  ;;  %5313 = vmatmul.mubr.msk.bf16.gmra.mrb[8].mxu0 %vm353_vm2, %v1525_v54  ;;  %v6095_v45 = vpack.c.bf16 %v4693_v42, %v4692_v41  ;;  %v4477_v47 = vld [vmem:[%s5977_s30 + $0xf9] sm:$0xff]  ;;  %v4695_v49 = vld [vmem:[%s5977_s30 + $0x6c] sm:$0xff]  ;;  %v4478_v50 = vld [vmem:[%s5977_s30 + $0x101] sm:$0xff] }
  0x2a   : > { %5164 = vmatprep.mubr.msk.bf16.mxu1 %vm353_vm2, %v339_v55  ;;  %5316 = vmatprep.mubr.msk.bf16.mxu0 %vm353_vm2, %v1526_v56  ;;  %v4479_v51 = vld [vmem:[%s5977_s30 + $0x109] sm:$0xff]  ;;  %v4696_v52 = vld [vmem:[%s5977_s30 + $0x74] sm:$0xff]  ;;  %v4697_v53 = vld [vmem:[%s5977_s30 + $0x7c] sm:$0xff]  ;;  %v348_v54 = vpack.c.bf16 %v4477_v47, %v4476_v46  ;;  %v6111_v55 = vpack.c.bf16 %v4695_v49, %v4694_v48 }
  0x2b   : > { %v349_v56 = vpack.c.bf16 %v4479_v51, %v4478_v50  ;;  %v6113_v57 = vpack.c.bf16 %v4697_v53, %v4696_v52  ;;  %v4480_v58 = vld [vmem:[%s5977_s30 + $0x111] sm:$0xff]  ;;  %v4481_v59 = vld [vmem:[%s5977_s30 + $0x119] sm:$0xff]  ;;  %v4698_v60 = vld [vmem:[%s5977_s30 + $0x84] sm:$0xff] }
  0x2c   : > { %v4699_v61 = vld [vmem:[%s5977_s30 + $0x8c] sm:$0xff]  ;;  %v240_v62 = vld [vmem:[%s5977_s30] sm:$0xff]  ;;  %v4700_v0 = vld [vmem:[%s5977_s30 + $0x94] sm:$0xff] }
  0x2d   : > { %v241_v63 = vld [vmem:[%s5977_s30 + $0x8] sm:$0xff]  ;;  %v242_v8 = vld [vmem:[%s5977_s30 + $0x10] sm:$0xff]  ;;  %v243_v9 = vld [vmem:[%s5977_s30 + $0x18] sm:$0xff] }
  0x2e   : > { %v4702_v10 = vld [vmem:[%s5977_s30 + $0xa4] sm:$0xff]  ;;  %v4703_v11 = vld [vmem:[%s5977_s30 + $0xac] sm:$0xff]  ;;  %v4704_v14 = vld [vmem:[%s5977_s30 + $0xb4] sm:$0xff] }
  0x2f   : > { %v244_v12 = vld [vmem:[%s5977_s30 + $0x20] sm:$0xff]  ;;  %v245_v13 = vld [vmem:[%s5977_s30 + $0x28] sm:$0xff]  ;;  %v246_v22 = vld [vmem:[%s5977_s30 + $0x30] sm:$0xff] }
  0x30   : > { %v278_v19 = vpack.c.bf16 %v245_v13, %v244_v12  ;;  %v247_v23 = vld [vmem:[%s5977_s30 + $0x38] sm:$0xff]  ;;  %v4706_v24 = vld [vmem:[%s5977_s30 + $0xc4] sm:$0xff]  ;;  %v4707_v25 = vld [vmem:[%s5977_s30 + $0xcc] sm:$0xff] }
  0x31   : > { %5165 = vmatmul.mubr.msk.bf16.gmra.mrb[12].mxu1 %vm353_vm2, %v340_v1  ;;  %5317 = vmatmul.mubr.msk.bf16.gmra.mrb[12].mxu0 %vm353_vm2, %v1527_v2  ;;  %v4701_v1 = vld [vmem:[%s5977_s30 + $0x9c] sm:$0xff]  ;;  %v350_v2 = vpack.c.bf16 %v4481_v59, %v4480_v58  ;;  %v4708_v28 = vld [vmem:[%s5977_s30 + $0xd4] sm:$0xff]  ;;  %v279_v35 = vpack.c.bf16 %v247_v23, %v246_v22  ;;  %v6173_v36 = vpack.c.bf16 %v4707_v25, %v4706_v24  ;;  %v4711_v41 = vld [vmem:[%s5977_s30 + $0xec] sm:$0xff] }
  0x32   : > { %5168 = vmatprep.mubr.msk.bf16.mxu1 %vm353_vm2, %v341_v3  ;;  %5320 = vmatprep.mubr.msk.bf16.mxu0 %vm353_vm2, %v1528_v4  ;;  %v6129_v3 = vpack.c.bf16 %v4699_v61, %v4698_v60  ;;  %v276_v4 = vpack.c.bf16 %v241_v63, %v240_v62  ;;  %v6131_v6 = vpack.c.bf16 %v4701_v1, %v4700_v0  ;;  %v248_v26 = vld [vmem:[%s5977_s30 + $0x40] sm:$0xff]  ;;  %v254_v51 = vld [vmem:[%s5977_s30 + $0x70] sm:$0xff]  ;;  %v255_v52 = vld [vmem:[%s5977_s30 + $0x78] sm:$0xff] }
  0x33   : > { %v252_v42 = vld [vmem:[%s5977_s30 + $0x60] sm:$0xff]  ;;  %v257_v58 = vld [vmem:[%s5977_s30 + $0x88] sm:$0xff]  ;;  %v4716_v59 = vld [vmem:[%s5977_s30 + $0x114] sm:$0xff]  ;;  %v283_v61 = vpack.c.bf16 %v255_v52, %v254_v51 }
  0x34   : > { %v4713_v46 = vld [vmem:[%s5977_s30 + $0xfc] sm:$0xff]  ;;  %v4714_v53 = vld [vmem:[%s5977_s30 + $0x104] sm:$0xff]  ;;  %v258_v1 = vld [vmem:[%s5977_s30 + $0x90] sm:$0xff] }
  0x35   : > { %v4717_v60 = vld [vmem:[%s5977_s30 + $0x11c] sm:$0xff]  ;;  %v4885_v22 = vld [vmem:[%s8250_s1 + $0x10] sm:$0x3] }
  0x36   : > { %v6211_v0 = vpack.c.bf16 %v4717_v60, %v4716_v59  ;;  %v6241_v24 = vand.u32 %v4885_v22, %v5958_v5  ;;  %v267_v25 = vld [vmem:[%s5977_s30 + $0xd8] sm:$0xff]  ;;  %v4531_v52 = vld [vmem:[%s5977_s30 + $0x62] sm:$0xff]  ;;  %v4536_v59 = vld [vmem:[%s5977_s30 + $0x8a] sm:$0xff] }
  0x37   : > { %v4798_v22 = vld [vmem:[%s5977_s30 + $0x45] sm:$0xff] }
  0x39   : > { %5169 = vmatmul.mubr.msk.bf16.gmra.mrb[16].mxu1 %vm353_vm2, %v342_v15  ;;  %5321 = vmatmul.mubr.msk.bf16.gmra.mrb[16].mxu0 %vm353_vm2, %v1529_v16  ;;  %v4705_v15 = vld [vmem:[%s5977_s30 + $0xbc] sm:$0xff]  ;;  %v277_v16 = vpack.c.bf16 %v243_v9, %v242_v8  ;;  %v4719_v8 = vld [vmem:[%s5977_s30 + $0x12c] sm:$0xff] }
  0x3a   : > { %5172 = vmatprep.mubr.msk.bf16.mxu1 %vm353_vm2, %v343_v17  ;;  %5342 = vmatprep.mubr.msk.bf16.mxu0 %vm353_vm2, %v1848_v18  ;;  %v4610_v17 = vld [vmem:[%s8250_s1 + $0x6] sm:$0x3]  ;;  %v6150_v18 = vpack.c.bf16 %v4703_v11, %v4702_v10  ;;  %v6152_v20 = vpack.c.bf16 %v4705_v15, %v4704_v14  ;;  %v261_v10 = vld [vmem:[%s5977_s30 + $0xa8] sm:$0xff]  ;;  %v262_v14 = vld [vmem:[%s5977_s30 + $0xb0] sm:$0xff] }
  0x3b   : > { %v6155_v21 = vand.u32 %v4610_v17, %v5958_v5  ;;  %v260_v9 = vld [vmem:[%s5977_s30 + $0xa0] sm:$0xff]  ;;  %v263_v15 = vld [vmem:[%s5977_s30 + $0xb8] sm:$0xff]  ;;  %v265_v17 = vld [vmem:[%s5977_s30 + $0xc8] sm:$0xff] }
  0x3c   : > { %v286_v13 = vpack.c.bf16 %v261_v10, %v260_v9  ;;  %v268_v5 = vld [vmem:[%s5977_s30 + $0xe0] sm:$0xff] }
  0x41   : > { %5173 = vmatmul.mubr.msk.bf16.gmra.mrb[20].mxu1 %vm353_vm2, %v344_v27  ;;  %5343 = vmatmul.mubr.msk.bf16.vlgmr.msra.gmra.mrb[0].mxu0 %vm353_vm2, %v6070_v30  ;;  %v249_v27 = vld [vmem:[%s5977_s30 + $0x48] sm:$0xff] }
  0x42   : > { %5176 = vmatprep.mubr.msk.bf16.mxu1 %vm353_vm2, %v345_v31  ;;  %5379 = vmatpush3.bf16.msra.mxu0 %v5999_v29  ;;  %v347_v29 = vpack.c.bf16 %v4475_v40, %v4474_v39  ;;  %v4709_v31 = vld [vmem:[%s5977_s30 + $0xdc] sm:$0xff]  ;;  %v280_v37 = vpack.c.bf16 %v249_v27, %v248_v26  ;;  %v4710_v40 = vld [vmem:[%s5977_s30 + $0xe4] sm:$0xff] }
  0x43   : > { %5346 = vmatprep.mubr.msk.bf16.mxu0 %vm353_vm2, %v6072_v33  ;;  %5416 = vmatprep.subr.bf16.mxu0 %v6075_v34  ;;  %v6175_v38 = vpack.c.bf16 %v4709_v31, %v4708_v28  ;;  %v251_v39 = vld [vmem:[%s5977_s30 + $0x58] sm:$0xff]  ;;  %v6191_v48 = vpack.c.bf16 %v4711_v41, %v4710_v40  ;;  %v269_v26 = vld [vmem:[%s5977_s30 + $0xe8] sm:$0xff] }
  0x44   : > { %v290_v28 = vpack.c.bf16 %v269_v26, %v268_v5  ;;  %v273_v31 = vld [vmem:[%s5977_s30 + $0x108] sm:$0xff] }
  0x49   : > { %5177 = vmatmul.mubr.msk.bf16.gmra.mrb[24].mxu1 %vm353_vm2, %v346_v43  ;;  %5347 = vmatmul.mubr.msk.bf16.gmra.mrb[4].mxu0 %vm353_vm2, %v6093_v44  ;;  %v253_v43 = vld [vmem:[%s5977_s30 + $0x68] sm:$0xff] }
  0x4a   : > { %5180 = vmatprep.mubr.msk.bf16.mxu1 %vm353_vm2, %v347_v29  ;;  %5350 = vmatprep.mubr.msk.bf16.mxu0 %vm353_vm2, %v6095_v45  ;;  %v4712_v29 = vld [vmem:[%s5977_s30 + $0xf4] sm:$0xff]  ;;  %v282_v49 = vpack.c.bf16 %v253_v43, %v252_v42  ;;  %v4524_v43 = vld [vmem:[%s5977_s30 + $0x2a] sm:$0xff] }
  0x4b   : > { %v6193_v50 = vpack.c.bf16 %v4713_v46, %v4712_v29  ;;  %v4522_v42 = vld [vmem:[%s5977_s30 + $0x1a] sm:$0xff] }
  0x51   : > { %5181 = vmatmul.mubr.msk.bf16.gmra.mrb[28].mxu1 %vm353_vm2, %v348_v54  ;;  %5351 = vmatmul.mubr.msk.bf16.gmra.mrb[8].mxu0 %vm353_vm2, %v6111_v55  ;;  %v4715_v54 = vld [vmem:[%s5977_s30 + $0x10c] sm:$0xff] }
  0x52   : > { %5184 = vmatprep.mubr.msk.bf16.mxu1 %vm353_vm2, %v349_v56  ;;  %5354 = vmatprep.mubr.msk.bf16.mxu0 %vm353_vm2, %v6113_v57  ;;  %v256_v56 = vld [vmem:[%s5977_s30 + $0x80] sm:$0xff]  ;;  %v6209_v62 = vpack.c.bf16 %v4715_v54, %v4714_v53  ;;  %v4532_v53 = vld [vmem:[%s5977_s30 + $0x6a] sm:$0xff] }
  0x53   : > { %v284_v63 = vpack.c.bf16 %v257_v58, %v256_v56  ;;  %v6321_v56 = vpack.c.bf16 %v4532_v53, %v4531_v52  ;;  %v4535_v58 = vld [vmem:[%s5977_s30 + $0x82] sm:$0xff]  ;;  %v4554_v52 = vld [vmem:[%s5977_s30 + $0x11a] sm:$0xff] }
  0x54   : > { %v4808_v53 = vld [vmem:[%s5977_s30 + $0x95] sm:$0xff] }
  0x59   : > { %5185 = vmatmul.mubr.msk.bf16.gmra.mrb[32].mxu1 %vm353_vm2, %v350_v2  ;;  %5355 = vmatmul.mubr.msk.bf16.gmra.mrb[12].mxu0 %vm353_vm2, %v6129_v3  ;;  %v259_v2 = vld [vmem:[%s5977_s30 + $0x98] sm:$0xff] }
  0x5a   : > { %5190 = vmatprep.mubr.msk.bf16.mxu1 %vm353_vm2, %v276_v4  ;;  %5358 = vmatprep.mubr.msk.bf16.mxu0 %vm353_vm2, %v6131_v6  ;;  %v4718_v4 = vld [vmem:[%s5977_s30 + $0x124] sm:$0xff]  ;;  %v285_v11 = vpack.c.bf16 %v259_v2, %v258_v1  ;;  %v4774_v1 = vld [vmem:[%s5977_s30 + $0x13c] sm:$0xff] }
  0x5b   : > { %v6225_v12 = vpack.c.bf16 %v4719_v8, %v4718_v4  ;;  %v4539_v2 = vld [vmem:[%s5977_s30 + $0xa2] sm:$0xff]  ;;  %v4540_v4 = vld [vmem:[%s5977_s30 + $0xaa] sm:$0xff] }
  0x5c   : > { %v4794_v8 = vld [vmem:[%s5977_s30 + $0x25] sm:$0xff] }
  0x61   : > { %5191 = vmatmul.mubr.msk.bf16.vlgmr.msra.gmra.mrb[0].mxu1 %vm353_vm2, %v277_v16  ;;  %5359 = vmatmul.mubr.msk.bf16.gmra.mrb[16].mxu0 %vm353_vm2, %v6150_v18  ;;  %v264_v16 = vld [vmem:[%s5977_s30 + $0xc0] sm:$0xff] }
  0x62   : > { %5194 = vmatprep.mubr.msk.bf16.mxu1 %vm353_vm2, %v278_v19  ;;  %5362 = vmatprep.mubr.msk.bf16.mxu0 %vm353_vm2, %v6152_v20  ;;  %v287_v19 = vpack.c.bf16 %v263_v15, %v262_v14  ;;  %v288_v23 = vpack.c.bf16 %v265_v17, %v264_v16  ;;  %v4542_v14 = vld [vmem:[%s5977_s30 + $0xba] sm:$0xff]  ;;  %v4543_v17 = vld [vmem:[%s5977_s30 + $0xc2] sm:$0xff] }
  0x63   : > { %5227 = vmatpush3.bf16.msra.mxu1 %v6004_v32  ;;  %v250_v32 = vld [vmem:[%s5977_s30 + $0x50] sm:$0xff]  ;;  %v4797_v16 = vld [vmem:[%s5977_s30 + $0x3d] sm:$0xff] }
  0x64   : > { %5264 = vmatprep.subr.bf16.mxu1 %v6155_v21  ;;  %v281_v47 = vpack.c.bf16 %v251_v39, %v250_v32  ;;  %v275_v32 = vld [vmem:[%s5977_s30 + $0x118] sm:$0xff]  ;;  %v4520_v39 = vld [vmem:[%s5977_s30 + $0xa] sm:$0xff] }
  0x65   : > { %v4796_v15 = vld [vmem:[%s5977_s30 + $0x35] sm:$0xff] }
  0x69   : > { %5195 = vmatmul.mubr.msk.bf16.gmra.mrb[4].mxu1 %vm353_vm2, %v279_v35  ;;  %5363 = vmatmul.mubr.msk.bf16.gmra.mrb[20].mxu0 %vm353_vm2, %v6173_v36 }
  0x6a   : > { %5198 = vmatprep.mubr.msk.bf16.mxu1 %vm353_vm2, %v280_v37  ;;  %5366 = vmatprep.mubr.msk.bf16.mxu0 %vm353_vm2, %v6175_v38 }
  0x71   : > { %5199 = vmatmul.mubr.msk.bf16.gmra.mrb[8].mxu1 %vm353_vm2, %v281_v47  ;;  %5367 = vmatmul.mubr.msk.bf16.gmra.mrb[24].mxu0 %vm353_vm2, %v6191_v48  ;;  %v4527_v47 = vld [vmem:[%s5977_s30 + $0x42] sm:$0xff] }
  0x72   : > { %5202 = vmatprep.mubr.msk.bf16.mxu1 %vm353_vm2, %v282_v49  ;;  %5370 = vmatprep.mubr.msk.bf16.mxu0 %vm353_vm2, %v6193_v50  ;;  %v4528_v49 = vld [vmem:[%s5977_s30 + $0x4a] sm:$0xff] }
  0x79   : > { %5203 = vmatmul.mubr.msk.bf16.gmra.mrb[12].mxu1 %vm353_vm2, %v283_v61  ;;  %5371 = vmatmul.mubr.msk.bf16.gmra.mrb[28].mxu0 %vm353_vm2, %v6209_v62  ;;  %v6337_v61 = vpack.c.bf16 %v4536_v59, %v4535_v58  ;;  %v4811_v58 = vld [vmem:[%s5977_s30 + $0xad] sm:$0xff] }
  0x7a   : > { %5206 = vmatprep.mubr.msk.bf16.mxu1 %vm353_vm2, %v284_v63  ;;  %5374 = vmatprep.mubr.msk.bf16.mxu0 %vm353_vm2, %v6211_v0  ;;  %v4538_v63 = vld [vmem:[%s5977_s30 + $0x9a] sm:$0xff] }
  0x81   : > { %5207 = vmatmul.mubr.msk.bf16.gmra.mrb[16].mxu1 %vm353_vm2, %v285_v11  ;;  %5375 = vmatmul.mubr.msk.bf16.gmra.mrb[32].mxu0 %vm353_vm2, %v6225_v12  ;;  %v6357_v11 = vpack.c.bf16 %v4540_v4, %v4539_v2  ;;  %v4814_v2 = vld [vmem:[%s5977_s30 + $0xc5] sm:$0xff]  ;;  %v4815_v4 = vld [vmem:[%s5977_s30 + $0xcd] sm:$0xff] }
  0x82   : > { %5210 = vmatprep.mubr.msk.bf16.mxu1 %vm353_vm2, %v286_v13  ;;  %5380 = vmatprep.mubr.msk.bf16.mxu0 %vm353_vm2, %v6070_v30  ;;  %v266_v30 = vld [vmem:[%s5977_s30 + $0xd0] sm:$0xff] }
  0x83   : > { %v289_v27 = vpack.c.bf16 %v267_v25, %v266_v30  ;;  %v2505_v25 = vpack.c.bf16 %v4797_v16, %v4796_v15  ;;  %v4823_v16 = vld [vmem:[%s5977_s30 + $0x10d] sm:$0xff] }
  0x89   : > { %5211 = vmatmul.mubr.msk.bf16.gmra.mrb[20].mxu1 %vm353_vm2, %v287_v19  ;;  %5381 = vmatmul.mubr.msk.bf16.vlgmr.msra.gmra.mrb[0].mxu0 %vm353_vm2, %v6072_v33  ;;  %v270_v33 = vld [vmem:[%s5977_s30 + $0xf0] sm:$0xff] }
  0x8a   : > { %5214 = vmatprep.mubr.msk.bf16.mxu1 %vm353_vm2, %v288_v23  ;;  %5417 = vmatpush3.bf16.msra.mxu0 %v6075_v34  ;;  %v271_v34 = vld [vmem:[%s5977_s30 + $0xf8] sm:$0xff]  ;;  %v4544_v19 = vld [vmem:[%s5977_s30 + $0xca] sm:$0xff] }
  0x8b   : > { %5384 = vmatprep.mubr.msk.bf16.mxu0 %vm353_vm2, %v6093_v44  ;;  %5454 = vmatprep.subr.bf16.mxu0 %v6241_v24  ;;  %v272_v44 = vld [vmem:[%s5977_s30 + $0x100] sm:$0xff]  ;;  %v291_v35 = vpack.c.bf16 %v271_v34, %v270_v33  ;;  %v4799_v23 = vld [vmem:[%s5977_s30 + $0x4d] sm:$0xff]  ;;  %v6375_v5 = vpack.c.bf16 %v4544_v19, %v4543_v17  ;;  %v4800_v33 = vld [vmem:[%s5977_s30 + $0x55] sm:$0xff] }
  0x8c   : > { %v292_v37 = vpack.c.bf16 %v273_v31, %v272_v44  ;;  %v2506_v26 = vpack.c.bf16 %v4799_v23, %v4798_v22  ;;  %v4801_v34 = vld [vmem:[%s5977_s30 + $0x5d] sm:$0xff]  ;;  %v4548_v31 = vld [vmem:[%s5977_s30 + $0xea] sm:$0xff] }
  0x8d   : > { %v4547_v44 = vld [vmem:[%s5977_s30 + $0xe2] sm:$0xff]  ;;  %v4827_v23 = vld [vmem:[%s5977_s30 + $0x12d] sm:$0xff] }
  0x8e   : > { %v4826_v22 = vld [vmem:[%s5977_s30 + $0x125] sm:$0xff] }
  0x91   : > { %5215 = vmatmul.mubr.msk.bf16.gmra.mrb[24].mxu1 %vm353_vm2, %v289_v27  ;;  %5385 = vmatmul.mubr.msk.bf16.gmra.mrb[4].mxu0 %vm353_vm2, %v6095_v45  ;;  %v274_v45 = vld [vmem:[%s5977_s30 + $0x110] sm:$0xff] }
  0x92   : > { %5218 = vmatprep.mubr.msk.bf16.mxu1 %vm353_vm2, %v290_v28  ;;  %5388 = vmatprep.mubr.msk.bf16.mxu0 %vm353_vm2, %v6111_v55  ;;  %v4519_v55 = vld [vmem:[%s5977_s30 + $0x2] sm:$0xff]  ;;  %v293_v40 = vpack.c.bf16 %v275_v32, %v274_v45  ;;  %v4545_v27 = vld [vmem:[%s5977_s30 + $0xd2] sm:$0xff]  ;;  %v4546_v28 = vld [vmem:[%s5977_s30 + $0xda] sm:$0xff]  ;;  %v2507_v32 = vpack.c.bf16 %v4801_v34, %v4800_v33 }
  0x93   : > { %v864_v41 = vpack.c.bf16 %v4520_v39, %v4519_v55  ;;  %v6392_v45 = vpack.c.bf16 %v4546_v28, %v4545_v27  ;;  %v6394_v55 = vpack.c.bf16 %v4548_v31, %v4547_v44  ;;  %v4849_v27 = vld [vmem:[%s5977_s30 + $0x26] sm:$0xff]  ;;  %v4850_v28 = vld [vmem:[%s5977_s30 + $0x2e] sm:$0xff] }
  0x94   : > { %v2832_v34 = vpack.c.bf16 %v4850_v28, %v4849_v27  ;;  %v4853_v44 = vld [vmem:[%s5977_s30 + $0x46] sm:$0xff]  ;;  %v4854_v31 = vld [vmem:[%s5977_s30 + $0x4e] sm:$0xff] }
  0x95   : > { %v4877_v27 = vld [vmem:[%s5977_s30 + $0x106] sm:$0xff]  ;;  %v4878_v28 = vld [vmem:[%s5977_s30 + $0x10e] sm:$0xff] }
  0x99   : > { %5219 = vmatmul.mubr.msk.bf16.gmra.mrb[28].mxu1 %vm353_vm2, %v291_v35  ;;  %5389 = vmatmul.mubr.msk.bf16.gmra.mrb[8].mxu0 %vm353_vm2, %v6113_v57  ;;  %v4521_v57 = vld [vmem:[%s5977_s30 + $0x12] sm:$0xff]  ;;  %v4802_v35 = vld [vmem:[%s5977_s30 + $0x65] sm:$0xff] }
  0x9a   : > { %5222 = vmatprep.mubr.msk.bf16.mxu1 %vm353_vm2, %v292_v37  ;;  %5392 = vmatprep.mubr.msk.bf16.mxu0 %vm353_vm2, %v6129_v3  ;;  %v4523_v3 = vld [vmem:[%s5977_s30 + $0x22] sm:$0xff]  ;;  %v6285_v29 = vpack.c.bf16 %v4522_v42, %v4521_v57  ;;  %v4803_v37 = vld [vmem:[%s5977_s30 + $0x6d] sm:$0xff] }
  0x9b   : > { %v6287_v46 = vpack.c.bf16 %v4524_v43, %v4523_v3  ;;  %v2508_v39 = vpack.c.bf16 %v4803_v37, %v4802_v35  ;;  %v4805_v57 = vld [vmem:[%s5977_s30 + $0x7d] sm:$0xff]  ;;  %v4552_v3 = vld [vmem:[%s5977_s30 + $0x10a] sm:$0xff]  ;;  %v2834_v37 = vpack.c.bf16 %v4854_v31, %v4853_v44 }
  0x9c   : > { %v4551_v42 = vld [vmem:[%s5977_s30 + $0x102] sm:$0xff]  ;;  %v4664_v31 = vld [vmem:[%s5977_s30 + $0x12b] sm:$0xff] }
  0x9d   : > { %v4806_v43 = vld [vmem:[%s5977_s30 + $0x85] sm:$0xff] }
  0x9e   : > { %v4663_v44 = vld [vmem:[%s5977_s30 + $0x123] sm:$0xff] }
  0xa1   : > { %5223 = vmatmul.mubr.msk.bf16.gmra.mrb[32].mxu1 %vm353_vm2, %v293_v40  ;;  %5393 = vmatmul.mubr.msk.bf16.gmra.mrb[12].mxu0 %vm353_vm2, %v6131_v6  ;;  %v4525_v6 = vld [vmem:[%s5977_s30 + $0x32] sm:$0xff]  ;;  %v4550_v40 = vld [vmem:[%s5977_s30 + $0xfa] sm:$0xff] }
  0xa2   : > { %5228 = vmatprep.mubr.msk.bf16.mxu1 %vm353_vm2, %v864_v41  ;;  %5396 = vmatprep.mubr.msk.bf16.mxu0 %vm353_vm2, %v6150_v18  ;;  %v4526_v18 = vld [vmem:[%s5977_s30 + $0x3a] sm:$0xff] }
  0xa3   : > { %v6303_v51 = vpack.c.bf16 %v4526_v18, %v4525_v6  ;;  %v4804_v41 = vld [vmem:[%s5977_s30 + $0x75] sm:$0xff]  ;;  %v4807_v6 = vld [vmem:[%s5977_s30 + $0x8d] sm:$0xff] }
  0xa9   : > { %5229 = vmatmul.mubr.msk.bf16.vlgmr.msra.gmra.mrb[0].mxu1 %vm353_vm2, %v6285_v29  ;;  %5397 = vmatmul.mubr.msk.bf16.gmra.mrb[16].mxu0 %vm353_vm2, %v6152_v20  ;;  %v6305_v20 = vpack.c.bf16 %v4528_v49, %v4527_v47  ;;  %v2509_v47 = vpack.c.bf16 %v4805_v57, %v4804_v41  ;;  %v6412_v49 = vpack.c.bf16 %v4552_v3, %v4551_v42  ;;  %v4861_v41 = vld [vmem:[%s5977_s30 + $0x86] sm:$0xff]  ;;  %v4862_v57 = vld [vmem:[%s5977_s30 + $0x8e] sm:$0xff] }
  0xaa   : > { %5232 = vmatprep.mubr.msk.bf16.mxu1 %vm353_vm2, %v6287_v46  ;;  %5400 = vmatprep.mubr.msk.bf16.mxu0 %vm353_vm2, %v6173_v36  ;;  %v4530_v36 = vld [vmem:[%s5977_s30 + $0x5a] sm:$0xff]  ;;  %v2838_v3 = vpack.c.bf16 %v4862_v57, %v4861_v41  ;;  %v3346_v41 = vlaneseq }
  0xab   : > { %5265 = vmatpush3.bf16.msra.mxu1 %v6155_v21  ;;  %v4529_v21 = vld [vmem:[%s5977_s30 + $0x52] sm:$0xff] }
  0xac   : > { %5492 = vmatprep.subr.bf16.mxu1 %v5966_v7  ;;  %v6319_v54 = vpack.c.bf16 %v4530_v36, %v4529_v21  ;;  %v2510_v21 = vpack.c.bf16 %v4807_v6, %v4806_v43  ;;  %v4553_v36 = vld [vmem:[%s5977_s30 + $0x112] sm:$0xff]  ;;  %v4609_v43 = vld [vmem:[%s5977_s30 + $0x12a] sm:$0xff]  ;;  %v6575_v57 = vshrl.u32 %v3346_v41, 7 }
  0xad   : > { %v6426_v59 = vpack.c.bf16 %v4554_v52, %v4553_v36  ;;  %v4863_v6 = vld [vmem:[%s5977_s30 + $0x96] sm:$0xff]  ;;  %v4866_v36 = vld [vmem:[%s5977_s30 + $0xae] sm:$0xff] }
  0xb1   : > { %5233 = vmatmul.mubr.msk.bf16.gmra.mrb[4].mxu1 %vm353_vm2, %v6303_v51  ;;  %5401 = vmatmul.mubr.msk.bf16.gmra.mrb[20].mxu0 %vm353_vm2, %v6175_v38  ;;  %v4533_v38 = vld [vmem:[%s5977_s30 + $0x72] sm:$0xff] }
  0xb2   : > { %5236 = vmatprep.mubr.msk.bf16.mxu1 %vm353_vm2, %v6305_v20  ;;  %5404 = vmatprep.mubr.msk.bf16.mxu0 %vm353_vm2, %v6191_v48  ;;  %v4534_v48 = vld [vmem:[%s5977_s30 + $0x7a] sm:$0xff] }
  0xb3   : > { %v6335_v60 = vpack.c.bf16 %v4534_v48, %v4533_v38  ;;  %v4809_v38 = vld [vmem:[%s5977_s30 + $0x9d] sm:$0xff]  ;;  %v4810_v48 = vld [vmem:[%s5977_s30 + $0xa5] sm:$0xff] }
  0xb9   : > { %5237 = vmatmul.mubr.msk.bf16.gmra.mrb[8].mxu1 %vm353_vm2, %v6319_v54  ;;  %5405 = vmatmul.mubr.msk.bf16.gmra.mrb[24].mxu0 %vm353_vm2, %v6193_v50  ;;  %v4537_v50 = vld [vmem:[%s5977_s30 + $0x92] sm:$0xff] }
  0xba   : > { %5240 = vmatprep.mubr.msk.bf16.mxu1 %vm353_vm2, %v6321_v56  ;;  %5408 = vmatprep.mubr.msk.bf16.mxu0 %vm353_vm2, %v6209_v62  ;;  %v4773_v62 = vld [vmem:[%s5977_s30 + $0x134] sm:$0xff]  ;;  %v6355_v9 = vpack.c.bf16 %v4538_v63, %v4537_v50  ;;  %v2511_v50 = vpack.c.bf16 %v4809_v38, %v4808_v53  ;;  %v2512_v63 = vpack.c.bf16 %v4811_v58, %v4810_v48  ;;  %v4651_v58 = vld [vmem:[%s5977_s30 + $0xc3] sm:$0xff] }
  0xbb   : > { %v2193_v10 = vpack.c.bf16 %v4774_v1, %v4773_v62  ;;  %v4812_v62 = vld [vmem:[%s5977_s30 + $0xb5] sm:$0xff]  ;;  %v4813_v1 = vld [vmem:[%s5977_s30 + $0xbd] sm:$0xff] }
  0xc1   : > { %5241 = vmatmul.mubr.msk.bf16.gmra.mrb[12].mxu1 %vm353_vm2, %v6335_v60  ;;  %5409 = vmatmul.mubr.msk.bf16.gmra.mrb[28].mxu0 %vm353_vm2, %v6211_v0  ;;  %v4795_v0 = vld [vmem:[%s5977_s30 + $0x2d] sm:$0xff] }
  0xc2   : > { %5244 = vmatprep.mubr.msk.bf16.mxu1 %vm353_vm2, %v6337_v61  ;;  %5412 = vmatprep.mubr.msk.bf16.mxu0 %vm353_vm2, %v6225_v12  ;;  %v2504_v13 = vpack.c.bf16 %v4795_v0, %v4794_v8  ;;  %v4541_v12 = vld [vmem:[%s5977_s30 + $0xb2] sm:$0xff]  ;;  %v2513_v8 = vpack.c.bf16 %v4813_v1, %v4812_v62  ;;  %v2514_v0 = vpack.c.bf16 %v4815_v4, %v4814_v2  ;;  %v4654_v1 = vld [vmem:[%s5977_s30 + $0xdb] sm:$0xff]  ;;  %v4869_v2 = vld [vmem:[%s5977_s30 + $0xc6] sm:$0xff] }
  0xc3   : > { %v6373_v30 = vpack.c.bf16 %v4542_v14, %v4541_v12  ;;  %v4819_v12 = vld [vmem:[%s5977_s30 + $0xed] sm:$0xff] }
  0xc4   : > { %v4653_v62 = vld [vmem:[%s5977_s30 + $0xd3] sm:$0xff] }
  0xc5   : > { %v4870_v4 = vld [vmem:[%s5977_s30 + $0xce] sm:$0xff] }
  0xc9   : > { %5245 = vmatmul.mubr.msk.bf16.gmra.mrb[16].mxu1 %vm353_vm2, %v6355_v9  ;;  %5413 = vmatmul.mubr.msk.bf16.gmra.mrb[32].mxu0 %vm353_vm2, %v2193_v10  ;;  %v4817_v10 = vld [vmem:[%s5977_s30 + $0xdd] sm:$0xff] }
  0xca   : > { %5248 = vmatprep.mubr.msk.bf16.mxu1 %vm353_vm2, %v6357_v11  ;;  %5418 = vmatprep.mubr.msk.bf16.mxu0 %vm353_vm2, %v2504_v13  ;;  %v4818_v13 = vld [vmem:[%s5977_s30 + $0xe5] sm:$0xff] }
  0xcb   : > { %v2516_v15 = vpack.c.bf16 %v4819_v12, %v4818_v13  ;;  %v4655_v13 = vld [vmem:[%s5977_s30 + $0xe3] sm:$0xff]  ;;  %v4656_v12 = vld [vmem:[%s5977_s30 + $0xeb] sm:$0xff] }
  0xd1   : > { %5249 = vmatmul.mubr.msk.bf16.gmra.mrb[20].mxu1 %vm353_vm2, %v6373_v30  ;;  %5419 = vmatmul.mubr.msk.bf16.vlgmr.msra.gmra.mrb[0].mxu0 %vm353_vm2, %v2505_v25 }
  0xd2   : > { %5252 = vmatprep.mubr.msk.bf16.mxu1 %vm353_vm2, %v6375_v5  ;;  %5455 = vmatpush3.bf16.msra.mxu0 %v6241_v24  ;;  %v4549_v24 = vld [vmem:[%s5977_s30 + $0xf2] sm:$0xff] }
  0xd3   : > { %5422 = vmatprep.mubr.msk.bf16.mxu0 %vm353_vm2, %v2506_v26  ;;  %v6410_v18 = vpack.c.bf16 %v4550_v40, %v4549_v24  ;;  %v2520_v26 = vpack.c.bf16 %v4827_v23, %v4826_v22  ;;  %v4659_v22 = vld [vmem:[%s5977_s30 + $0x103] sm:$0xff]  ;;  %v4660_v23 = vld [vmem:[%s5977_s30 + $0x10b] sm:$0xff] }
  0xd9   : > { %5253 = vmatmul.mubr.msk.bf16.gmra.mrb[24].mxu1 %vm353_vm2, %v6392_v45  ;;  %5423 = vmatmul.mubr.msk.bf16.gmra.mrb[4].mxu0 %vm353_vm2, %v2507_v32  ;;  %v4857_v32 = vld [vmem:[%s5977_s30 + $0x66] sm:$0xff] }
  0xda   : > { %5256 = vmatprep.mubr.msk.bf16.mxu1 %vm353_vm2, %v6394_v55  ;;  %5426 = vmatprep.mubr.msk.bf16.mxu0 %vm353_vm2, %v2508_v39  ;;  %v4858_v39 = vld [vmem:[%s5977_s30 + $0x6e] sm:$0xff] }
  0xdb   : > { %v2836_v40 = vpack.c.bf16 %v4858_v39, %v4857_v32  ;;  %v1537_v32 = vpack.c.bf16 %v4664_v31, %v4663_v44  ;;  %v6661_v31 = vadd.s32 72, %v6575_v57 }
  0xe1   : > { %5257 = vmatmul.mubr.msk.bf16.gmra.mrb[28].mxu1 %vm353_vm2, %v6410_v18  ;;  %5427 = vmatmul.mubr.msk.bf16.gmra.mrb[8].mxu0 %vm353_vm2, %v2509_v47  ;;  %v4649_v47 = vld [vmem:[%s5977_s30 + $0xb3] sm:$0xff] }
  0xe2   : > { %5260 = vmatprep.mubr.msk.bf16.mxu1 %vm353_vm2, %v6412_v49  ;;  %5430 = vmatprep.mubr.msk.bf16.mxu0 %vm353_vm2, %v2510_v21  ;;  %v4650_v21 = vld [vmem:[%s5977_s30 + $0xbb] sm:$0xff] }
  0xe3   : > { %v1530_v38 = vpack.c.bf16 %v4650_v21, %v4649_v47 }
  0xe9   : > { %5261 = vmatmul.mubr.msk.bf16.gmra.mrb[32].mxu1 %vm353_vm2, %v6426_v59  ;;  %5431 = vmatmul.mubr.msk.bf16.gmra.mrb[12].mxu0 %vm353_vm2, %v2511_v50  ;;  %v4867_v50 = vld [vmem:[%s5977_s30 + $0xb6] sm:$0xff] }
  0xea   : > { %5266 = vmatprep.mubr.msk.bf16.mxu1 %vm353_vm2, %v6285_v29  ;;  %5434 = vmatprep.mubr.msk.bf16.mxu0 %vm353_vm2, %v2512_v63  ;;  %v4816_v29 = vld [vmem:[%s5977_s30 + $0xd5] sm:$0xff]  ;;  %v4868_v63 = vld [vmem:[%s5977_s30 + $0xbe] sm:$0xff] }
  0xeb   : > { %v2515_v14 = vpack.c.bf16 %v4817_v10, %v4816_v29  ;;  %v1532_v29 = vpack.c.bf16 %v4654_v1, %v4653_v62  ;;  %v2842_v10 = vpack.c.bf16 %v4870_v4, %v4869_v2 }
  0xf1   : > { %5267 = vmatmul.mubr.msk.bf16.vlgmr.msra.gmra.mrb[0].mxu1 %vm353_vm2, %v6287_v46  ;;  %5435 = vmatmul.mubr.msk.bf16.gmra.mrb[16].mxu0 %vm353_vm2, %v2513_v8  ;;  %v4821_v46 = vld [vmem:[%s5977_s30 + $0xfd] sm:$0xff] }
  0xf2   : > { %5270 = vmatprep.mubr.msk.bf16.mxu1 %vm353_vm2, %v6303_v51  ;;  %5438 = vmatprep.mubr.msk.bf16.mxu0 %vm353_vm2, %v2514_v0  ;;  %v4822_v51 = vld [vmem:[%s5977_s30 + $0x105] sm:$0xff]  ;;  %v2841_v0 = vpack.c.bf16 %v4868_v63, %v4867_v50 }
  0xf3   : > { %5493 = vmatpush3.bf16.msra.mxu1 %v5966_v7  ;;  %v4820_v7 = vld [vmem:[%s5977_s30 + $0xf5] sm:$0xff]  ;;  %v2518_v19 = vpack.c.bf16 %v4823_v16, %v4822_v51  ;;  %v4873_v51 = vld [vmem:[%s5977_s30 + $0xe6] sm:$0xff] }
  0xf4   : > { %v2517_v17 = vpack.c.bf16 %v4821_v46, %v4820_v7  ;;  %v4657_v7 = vld [vmem:[%s5977_s30 + $0xf3] sm:$0xff]  ;;  %v4658_v46 = vld [vmem:[%s5977_s30 + $0xfb] sm:$0xff] }
  0xf5   : > { %v4874_v16 = vld [vmem:[%s5977_s30 + $0xee] sm:$0xff] }
  0xf9   : > { %5271 = vmatmul.mubr.msk.bf16.gmra.mrb[4].mxu1 %vm353_vm2, %v6305_v20  ;;  %5439 = vmatmul.mubr.msk.bf16.gmra.mrb[20].mxu0 %vm353_vm2, %v2515_v14  ;;  %v4824_v20 = vld [vmem:[%s5977_s30 + $0x115] sm:$0xff] }
  0xfa   : > { %5274 = vmatprep.mubr.msk.bf16.mxu1 %vm353_vm2, %v6319_v54  ;;  %5442 = vmatprep.mubr.msk.bf16.mxu0 %vm353_vm2, %v2516_v15  ;;  %v4825_v54 = vld [vmem:[%s5977_s30 + $0x11d] sm:$0xff] }
  0xfb   : > { %v2519_v25 = vpack.c.bf16 %v4825_v54, %v4824_v20  ;;  %v4871_v14 = vld [vmem:[%s5977_s30 + $0xd6] sm:$0xff]  ;;  %v4872_v15 = vld [vmem:[%s5977_s30 + $0xde] sm:$0xff]  ;;  %v1534_v20 = vpack.c.bf16 %v4658_v46, %v4657_v7  ;;  %v2844_v54 = vpack.c.bf16 %v4874_v16, %v4873_v51 }
 0x101   : > { %5275 = vmatmul.mubr.msk.bf16.gmra.mrb[8].mxu1 %vm353_vm2, %v6321_v56  ;;  %5443 = vmatmul.mubr.msk.bf16.gmra.mrb[24].mxu0 %vm353_vm2, %v2517_v17  ;;  %v4828_v56 = vld [vmem:[%s5977_s30 + $0x135] sm:$0xff]  ;;  %v1533_v17 = vpack.c.bf16 %v4656_v12, %v4655_v13 }
 0x102   : > { %5278 = vmatprep.mubr.msk.bf16.mxu1 %vm353_vm2, %v6335_v60  ;;  %5446 = vmatprep.mubr.msk.bf16.mxu0 %vm353_vm2, %v2518_v19  ;;  %v4829_v60 = vld [vmem:[%s5977_s30 + $0x13d] sm:$0xff]  ;;  %v2843_v19 = vpack.c.bf16 %v4872_v15, %v4871_v14  ;;  %v6613_v14 = vadd.s32 80, %v6575_v57 }
 0x103   : > { %v2521_v33 = vpack.c.bf16 %v4829_v60, %v4828_v56  ;;  %v4661_v56 = vld [vmem:[%s5977_s30 + $0x113] sm:$0xff]  ;;  %v4662_v60 = vld [vmem:[%s5977_s30 + $0x11b] sm:$0xff] }
 0x109   : > { %5279 = vmatmul.mubr.msk.bf16.gmra.mrb[12].mxu1 %vm353_vm2, %v6337_v61  ;;  %5447 = vmatmul.mubr.msk.bf16.gmra.mrb[28].mxu0 %vm353_vm2, %v2519_v25  ;;  %v4851_v61 = vld [vmem:[%s5977_s30 + $0x36] sm:$0xff] }
 0x10a   : > { %5282 = vmatprep.mubr.msk.bf16.mxu1 %vm353_vm2, %v6355_v9  ;;  %5450 = vmatprep.mubr.msk.bf16.mxu0 %vm353_vm2, %v2520_v26  ;;  %v4852_v9 = vld [vmem:[%s5977_s30 + $0x3e] sm:$0xff]  ;;  %v4875_v25 = vld [vmem:[%s5977_s30 + $0xf6] sm:$0xff] }
 0x10b   : > { %v2833_v35 = vpack.c.bf16 %v4852_v9, %v4851_v61  ;;  %v4876_v26 = vld [vmem:[%s5977_s30 + $0xfe] sm:$0xff]  ;;  %v1536_v61 = vpack.c.bf16 %v4662_v60, %v4661_v56  ;;  %v2846_v9 = vpack.c.bf16 %v4878_v28, %v4877_v27 }
 0x111   : > { %5283 = vmatmul.mubr.msk.bf16.gmra.mrb[16].mxu1 %vm353_vm2, %v6357_v11  ;;  %5451 = vmatmul.mubr.msk.bf16.gmra.mrb[32].mxu0 %vm353_vm2, %v2521_v33  ;;  %v4855_v11 = vld [vmem:[%s5977_s30 + $0x56] sm:$0xff]  ;;  %v1535_v33 = vpack.c.bf16 %v4660_v23, %v4659_v22  ;;  %v6632_v22 = vmul.u32.u64.low 3817748708, %v6613_v14  ;;  %v6633_v23 = vmul.u32.u64.high 3817748708, %v6613_v14, %v6632_v22 }
 0x112   : > { %5286 = vmatprep.mubr.msk.bf16.mxu1 %vm353_vm2, %v6373_v30  ;;  %5456 = vmatprep.mubr.msk.bf16.mxu0 %vm353_vm2, %v2832_v34  ;;  %v4856_v30 = vld [vmem:[%s5977_s30 + $0x5e] sm:$0xff]  ;;  %v2845_v34 = vpack.c.bf16 %v4876_v26, %v4875_v25 }
 0x113   : > { %v2835_v24 = vpack.c.bf16 %v4856_v30, %v4855_v11  ;;  %v4881_v11 = vld [vmem:[%s5977_s30 + $0x126] sm:$0xff]  ;;  %v4882_v30 = vld [vmem:[%s5977_s30 + $0x12e] sm:$0xff] }
 0x119   : > { %5287 = vmatmul.mubr.msk.bf16.gmra.mrb[20].mxu1 %vm353_vm2, %v6375_v5  ;;  %5457 = vmatmul.mubr.msk.bf16.vlgmr.msra.gmra.mrb[0].mxu0 %vm353_vm2, %v2833_v35  ;;  %v4859_v5 = vld [vmem:[%s5977_s30 + $0x76] sm:$0xff] }
 0x11a   : > { %5290 = vmatprep.mubr.msk.bf16.mxu1 %vm353_vm2, %v6392_v45  ;;  %5460 = vmatprep.mubr.msk.bf16.mxu0 %vm353_vm2, %v2834_v37  ;;  %v4860_v45 = vld [vmem:[%s5977_s30 + $0x7e] sm:$0xff]  ;;  %v4879_v35 = vld [vmem:[%s5977_s30 + $0x116] sm:$0xff] }
 0x11b   : > { %v2837_v42 = vpack.c.bf16 %v4860_v45, %v4859_v5  ;;  %v4880_v37 = vld [vmem:[%s5977_s30 + $0x11e] sm:$0xff] }
 0x11c   : > { %v2847_v39 = vpack.c.bf16 %v4880_v37, %v4879_v35  ;;  %v4884_v5 = vld [vmem:[%s5977_s30 + $0x13e] sm:$0xff] }
 0x121   : > { %5291 = vmatmul.mubr.msk.bf16.gmra.mrb[24].mxu1 %vm353_vm2, %v6394_v55  ;;  %5461 = vmatmul.mubr.msk.bf16.gmra.mrb[4].mxu0 %vm353_vm2, %v2835_v24  ;;  %v4608_v55 = vld [vmem:[%s5977_s30 + $0x122] sm:$0xff]  ;;  %v2848_v24 = vpack.c.bf16 %v4882_v30, %v4881_v11 }
 0x122   : > { %5294 = vmatprep.mubr.msk.bf16.mxu1 %vm353_vm2, %v6410_v18  ;;  %5464 = vmatprep.mubr.msk.bf16.mxu0 %vm353_vm2, %v2836_v40  ;;  %v4864_v18 = vld [vmem:[%s5977_s30 + $0x9e] sm:$0xff]  ;;  %v1209_v52 = vpack.c.bf16 %v4609_v43, %v4608_v55  ;;  %v4883_v40 = vld [vmem:[%s5977_s30 + $0x136] sm:$0xff] }
 0x123   : > { %v2839_v53 = vpack.c.bf16 %v4864_v18, %v4863_v6  ;;  %v2849_v45 = vpack.c.bf16 %v4884_v5, %v4883_v40  ;;  %v3348_v6 = vadd.s32 8, %v6575_v57  ;;  %v3499_v5 = vshrl.u32 %v6633_v23, 4 }
 0x124   : > { %v6584_v18 = vmul.u32.u64.low 3817748708, %v6575_v57  ;;  %v6585_v47 = vmul.u32.u64.high 3817748708, %v6575_v57, %v6584_v18  ;;  %v8400_v23 = vmov 0 }
 0x126   : > { %v3389_v63 = vshrl.u32 %v6585_v47, 4  ;;  %v6707_v47 = vadd.s32 144, %v6575_v57 }
 0x128   : > { %v3390_v13 = vmul.u32 18, %v3389_v63 }
 0x129   : > { %5295 = vmatmul.mubr.msk.bf16.gmra.mrb[28].mxu1 %vm353_vm2, %v6412_v49  ;;  %5465 = vmatmul.mubr.msk.bf16.gmra.mrb[8].mxu0 %vm353_vm2, %v2837_v42  ;;  %v4865_v49 = vld [vmem:[%s5977_s30 + $0xa6] sm:$0xff]  ;;  %v3349_v42 = vadd.s32 16, %v6575_v57 }
 0x12a   : > { %5298 = vmatprep.mubr.msk.bf16.mxu1 %vm353_vm2, %v6426_v59  ;;  %5468 = vmatprep.mubr.msk.bf16.mxu0 %vm353_vm2, %v2838_v3  ;;  %v2840_v48 = vpack.c.bf16 %v4866_v36, %v4865_v49  ;;  %v4652_v59 = vld [vmem:[%s5977_s30 + $0xcb] sm:$0xff]  ;;  %v3350_v3 = vadd.s32 24, %v6575_v57 }
 0x12b   : > { %v1531_v8 = vpack.c.bf16 %v4652_v59, %v4651_v58  ;;  %v6579_v55 = vmul.u32.u64.low 3817748708, %v3349_v42  ;;  %v6580_v43 = vmul.u32.u64.high 3817748708, %v3349_v42, %v6579_v55  ;;  %v3354_v58 = vadd.s32 56, %v6575_v57 }
 0x12c   : > { %v6587_v21 = vmul.u32.u64.low 3817748708, %v3350_v3  ;;  %v6588_v49 = vmul.u32.u64.high 3817748708, %v3350_v3, %v6587_v21  ;;  %v6694_v55 = vadd.s32 104, %v6575_v57 }
 0x12e   : > { %v3422_v62 = vshrl.u32 %v6588_v49, 4 }
 0x130   : > { %v3423_v12 = vmul.u32 18, %v3422_v62  ;;  %v6749_v63 = vmul.u32.u64.low 3817748708, %v6694_v55  ;;  %v6750_v62 = vmul.u32.u64.high 3817748708, %v6694_v55, %v6749_v63 }
 0x131   : > { %5299 = vmatmul.mubr.msk.bf16.gmra.mrb[32].mxu1 %vm353_vm2, %v1209_v52  ;;  %5469 = vmatmul.mubr.msk.bf16.gmra.mrb[12].mxu0 %vm353_vm2, %v2839_v53  ;;  %v6590_v36 = vmul.u32.u64.low 3817748708, %v3348_v6  ;;  %v6591_v52 = vmul.u32.u64.high 3817748708, %v3348_v6, %v6590_v36  ;;  %v3353_v53 = vadd.s32 48, %v6575_v57 }
 0x132   : > { %5324 = vmatprep.mubr.msk.bf16.mxu1 %vm353_vm2, %v1530_v38  ;;  %5472 = vmatprep.mubr.msk.bf16.mxu0 %vm353_vm2, %v2840_v48  ;;  %v3351_v38 = vadd.s32 32, %v6575_v57  ;;  %v3411_v48 = vshrl.u32 %v6580_v43, 4  ;;  %v8481_v43 = vmov 0 }
 0x133   : > { %v6597_v59 = vmul.u32.u64.low 3817748708, %v3353_v53  ;;  %v6598_v50 = vmul.u32.u64.high 3817748708, %v3353_v53, %v6597_v59 }
 0x134   : > { %v6602_v1 = vmul.u32.u64.low 3817748708, %v3351_v38  ;;  %v6603_v2 = vmul.u32.u64.high 3817748708, %v3351_v38, %v6602_v1  ;;  %v3412_v4 = vmul.u32 18, %v3411_v48 }
 0x135   : > { %v3455_v46 = vshrl.u32 %v6598_v50, 4  ;;  %v3500_v50 = vmul.u32 18, %v3499_v5  ;;  %v8364_v5 = vmov 0 }
 0x136   : > { %v6615_v15 = vsub.s32 %v3349_v42, %v3412_v4 }
 0x137   : > { %v3456_v56 = vmul.u32 18, %v3455_v46  ;;  %v8355_v46 = vmov 0 }
 0x138   : > { %vm3781_vm3 = vcmp.ne.s32.totalorder %v6615_v15, 0  ;;  %vm3817_vm4 = vcmp.lt.s32.totalorder %v6615_v15, 0  ;;  %v6645_v28 = vadd.s32 18, %v6615_v15 }
 0x139   : > { %5325 = vmatmul.mubr.msk.bf16.vlgmr.msra.gmra.mrb[20].mxu1 %vm353_vm2, %v1531_v8  ;;  %5473 = vmatmul.mubr.msk.bf16.gmra.mrb[16].mxu0 %vm353_vm2, %v2841_v0  ;;  %v3400_v8 = vshrl.u32 %v6591_v52, 4  ;;  %v6665_v35 = vsub.s32 %v3353_v53, %v3456_v56  ;;  %vm6700_vm11 = vmand %vm3817_vm4, %vm3781_vm3 }
 0x13a   : > { %5328 = vmatprep.mubr.msk.bf16.mxu1 %vm353_vm2, %v1532_v29  ;;  %5476 = vmatprep.mubr.msk.bf16.mxu0 %vm353_vm2, %v2842_v10  ;;  %v6606_v0 = vmul.u32.u64.low 3817748708, %v3354_v58  ;;  %v6607_v29 = vmul.u32.u64.high 3817748708, %v3354_v58, %v6606_v0  ;;  %v6610_v10 = vadd.s32 40, %v6575_v57 }
 0x13b   : > { %v3401_v7 = vmul.u32 18, %v3400_v8  ;;  %vm3785_vm12 = vcmp.ne.s32.totalorder %v6665_v35, 0  ;;  %vm3821_vm15 = vcmp.lt.s32.totalorder %v6665_v35, 0  ;;  %v6753_v1 = vadd.s32 18, %v6665_v35 }
 0x13c   : > { %v6619_v51 = vmul.u32.u64.low 3817748708, %v6610_v10  ;;  %v6620_v16 = vmul.u32.u64.high 3817748708, %v6610_v10, %v6619_v51  ;;  %v3466_v25 = vshrl.u32 %v6607_v29, 4  ;;  %vm6772_vm3 = vmand %vm3821_vm15, %vm3785_vm12 }
 0x13d   : > { %v6637_v26 = vsub.s32 %v3348_v6, %v3401_v7  ;;  %v6759_v4 = vmul.u32.u64.low 3817748708, %v6707_v47  ;;  %v6760_v8 = vmul.u32.u64.high 3817748708, %v6707_v47, %v6759_v4 }
 0x13e   : > { %v3467_v44 = vmul.u32 18, %v3466_v25  ;;  %v3444_v37 = vshrl.u32 %v6620_v16, 4  ;;  %v6809_v25 = vadd.s32 128, %v6575_v57  ;;  %v8369_v4 = vmov 0 }
 0x13f   : > { %vm3780_vm9 = vcmp.ne.s32.totalorder %v6637_v26, 0  ;;  %vm3816_vm10 = vcmp.lt.s32.totalorder %v6637_v26, 0 }
 0x140   : > { %v6687_v41 = vsub.s32 %v3354_v58, %v3467_v44  ;;  %v3445_v6 = vmul.u32 18, %v3444_v37  ;;  %vm6743_vm1 = vmand %vm3816_vm10, %vm3780_vm9 }
 0x141   : > { %5329 = vmatmul.mubr.msk.bf16.gmra.mrb[24].mxu1 %vm353_vm2, %v1533_v17  ;;  %5477 = vmatmul.mubr.msk.bf16.gmra.mrb[20].mxu0 %vm353_vm2, %v2843_v19  ;;  %v6623_v17 = vadd.s32 64, %v6575_v57  ;;  %v6626_v19 = vsub.s32 %v6575_v57, %v3390_v13  ;;  %v8352_v13 = vmov 0 }
 0x142   : > { %5332 = vmatprep.mubr.msk.bf16.mxu1 %vm353_vm2, %v1534_v20  ;;  %5480 = vmatprep.mubr.msk.bf16.mxu0 %vm353_vm2, %v2844_v54  ;;  %v6628_v20 = vsub.s32 %v3350_v3, %v3423_v12  ;;  %v3433_v54 = vshrl.u32 %v6603_v2, 4  ;;  %8342 = vst [vmem:[#allocation3_spill] sm:$0xff] %v6687_v41  ;;  %v6690_v42 = vmul.u32.u64.low 3817748708, %v6661_v31  ;;  %v6691_v3 = vmul.u32.u64.high 3817748708, %v6661_v31, %v6690_v42 }
 0x143   : > { %v6640_v60 = vmul.u32.u64.low 3817748708, %v6623_v17  ;;  %v6641_v27 = vmul.u32.u64.high 3817748708, %v6623_v17, %v6640_v60  ;;  %vm3779_vm5 = vcmp.ne.s32.totalorder %v6626_v19, 0  ;;  %vm3815_vm6 = vcmp.lt.s32.totalorder %v6626_v19, 0 }
 0x144   : > { %vm3782_vm7 = vcmp.ne.s32.totalorder %v6628_v20, 0  ;;  %vm3818_vm8 = vcmp.lt.s32.totalorder %v6628_v20, 0  ;;  %vm6713_vm13 = vmand %vm3815_vm6, %vm3779_vm5  ;;  %v6756_v2 = vsub.s32 %v6610_v10, %v3445_v6  ;;  %v8353_v13 = vsel %vm6772_vm3, 4294967295, %v8352_v13 }
 0x145   : > { %v3477_v18 = vshrl.u32 %v6641_v27, 4  ;;  %vm6729_vm14 = vmand %vm3818_vm8, %vm3782_vm7  ;;  %vm3786_vm5 = vcmp.ne.s32.totalorder %v6687_v41, 0  ;;  %vm3822_vm6 = vcmp.lt.s32.totalorder %v6687_v41, 0  ;;  %v3488_v22 = vshrl.u32 %v6691_v3, 4 }
 0x146   : > { %8351 = vst [vmem:[#allocation4_spill] sm:$0xff] %v6756_v2  ;;  %vm3784_vm7 = vcmp.ne.s32.totalorder %v6756_v2, 0  ;;  %vm3820_vm8 = vcmp.lt.s32.totalorder %v6756_v2, 0  ;;  %v6816_v56 = vadd.s32 18, %v6687_v41  ;;  %vm6820_vm9 = vmand %vm3822_vm6, %vm3786_vm5  ;;  %v6825_v44 = vadd.s32 18, %v6756_v2 }
 0x147   : > { %v3478_v51 = vmul.u32 18, %v3477_v18  ;;  %vm6831_vm10 = vmand %vm3820_vm8, %vm3784_vm7  ;;  %v3489_v42 = vmul.u32 18, %v3488_v22  ;;  %v3532_v3 = vshrl.u32 %v6750_v62, 4  ;;  %v6838_v6 = vadd.s32 152, %v6575_v57 }
 0x148   : > { %8358 = vst [vmem:[#allocation7_spill] sm:$0xff] %v6816_v56  ;;  %8362 = vst [vmem:[#allocation9_spill] sm:$0xff] %v6825_v44  ;;  %v8365_v5 = vsel %vm6831_vm10, 4294967295, %v8364_v5  ;;  %v8419_v41 = vmov 0 }
 0x149   : > { %5333 = vmatmul.mubr.msk.bf16.gmra.mrb[28].mxu1 %vm353_vm2, %v1535_v33  ;;  %5481 = vmatmul.mubr.msk.bf16.gmra.mrb[24].mxu0 %vm353_vm2, %v2845_v34  ;;  %v6649_v33 = vadd.s32 88, %v6575_v57  ;;  %v6653_v34 = vadd.s32 18, %v6626_v19  ;;  %v6828_v37 = vsub.s32 %v6623_v17, %v3478_v51  ;;  %8366 = vst [vmem:[#allocation11_spill] sm:$0xff] %v8365_v5  ;;  %v3587_v17 = vshrl.u32 %v6760_v8, 4 }
 0x14a   : > { %5336 = vmatprep.mubr.msk.bf16.mxu1 %vm353_vm2, %v1536_v61  ;;  %5484 = vmatprep.mubr.msk.bf16.mxu0 %vm353_vm2, %v2846_v9  ;;  %v3434_v61 = vmul.u32 18, %v3433_v54  ;;  %v6658_v9 = vadd.s32 18, %v6628_v20  ;;  %v6799_v54 = vsub.s32 %v6613_v14, %v3500_v50  ;;  %v6870_v8 = vsub.s32 %v6661_v31, %v3489_v42 }
 0x14b   : > { %v6669_v11 = vmul.u32.u64.low 3817748708, %v6649_v33  ;;  %v6670_v30 = vmul.u32.u64.high 3817748708, %v6649_v33, %v6669_v11  ;;  %8363 = vst [vmem:[#allocation10_spill] sm:$0xff] %v6828_v37  ;;  %v3533_v51 = vmul.u32 18, %v3532_v3  ;;  %vm3823_vm5 = vcmp.lt.s32.totalorder %v6828_v37, 0 }
 0x14c   : > { %v6681_v40 = vsub.s32 %v3351_v38, %v3434_v61  ;;  %8357 = vst [vmem:[#allocation6_spill] sm:$0xff] %v6799_v54  ;;  %v8359_v61 = vmov 0  ;;  %vm3789_vm12 = vcmp.ne.s32.totalorder %v6799_v54, 0  ;;  %vm3825_vm15 = vcmp.lt.s32.totalorder %v6799_v54, 0  ;;  %8372 = vst [vmem:[#allocation15_spill] sm:$0xff] %v6870_v8 }
 0x14d   : > { %v3510_v16 = vshrl.u32 %v6670_v30, 4  ;;  %v8360_v61 = vsel %vm6820_vm9, 4294967295, %v8359_v61  ;;  %v6858_v50 = vadd.s32 18, %v6799_v54  ;;  %vm8388_vm7 = vcmp.ne.s32.totalorder %v6870_v8, 0 }
 0x14e   : > { %8341 = vst [vmem:[#allocation2_spill] sm:$0xff] %v6681_v40  ;;  %vm3783_vm0 = vcmp.ne.s32.totalorder %v6681_v40, 0  ;;  %v6777_v10 = vadd.s32 18, %v6681_v40  ;;  %8361 = vst [vmem:[#allocation8_spill] sm:$0xff] %v8360_v61  ;;  %vm8389_vm8 = vcmp.lt.s32.totalorder %v6870_v8, 0  ;;  %v8395_v42 = vmov 0 }
 0x14f   : > { %v3511_v11 = vmul.u32 18, %v3510_v16  ;;  %8367 = vst [vmem:[#allocation12_spill] sm:$0xff] %v6858_v50  ;;  %v6873_v16 = vmul.u32.u64.low 3817748708, %v6838_v6  ;;  %v6874_v22 = vmul.u32.u64.high 3817748708, %v6838_v6, %v6873_v16  ;;  %vm6952_vm9 = vmand %vm8389_vm8, %vm8388_vm7  ;;  %v8407_v54 = vmov 0 }
 0x150   : > { %8354 = vst [vmem:[#allocation5_spill] sm:$0xff] %v6777_v10  ;;  %v8414_v50 = vmov 0  ;;  %v7044_v10 = vadd.s32 208, %v6575_v57 }
 0x151   : > { %5337 = vmatmul.mubr.msk.bf16.gmra.mrb[32].mxu1 %vm353_vm2, %v1537_v32  ;;  %5485 = vmatmul.mubr.msk.bf16.gmra.mrb[28].mxu0 %vm353_vm2, %v2847_v39  ;;  %v6673_v32 = vadd.s32 112, %v6575_v57  ;;  %v6676_v39 = vadd.s32 96, %v6575_v57  ;;  %v6861_v63 = vsub.s32 %v6649_v33, %v3511_v11  ;;  %v6879_v33 = vadd.s32 18, %v6828_v37 }
 0x152   : > { %5488 = vmatprep.mubr.msk.bf16.mxu0 %vm353_vm2, %v2848_v24  ;;  %v6679_v24 = vadd.s32 18, %v6637_v26  ;;  %v3598_v16 = vshrl.u32 %v6874_v22, 4 }
 0x153   : > { %v6718_v49 = vmul.u32.u64.low 3817748708, %v6673_v32  ;;  %v6719_v36 = vmul.u32.u64.high 3817748708, %v6673_v32, %v6718_v49  ;;  %v6722_v52 = vmul.u32.u64.low 3817748708, %v6676_v39  ;;  %v6723_v53 = vmul.u32.u64.high 3817748708, %v6676_v39, %v6722_v52  ;;  %8368 = vst [vmem:[#allocation13_spill] sm:$0xff] %v6861_v63  ;;  %8373 = vst [vmem:[#allocation16_spill] sm:$0xff] %v6879_v33 }
 0x154   : > { %v6843_v18 = vmul.u32.u64.low 3817748708, %v6809_v25  ;;  %v6844_v49 = vmul.u32.u64.high 3817748708, %v6809_v25, %v6843_v18  ;;  %vm3790_vm6 = vcmp.ne.s32.totalorder %v6861_v63, 0  ;;  %v3599_v2 = vmul.u32 18, %v3598_v16 }
 0x155   : > { %v3543_v60 = vshrl.u32 %v6719_v36, 4  ;;  %v3521_v27 = vshrl.u32 %v6723_v53, 4  ;;  %v7070_v16 = vadd.s32 216, %v6575_v57 }
 0x157   : > { %v3544_v52 = vmul.u32 18, %v3543_v60  ;;  %v3522_v53 = vmul.u32 18, %v3521_v27 }
 0x158   : > { %v3588_v60 = vmul.u32 18, %v3587_v17  ;;  %v6909_v17 = vadd.s32 18, %v6870_v8 }
 0x159   : > { %5489 = vmatmul.mubr.msk.bf16.gmra.mrb[32].mxu0 %vm353_vm2, %v2849_v45  ;;  %v6685_v45 = vadd.s32 120, %v6575_v57  ;;  %vm3819_vm2 = vcmp.lt.s32.totalorder %v6681_v40, 0  ;;  %v6882_v27 = vsub.s32 %v6673_v32, %v3544_v52  ;;  %v6885_v11 = vsub.s32 %v6676_v39, %v3522_v53 }
 0x15a   : > { %vm6791_vm4 = vmand %vm3819_vm2, %vm3783_vm0  ;;  %vm3787_vm2 = vcmp.ne.s32.totalorder %v6828_v37, 0  ;;  %v6901_v32 = vadd.s32 18, %v6861_v63  ;;  %v6906_v39 = vsub.s32 %v6694_v55, %v3533_v51  ;;  %8379 = vst [vmem:[#allocation22_spill] sm:$0xff] %v6909_v17  ;;  %v6912_v18 = vsub.s32 %v6707_v47, %v3588_v60 }
 0x15b   : > { %v6736_v48 = vmul.u32.u64.low 3817748708, %v6685_v45  ;;  %v6737_v58 = vmul.u32.u64.high 3817748708, %v6685_v45, %v6736_v48  ;;  %v8356_v46 = vsel %vm6791_vm4, 4294967295, %v8355_v46  ;;  %vm6865_vm0 = vmand %vm3825_vm15, %vm3789_vm12  ;;  %8374 = vst [vmem:[#allocation17_spill] sm:$0xff] %v6882_v27  ;;  %v3565_v52 = vshrl.u32 %v6844_v49, 4 }
 0x15c   : > { %v6851_v48 = vadd.s32 136, %v6575_v57  ;;  %v8370_v4 = vsel %vm6865_vm0, 4294967295, %v8369_v4  ;;  %8375 = vst [vmem:[#allocation18_spill] sm:$0xff] %v6885_v11  ;;  %8377 = vst [vmem:[#allocation20_spill] sm:$0xff] %v6901_v32  ;;  %v8381_v53 = vmov 0  ;;  %v6930_v55 = vadd.s32 160, %v6575_v57 }
 0x15d   : > { %v3554_v30 = vshrl.u32 %v6737_v58, 4  ;;  %8371 = vst [vmem:[#allocation14_spill] sm:$0xff] %v8370_v4  ;;  %8378 = vst [vmem:[#allocation21_spill] sm:$0xff] %v6906_v39  ;;  %vm8384_vm0 = vcmp.lt.s32.totalorder %v6861_v63, 0  ;;  %v8385_v47 = vmov 0  ;;  %v6944_v49 = vadd.s32 184, %v6575_v57 }
 0x15e   : > { %8380 = vst [vmem:[#allocation23_spill] sm:$0xff] %v6912_v18  ;;  %vm6922_vm15 = vmand %vm3823_vm5, %vm3787_vm2  ;;  %v8390_v51 = vmov 0  ;;  %v6960_v60 = vadd.s32 168, %v6575_v57  ;;  %vm8393_vm12 = vcmp.ne.s32.totalorder %v6882_v27, 0  ;;  %vm8394_vm5 = vcmp.lt.s32.totalorder %v6882_v27, 0 }
 0x15f   : > { %v3555_v62 = vmul.u32 18, %v3554_v30  ;;  %v6888_v31 = vmul.u32.u64.low 3817748708, %v6851_v48  ;;  %v6889_v30 = vmul.u32.u64.high 3817748708, %v6851_v48, %v6888_v31  ;;  %v8382_v53 = vsel %vm6922_vm15, 4294967295, %v8381_v53  ;;  %vm6936_vm10 = vmand %vm8384_vm0, %vm3790_vm6 }
 0x160   : > { %8383 = vst [vmem:[#allocation24_spill] sm:$0xff] %v8382_v53  ;;  %v8386_v47 = vsel %vm6936_vm10, 4294967295, %v8385_v47  ;;  %v8391_v51 = vsel %vm6952_vm9, 4294967295, %v8390_v51  ;;  %vm6968_vm2 = vmand %vm8394_vm5, %vm8393_vm12  ;;  %v3566_v58 = vmul.u32 18, %v3565_v52  ;;  %vm8398_vm8 = vcmp.ne.s32.totalorder %v6885_v11, 0 }
 0x161   : > { %v6898_v3 = vsub.s32 %v6685_v45, %v3555_v62  ;;  %v6916_v45 = vadd.s32 176, %v6575_v57  ;;  %8387 = vst [vmem:[#allocation25_spill] sm:$0xff] %v8386_v47  ;;  %8392 = vst [vmem:[#allocation26_spill] sm:$0xff] %v8391_v51  ;;  %v8396_v42 = vsel %vm6968_vm2, 4294967295, %v8395_v42  ;;  %vm8399_vm6 = vcmp.lt.s32.totalorder %v6885_v11, 0 }
 0x162   : > { %8397 = vst [vmem:[#allocation27_spill] sm:$0xff] %v8396_v42  ;;  %vm6983_vm0 = vmand %vm8399_vm6, %vm8398_vm8  ;;  %vm3833_vm12 = vcmp.lt.s32.totalorder %v6912_v18, 0  ;;  %v3576_v7 = vshrl.u32 %v6889_v30, 4  ;;  %v6990_v52 = vmul.u32.u64.low 3817748708, %v6930_v55  ;;  %v6991_v12 = vmul.u32.u64.high 3817748708, %v6930_v55, %v6990_v52 }
 0x163   : > { %8376 = vst [vmem:[#allocation19_spill] sm:$0xff] %v6898_v3  ;;  %v6974_v36 = vmul.u32.u64.low 3817748708, %v6916_v45  ;;  %v6975_v14 = vmul.u32.u64.high 3817748708, %v6916_v45, %v6974_v36  ;;  %v8401_v23 = vsel %vm6983_vm0, 4294967295, %v8400_v23  ;;  %v6999_v0 = vadd.s32 18, %v6885_v11 }
 0x164   : > { %8402 = vst [vmem:[#allocation28_spill] sm:$0xff] %v8401_v23  ;;  %v6996_v36 = vadd.s32 18, %v6882_v27  ;;  %vm8405_vm5 = vcmp.ne.s32.totalorder %v6898_v3, 0  ;;  %vm8406_vm6 = vcmp.lt.s32.totalorder %v6898_v3, 0  ;;  %v7010_v30 = vadd.s32 18, %v6898_v3 }
 0x165   : > { %8404 = vst [vmem:[#allocation30_spill] sm:$0xff] %v6999_v0  ;;  %vm7005_vm8 = vmand %vm8406_vm6, %vm8405_vm5  ;;  %v7013_v52 = vadd.s32 18, %v6906_v39  ;;  %vm8412_vm7 = vcmp.ne.s32.totalorder %v6906_v39, 0  ;;  %vm8413_vm4 = vcmp.lt.s32.totalorder %v6906_v39, 0  ;;  %v7024_v4 = vadd.s32 18, %v6912_v18 }
 0x166   : > { %8403 = vst [vmem:[#allocation29_spill] sm:$0xff] %v6996_v36  ;;  %v8408_v54 = vsel %vm7005_vm8, 4294967295, %v8407_v54  ;;  %8410 = vst [vmem:[#allocation32_spill] sm:$0xff] %v7010_v30  ;;  %v7027_v44 = vmul.u32.u64.low 3817748708, %v6944_v49  ;;  %v7028_v5 = vmul.u32.u64.high 3817748708, %v6944_v49, %v7027_v44  ;;  %vm8418_vm5 = vcmp.ne.s32.totalorder %v6912_v18, 0 }
 0x167   : > { %8409 = vst [vmem:[#allocation31_spill] sm:$0xff] %v8408_v54  ;;  %8411 = vst [vmem:[#allocation33_spill] sm:$0xff] %v7013_v52  ;;  %v7037_v56 = vsub.s32 %v6809_v25, %v3566_v58  ;;  %v7040_v61 = vmul.u32.u64.low 3817748708, %v6960_v60  ;;  %v7041_v40 = vmul.u32.u64.high 3817748708, %v6960_v60, %v7040_v61  ;;  %v3577_v58 = vmul.u32 18, %v3576_v7 }
 0x168   : > { %vm7019_vm3 = vmand %vm8413_vm4, %vm8412_vm7  ;;  %8417 = vst [vmem:[#allocation35_spill] sm:$0xff] %v7024_v4  ;;  %v7067_v37 = vadd.s32 192, %v6575_v57  ;;  %v7087_v25 = vsub.s32 %v6838_v6, %v3599_v2  ;;  %v3631_v54 = vshrl.u32 %v6975_v14, 4  ;;  %v3609_v2 = vshrl.u32 %v6991_v12, 4 }
 0x169   : > { %v8415_v50 = vsel %vm7019_vm3, 4294967295, %v8414_v50  ;;  %vm7032_vm6 = vmand %vm3833_vm12, %vm8418_vm5  ;;  %8422 = vst [vmem:[#allocation37_spill] sm:$0xff] %v7037_v56  ;;  %vm3795_vm4 = vcmp.ne.s32.totalorder %v7037_v56, 0  ;;  %v7094_v7 = vmul.u32.u64.low 3817748708, %v7044_v10  ;;  %v7095_v3 = vmul.u32.u64.high 3817748708, %v7044_v10, %v7094_v7 }
 0x16a   : > { %8416 = vst [vmem:[#allocation34_spill] sm:$0xff] %v8415_v50  ;;  %v8420_v41 = vsel %vm7032_vm6, 4294967295, %v8419_v41  ;;  %8423 = vst [vmem:[#allocation38_spill] sm:$0xff] %v7087_v25  ;;  %vm3831_vm7 = vcmp.lt.s32.totalorder %v7037_v56, 0  ;;  %v7101_v61 = vsub.s32 %v6851_v48, %v3577_v58  ;;  %v7105_v6 = vadd.s32 200, %v6575_v57 }
 0x16b   : > { %8421 = vst [vmem:[#allocation36_spill] sm:$0xff] %v8420_v41  ;;  %v7110_v14 = vmul.u32.u64.low 3817748708, %v7067_v37  ;;  %v7111_v18 = vmul.u32.u64.high 3817748708, %v7067_v37, %v7110_v14  ;;  %v7114_v7 = vmul.u32.u64.low 3817748708, %v7070_v16  ;;  %v7115_v4 = vmul.u32.u64.high 3817748708, %v7070_v16, %v7114_v7  ;;  %vm7163_vm12 = vmand %vm3831_vm7, %vm3795_vm4 }
 0x16c   : > { %8425 = vst [vmem:[#allocation40_spill] sm:$0xff] %v7101_v61  ;;  %v7118_v41 = vadd.s32 18, %v7037_v56  ;;  %v7123_v12 = vadd.s32 240, %v6575_v57  ;;  %v7126_v48 = vadd.s32 18, %v7087_v25  ;;  %v3632_v58 = vmul.u32 18, %v3631_v54 }
 0x16d   : > { %v3642_v14 = vshrl.u32 %v7028_v5, 4  ;;  %v3620_v39 = vshrl.u32 %v7041_v40, 4  ;;  %v3610_v52 = vmul.u32 18, %v3609_v2  ;;  %v7135_v0 = vadd.s32 224, %v6575_v57 }
 0x16e   : > { %8427 = vst [vmem:[#allocation42_spill] sm:$0xff] %v7118_v41  ;;  %8428 = vst [vmem:[#allocation43_spill] sm:$0xff] %v7126_v48  ;;  %v7131_v7 = vmul.u32.u64.low 3817748708, %v7105_v6  ;;  %v7132_v30 = vmul.u32.u64.high 3817748708, %v7105_v6, %v7131_v7  ;;  %v7140_v23 = vadd.s32 18, %v7101_v61  ;;  %v7143_v54 = vadd.s32 248, %v6575_v57 }
 0x16f   : > { %v7148_v40 = vmul.u32.u64.low 3817748708, %v7123_v12  ;;  %v7149_v2 = vmul.u32.u64.high 3817748708, %v7123_v12, %v7148_v40  ;;  %v7152_v7 = vadd.s32 232, %v6575_v57  ;;  %v7155_v27 = vadd.s32 272, %v6575_v57 }
 0x170   : > { %8429 = vst [vmem:[#allocation44_spill] sm:$0xff] %v7140_v23  ;;  %v8432_v42 = vmov 0  ;;  %v3643_v40 = vmul.u32 18, %v3642_v14  ;;  %v3621_v8 = vmul.u32 18, %v3620_v39  ;;  %v3675_v17 = vshrl.u32 %v7095_v3, 4 }
 0x171   : > { %v8433_v42 = vsel %vm7163_vm12, 4294967295, %v8432_v42  ;;  %vm8436_vm5 = vcmp.ne.s32.totalorder %v7087_v25, 0  ;;  %vm8437_vm6 = vcmp.lt.s32.totalorder %v7087_v25, 0  ;;  %v7182_v32 = vsub.s32 %v6930_v55, %v3610_v52 }
 0x172   : > { %8434 = vst [vmem:[#allocation47_spill] sm:$0xff] %v8433_v42  ;;  %vm7177_vm3 = vmand %vm8437_vm6, %vm8436_vm5  ;;  %v7189_v39 = vadd.s32 256, %v6575_v57  ;;  %vm8442_vm4 = vcmp.ne.s32.totalorder %v7101_v61, 0  ;;  %vm8443_vm7 = vcmp.lt.s32.totalorder %v7101_v61, 0  ;;  %v8444_v14 = vmov 0 }
 0x173   : > { %vm7197_vm6 = vmand %vm8443_vm7, %vm8442_vm4  ;;  %v3653_v55 = vshrl.u32 %v7111_v18, 4  ;;  %v3686_v52 = vshrl.u32 %v7115_v4, 4  ;;  %v7208_v47 = vmul.u32.u64.low 3817748708, %v7152_v7  ;;  %v7209_v33 = vmul.u32.u64.high 3817748708, %v7152_v7, %v7208_v47 }
 0x174   : > { %v8445_v14 = vsel %vm7197_vm6, 4294967295, %v8444_v14  ;;  %v7224_v18 = vsub.s32 %v6944_v49, %v3643_v40  ;;  %vm8455_vm5 = vcmp.ne.s32.totalorder %v7182_v32, 0  ;;  %vm8456_vm12 = vcmp.lt.s32.totalorder %v7182_v32, 0 }
 0x175   : > { %8446 = vst [vmem:[#allocation51_spill] sm:$0xff] %v8445_v14  ;;  %v3654_v4 = vmul.u32 18, %v3653_v55  ;;  %v3687_v49 = vmul.u32 18, %v3686_v52  ;;  %v3708_v25 = vshrl.u32 %v7209_v33, 4  ;;  %vm7304_vm8 = vmand %vm8456_vm12, %vm8455_vm5 }
 0x176   : > { %v7261_v55 = vadd.s32 18, %v7224_v18  ;;  %vm8460_vm0 = vcmp.ne.s32.totalorder %v7224_v18, 0  ;;  %vm8461_vm2 = vcmp.lt.s32.totalorder %v7224_v18, 0 }
 0x177   : > { %v7268_v23 = vsub.s32 %v7067_v37, %v3654_v4  ;;  %v7282_v37 = vadd.s32 280, %v6575_v57  ;;  %vm7317_vm9 = vmand %vm8461_vm2, %vm8460_vm0 }
 0x179   : > { %8448 = vst [vmem:[#allocation53_spill] sm:$0xff] %v7268_v23 }
 0x1c4   : > { %v6946_v62 = vpop.f32.mrb[0].mxu1 }
 0x1c5   : > { %v6962_v31 = vpop.f32.mrb[1].mxu1 }
 0x1c6   : > { %v6977_v22 = vpop.f32.mrb[2].mxu1 }
 0x1c7   : > { %v6993_v29 = vpop.f32.mrb[3].mxu1 }
 0x1cc   : > { %v7072_v63 = vpop.f32.mrb[4].mxu1 }
 0x1cd   : > { %v7089_v11 = vpop.f32.mrb[5].mxu1 }
 0x1ce   : > { %v7097_v50 = vpop.f32.mrb[6].mxu1 }
 0x1cf   : > { %8424 = vst [vmem:[#allocation39_spill] sm:$0xff] %v7097_v50  ;;  %v7107_v44 = vpop.f32.mrb[7].mxu1  ;;  %v7232_v50 = vmul.u32.u64.low 3817748708, %v7189_v39  ;;  %v7233_v42 = vmul.u32.u64.high 3817748708, %v7189_v39, %v7232_v50 }
 0x1d0   : > { %8426 = vst [vmem:[#allocation41_spill] sm:$0xff] %v7107_v44  ;;  %v7237_v44 = vsub.s32 %v6960_v60, %v3621_v8  ;;  %v7251_v50 = vadd.s32 18, %v7182_v32 }
 0x1d1   : > { %v3741_v4 = vshrl.u32 %v7233_v42, 4  ;;  %v8462_v42 = vmov 0 }
 0x1d2   : > { %v8463_v42 = vsel %vm7317_vm9, 4294967295, %v8462_v42  ;;  %vm8465_vm5 = vcmp.ne.s32.totalorder %v7237_v44, 0 }
 0x1d4   : > { %v7145_v5 = vpop.f32.mrb[8].mxu1 }
 0x1d5   : > { %8430 = vst [vmem:[#allocation45_spill] sm:$0xff] %v7145_v5  ;;  %v7157_v36 = vpop.f32.mrb[9].mxu1  ;;  %v7168_v5 = vsub.s32 %v6916_v45, %v3632_v58  ;;  %v7185_v45 = vmul.u32.u64.low 3817748708, %v7135_v0  ;;  %v7186_v58 = vmul.u32.u64.high 3817748708, %v7135_v0, %v7185_v45 }
 0x1d6   : > { %8431 = vst [vmem:[#allocation46_spill] sm:$0xff] %v7157_v36  ;;  %v7171_v51 = vpop.f32.mrb[10].mxu1  ;;  %v8438_v36 = vmov 0 }
 0x1d7   : > { %8435 = vst [vmem:[#allocation48_spill] sm:$0xff] %v7171_v51  ;;  %v8439_v36 = vsel %vm7177_vm3, 4294967295, %v8438_v36  ;;  %v7191_v3 = vpop.f32.mrb[11].mxu1  ;;  %v7204_v51 = vmul.u32.u64.low 3817748708, %v7143_v54  ;;  %v7205_v45 = vmul.u32.u64.high 3817748708, %v7143_v54, %v7204_v51  ;;  %v3697_v52 = vshrl.u32 %v7186_v58, 4 }
 0x1d8   : > { %8440 = vst [vmem:[#allocation49_spill] sm:$0xff] %v8439_v36  ;;  %8441 = vst [vmem:[#allocation50_spill] sm:$0xff] %v7191_v3  ;;  %v7212_v3 = vmul.u32.u64.low 3817748708, %v7155_v27  ;;  %v7213_v53 = vmul.u32.u64.high 3817748708, %v7155_v27, %v7212_v3  ;;  %v3676_v51 = vmul.u32 18, %v3675_v17  ;;  %v7243_v17 = vadd.s32 18, %v7168_v5 }
 0x1d9   : > { %v3664_v3 = vshrl.u32 %v7132_v30, 4  ;;  %v3719_v30 = vshrl.u32 %v7149_v2, 4  ;;  %v7278_v58 = vadd.s32 18, %v7237_v44  ;;  %vm8450_vm6 = vcmp.ne.s32.totalorder %v7168_v5, 0  ;;  %v8561_v38 = vld [vmem:[#allocation41_spill] sm:$0xff] }
 0x1da   : > { %v7255_v8 = vsub.s32 %v7044_v10, %v3676_v51  ;;  %v7271_v10 = vsub.s32 %v7070_v16, %v3687_v49  ;;  %v3730_v51 = vshrl.u32 %v7205_v45, 4  ;;  %v7285_v16 = vadd.s32 264, %v6575_v57 }
 0x1db   : > { %v3665_v2 = vmul.u32 18, %v3664_v3  ;;  %v3720_v14 = vmul.u32 18, %v3719_v30  ;;  %v3763_v3 = vshrl.u32 %v7213_v53, 4  ;;  %vm8451_vm4 = vcmp.lt.s32.totalorder %v7168_v5, 0 }
 0x1dc   : > { %v7239_v40 = vpop.f32.mrb[12].mxu1  ;;  %8447 = vst [vmem:[#allocation52_spill] sm:$0xff] %v7255_v8  ;;  %8449 = vst [vmem:[#allocation54_spill] sm:$0xff] %v7271_v10  ;;  %v8452_v45 = vmov 0  ;;  %v3698_v53 = vmul.u32 18, %v3697_v52  ;;  %v8457_v57 = vmov 0 }
 0x1dd   : > { %v7247_v47 = vpop.f32.mrb[13].mxu1  ;;  %vm7291_vm7 = vmand %vm8451_vm4, %vm8450_vm6  ;;  %v7297_v33 = vsub.s32 %v7105_v6, %v3665_v2  ;;  %v8458_v57 = vsel %vm7304_vm8, 4294967295, %v8457_v57  ;;  %v3731_v49 = vmul.u32 18, %v3730_v51  ;;  %v7323_v30 = vsub.s32 %v7123_v12, %v3720_v14 }
 0x1de   : > { %v7257_v60 = vpop.f32.mrb[14].mxu1  ;;  %v8453_v45 = vsel %vm7291_vm7, 4294967295, %v8452_v45  ;;  %v3709_v2 = vmul.u32 18, %v3708_v25  ;;  %v3764_v52 = vmul.u32 18, %v3763_v3  ;;  %vm8466_vm3 = vcmp.lt.s32.totalorder %v7237_v44, 0 }
 0x1df   : > { %v7264_v61 = vpop.f32.mrb[15].mxu1  ;;  %8454 = vst [vmem:[#allocation55_spill] sm:$0xff] %v7297_v33  ;;  %vm7331_vm4 = vmand %vm8466_vm3, %vm8465_vm5  ;;  %v8467_v51 = vmov 0  ;;  %v7340_v56 = vmul.u32.u64.low 3817748708, %v7285_v16  ;;  %v7341_v12 = vmul.u32.u64.high 3817748708, %v7285_v16, %v7340_v56  ;;  %vm8470_vm2 = vcmp.ne.s32.totalorder %v7255_v8, 0 }
 0x1e0   : > { %v8468_v51 = vsel %vm7331_vm4, 4294967295, %v8467_v51  ;;  %vm8471_vm0 = vcmp.lt.s32.totalorder %v7255_v8, 0  ;;  %v8472_v14 = vmov 0  ;;  %v7356_v3 = vsub.s32 %v7135_v0, %v3698_v53 }
 0x1e1   : > { %vm7349_vm12 = vmand %vm8471_vm0, %vm8470_vm2  ;;  %v8475_v56 = vsel %vm6700_vm11, %v6645_v28, %v6615_v15  ;;  %v7374_v0 = vadd.s32 18, %v7255_v8  ;;  %vm8479_vm2 = vcmp.ne.s32.totalorder %v7268_v23, 0  ;;  %vm8480_vm0 = vcmp.lt.s32.totalorder %v7268_v23, 0 }
 0x1e2   : > { %v8473_v14 = vsel %vm7349_vm12, 4294967295, %v8472_v14  ;;  %vm7365_vm6 = vcmp.lt.s32.totalorder %v8475_v56, 16  ;;  %vm7380_vm5 = vmand %vm8480_vm0, %vm8479_vm2  ;;  %v7385_v15 = vadd.s32 18, %v7268_v23  ;;  %v7388_v28 = vsub.s32 %v7143_v54, %v3731_v49  ;;  %v8644_v23 = vld [vmem:[#allocation35_spill] sm:$0xff] }
 0x1e3   : > { %8474 = vst [vmem:[#allocation59_spill] sm:$0xff] %v8473_v14  ;;  %8478 = vst [vmem:[#allocation60_spill] sm:$0xff] %v7374_v0  ;;  %v8482_v43 = vsel %vm7380_vm5, 4294967295, %v8481_v43  ;;  %v8483_v53 = vsel %vm6713_vm13, %v6653_v34, %v6626_v19  ;;  %vm8486_vm2 = vcmp.ne.s32.totalorder %v7271_v10, 0  ;;  %vm8487_vm0 = vcmp.lt.s32.totalorder %v7271_v10, 0 }
 0x1e4   : > { %v7311_v6 = vpop.f32.mrb[16].mxu1  ;;  %vm7395_vm11 = vcmp.lt.s32.totalorder %v8483_v53, 16  ;;  %vm7407_vm3 = vmand %vm8487_vm0, %vm8486_vm2  ;;  %v8488_v54 = vmov 0  ;;  %v7412_v21 = vadd.s32 18, %v7271_v10  ;;  %v7415_v19 = vadd.s32 18, %v7297_v33 }
 0x1e5   : > { %8459 = vst [vmem:[#allocation56_spill] sm:$0xff] %v7311_v6  ;;  %v7325_v48 = vpop.f32.mrb[17].mxu1  ;;  %v7336_v6 = vmul.u32.u64.low 3817748708, %v7282_v37  ;;  %v7337_v36 = vmul.u32.u64.high 3817748708, %v7282_v37, %v7336_v6  ;;  %v8489_v54 = vsel %vm7407_vm3, 4294967295, %v8488_v54  ;;  %v7418_v34 = vsub.s32 %v7152_v7, %v3709_v2 }
 0x1e6   : > { %8464 = vst [vmem:[#allocation57_spill] sm:$0xff] %v7325_v48  ;;  %v7343_v25 = vpop.f32.mrb[18].mxu1  ;;  %v3742_v6 = vmul.u32 18, %v3741_v4  ;;  %8490 = vst [vmem:[#allocation61_spill] sm:$0xff] %v8489_v54  ;;  %vm8494_vm2 = vcmp.ne.s32.totalorder %v7297_v33, 0  ;;  %vm8495_vm0 = vcmp.lt.s32.totalorder %v7297_v33, 0  ;;  %v7435_v7 = vsub.s32 %v7155_v27, %v3764_v52 }
 0x1e7   : > { %8469 = vst [vmem:[#allocation58_spill] sm:$0xff] %v7343_v25  ;;  %v7358_v48 = vpop.f32.mrb[19].mxu1  ;;  %8491 = vst [vmem:[#allocation62_spill] sm:$0xff] %v7412_v21  ;;  %v8496_v53 = vmov 0  ;;  %vm3809_vm7 = vcmp.ne.s32.totalorder %v7323_v30, 0  ;;  %vm3845_vm10 = vcmp.lt.s32.totalorder %v7323_v30, 0  ;;  %v8501_v27 = vsel %vm6729_vm14, %v6658_v9, %v6628_v20 }
 0x1e8   : > { %8492 = vst [vmem:[#allocation63_spill] sm:$0xff] %v7415_v19  ;;  %8493 = vst [vmem:[#allocation64_spill] sm:$0xff] %v7418_v34  ;;  %vm3807_vm9 = vcmp.ne.s32.totalorder %v7356_v3, 0  ;;  %v7444_v49 = vsub.s32 %v7189_v39, %v3742_v6  ;;  %v7468_v20 = vld [vmem:[%s8251_s2] ss:$0 sm:$0xff]  ;;  %v8504_v9 = vsel %vm6743_vm1, %v6679_v24, %v6637_v26  ;;  %vm3808_vm1 = vcmp.ne.s32.totalorder %v7418_v34, 0 }
 0x1e9   : > { %vm7428_vm8 = vmand %vm8495_vm0, %vm8494_vm2  ;;  %8499 = vst [vmem:[#allocation66_spill] sm:$0xff] %v7435_v7  ;;  %vm7451_vm0 = vcmp.lt.s32.totalorder %v8501_v27, 16  ;;  %vm7475_vm14 = vcmp.lt.s32.totalorder %v8504_v9, 16  ;;  %vm3844_vm13 = vcmp.lt.s32.totalorder %v7418_v34, 0  ;;  %vm8509_vm3 = vcmp.lt.s32.totalorder %v7356_v3, 0  ;;  %v8553_v4 = vld [vmem:[#allocation9_spill] sm:$0xff] }
 0x1ea   : > { %v8497_v53 = vsel %vm7428_vm8, 4294967295, %v8496_v53  ;;  %8500 = vst [vmem:[#allocation67_spill] sm:$0xff] %v7444_v49  ;;  %vm7491_vm2 = vmand %vm3845_vm10, %vm3809_vm7  ;;  %v3774_v9 = vshrl.u32 %v7337_v36, 4  ;;  %v3752_v27 = vshrl.u32 %v7341_v12, 4  ;;  %v7512_v39 = vadd.s32 18, %v7323_v30 }
 0x1eb   : > { %8498 = vst [vmem:[#allocation65_spill] sm:$0xff] %v8497_v53  ;;  %vm7502_vm12 = vmand %vm8509_vm3, %vm3807_vm9  ;;  %vm8512_vm7 = vcmp.ne.s32.totalorder %v7388_v28, 0  ;;  %vm8513_vm9 = vcmp.lt.s32.totalorder %v7388_v28, 0  ;;  %v7540_v33 = vadd.s32 18, %v7418_v34  ;;  %v8525_v21 = vmov 0 }
 0x1ec   : > { %v5458_v24 = vpop.f32.mrb[0].mxu0  ;;  %vm7518_vm3 = vmand %vm8513_vm9, %vm8512_vm7  ;;  %vm8519_vm9 = vnez %v8353_v13  ;;  %v7565_v13 = vadd.s32 18, %v7444_v49  ;;  %v8534_v54 = vmov 0  ;;  %vm8537_vm5 = vcmp.lt.s32.totalorder %v7444_v49, 0 }
 0x1ed   : > { %v5494_v6 = vadd.f32 %v5458_v24, %v6946_v62  ;;  %v2943_v2 = vpop.f32.mrb[1].mxu0  ;;  %v7526_v62 = vadd.s32 18, %v7356_v3  ;;  %v7529_v24 = vadd.s32 18, %v7388_v28  ;;  %vm7535_vm7 = vmand %vm3844_vm13, %vm3808_vm1  ;;  %8518 = vst [vmem:[#allocation68_spill] sm:$0xff] %v7540_v33  ;;  %v8520_v53 = vsel %vm8519_vm9, %v6753_v1, %v6665_v35  ;;  %v8675_v33 = vld [vmem:[#allocation40_spill] sm:$0xff] }
 0x1ee   : > { %v5495_v36 = vadd.f32 %v2943_v2, %v6962_v31  ;;  %v5459_v12 = vpop.f32.mrb[2].mxu0  ;;  %vm7549_vm8 = vcmp.lt.s32.totalorder %v8520_v53, 16  ;;  %vm8523_vm13 = vcmp.ne.s32.totalorder %v7435_v7, 0  ;;  %vm8524_vm1 = vcmp.lt.s32.totalorder %v7435_v7, 0  ;;  %8529 = vst [vmem:[#allocation71_spill] sm:$0xff] %v7565_v13  ;;  %v8531_v53 = vld [vmem:[#allocation5_spill] sm:$0xff] }
 0x1ef   : > { %v3131_v31 = vadd.f32 %v5494_v6, %v7468_v20  ;;  %v5496_v2 = vadd.f32 %v5459_v12, %v6977_v22  ;;  %v2946_v19 = vpop.f32.mrb[3].mxu0  ;;  %vm7557_vm10 = vmand %vm8524_vm1, %vm8523_vm13  ;;  %v7562_v22 = vadd.s32 18, %v7435_v7  ;;  %vm8530_vm9 = vnez %v8356_v46  ;;  %v8532_v6 = vld [vmem:[#allocation2_spill] sm:$0xff] }
 0x1f0   : > { %v8526_v21 = vsel %vm7557_vm10, 4294967295, %v8525_v21  ;;  %v3129_v35 = vadd.f32 %v5495_v36, %v7468_v20  ;;  %v5497_v1 = vadd.f32 %v2946_v19, %v6993_v29  ;;  %v8533_v12 = vsel %vm8530_vm9, %v8531_v53, %v8532_v6  ;;  %v8541_v53 = vld [vmem:[#allocation8_spill] sm:$0xff]  ;;  %v8543_v6 = vld [vmem:[#allocation7_spill] sm:$0xff] }
 0x1f1   : > { %8527 = vst [vmem:[#allocation69_spill] sm:$0xff] %v8526_v21  ;;  %8528 = vst [vmem:[#allocation70_spill] sm:$0xff] %v7562_v22  ;;  %vm7579_vm13 = vcmp.lt.s32.totalorder %v8533_v12, 16  ;;  %vm8536_vm1 = vcmp.ne.s32.totalorder %v7444_v49, 0  ;;  %v8538_v8 = vmov 0  ;;  %v3775_v36 = vmul.u32 18, %v3774_v9 }
 0x1f2   : > { %v8535_v54 = vsel %vm7579_vm13, 4294967295, %v8534_v54  ;;  %vm7587_vm4 = vmand %vm8537_vm5, %vm8536_vm1  ;;  %v3753_v0 = vmul.u32 18, %v3752_v27  ;;  %v4945_v29 = vpack.c.bf16 %v3131_v31, %v3131_v31  ;;  %v4069_v46 = vsel %vm7365_vm6, %v3131_v31, 0.0  ;;  %v8544_v12 = vld [vmem:[#allocation3_spill] sm:$0xff]  ;;  %v8554_v31 = vld [vmem:[#allocation4_spill] sm:$0xff] }
 0x1f3   : > { %v8539_v8 = vsel %vm7587_vm4, 4294967295, %v8538_v8  ;;  %v3132_v19 = vadd.f32 %v5496_v2, %v7468_v20  ;;  %vm8542_vm9 = vnez %v8541_v53  ;;  %v4943_v9 = vpack.c.bf16 %v3129_v35, %v3129_v35  ;;  %v8559_v22 = vld [vmem:[#allocation39_spill] sm:$0xff]  ;;  %v8605_v21 = vld [vmem:[#allocation29_spill] sm:$0xff] }
 0x1f4   : > { %8540 = vst [vmem:[#allocation5_spill] sm:$0xff] %v8539_v8  ;;  %v8545_v14 = vsel %vm8542_vm9, %v8543_v6, %v8544_v12  ;;  %v4067_v25 = vsel %vm7395_vm11, %v3129_v35, 0.0  ;;  %vm8548_vm6 = vcmask 60416   ;;  %vm8549_vm5 = vcmask 64512   ;;  %v5462_v12 = vpop.f32.mrb[4].mxu0 }
 0x1f5   : > { %vm7599_vm13 = vcmp.lt.s32.totalorder %v8545_v14, 16  ;;  %3312 = vst.msk [vmem:[%s7570_s24 + $0x8] sm:$0xf] %vm8548_vm6, %v4945_v29  ;;  %v4946_v2 = vpack.c.bf16 %v3132_v19, %v3132_v19  ;;  %v4107_v6 = vsel %vm8549_vm5, %v4069_v46, 0.0  ;;  %vm8550_vm11 = vmmov %vm8548_vm6  ;;  %v3130_v29 = vadd.f32 %v5497_v1, %v7468_v20  ;;  %v8551_v14 = vld [vmem:[#allocation11_spill] sm:$0xff] }
 0x1f6   : > { %3310 = vst.msk [vmem:[%s7570_s24] sm:$0xf] %vm8550_vm11, %v4943_v9  ;;  %vm8552_vm1 = vnez %v8551_v14  ;;  %v7645_v35 = vsub.s32 %v7282_v37, %v3775_v36  ;;  %v7648_v53 = vsub.s32 %v7285_v16, %v3753_v0  ;;  %v4185_v7 = vmul.f32 %v4069_v46, %v4069_v46  ;;  %vm8558_vm11 = vmmov %vm8549_vm5 }
 0x1f7   : > { %v8555_v27 = vsel %vm8552_vm1, %v8553_v4, %v8554_v31  ;;  %v4183_v9 = vmul.f32 %v4067_v25, %v4067_v25  ;;  %3313 = vst.msk [vmem:[%s7570_s24 + $0xc] sm:$0xf] %vm8548_vm6, %v4946_v2  ;;  %v4070_v1 = vsel %vm7451_vm0, %v3132_v19, 0.0  ;;  %v5498_v31 = vadd.f32 %v5462_v12, %v7072_v63  ;;  %vm8560_vm0 = vmmov %vm8548_vm6  ;;  %v8562_v12 = vld [vmem:[#allocation14_spill] sm:$0xff] }
 0x1f8   : > { %vm7640_vm9 = vcmp.lt.s32.totalorder %v8555_v27, 16  ;;  %v2959_v27 = vpop.f32.mrb[5].mxu0  ;;  %v4104_v14 = vsel %vm8549_vm5, %v4067_v25, 0.0  ;;  %v4944_v4 = vpack.c.bf16 %v3130_v29, %v3130_v29  ;;  %v4068_v37 = vsel %vm7475_vm14, %v3130_v29, 0.0  ;;  %vm8569_vm6 = vmmov %vm8549_vm5 }
 0x1f9   : > { %v5499_v16 = vadd.f32 %v2959_v27, %v7089_v11  ;;  %v5463_v0 = vpop.f32.mrb[6].mxu0  ;;  %v4105_v36 = vsel %vm8558_vm11, %v4068_v37, 0.0  ;;  %v4184_v46 = vmul.f32 %v4068_v37, %v4068_v37  ;;  %v3135_v2 = vadd.f32 %v5498_v31, %v7468_v20  ;;  %v8564_v11 = vld [vmem:[#allocation12_spill] sm:$0xff]  ;;  %v8565_v27 = vld [vmem:[#allocation6_spill] sm:$0xff] }
 0x1fa   : > { %v5500_v52 = vadd.f32 %v5463_v0, %v8559_v22  ;;  %v2962_v19 = vpop.f32.mrb[7].mxu0  ;;  %v4186_v49 = vmul.f32 %v4070_v1, %v4070_v1  ;;  %3311 = vst.msk [vmem:[%s7570_s24 + $0x4] sm:$0xf] %vm8560_vm0, %v4944_v4  ;;  %v4106_v63 = vadd.f32 %v4105_v36, %v4104_v14  ;;  %vm8563_vm14 = vnez %v8562_v12  ;;  %v8572_v36 = vld [vmem:[#allocation10_spill] sm:$0xff]  ;;  %vm8576_vm0 = vmmov %vm8549_vm5 }
 0x1fb   : > { %v3133_v25 = vadd.f32 %v5499_v16, %v7468_v20  ;;  %v5501_v29 = vadd.f32 %v2962_v19, %v8561_v38  ;;  %v8566_v13 = vsel %vm8563_vm14, %v8564_v11, %v8565_v27  ;;  %v4219_v22 = vsel %vm8569_vm6, %v4183_v9, 0.0  ;;  %v8571_v16 = vld [vmem:[#allocation16_spill] sm:$0xff]  ;;  %vm8577_vm14 = vmmov %vm8576_vm0 }
 0x1fc   : > { %vm7671_vm1 = vcmp.lt.s32.totalorder %v8566_v13, 16  ;;  %v4220_v31 = vsel %vm8549_vm5, %v4184_v46, 0.0  ;;  %v4949_v0 = vpack.c.bf16 %v3135_v2, %v3135_v2  ;;  %v3136_v14 = vadd.f32 %v5500_v52, %v7468_v20 }
 0x1fd   : > { %v8573_v19 = vsel %vm6922_vm15, %v8571_v16, %v8572_v36  ;;  %v4222_v13 = vsel %vm8576_vm0, %v4185_v7, 0.0  ;;  %v4108_v12 = vadd.f32 %v4107_v6, %v4106_v63  ;;  %v4221_v11 = vadd.f32 %v4220_v31, %v4219_v22  ;;  %v8580_v16 = vld [vmem:[#allocation25_spill] sm:$0xff]  ;;  %v8582_v36 = vld [vmem:[#allocation20_spill] sm:$0xff]  ;;  %v5466_v31 = vpop.f32.mrb[8].mxu0 }
 0x1fe   : > { %vm7683_vm11 = vcmp.lt.s32.totalorder %v8573_v19, 16  ;;  %v4073_v9 = vsel %vm7549_vm8, %v3135_v2, 0.0  ;;  %v4109_v46 = vsel %vm8577_vm14, %v4070_v1, 0.0  ;;  %vm8578_vm6 = vcmask 60416   ;;  %v8583_v7 = vld [vmem:[#allocation13_spill] sm:$0xff]  ;;  %vm8587_vm8 = vmmov %vm8577_vm14 }
 0x1ff   : > { %3316 = vst.msk [vmem:[%s7570_s24 + $0x18] sm:$0xf] %vm8578_vm6, %v4949_v0  ;;  %v4947_v52 = vpack.c.bf16 %v3133_v25, %v3133_v25  ;;  %vm8579_vm15 = vnez %v8535_v54  ;;  %v4950_v4 = vpack.c.bf16 %v3136_v14, %v3136_v14  ;;  %vm8581_vm5 = vnez %v8580_v16  ;;  %vm8588_vm14 = vmmov %vm8587_vm8  ;;  %v2975_v16 = vpop.f32.mrb[9].mxu0 }
 0x200   : > { %v4071_v27 = vsel %vm8579_vm15, %v3133_v25, 0.0  ;;  %v8584_v6 = vsel %vm8581_vm5, %v8582_v36, %v8583_v7  ;;  %v4223_v10 = vadd.f32 %v4222_v13, %v4221_v11  ;;  %v4110_v2 = vadd.f32 %v4109_v46, %v4108_v12  ;;  %vm8589_vm15 = vmmov %vm8578_vm6  ;;  %v8590_v36 = vld [vmem:[#allocation26_spill] sm:$0xff]  ;;  %v8593_v12 = vld [vmem:[#allocation15_spill] sm:$0xff] }
 0x201   : > { %vm7700_vm0 = vcmp.lt.s32.totalorder %v8584_v6, 16  ;;  %v4111_v1 = vsel %vm8587_vm8, %v4071_v27, 0.0  ;;  %v4074_v22 = vsel %vm7599_vm13, %v3136_v14, 0.0  ;;  %v4224_v54 = vsel %vm8588_vm14, %v4186_v49, 0.0  ;;  %3314 = vst.msk [vmem:[%s7570_s24 + $0x10] sm:$0xf] %vm8578_vm6, %v4947_v52  ;;  %vm8599_vm13 = vmmov %vm8588_vm14 }
 0x202   : > { %v4189_v25 = vmul.f32 %v4073_v9, %v4073_v9  ;;  %v4187_v0 = vmul.f32 %v4071_v27, %v4071_v27  ;;  %3317 = vst.msk [vmem:[%s7570_s24 + $0x1c] sm:$0xf] %vm8589_vm15, %v4950_v4  ;;  %v3134_v19 = vadd.f32 %v5501_v29, %v7468_v20  ;;  %vm8591_vm5 = vnez %v8590_v36  ;;  %v8592_v13 = vld [vmem:[#allocation22_spill] sm:$0xff]  ;;  %v8597_v46 = vld [vmem:[#allocation45_spill] sm:$0xff]  ;;  %v5467_v4 = vpop.f32.mrb[10].mxu0  ;;  %vm8600_vm14 = vmmov %vm8599_vm13 }
 0x203   : > { %v8594_v11 = vsel %vm8591_vm5, %v8592_v13, %v8593_v12  ;;  %v4112_v49 = vadd.f32 %v4111_v1, %v4110_v2  ;;  %v4225_v14 = vadd.f32 %v4224_v54, %v4223_v10  ;;  %v5502_v52 = vadd.f32 %v5466_v31, %v8597_v46  ;;  %v8598_v27 = vld [vmem:[#allocation46_spill] sm:$0xff]  ;;  %v2978_v13 = vpop.f32.mrb[11].mxu0  ;;  %v8601_v31 = vld [vmem:[#allocation48_spill] sm:$0xff]  ;;  %v8603_v46 = vld [vmem:[#allocation27_spill] sm:$0xff] }
 0x204   : > { %vm7718_vm8 = vcmp.lt.s32.totalorder %v8594_v11, 16  ;;  %v5503_v7 = vadd.f32 %v2975_v16, %v8598_v27  ;;  %v4226_v29 = vsel %vm8599_vm13, %v4187_v0, 0.0  ;;  %v4190_v6 = vmul.f32 %v4074_v22, %v4074_v22  ;;  %v8602_v0 = vld [vmem:[#allocation50_spill] sm:$0xff]  ;;  %vm8610_vm5 = vmmov %vm8599_vm13 }
 0x205   : > { %v4948_v8 = vpack.c.bf16 %v3134_v19, %v3134_v19  ;;  %v4072_v36 = vsel %vm7640_vm9, %v3134_v19, 0.0  ;;  %v4227_v12 = vadd.f32 %v4226_v29, %v4225_v14  ;;  %v3139_v2 = vadd.f32 %v5502_v52, %v7468_v20  ;;  %v8606_v19 = vld [vmem:[#allocation17_spill] sm:$0xff]  ;;  %vm8611_vm13 = vmmov %vm8610_vm5  ;;  %v8613_v29 = vld [vmem:[#allocation28_spill] sm:$0xff] }
 0x206   : > { %v4113_v11 = vsel %vm8600_vm14, %v4072_v36, 0.0  ;;  %v4188_v34 = vmul.f32 %v4072_v36, %v4072_v36  ;;  %v3137_v1 = vadd.f32 %v5503_v7, %v7468_v20  ;;  %v5504_v54 = vadd.f32 %v5467_v4, %v8601_v31  ;;  %vm8612_vm14 = vmmov %vm8610_vm5  ;;  %v8615_v4 = vld [vmem:[#allocation30_spill] sm:$0xff] }
 0x207   : > { %3315 = vst.msk [vmem:[%s7570_s24 + $0x14] sm:$0xf] %vm8578_vm6, %v4948_v8  ;;  %v4114_v10 = vadd.f32 %v4113_v11, %v4112_v49  ;;  %v5505_v16 = vadd.f32 %v2978_v13, %v8602_v0  ;;  %vm8604_vm15 = vnez %v8603_v46  ;;  %v4115_v52 = vsel %vm8610_vm5, %v4073_v9, 0.0  ;;  %v8616_v36 = vld [vmem:[#allocation18_spill] sm:$0xff] }
 0x208   : > { %v8607_v14 = vsel %vm8604_vm15, %v8605_v21, %v8606_v19  ;;  %v4230_v8 = vsel %vm8611_vm13, %v4189_v25, 0.0  ;;  %v4228_v49 = vsel %vm8612_vm14, %v4188_v34, 0.0  ;;  %v4953_v7 = vpack.c.bf16 %v3139_v2, %v3139_v2  ;;  %vm8620_vm15 = vmmov %vm8610_vm5 }
 0x209   : > { %vm7739_vm9 = vcmp.lt.s32.totalorder %v8607_v14, 16  ;;  %vm8614_vm6 = vnez %v8613_v29  ;;  %v4117_v31 = vsel %vm8620_vm15, %v4074_v22, 0.0  ;;  %v4116_v0 = vadd.f32 %v4115_v52, %v4114_v10  ;;  %v5470_v14 = vpop.f32.mrb[12].mxu0  ;;  %vm8622_vm14 = vmmov %vm8611_vm13  ;;  %v8626_v52 = vld [vmem:[#allocation32_spill] sm:$0xff] }
 0x20a   : > { %v8617_v13 = vsel %vm8614_vm6, %v8615_v4, %v8616_v36  ;;  %v4229_v46 = vadd.f32 %v4228_v49, %v4227_v12  ;;  %v4077_v9 = vsel %vm7671_vm1, %v3139_v2, 0.0  ;;  %vm8621_vm5 = vcmask 60416   ;;  %v2991_v37 = vpop.f32.mrb[13].mxu0  ;;  %v8633_v36 = vld [vmem:[#allocation33_spill] sm:$0xff] }
 0x20b   : > { %vm7751_vm10 = vcmp.lt.s32.totalorder %v8617_v13, 16  ;;  %3320 = vst.msk [vmem:[%s7570_s24 + $0x28] sm:$0xf] %vm8621_vm5, %v4953_v7  ;;  %v4951_v34 = vpack.c.bf16 %v3137_v1, %v3137_v1  ;;  %v4075_v25 = vsel %vm7683_vm11, %v3137_v1, 0.0  ;;  %v3140_v21 = vadd.f32 %v5504_v54, %v7468_v20  ;;  %vm8623_vm1 = vmmov %vm8621_vm5  ;;  %v5471_v54 = vpop.f32.mrb[14].mxu0  ;;  %v8631_v7 = vld [vmem:[#allocation34_spill] sm:$0xff] }
 0x20c   : > { %v3138_v19 = vadd.f32 %v5505_v16, %v7468_v20  ;;  %v4232_v29 = vsel %vm8611_vm13, %v4190_v6, 0.0  ;;  %v4231_v4 = vadd.f32 %v4230_v8, %v4229_v46  ;;  %v4118_v22 = vadd.f32 %v4117_v31, %v4116_v0  ;;  %v8624_v16 = vld [vmem:[#allocation31_spill] sm:$0xff]  ;;  %v8634_v13 = vld [vmem:[#allocation21_spill] sm:$0xff] }
 0x20d   : > { %v4119_v12 = vsel %vm8622_vm14, %v4075_v25, 0.0  ;;  %3318 = vst.msk [vmem:[%s7570_s24 + $0x20] sm:$0xf] %vm8623_vm1, %v4951_v34  ;;  %v4191_v2 = vmul.f32 %v4075_v25, %v4075_v25  ;;  %v4954_v10 = vpack.c.bf16 %v3140_v21, %v3140_v21  ;;  %v4078_v38 = vsel %vm7700_vm0, %v3140_v21, 0.0  ;;  %v8627_v6 = vld [vmem:[#allocation19_spill] sm:$0xff]  ;;  %v2994_v25 = vpop.f32.mrb[15].mxu0  ;;  %vm8638_vm0 = vmmov %vm8611_vm13 }
 0x20e   : > { %v4952_v1 = vpack.c.bf16 %v3138_v19, %v3138_v19  ;;  %vm8625_vm11 = vnez %v8624_v16  ;;  %vm8632_vm15 = vnez %v8631_v7  ;;  %v4193_v63 = vmul.f32 %v4077_v9, %v4077_v9  ;;  %vm8639_vm13 = vmmov %vm8623_vm1 }
 0x20f   : > { %v8628_v8 = vsel %vm8625_vm11, %v8626_v52, %v8627_v6  ;;  %v8635_v31 = vsel %vm8632_vm15, %v8633_v36, %v8634_v13  ;;  %v4120_v46 = vadd.f32 %v4119_v12, %v4118_v22  ;;  %v4233_v34 = vadd.f32 %v4232_v29, %v4231_v4  ;;  %3321 = vst.msk [vmem:[%s7570_s24 + $0x2c] sm:$0xf] %vm8639_vm13, %v4954_v10  ;;  %vm8640_vm14 = vmmov %vm8623_vm1 }
 0x210   : > { %vm7775_vm6 = vcmp.lt.s32.totalorder %v8628_v8, 16  ;;  %vm7784_vm5 = vcmp.lt.s32.totalorder %v8635_v31, 16  ;;  %v7789_v21 = vadd.s32 18, %v7645_v35  ;;  %v4234_v16 = vsel %vm8638_vm0, %v4191_v2, 0.0  ;;  %3319 = vst.msk [vmem:[%s7570_s24 + $0x24] sm:$0xf] %vm8640_vm14, %v4952_v1  ;;  %vm8641_vm1 = vmmov %vm8638_vm0 }
 0x211   : > { %v4076_v52 = vsel %vm7718_vm8, %v3138_v19, 0.0  ;;  %v5506_v6 = vadd.f32 %v5470_v14, %v7239_v40  ;;  %v5507_v8 = vadd.f32 %v2991_v37, %v7247_v47  ;;  %v4235_v7 = vadd.f32 %v4234_v16, %v4233_v34  ;;  %v8642_v1 = vld [vmem:[#allocation36_spill] sm:$0xff]  ;;  %v8645_v19 = vld [vmem:[#allocation23_spill] sm:$0xff]  ;;  %vm8649_vm15 = vmmov %vm8638_vm0 }
 0x212   : > { %v4194_v22 = vmul.f32 %v4078_v38, %v4078_v38  ;;  %v4121_v29 = vsel %vm8641_vm1, %v4076_v52, 0.0  ;;  %v4192_v4 = vmul.f32 %v4076_v52, %v4076_v52  ;;  %v5508_v10 = vadd.f32 %v5471_v54, %v7257_v60  ;;  %vm8650_vm13 = vmmov %vm8638_vm0  ;;  %v5474_v52 = vpop.f32.mrb[16].mxu0 }
 0x213   : > { %v4122_v12 = vadd.f32 %v4121_v29, %v4120_v46  ;;  %v3143_v36 = vadd.f32 %v5506_v6, %v7468_v20  ;;  %v3141_v2 = vadd.f32 %v5507_v8, %v7468_v20  ;;  %vm8643_vm11 = vnez %v8642_v1  ;;  %v7817_v46 = vpop.f32.mrb[20].mxu1  ;;  %v8651_v8 = vld [vmem:[#allocation47_spill] sm:$0xff] }
 0x214   : > { %v8646_v13 = vsel %vm8643_vm11, %v8644_v23, %v8645_v19  ;;  %v4123_v47 = vsel %vm8649_vm15, %v4077_v9, 0.0  ;;  %v4238_v14 = vsel %vm8638_vm0, %v4193_v63, 0.0  ;;  %v4236_v37 = vsel %vm8650_vm13, %v4192_v4, 0.0  ;;  %v7821_v6 = vpop.f32.mrb[21].mxu1  ;;  %v8653_v9 = vld [vmem:[#allocation42_spill] sm:$0xff]  ;;  %v8654_v63 = vld [vmem:[#allocation37_spill] sm:$0xff]  ;;  %vm8658_vm11 = vmmov %vm8638_vm0 }
 0x215   : > { %vm7809_vm8 = vcmp.lt.s32.totalorder %v8646_v13, 16  ;;  %v5509_v31 = vadd.f32 %v2994_v25, %v7264_v61  ;;  %v4124_v60 = vadd.f32 %v4123_v47, %v4122_v12  ;;  %v4237_v54 = vadd.f32 %v4236_v37, %v4235_v7  ;;  %vm8659_vm15 = vmmov %vm8638_vm0  ;;  %v3007_v12 = vpop.f32.mrb[17].mxu0  ;;  %v8661_v37 = vld [vmem:[#allocation49_spill] sm:$0xff] }
 0x216   : > { %v4957_v34 = vpack.c.bf16 %v3143_v36, %v3143_v36  ;;  %v4081_v16 = vsel %vm7739_vm9, %v3143_v36, 0.0  ;;  %vm8652_vm14 = vnez %v8651_v8  ;;  %v4125_v61 = vsel %vm8658_vm11, %v4078_v38, 0.0  ;;  %v7836_v36 = vpop.f32.mrb[22].mxu1  ;;  %v5475_v47 = vpop.f32.mrb[18].mxu0  ;;  %v8663_v38 = vld [vmem:[#allocation43_spill] sm:$0xff]  ;;  %v8664_v8 = vld [vmem:[#allocation38_spill] sm:$0xff]  ;;  %vm8670_vm11 = vmmov %vm8638_vm0 }
 0x217   : > { %v8655_v29 = vsel %vm8652_vm14, %v8653_v9, %v8654_v63  ;;  %v4240_v25 = vsel %vm8659_vm15, %v4194_v22, 0.0  ;;  %v4955_v7 = vpack.c.bf16 %v3141_v2, %v3141_v2  ;;  %v4079_v27 = vsel %vm7751_vm10, %v3141_v2, 0.0  ;;  %v7850_v11 = vpop.f32.mrb[23].mxu1  ;;  %v3010_v63 = vpop.f32.mrb[19].mxu0 }
 0x218   : > { %vm7828_vm1 = vcmp.lt.s32.totalorder %v8655_v29, 16  ;;  %v4239_v1 = vadd.f32 %v4238_v14, %v4237_v54  ;;  %vm8660_vm9 = vcmask 60416   ;;  %v4126_v23 = vadd.f32 %v4125_v61, %v4124_v60  ;;  %v8669_v54 = vld [vmem:[#allocation56_spill] sm:$0xff]  ;;  %v7883_v0 = vpop.f32.mrb[24].mxu1 }
 0x219   : > { %3324 = vst.msk [vmem:[%s7570_s24 + $0x38] sm:$0xf] %vm8660_vm9, %v4957_v34  ;;  %v4127_v19 = vsel %vm8638_vm0, %v4079_v27, 0.0  ;;  %v4195_v13 = vmul.f32 %v4079_v27, %v4079_v27  ;;  %vm8662_vm13 = vnez %v8661_v37  ;;  %v4197_v2 = vmul.f32 %v4081_v16, %v4081_v16  ;;  %vm8668_vm10 = vmmov %vm8660_vm9  ;;  %v8671_v37 = vld [vmem:[#allocation57_spill] sm:$0xff] }
 0x21a   : > { %v8665_v22 = vsel %vm8662_vm13, %v8663_v38, %v8664_v8  ;;  %3322 = vst.msk [vmem:[%s7570_s24 + $0x30] sm:$0xf] %vm8668_vm10, %v4955_v7  ;;  %v3144_v14 = vadd.f32 %v5508_v10, %v7468_v20  ;;  %v3142_v60 = vadd.f32 %v5509_v31, %v7468_v20  ;;  %v5510_v34 = vadd.f32 %v5474_v52, %v8669_v54  ;;  %v8672_v8 = vld [vmem:[#allocation51_spill] sm:$0xff]  ;;  %vm8679_vm13 = vmmov %vm8638_vm0 }
 0x21b   : > { %vm7846_vm14 = vcmp.lt.s32.totalorder %v8665_v22, 16  ;;  %v4128_v29 = vadd.f32 %v4127_v19, %v4126_v23  ;;  %v4241_v61 = vadd.f32 %v4240_v25, %v4239_v1  ;;  %v4242_v27 = vsel %vm8670_vm11, %v4195_v13, 0.0  ;;  %v8674_v22 = vld [vmem:[#allocation44_spill] sm:$0xff]  ;;  %vm8680_vm11 = vmmov %vm8668_vm10 }
 0x21c   : > { %v5511_v38 = vadd.f32 %v3007_v12, %v8671_v37  ;;  %vm8673_vm15 = vnez %v8672_v8  ;;  %v4958_v31 = vpack.c.bf16 %v3144_v14, %v3144_v14  ;;  %v4082_v52 = vsel %vm7775_vm6, %v3144_v14, 0.0  ;;  %vm8681_vm6 = vmmov %vm8638_vm0  ;;  %v5478_v8 = vpop.f32.mrb[20].mxu0 }
 0x21d   : > { %v8676_v7 = vsel %vm8673_vm15, %v8674_v22, %v8675_v33  ;;  %v4956_v54 = vpack.c.bf16 %v3142_v60, %v3142_v60  ;;  %v4080_v25 = vsel %vm7784_vm5, %v3142_v60, 0.0  ;;  %v4131_v1 = vsel %vm8638_vm0, %v4081_v16, 0.0 }
 0x21e   : > { %vm7864_vm9 = vcmp.lt.s32.totalorder %v8676_v7, 16  ;;  %v4243_v12 = vadd.f32 %v4242_v27, %v4241_v61  ;;  %v4129_v23 = vsel %vm8679_vm13, %v4080_v25, 0.0  ;;  %v7875_v19 = vadd.s32 18, %v7648_v53  ;;  %3325 = vst.msk [vmem:[%s7570_s24 + $0x3c] sm:$0xf] %vm8668_vm10, %v4958_v31  ;;  %v8682_v61 = vld [vmem:[#allocation58_spill] sm:$0xff] }
 0x21f   : > { %3323 = vst.msk [vmem:[%s7570_s24 + $0x34] sm:$0xf] %vm8680_vm11, %v4956_v54  ;;  %v4130_v33 = vadd.f32 %v4129_v23, %v4128_v29  ;;  %v4196_v13 = vmul.f32 %v4080_v25, %v4080_v25  ;;  %v3147_v49 = vadd.f32 %v5510_v34, %v7468_v20  ;;  %v3145_v14 = vadd.f32 %v5511_v38, %v7468_v20  ;;  %v1727_v34 = vpop.f32.mrb[25].mxu1 }
 0x220   : > { %v4246_v16 = vsel %vm8681_vm6, %v4197_v2, 0.0  ;;  %v4198_v60 = vmul.f32 %v4082_v52, %v4082_v52  ;;  %v5512_v27 = vadd.f32 %v5475_v47, %v8682_v61  ;;  %v5513_v37 = vadd.f32 %v3010_v63, %v7358_v48  ;;  %v3023_v48 = vpop.f32.mrb[21].mxu0 }
 0x221   : > { %vm8683_vm5 = vnez %v8453_v45  ;;  %v4132_v38 = vadd.f32 %v4131_v1, %v4130_v33  ;;  %v4244_v2 = vsel %vm8638_vm0, %v4196_v13, 0.0  ;;  %v4961_v7 = vpack.c.bf16 %v3147_v49, %v3147_v49 }
 0x222   : > { %v8684_v29 = vsel %vm8683_vm5, %v7243_v17, %v7168_v5  ;;  %v4085_v47 = vsel %vm7809_vm8, %v3147_v49, 0.0  ;;  %vm8687_vm13 = vnez %v8458_v57  ;;  %v7909_v17 = vpop.f32.mrb[26].mxu1  ;;  %vm8691_vm5 = vmmov %vm8638_vm0  ;;  %v4245_v63 = vadd.f32 %v4244_v2, %v4243_v12  ;;  %v5479_v57 = vpop.f32.mrb[22].mxu0 }
 0x223   : > { %vm7893_vm15 = vcmp.lt.s32.totalorder %v8684_v29, 16  ;;  %v8688_v45 = vsel %vm8687_vm13, %v7251_v50, %v7182_v32  ;;  %v4133_v40 = vsel %vm8691_vm5, %v4082_v52, 0.0  ;;  %v4201_v31 = vmul.f32 %v4085_v47, %v4085_v47  ;;  %v7914_v25 = vpop.f32.mrb[27].mxu1  ;;  %vm8692_vm8 = vmmov %vm8680_vm11  ;;  %v3026_v33 = vpop.f32.mrb[23].mxu0 }
 0x224   : > { %vm7905_vm10 = vcmp.lt.s32.totalorder %v8688_v45, 16  ;;  %v4959_v54 = vpack.c.bf16 %v3145_v14, %v3145_v14  ;;  %3328 = vst.msk [vmem:[%s7570_s24 + $0x48] sm:$0xf] %vm8692_vm8, %v4961_v7  ;;  %v4083_v32 = vsel %vm7828_vm1, %v3145_v14, 0.0  ;;  %v4134_v50 = vadd.f32 %v4133_v40, %v4132_v38  ;;  %vm8697_vm1 = vmmov %vm8692_vm8  ;;  %v7958_v2 = vpop.f32.mrb[28].mxu1 }
 0x225   : > { %v3148_v1 = vadd.f32 %v5512_v27, %v7468_v20  ;;  %v3146_v23 = vadd.f32 %v5513_v37, %v7468_v20  ;;  %vm8693_vm0 = vnez %v8463_v42  ;;  %v4248_v4 = vsel %vm8691_vm5, %v4198_v60, 0.0  ;;  %vm8698_vm8 = vmmov %vm8691_vm5 }
 0x226   : > { %v8694_v52 = vsel %vm8693_vm0, %v7261_v55, %v7224_v18  ;;  %v4247_v13 = vadd.f32 %v4246_v16, %v4245_v63  ;;  %3326 = vst.msk [vmem:[%s7570_s24 + $0x40] sm:$0xf] %vm8697_vm1, %v4959_v54  ;;  %v4135_v49 = vsel %vm8698_vm8, %v4083_v32, 0.0  ;;  %v4199_v14 = vmul.f32 %v4083_v32, %v4083_v32  ;;  %vm8703_vm1 = vmmov %vm8691_vm5  ;;  %v5482_v63 = vpop.f32.mrb[24].mxu0 }
 0x227   : > { %vm7927_vm13 = vcmp.lt.s32.totalorder %v8694_v52, 16  ;;  %v4136_v61 = vadd.f32 %v4135_v49, %v4134_v50  ;;  %v4962_v42 = vpack.c.bf16 %v3148_v1, %v3148_v1  ;;  %v4086_v18 = vsel %vm7846_vm14, %v3148_v1, 0.0  ;;  %vm8704_vm8 = vmmov %vm8703_vm1  ;;  %v8713_v52 = vld [vmem:[#allocation59_spill] sm:$0xff] }
 0x228   : > { %v4960_v55 = vpack.c.bf16 %v3146_v23, %v3146_v23  ;;  %vm8699_vm0 = vnez %v8468_v51  ;;  %v4139_v16 = vsel %vm8691_vm5, %v4085_v47, 0.0  ;;  %v4254_v60 = vsel %vm8703_vm1, %v4201_v31, 0.0  ;;  %vm8705_vm14 = vmmov %vm8680_vm11  ;;  %v7961_v31 = vpop.f32.mrb[29].mxu1 }
 0x229   : > { %v8700_v27 = vsel %vm8699_vm0, %v7278_v58, %v7237_v44  ;;  %v4249_v29 = vadd.f32 %v4248_v4, %v4247_v13  ;;  %v4250_v38 = vsel %vm8704_vm8, %v4199_v14, 0.0  ;;  %3329 = vst.msk [vmem:[%s7570_s24 + $0x4c] sm:$0xf] %vm8680_vm11, %v4962_v42  ;;  %v4084_v51 = vsel %vm7864_vm9, %v3146_v23, 0.0  ;;  %vm8706_vm0 = vmmov %vm8703_vm1  ;;  %v8715_v4 = vld [vmem:[#allocation60_spill] sm:$0xff] }
 0x22a   : > { %vm7942_vm6 = vcmp.lt.s32.totalorder %v8700_v27, 16  ;;  %3327 = vst.msk [vmem:[%s7570_s24 + $0x44] sm:$0xf] %vm8705_vm14, %v4960_v55  ;;  %v5514_v44 = vadd.f32 %v5478_v8, %v7817_v46  ;;  %v5515_v58 = vadd.f32 %v3023_v48, %v7821_v6  ;;  %v5516_v9 = vadd.f32 %v5479_v57, %v7836_v36  ;;  %v3039_v6 = vpop.f32.mrb[25].mxu0  ;;  %v8708_v36 = vld [vmem:[#allocation53_spill] sm:$0xff]  ;;  %v7975_v57 = vpop.f32.mrb[30].mxu1  ;;  %vm8712_vm5 = vmmov %vm8706_vm0 }
 0x22b   : > { %v4251_v7 = vadd.f32 %v4250_v38, %v4249_v29  ;;  %v4202_v47 = vmul.f32 %v4086_v18, %v4086_v18  ;;  %v4137_v45 = vsel %vm8706_vm0, %v4084_v51, 0.0  ;;  %v4200_v40 = vmul.f32 %v4084_v51, %v4084_v51  ;;  %v8716_v13 = vld [vmem:[#allocation52_spill] sm:$0xff]  ;;  %v5483_v14 = vpop.f32.mrb[26].mxu0 }
 0x22c   : > { %v4138_v54 = vadd.f32 %v4137_v45, %v4136_v61  ;;  %v3151_v10 = vadd.f32 %v5514_v44, %v7468_v20  ;;  %v3149_v32 = vadd.f32 %v5515_v58, %v7468_v20  ;;  %v3152_v46 = vadd.f32 %v5516_v9, %v7468_v20  ;;  %v7989_v61 = vpop.f32.mrb[31].mxu1  ;;  %v3042_v55 = vpop.f32.mrb[27].mxu0  ;;  %v8731_v45 = vld [vmem:[#allocation62_spill] sm:$0xff] }
 0x22d   : > { %vm8707_vm9 = vnez %v8482_v43  ;;  %v4252_v50 = vsel %vm8712_vm5, %v4200_v40, 0.0  ;;  %v5517_v1 = vadd.f32 %v3026_v33, %v7850_v11  ;;  %v5518_v23 = vadd.f32 %v5482_v63, %v7883_v0  ;;  %vm8721_vm5 = vmmov %vm8706_vm0 }
 0x22e   : > { %v8709_v8 = vsel %vm8707_vm9, %v7385_v15, %v8708_v36  ;;  %vm8714_vm1 = vnez %v8713_v52  ;;  %v5519_v15 = vadd.f32 %v3039_v6, %v1727_v34  ;;  %v4140_v11 = vadd.f32 %v4139_v16, %v4138_v54  ;;  %vm8720_vm9 = vmmov %vm8706_vm0  ;;  %v8736_v54 = vld [vmem:[#allocation65_spill] sm:$0xff] }
 0x22f   : > { %vm7971_vm11 = vcmp.lt.s32.totalorder %v8709_v8, 16  ;;  %v8717_v43 = vsel %vm8714_vm1, %v8715_v4, %v8716_v13  ;;  %v4253_v0 = vadd.f32 %v4252_v50, %v4251_v7  ;;  %v4965_v33 = vpack.c.bf16 %v3151_v10, %v3151_v10  ;;  %v8034_v50 = vpop.f32.mrb[32].mxu1 }
 0x230   : > { %vm7985_vm8 = vcmp.lt.s32.totalorder %v8717_v43, 16  ;;  %v4089_v42 = vsel %vm7893_vm15, %v3151_v10, 0.0  ;;  %v4141_v27 = vsel %vm8720_vm9, %v4086_v18, 0.0  ;;  %v4256_v34 = vsel %vm8721_vm5, %v4202_v47, 0.0  ;;  %vm8727_vm15 = vmmov %vm8721_vm5  ;;  %v8729_v47 = vld [vmem:[#allocation61_spill] sm:$0xff]  ;;  %v8738_v10 = vld [vmem:[#allocation63_spill] sm:$0xff] }
 0x231   : > { %v4963_v29 = vpack.c.bf16 %v3149_v32, %v3149_v32  ;;  %v4087_v38 = vsel %vm7905_vm10, %v3149_v32, 0.0  ;;  %vm8722_vm1 = vcmp.ne.s32.totalorder %v7645_v35, 0  ;;  %vm8723_vm0 = vcmp.lt.s32.totalorder %v7645_v35, 0  ;;  %v8739_v32 = vld [vmem:[#allocation55_spill] sm:$0xff] }
 0x232   : > { %vm8003_vm14 = vmand %vm8723_vm0, %vm8722_vm1  ;;  %v4255_v51 = vadd.f32 %v4254_v60, %v4253_v0  ;;  %vm8726_vm4 = vcmask 60416   ;;  %v4142_v22 = vadd.f32 %v4141_v27, %v4140_v11  ;;  %v4143_v18 = vsel %vm8727_vm15, %v4087_v38, 0.0  ;;  %v8732_v60 = vld [vmem:[#allocation54_spill] sm:$0xff]  ;;  %v5486_v11 = vpop.f32.mrb[28].mxu0  ;;  %v8045_v0 = vpop.f32.mrb[33].mxu1 }
 0x233   : > { %3332 = vst.msk [vmem:[%s7570_s24 + $0x58] sm:$0xf] %vm8726_vm4, %v4965_v33  ;;  %v4203_v44 = vmul.f32 %v4087_v38, %v4087_v38  ;;  %v4205_v58 = vmul.f32 %v4089_v42, %v4089_v42  ;;  %vm8728_vm9 = vmmov %vm8726_vm4  ;;  %v4966_v5 = vpack.c.bf16 %v3152_v46, %v3152_v46  ;;  %v4090_v9 = vsel %vm7927_vm13, %v3152_v46, 0.0  ;;  %v3055_v38 = vpop.f32.mrb[29].mxu0 }
 0x234   : > { %3330 = vst.msk [vmem:[%s7570_s24 + $0x50] sm:$0xf] %vm8728_vm9, %v4963_v29  ;;  %v3150_v7 = vadd.f32 %v5517_v1, %v7468_v20  ;;  %vm8730_vm10 = vnez %v8729_v47  ;;  %vm8737_vm0 = vnez %v8736_v54  ;;  %v4144_v12 = vadd.f32 %v4143_v18, %v4142_v22  ;;  %vm8743_vm13 = vmmov %vm8727_vm15 }
 0x235   : > { %v8733_v40 = vsel %vm8730_vm10, %v8731_v45, %v8732_v60  ;;  %v8740_v6 = vsel %vm8737_vm0, %v8738_v10, %v8739_v32  ;;  %v4257_v46 = vadd.f32 %v4256_v34, %v4255_v51  ;;  %v4258_v8 = vsel %vm8743_vm13, %v4203_v44, 0.0  ;;  %vm8744_vm1 = vmmov %vm8728_vm9  ;;  %v8049_v51 = vpop.f32.mrb[34].mxu1 }
 0x236   : > { %vm8020_vm4 = vcmp.lt.s32.totalorder %v8733_v40, 16  ;;  %vm8029_vm5 = vcmp.lt.s32.totalorder %v8740_v6, 16  ;;  %v3958_v1 = vsel %vm8003_vm14, %v7789_v21, %v7645_v35  ;;  %3333 = vst.msk [vmem:[%s7570_s24 + $0x5c] sm:$0xf] %vm8744_vm1, %v4966_v5  ;;  %v4206_v52 = vmul.f32 %v4090_v9, %v4090_v9  ;;  %vm8745_vm15 = vmmov %vm8743_vm13 }
 0x237   : > { %v4964_v4 = vpack.c.bf16 %v3150_v7, %v3150_v7  ;;  %v4088_v13 = vsel %vm7942_vm6, %v3150_v7, 0.0  ;;  %v3155_v43 = vadd.f32 %v5518_v23, %v7468_v20  ;;  %v4259_v33 = vadd.f32 %v4258_v8, %v4257_v46  ;;  %vm8746_vm9 = vmmov %vm8743_vm13  ;;  %v8064_v7 = vpop.f32.mrb[35].mxu1  ;;  %v8770_v46 = vld [vmem:[#allocation64_spill] sm:$0xff] }
 0x238   : > { %v4145_v27 = vsel %vm8745_vm15, %v4088_v13, 0.0  ;;  %v4204_v34 = vmul.f32 %v4088_v13, %v4088_v13  ;;  %v3153_v29 = vadd.f32 %v5519_v15, %v7468_v20  ;;  %v4147_v22 = vsel %vm8746_vm9, %v4089_v42, 0.0  ;;  %vm8747_vm10 = vmmov %vm8746_vm9  ;;  %v5487_v15 = vpop.f32.mrb[30].mxu0 }
 0x239   : > { %v4262_v37 = vsel %vm8747_vm10, %v4205_v58, 0.0  ;;  %vm8748_vm6 = vmmov %vm8744_vm1  ;;  %v4146_v23 = vadd.f32 %v4145_v27, %v4144_v12  ;;  %v4969_v18 = vpack.c.bf16 %v3155_v43, %v3155_v43  ;;  %v8749_v44 = vsel %vm7491_vm2, %v7512_v39, %v7323_v30  ;;  %v3058_v26 = vpop.f32.mrb[31].mxu0  ;;  %v8769_v12 = vld [vmem:[#allocation68_spill] sm:$0xff] }
 0x23a   : > { %3331 = vst.msk [vmem:[%s7570_s24 + $0x54] sm:$0xf] %vm8748_vm6, %v4964_v4  ;;  %vm8060_vm0 = vcmp.lt.s32.totalorder %v8749_v44, 16  ;;  %vm8752_vm13 = vmmov %vm8746_vm9  ;;  %v4967_v45 = vpack.c.bf16 %v3153_v29, %v3153_v29  ;;  %v8755_v30 = vsel %vm7502_vm12, %v7526_v62, %v7356_v3  ;;  %v5520_v54 = vadd.f32 %v5483_v14, %v7909_v17 }
 0x23b   : > { %v4149_v42 = vsel %vm8752_vm13, %v4090_v9, 0.0  ;;  %vm8753_vm1 = vmmov %vm8746_vm9  ;;  %vm8074_vm2 = vcmp.lt.s32.totalorder %v8755_v30, 16  ;;  %v4148_v60 = vadd.f32 %v4147_v22, %v4146_v23  ;;  %v4091_v9 = vsel %vm7971_vm11, %v3153_v29, 0.0  ;;  %v8781_v30 = vld [vmem:[#allocation71_spill] sm:$0xff] }
 0x23c   : > { %v4264_v58 = vsel %vm8753_vm1, %v4206_v52, 0.0  ;;  %vm8754_vm15 = vmmov %vm8753_vm1  ;;  %v8759_v59 = vsel %vm7518_vm3, %v7529_v24, %v7388_v28  ;;  %v4093_v62 = vsel %vm7985_vm8, %v3155_v43, 0.0  ;;  %v4207_v48 = vmul.f32 %v4091_v9, %v4091_v9  ;;  %v5490_v43 = vpop.f32.mrb[32].mxu0 }
 0x23d   : > { %v4260_v47 = vsel %vm8754_vm15, %v4204_v34, 0.0  ;;  %vm8758_vm9 = vmmov %vm8748_vm6  ;;  %vm8088_vm12 = vcmp.lt.s32.totalorder %v8759_v59, 16  ;;  %v5521_v32 = vadd.f32 %v3042_v55, %v7914_v25  ;;  %vm8764_vm11 = vcmp.ne.s32.totalorder %v7648_v53, 0  ;;  %v3071_v27 = vpop.f32.mrb[33].mxu0 }
 0x23e   : > { %v4261_v40 = vadd.f32 %v4260_v47, %v4259_v33  ;;  %3336 = vst.msk [vmem:[%s7570_s24 + $0x68] sm:$0xf] %vm8758_vm9, %v4969_v18  ;;  %vm8762_vm10 = vmmov %vm8748_vm6  ;;  %vm8765_vm13 = vcmp.lt.s32.totalorder %v7648_v53, 0  ;;  %v4150_v24 = vadd.f32 %v4149_v42, %v4148_v60  ;;  %v3156_v17 = vadd.f32 %v5520_v54, %v7468_v20  ;;  %v8782_v60 = vld [vmem:[#allocation67_spill] sm:$0xff] }
 0x23f   : > { %3334 = vst.msk [vmem:[%s7570_s24 + $0x60] sm:$0xf] %vm8762_vm10, %v4967_v45  ;;  %vm8763_vm6 = vmmov %vm8753_vm1  ;;  %v5522_v49 = vadd.f32 %v5486_v11, %v7958_v2  ;;  %v3154_v6 = vadd.f32 %v5521_v32, %v7468_v20  ;;  %v5523_v25 = vadd.f32 %v3055_v38, %v7961_v31  ;;  %v5524_v55 = vadd.f32 %v5487_v15, %v7975_v57  ;;  %v8779_v45 = vld [vmem:[#allocation5_spill] sm:$0xff] }
 0x240   : > { %v4151_v10 = vsel %vm8763_vm6, %v4091_v9, 0.0  ;;  %vm8102_vm1 = vmand %vm8765_vm13, %vm8764_vm11  ;;  %v4263_v56 = vadd.f32 %v4262_v37, %v4261_v40  ;;  %v8771_v8 = vsel %vm7535_vm7, %v8769_v12, %v8770_v46  ;;  %v4970_v13 = vpack.c.bf16 %v3156_v17, %v3156_v17  ;;  %v5491_v37 = vpop.f32.mrb[34].mxu0 }
 0x241   : > { %vm8768_vm3 = vmmov %vm8763_vm6  ;;  %vm8117_vm8 = vcmp.lt.s32.totalorder %v8771_v8, 16  ;;  %v4152_v4 = vadd.f32 %v4151_v10, %v4150_v24  ;;  %v3956_v31 = vsel %vm8102_vm1, %v7875_v19, %v7648_v53  ;;  %v4209_v57 = vmul.f32 %v4093_v62, %v4093_v62  ;;  %v3074_v44 = vpop.f32.mrb[35].mxu0  ;;  %v8791_v24 = vld [vmem:[#allocation70_spill] sm:$0xff] }
 0x242   : > { %v4266_v14 = vsel %vm8768_vm3, %v4207_v48, 0.0  ;;  %v4265_v2 = vadd.f32 %v4264_v58, %v4263_v56  ;;  %v4094_v41 = vsel %vm8020_vm4, %v3156_v17, 0.0  ;;  %v4968_v11 = vpack.c.bf16 %v3154_v6, %v3154_v6  ;;  %vm8774_vm7 = vmmov %vm8758_vm9  ;;  %v8789_v56 = vld [vmem:[#allocation69_spill] sm:$0xff]  ;;  %v8792_v17 = vld [vmem:[#allocation66_spill] sm:$0xff] }
 0x243   : > { %v4092_v33 = vsel %vm8029_vm5, %v3154_v6, 0.0  ;;  %3337 = vst.msk [vmem:[%s7570_s24 + $0x6c] sm:$0xf] %vm8774_vm7, %v4970_v13  ;;  %vm8775_vm15 = vmmov %vm8768_vm3  ;;  %v3159_v22 = vadd.f32 %v5522_v49, %v7468_v20  ;;  %v3157_v18 = vadd.f32 %v5523_v25, %v7468_v20  ;;  %v3160_v36 = vadd.f32 %v5524_v55, %v7468_v20 }
 0x244   : > { %v4267_v34 = vadd.f32 %v4266_v14, %v4265_v2  ;;  %v4153_v29 = vsel %vm8775_vm15, %v4092_v33, 0.0  ;;  %v4208_v38 = vmul.f32 %v4092_v33, %v4092_v33  ;;  %vm8776_vm9 = vmmov %vm8768_vm3  ;;  %v4210_v15 = vmul.f32 %v4094_v41, %v4094_v41 }
 0x245   : > { %v4155_v23 = vsel %vm8776_vm9, %v4093_v62, 0.0  ;;  %vm8777_vm10 = vmmov %vm8774_vm7  ;;  %v4154_v63 = vadd.f32 %v4153_v29, %v4152_v4  ;;  %v4973_v58 = vpack.c.bf16 %v3159_v22, %v3159_v22  ;;  %v5525_v47 = vadd.f32 %v3058_v26, %v7989_v61 }
 0x246   : > { %3335 = vst.msk [vmem:[%s7570_s24 + $0x64] sm:$0xf] %vm8777_vm10, %v4968_v11  ;;  %vm8778_vm4 = vmmov %vm8768_vm3  ;;  %vm8780_vm5 = vnez %v8779_v45  ;;  %v4097_v10 = vsel %vm8060_vm0, %v3159_v22, 0.0  ;;  %v4971_v26 = vpack.c.bf16 %v3157_v18, %v3157_v18  ;;  %v4095_v48 = vsel %vm8074_vm2, %v3157_v18, 0.0 }
 0x247   : > { %v4268_v42 = vsel %vm8778_vm4, %v4208_v38, 0.0  ;;  %v8783_v40 = vsel %vm8780_vm5, %v8781_v30, %v8782_v60  ;;  %vm8786_vm11 = vmmov %vm8768_vm3  ;;  %v4156_v59 = vadd.f32 %v4155_v23, %v4154_v63  ;;  %v4974_v32 = vpack.c.bf16 %v3160_v36, %v3160_v36 }
 0x248   : > { %vm8145_vm6 = vcmp.lt.s32.totalorder %v8783_v40, 16  ;;  %v4270_v54 = vsel %vm8786_vm11, %v4209_v57, 0.0  ;;  %v4269_v62 = vadd.f32 %v4268_v42, %v4267_v34  ;;  %vm8787_vm13 = vmmov %vm8768_vm3  ;;  %v4098_v55 = vsel %vm8088_vm12, %v3160_v36, 0.0 }
 0x249   : > { %v4157_v61 = vsel %vm8787_vm13, %v4094_v41, 0.0  ;;  %vm8788_vm3 = vmmov %vm8774_vm7  ;;  %vm8790_vm7 = vnez %v8789_v56  ;;  %v4213_v12 = vmul.f32 %v4097_v10, %v4097_v10  ;;  %v4211_v46 = vmul.f32 %v4095_v48, %v4095_v48 }
 0x24a   : > { %3340 = vst.msk [vmem:[%s7570_s24 + $0x78] sm:$0xf] %vm8788_vm3, %v4973_v58  ;;  %v8793_v49 = vsel %vm8790_vm7, %v8791_v24, %v8792_v17  ;;  %v4271_v5 = vadd.f32 %v4270_v54, %v4269_v62  ;;  %v4158_v6 = vadd.f32 %v4157_v61, %v4156_v59  ;;  %vm8796_vm0 = vmmov %vm8778_vm4  ;;  %v3158_v8 = vadd.f32 %v5525_v47, %v7468_v20 }
 0x24b   : > { %vm8162_vm15 = vcmp.lt.s32.totalorder %v8793_v49, 16  ;;  %v4159_v25 = vsel %vm8796_vm0, %v4095_v48, 0.0  ;;  %vm8797_vm9 = vmmov %vm8796_vm0  ;;  %vm8180_vm4 = vcmp.lt.s32.totalorder %v3958_v1, 16  ;;  %v5526_v13 = vadd.f32 %v5490_v43, %v8034_v50 }
 0x24c   : > { %v4272_v39 = vsel %vm8797_vm9, %v4210_v15, 0.0  ;;  %vm8798_vm2 = vmmov %vm8788_vm3  ;;  %v4160_v3 = vadd.f32 %v4159_v25, %v4158_v6  ;;  %v5527_v57 = vadd.f32 %v3071_v27, %v8045_v0  ;;  %v4214_v11 = vmul.f32 %v4098_v55, %v4098_v55 }
 0x24d   : > { %3338 = vst.msk [vmem:[%s7570_s24 + $0x70] sm:$0xf] %vm8798_vm2, %v4971_v26  ;;  %vm8799_vm10 = vmmov %vm8798_vm2  ;;  %v4273_v2 = vadd.f32 %v4272_v39, %v4271_v5  ;;  %v4972_v33 = vpack.c.bf16 %v3158_v8, %v3158_v8  ;;  %v4096_v16 = vsel %vm8117_vm8, %v3158_v8, 0.0  ;;  %v3163_v1 = vadd.f32 %v5526_v13, %v7468_v20 }
 0x24e   : > { %3341 = vst.msk [vmem:[%s7570_s24 + $0x7c] sm:$0xf] %vm8799_vm10, %v4974_v32  ;;  %vm8802_vm12 = vmmov %vm8796_vm0  ;;  %v4212_v21 = vmul.f32 %v4096_v16, %v4096_v16  ;;  %v3161_v50 = vadd.f32 %v5527_v57, %v7468_v20  ;;  %v5528_v0 = vadd.f32 %v5491_v37, %v8049_v51  ;;  %v5529_v43 = vadd.f32 %v3074_v44, %v8064_v7 }
 0x24f   : > { %v4274_v41 = vsel %vm8802_vm12, %v4211_v46, 0.0  ;;  %vm8803_vm5 = vmmov %vm8796_vm0  ;;  %v4977_v38 = vpack.c.bf16 %v3163_v1, %v3163_v1  ;;  %vm8203_vm8 = vcmp.lt.s32.totalorder %v3956_v31, 16  ;;  %v4101_v15 = vsel %vm8162_vm15, %v3163_v1, 0.0 }
 0x250   : > { %v4275_v34 = vadd.f32 %v4274_v41, %v4273_v2  ;;  %v4161_v35 = vsel %vm8803_vm5, %v4096_v16, 0.0  ;;  %vm8804_vm14 = vmmov %vm8798_vm2  ;;  %v4975_v63 = vpack.c.bf16 %v3161_v50, %v3161_v50  ;;  %v4099_v28 = vsel %vm8145_vm6, %v3161_v50, 0.0 }
 0x251   : > { %3339 = vst.msk [vmem:[%s7570_s24 + $0x74] sm:$0xf] %vm8804_vm14, %v4972_v33  ;;  %v4162_v29 = vadd.f32 %v4161_v35, %v4160_v3  ;;  %vm8805_vm11 = vmmov %vm8796_vm0  ;;  %v3164_v53 = vadd.f32 %v5528_v0, %v7468_v20  ;;  %v3162_v19 = vadd.f32 %v5529_v43, %v7468_v20  ;;  %v4215_v42 = vmul.f32 %v4099_v28, %v4099_v28 }
 0x252   : > { %v4163_v27 = vsel %vm8805_vm11, %v4097_v10, 0.0  ;;  %vm8806_vm13 = vmmov %vm8796_vm0  ;;  %v4217_v9 = vmul.f32 %v4101_v15, %v4101_v15 }
 0x253   : > { %v4276_v52 = vsel %vm8806_vm13, %v4212_v21, 0.0  ;;  %vm8809_vm3 = vmmov %vm8796_vm0  ;;  %v4164_v7 = vadd.f32 %v4163_v27, %v4162_v29  ;;  %v4978_v58 = vpack.c.bf16 %v3164_v53, %v3164_v53  ;;  %v4976_v47 = vpack.c.bf16 %v3162_v19, %v3162_v19 }
 0x254   : > { %v4278_v23 = vsel %vm8809_vm3, %v4213_v12, 0.0  ;;  %vm8810_vm7 = vmmov %vm8796_vm0  ;;  %v4277_v37 = vadd.f32 %v4276_v52, %v4275_v34  ;;  %v4102_v20 = vsel %vm8180_vm4, %v3164_v53, 0.0  ;;  %v4100_v40 = vsel %vm8203_vm8, %v3162_v19, 0.0 }
 0x255   : > { %v4165_v51 = vsel %vm8810_vm7, %v4098_v55, 0.0  ;;  %vm8811_vm0 = vmmov %vm8798_vm2  ;;  %v4216_v62 = vmul.f32 %v4100_v40, %v4100_v40  ;;  %v4218_v26 = vmul.f32 %v4102_v20, %v4102_v20  ;;  %vm4181_vm8 = vcmask 57344  }
 0x256   : > { %3344 = vst.msk [vmem:[%s7570_s24 + $0x88] sm:$0xf] %vm8811_vm0, %v4977_v38  ;;  %vm8812_vm1 = vmmov %vm8809_vm3  ;;  %v4279_v18 = vadd.f32 %v4278_v23, %v4277_v37  ;;  %v4166_v36 = vadd.f32 %v4165_v51, %v4164_v7 }
 0x257   : > { %v4280_v31 = vsel %vm8812_vm1, %v4214_v11, 0.0  ;;  %vm8813_vm9 = vmmov %vm8812_vm1 }
 0x258   : > { %v4167_v44 = vsel %vm8813_vm9, %v4099_v28, 0.0  ;;  %vm8814_vm2 = vmmov %vm8811_vm0  ;;  %v4281_v30 = vadd.f32 %v4280_v31, %v4279_v18 }
 0x259   : > { %3342 = vst.msk [vmem:[%s7570_s24 + $0x80] sm:$0xf] %vm8814_vm2, %v4975_v63  ;;  %v4168_v45 = vadd.f32 %v4167_v44, %v4166_v36  ;;  %vm8815_vm6 = vmmov %vm8812_vm1 }
 0x25a   : > { %v4282_v60 = vsel %vm8815_vm6, %v4215_v42, 0.0  ;;  %vm8816_vm10 = vmmov %vm8811_vm0 }
 0x25b   : > { %3345 = vst.msk [vmem:[%s7570_s24 + $0x8c] sm:$0xf] %vm8816_vm10, %v4978_v58  ;;  %vm8817_vm12 = vmmov %vm8811_vm0  ;;  %v4283_v54 = vadd.f32 %v4282_v60, %v4281_v30 }
 0x25c   : > { %3343 = vst.msk [vmem:[%s7570_s24 + $0x84] sm:$0xf] %vm8817_vm12, %v4976_v47  ;;  %vm8818_vm15 = vmmov %vm8812_vm1 }
 0x25d   : > { %v4169_v59 = vsel %vm8818_vm15, %v4100_v40, 0.0  ;;  %vm8819_vm5 = vmmov %vm8812_vm1 }
 0x25e   : > { %v4170_v10 = vadd.f32 %v4169_v59, %v4168_v45  ;;  %v4171_v61 = vsel %vm8819_vm5, %v4101_v15, 0.0  ;;  %vm8820_vm14 = vmmov %vm8812_vm1 }
 0x25f   : > { %v4284_v48 = vsel %vm8820_vm14, %v4216_v62, 0.0  ;;  %vm8821_vm4 = vmmov %vm8812_vm1 }
 0x260   : > { %v4172_v32 = vadd.f32 %v4171_v61, %v4170_v10  ;;  %v4285_v56 = vadd.f32 %v4284_v48, %v4283_v54  ;;  %v4286_v24 = vsel %vm8821_vm4, %v4217_v9, 0.0  ;;  %vm8822_vm11 = vmmov %vm8812_vm1 }
 0x261   : > { %v4173_v17 = vsel %vm8822_vm11, %v4102_v20, 0.0  ;;  %vm8823_vm13 = vmmov %vm8812_vm1 }
 0x262   : > { %v4174_v49 = vadd.f32 %v4173_v17, %v4172_v32  ;;  %v4287_v14 = vadd.f32 %v4286_v24, %v4285_v56  ;;  %v4288_v5 = vsel %vm8823_vm13, %v4218_v26, 0.0 }
 0x264   : > { %v4175_v6 = vrot.slane %v4174_v49, 4  ;;  %v4289_v25 = vadd.f32 %v4288_v5, %v4287_v14 }
 0x266   : > { %v4176_v55 = vadd.f32 %v4175_v6, %v4174_v49  ;;  %v4290_v39 = vrot.slane %v4289_v25, 4 }
 0x268   : > { %v4177_v12 = vrot.slane %v4176_v55, 2  ;;  %v4291_v46 = vadd.f32 %v4290_v39, %v4289_v25 }
 0x26a   : > { %v4178_v8 = vadd.f32 %v4177_v12, %v4176_v55  ;;  %v4292_v4 = vrot.slane %v4291_v46, 2 }
 0x26c   : > { %v4179_v3 = vrot.slane %v4178_v8, 1  ;;  %v4293_v2 = vadd.f32 %v4292_v4, %v4291_v46 }
 0x26e   : > { %v4180_v13 = vadd.f32 %v4179_v3, %v4178_v8  ;;  %v4294_v57 = vrot.slane %v4293_v2, 1 }
 0x270   : > { %4182 = vst.msk [vmem:[%s235_s28] sm:$0x1] %vm4181_vm8, %v4180_v13  ;;  %v4295_v41 = vadd.f32 %v4294_v57, %v4293_v2 }
 0x272   : > { %4296 = vst.msk [vmem:[%s235_s28 + $0x1] sm:$0x1] %vm4181_vm8, %v4295_v41 }
 0x273 PF: > { %s15_s17 = sadd.s32 1, %s5903_s17   ;;  %s8824_s15 = smov %s5899_s16 }
 0x274   : > { %p12_p5 = scmp.ge.s32.totalorder %s15_s17, 4   ;;  %s8825_s16 = smov %s8827_s18 }
 0x276   :  { %14 = sbr.rel (!%p12_p5) target bundleno = 2 (0x2), region = 91 }

// kernel: conv_autoencoder_forward.16
= control target key start
LH: loop header
LB: loop body
LE: loop exit
PB: predicated region body
PF: predicated region fallthrough
CT: control target
= control target key end

     0   :  { %s433_s12 = smov 0   ;;  %s492_s0 = inlined_call_operand.vmem [shape: bf16[2,80,8], index: 0, kind: input, shape index: {}]   ;;  %s493_s1 = inlined_call_operand.vmem [shape: f32[1,8], index: 1, kind: input, shape index: {}]   ;;  %s494_s2 = inlined_call_operand.vmem [shape: f32[1,8], index: 2, kind: input, shape index: {}]   ;;  %s495_s3 = inlined_call_operand.vmem [shape: bf16[2,80,8], index: 3, kind: output, shape index: {}]  }
   0x1 LB: > { %s341_s13 = sadd.s32 4294967295, %s411_s12   ;;  %p345_p0 = scmp.ge.s32.totalorder %s411_s12, 1  ;;  %s411_s12 = sphi %s433_s12, %s13_s12  }
   0x2   : > { %p137_p1 = scmp.lt.s32.totalorder %s411_s12, 3 }
   0x4   : > { %p138_p2 = pnand %p345_p0, %p137_p1 }
   0x5   : > { %p161_p3 = scmp.lt.s32.totalorder (!%p138_p2), %s341_s13, 1  ;;  %v348_v0 = vld [vmem:[%s493_s1] ss:$0 sm:$0xff] (!%p138_p2)  ;;  %vm275_vm0 = vcmask (!%p138_p2), 60416  }
   0x6   : > { %141 = sbr.rel (%p138_p2) target bundleno = 39 (0x27), region = 32  ;;  %v349_v9 = vld [vmem:[%s494_s2] ss:$0 sm:$0xff] (!%p138_p2) }
   0xd   : > { %s497_s13 = smov (!%p161_p3, %s341_s13), 1 }
   0xe   : > { %s396_s14 = smul.u32 40, %s497_s13 }
  0x10   : > { %s449_s17 = scalar_lea.vmem %s492_s0, %s396_s14  ;;  %s466_s24 = scalar_lea.vmem %s495_s3, %s396_s14 }
  0x11   : > { %v373_v1 = vld [vmem:[%s449_s17] sm:$0xff]   ;;  %v392_v2 = vld [vmem:[%s449_s17 + $0x8] sm:$0xff]   ;;  %v393_v3 = vld [vmem:[%s449_s17 + $0x10] sm:$0xff]  }
  0x12   : > { %v374_v4 = vunpack.c.l.bf16 %v373_v1  ;;  %v375_v5 = vunpack.c.h.bf16 %v373_v1  ;;  %v378_v6 = vunpack.c.l.bf16 %v392_v2  ;;  %v379_v7 = vunpack.c.h.bf16 %v392_v2  ;;  %v394_v8 = vld [vmem:[%s449_s17 + $0x18] sm:$0xff]   ;;  %v395_v38 = vld [vmem:[%s449_s17 + $0x20] sm:$0xff]  }
  0x13   : > { %v382_v10 = vunpack.c.l.bf16 %v393_v3  ;;  %v383_v11 = vunpack.c.h.bf16 %v393_v3  ;;  %v386_v12 = vunpack.c.l.bf16 %v394_v8  ;;  %v387_v13 = vunpack.c.h.bf16 %v394_v8 }
  0x14   : > { %v198_v14 = vmul.f32 %v374_v4, %v348_v0  ;;  %v199_v15 = vmul.f32 %v375_v5, %v348_v0  ;;  %v200_v16 = vmul.f32 %v378_v6, %v348_v0  ;;  %v201_v17 = vmul.f32 %v379_v7, %v348_v0 }
  0x15   : > { %v202_v18 = vmul.f32 %v382_v10, %v348_v0  ;;  %v203_v19 = vmul.f32 %v383_v11, %v348_v0  ;;  %v204_v20 = vmul.f32 %v386_v12, %v348_v0  ;;  %v205_v21 = vmul.f32 %v387_v13, %v348_v0 }
  0x16   : > { %v215_v22 = vadd.f32 %v349_v9, %v198_v14  ;;  %v216_v23 = vadd.f32 %v349_v9, %v199_v15  ;;  %v217_v24 = vadd.f32 %v349_v9, %v200_v16  ;;  %v218_v25 = vadd.f32 %v349_v9, %v201_v17 }
  0x17   : > { %v219_v26 = vadd.f32 %v349_v9, %v202_v18  ;;  %v220_v27 = vadd.f32 %v349_v9, %v203_v19  ;;  %v221_v28 = vadd.f32 %v349_v9, %v204_v20  ;;  %v222_v29 = vadd.f32 %v349_v9, %v205_v21 }
  0x18   : > { %v225_v30 = vmax.f32 %v215_v22, 0.0  ;;  %v226_v31 = vmax.f32 %v216_v23, 0.0  ;;  %v227_v32 = vmax.f32 %v217_v24, 0.0  ;;  %v228_v33 = vmax.f32 %v218_v25, 0.0 }
  0x19   : > { %v229_v34 = vmax.f32 %v219_v26, 0.0  ;;  %v230_v35 = vmax.f32 %v220_v27, 0.0  ;;  %v231_v36 = vmax.f32 %v221_v28, 0.0  ;;  %v232_v37 = vmax.f32 %v222_v29, 0.0 }
  0x1a   : > { %v362_v39 = vpack.c.bf16 %v225_v30, %v225_v30  ;;  %v363_v40 = vpack.c.bf16 %v226_v31, %v226_v31  ;;  %v364_v41 = vpack.c.bf16 %v227_v32, %v227_v32  ;;  %v365_v42 = vpack.c.bf16 %v228_v33, %v228_v33 }
  0x1b   : > { %v366_v43 = vpack.c.bf16 %v229_v34, %v229_v34  ;;  %v367_v44 = vpack.c.bf16 %v230_v35, %v230_v35  ;;  %v368_v45 = vpack.c.bf16 %v231_v36, %v231_v36  ;;  %v369_v46 = vpack.c.bf16 %v232_v37, %v232_v37 }
  0x1c   : > { %276 = vst.msk [vmem:[%s466_s24] sm:$0xf] %vm275_vm0, %v362_v39  ;;  %277 = vst.msk [vmem:[%s466_s24 + $0x4] sm:$0xf] %vm275_vm0, %v363_v40  ;;  %v390_v47 = vunpack.c.l.bf16 %v395_v38  ;;  %v391_v48 = vunpack.c.h.bf16 %v395_v38 }
  0x1d   : > { %278 = vst.msk [vmem:[%s466_s24 + $0x8] sm:$0xf] %vm275_vm0, %v364_v41  ;;  %279 = vst.msk [vmem:[%s466_s24 + $0xc] sm:$0xf] %vm275_vm0, %v365_v42 }
  0x1e   : > { %280 = vst.msk [vmem:[%s466_s24 + $0x10] sm:$0xf] %vm275_vm0, %v366_v43  ;;  %281 = vst.msk [vmem:[%s466_s24 + $0x14] sm:$0xf] %vm275_vm0, %v367_v44  ;;  %v206_v49 = vmul.f32 %v390_v47, %v348_v0  ;;  %v207_v50 = vmul.f32 %v391_v48, %v348_v0 }
  0x1f   : > { %282 = vst.msk [vmem:[%s466_s24 + $0x18] sm:$0xf] %vm275_vm0, %v368_v45  ;;  %283 = vst.msk [vmem:[%s466_s24 + $0x1c] sm:$0xf] %vm275_vm0, %v369_v46 }
  0x20   : > { %v223_v51 = vadd.f32 %v349_v9, %v206_v49  ;;  %v224_v52 = vadd.f32 %v349_v9, %v207_v50 }
  0x22   : > { %v233_v53 = vmax.f32 %v223_v51, 0.0  ;;  %v234_v54 = vmax.f32 %v224_v52, 0.0 }
  0x24   : > { %v370_v55 = vpack.c.bf16 %v233_v53, %v233_v53  ;;  %v371_v56 = vpack.c.bf16 %v234_v54, %v234_v54 }
  0x26   : > { %284 = vst.msk [vmem:[%s466_s24 + $0x20] sm:$0xf] %vm275_vm0, %v370_v55  ;;  %285 = vst.msk [vmem:[%s466_s24 + $0x24] sm:$0xf] %vm275_vm0, %v371_v56 }
  0x27 PF: > { %s13_s12 = sadd.s32 1, %s411_s12  }
  0x28   : > { %p10_p4 = scmp.ge.s32.totalorder %s13_s12, 4  }
  0x2a   :  { %12 = sbr.rel (!%p10_p4) target bundleno = 1 (0x1), region = 62 }

// kernel: conv_autoencoder_forward.15
= control target key start
LH: loop header
LB: loop body
LE: loop exit
PB: predicated region body
PF: predicated region fallthrough
CT: control target
= control target key end

     0   :  { %s2361_s15 = smov 0   ;;  %s2363_s16 = smov 0   ;;  %s2994_s0 = inlined_call_operand.vmem [shape: f32[2,110,16], index: 0, kind: input, shape index: {}]   ;;  %s2995_s1 = inlined_call_operand.vmem [shape: bf16[9,16,8], index: 1, kind: input, shape index: {}]   ;;  %s2996_s2 = inlined_call_operand.vmem [shape: f32[1,8], index: 2, kind: input, shape index: {}]   ;;  %s2997_s3 = inlined_call_operand.vmem [shape: bf16[2,80,8], index: 3, kind: output, shape index: {0}]   ;;  %s2998_s4 = inlined_call_operand.vmem [shape: f32[2,2,8], index: 4, kind: output, shape index: {1}]  }
   0x1   :  { %s2365_s17 = smov 0  }
   0x2 LB: > { %s27_s18 = sadd.s32 1, %s2328_s16  ;;  %p1822_p0 = scmp.ge.s32.totalorder %s2332_s17, 1  ;;  %s2332_s17 = sphi %s2365_s17, %s15_s17   ;;  %s2328_s16 = sphi %s2363_s16, %s3032_s16   ;;  %s2324_s15 = sphi %s2361_s15, %s3031_s15  }
   0x3   : > { %p29_p1 = scmp.ge.s32.totalorder %s27_s18, 2  ;;  %p181_p2 = scmp.lt.s32.totalorder %s2332_s17, 3 }
   0x5   : > { %s3034_s18 = smov (%p29_p1, %s27_s18), 0  ;;  %p182_p3 = pnand %p1822_p0, %p181_p2 }
   0x6   : > { %v2301_v0 = vld [vmem:[%s2995_s1 + $0x8] sm:$0xff] (!%p182_p3)   ;;  %v2334_v1 = vmov (!%p182_p3), 0.0   ;;  %p216_p4 = scmp.lt.s32.totalorder (!%p182_p3), %s2324_s15, 1  ;;  %vm2335_vm0 = vmmov (!%p182_p3), 0   ;;  %v2302_v2 = vld [vmem:[%s2995_s1 + $0x10] sm:$0xff] (!%p182_p3)   ;;  %vm283_vm1 = vcmask (!%p182_p3), 130048  }
   0x7   : > { %185 = sbr.rel (%p182_p3) target bundleno = 434 (0x1b2), region = 32  ;;  %2053 = vmatprep.subr.bf16.mxu0 (!%p182_p3), %v2334_v1  ;;  %2251 = vmatprep.subr.bf16.mxu1 (!%p182_p3), %v2334_v1  ;;  %v2303_v8 = vld [vmem:[%s2995_s1] sm:$0xff] (!%p182_p3)   ;;  %v2304_v22 = vld [vmem:[%s2995_s1 + $0x18] sm:$0xff] (!%p182_p3)   ;;  %v2306_v52 = vld [vmem:[%s2995_s1 + $0x28] sm:$0xff] (!%p182_p3)  }
   0x8   : > { %2054 = vmatpush3.bf16.msra.mxu0 (!%p182_p3), %v2301_v0  ;;  %2252 = vmatpush3.bf16.msra.mxu1 (!%p182_p3), %v2301_v0  ;;  %v2305_v29 = vld [vmem:[%s2995_s1 + $0x20] sm:$0xff] (!%p182_p3)   ;;  %v2307_v57 = vld [vmem:[%s2995_s1 + $0x30] sm:$0xff] (!%p182_p3)  }
   0x9   : > { %2055 = vmatprep.mubr.msk.bf16.mxu0 (!%p182_p3), %vm2335_vm0, %v2334_v1  ;;  %2067 = vmatprep.mubr.msk.bf16.mxu1 (!%p182_p3), %vm2335_vm0, %v2334_v1 }
   0xa   : > { %2097 = vmatprep.subr.bf16.mxu0 (!%p182_p3), %v2334_v1  ;;  %2075 = vmatprep.subr.bf16.mxu1 (!%p182_p3), %v2334_v1 }
   0xe   : > { %s3036_s15 = smov (!%p216_p4, %s2324_s15), 1 }
   0xf   : > { %s2253_s21 = smul.u32 112, %s3036_s15  ;;  %s1825_s25 = sshll.u32 %s3036_s15, 1 }
  0x10   : > { %s235_s28 = scalar_lea.vmem %s2998_s4, %s1825_s25 }
  0x11   : > { %s2396_s24 = scalar_lea.vmem %s2994_s0, %s2253_s21  ;;  %s2254_s21 = smul.u32 40, %s3036_s15 }
  0x12   : > { %v1826_v3 = vld [vmem:[%s2396_s24 + $0x1] sm:$0xff]  ;;  %v1827_v4 = vld [vmem:[%s2396_s24 + $0x9] sm:$0xff]  ;;  %v1832_v5 = vld [vmem:[%s2396_s24 + $0x31] sm:$0xff] }
  0x13   : > { %v269_v6 = vpack.c.bf16 %v1827_v4, %v1826_v3  ;;  %v1833_v7 = vld [vmem:[%s2396_s24 + $0x39] sm:$0xff]  ;;  %v1828_v10 = vld [vmem:[%s2396_s24 + $0x11] sm:$0xff]  ;;  %v1834_v12 = vld [vmem:[%s2396_s24 + $0x41] sm:$0xff] }
  0x14   : > { %v272_v9 = vpack.c.bf16 %v1833_v7, %v1832_v5  ;;  %v1829_v11 = vld [vmem:[%s2396_s24 + $0x19] sm:$0xff]  ;;  %v1835_v13 = vld [vmem:[%s2396_s24 + $0x49] sm:$0xff]  ;;  %v1830_v16 = vld [vmem:[%s2396_s24 + $0x21] sm:$0xff] }
  0x15   : > { %2056 = vmatmul.mubr.msk.bf16.vlgmr.msra.gmra.mrb[0].mxu0 %vm283_vm1, %v269_v6  ;;  %v270_v14 = vpack.c.bf16 %v1829_v11, %v1828_v10  ;;  %v273_v15 = vpack.c.bf16 %v1835_v13, %v1834_v12  ;;  %v1831_v17 = vld [vmem:[%s2396_s24 + $0x29] sm:$0xff]  ;;  %v240_v18 = vld [vmem:[%s2396_s24] sm:$0xff]  ;;  %v243_v26 = vld [vmem:[%s2396_s24 + $0x18] sm:$0xff] }
  0x16   : > { %2068 = vmatmul.mubr.msk.bf16.vlgmr.msra.gmra.mrb[0].mxu1 %vm283_vm1, %v272_v9  ;;  %2098 = vmatpush3.bf16.msra.mxu0 %v2302_v2  ;;  %v241_v19 = vld [vmem:[%s2396_s24 + $0x8] sm:$0xff]  ;;  %v271_v20 = vpack.c.bf16 %v1831_v17, %v1830_v16  ;;  %v242_v25 = vld [vmem:[%s2396_s24 + $0x10] sm:$0xff]  ;;  %v1853_v31 = vld [vmem:[%s2396_s24 + $0x1a] sm:$0xff] }
  0x17   : > { %2076 = vmatpush3.bf16.msra.mxu1 %v2303_v8  ;;  %2059 = vmatprep.mubr.msk.bf16.mxu0 %vm2335_vm0, %v2334_v1  ;;  %v250_v21 = vpack.c.bf16 %v241_v19, %v240_v18  ;;  %v1850_v23 = vld [vmem:[%s2396_s24 + $0x2] sm:$0xff]  ;;  %v1851_v24 = vld [vmem:[%s2396_s24 + $0xa] sm:$0xff]  ;;  %v251_v28 = vpack.c.bf16 %v243_v26, %v242_v25  ;;  %v1852_v30 = vld [vmem:[%s2396_s24 + $0x12] sm:$0xff] }
  0x18   : > { %2071 = vmatprep.mubr.msk.bf16.mxu1 %vm2335_vm0, %v2334_v1  ;;  %2119 = vmatprep.subr.bf16.mxu1 %v2334_v1  ;;  %v478_v27 = vpack.c.bf16 %v1851_v24, %v1850_v23  ;;  %v244_v32 = vld [vmem:[%s2396_s24 + $0x20] sm:$0xff]  ;;  %v245_v33 = vld [vmem:[%s2396_s24 + $0x28] sm:$0xff]  ;;  %v479_v34 = vpack.c.bf16 %v1853_v31, %v1852_v30  ;;  %v246_v38 = vld [vmem:[%s2396_s24 + $0x30] sm:$0xff]  ;;  %v602_v51 = vpack.c.bf16 %v1852_v30, %v1851_v24 }
  0x19   : > { %2141 = vmatprep.subr.bf16.mxu0 %v2334_v1  ;;  %v252_v35 = vpack.c.bf16 %v245_v33, %v244_v32  ;;  %v1854_v36 = vld [vmem:[%s2396_s24 + $0x22] sm:$0xff]  ;;  %v1855_v37 = vld [vmem:[%s2396_s24 + $0x2a] sm:$0xff]  ;;  %v247_v39 = vld [vmem:[%s2396_s24 + $0x38] sm:$0xff] }
  0x1a   : > { %v480_v40 = vpack.c.bf16 %v1855_v37, %v1854_v36  ;;  %v253_v41 = vpack.c.bf16 %v247_v39, %v246_v38  ;;  %v1856_v42 = vld [vmem:[%s2396_s24 + $0x32] sm:$0xff]  ;;  %v1857_v43 = vld [vmem:[%s2396_s24 + $0x3a] sm:$0xff]  ;;  %v249_v45 = vld [vmem:[%s2396_s24 + $0x48] sm:$0xff]  ;;  %v603_v56 = vpack.c.bf16 %v1854_v36, %v1853_v31 }
  0x1b   : > { %v248_v44 = vld [vmem:[%s2396_s24 + $0x40] sm:$0xff]  ;;  %v481_v46 = vpack.c.bf16 %v1857_v43, %v1856_v42  ;;  %v1859_v49 = vld [vmem:[%s2396_s24 + $0x4a] sm:$0xff]  ;;  %v1887_v54 = vld [vmem:[%s2396_s24 + $0x13] sm:$0xff]  ;;  %v604_v61 = vpack.c.bf16 %v1856_v42, %v1855_v37 }
  0x1c   : > { %v254_v47 = vpack.c.bf16 %v249_v45, %v248_v44  ;;  %v1858_v48 = vld [vmem:[%s2396_s24 + $0x42] sm:$0xff]  ;;  %v1886_v53 = vld [vmem:[%s2396_s24 + $0xb] sm:$0xff]  ;;  %v1891_v63 = vld [vmem:[%s2396_s24 + $0x33] sm:$0xff] }
  0x1d   : > { %2060 = vmatmul.mubr.msk.bf16.gmra.mrb[4].mxu0 %vm283_vm1, %v270_v14  ;;  %v482_v50 = vpack.c.bf16 %v1859_v49, %v1858_v48  ;;  %v726_v55 = vpack.c.bf16 %v1887_v54, %v1886_v53  ;;  %v1888_v58 = vld [vmem:[%s2396_s24 + $0x1b] sm:$0xff]  ;;  %v1889_v59 = vld [vmem:[%s2396_s24 + $0x23] sm:$0xff]  ;;  %v1890_v62 = vld [vmem:[%s2396_s24 + $0x2b] sm:$0xff]  ;;  %v605_v2 = vpack.c.bf16 %v1858_v48, %v1857_v43 }
  0x1e   : > { %2072 = vmatmul.mubr.msk.bf16.gmra.mrb[4].mxu1 %vm283_vm1, %v273_v15  ;;  %2063 = vmatprep.mubr.msk.bf16.mxu0 %vm2335_vm0, %v2334_v1  ;;  %v727_v60 = vpack.c.bf16 %v1889_v59, %v1888_v58  ;;  %v728_v0 = vpack.c.bf16 %v1891_v63, %v1890_v62  ;;  %v1892_v3 = vld [vmem:[%s2396_s24 + $0x3b] sm:$0xff]  ;;  %v1893_v4 = vld [vmem:[%s2396_s24 + $0x43] sm:$0xff]  ;;  %v1877_v5 = vld [vmem:[%s2396_s24 + $0x52] sm:$0xff] }
  0x1f   : > { %2077 = vmatprep.mubr.msk.bf16.mxu1 %vm2335_vm0, %v2334_v1  ;;  %v729_v6 = vpack.c.bf16 %v1893_v4, %v1892_v3  ;;  %v606_v7 = vpack.c.bf16 %v1877_v5, %v1859_v49  ;;  %v1894_v8 = vld [vmem:[%s2396_s24 + $0x4b] sm:$0xff]  ;;  %v1895_v9 = vld [vmem:[%s2396_s24 + $0x53] sm:$0xff]  ;;  %v1906_v15 = vld [vmem:[%s2396_s24 + $0x1c] sm:$0xff] }
  0x20   : > { %v1904_v10 = vld [vmem:[%s2396_s24 + $0xc] sm:$0xff]  ;;  %v1905_v11 = vld [vmem:[%s2396_s24 + $0x14] sm:$0xff]  ;;  %v730_v12 = vpack.c.bf16 %v1895_v9, %v1894_v8  ;;  %v1907_v16 = vld [vmem:[%s2396_s24 + $0x24] sm:$0xff] }
  0x21   : > { %v850_v13 = vpack.c.bf16 %v1905_v11, %v1904_v10  ;;  %v2308_v14 = vld [vmem:[%s2995_s1 + $0x38] sm:$0xff]   ;;  %v974_v17 = vpack.c.bf16 %v1906_v15, %v1905_v11  ;;  %v851_v18 = vpack.c.bf16 %v1907_v16, %v1906_v15  ;;  %v2309_v19 = vld [vmem:[%s2995_s1 + $0x40] sm:$0xff]   ;;  %v1961_v44 = vld [vmem:[%s2396_s24 + $0x2e] sm:$0xff] }
  0x22   : > { %v1910_v24 = vld [vmem:[%s2396_s24 + $0x3c] sm:$0xff]  ;;  %v1911_v25 = vld [vmem:[%s2396_s24 + $0x44] sm:$0xff] }
  0x23   : > { %v1931_v32 = vld [vmem:[%s2396_s24 + $0x5c] sm:$0xff]  ;;  %v1942_v39 = vld [vmem:[%s2396_s24 + $0x25] sm:$0xff] }
  0x24   : > { %v1940_v33 = vld [vmem:[%s2396_s24 + $0x15] sm:$0xff]  ;;  %v1959_v38 = vld [vmem:[%s2396_s24 + $0x1e] sm:$0xff]  ;;  %v1960_v43 = vld [vmem:[%s2396_s24 + $0x26] sm:$0xff] }
  0x25   : > { %2064 = vmatmul.mubr.msk.bf16.gmra.mrb[8].mxu0 %vm283_vm1, %v271_v20  ;;  %v1908_v20 = vld [vmem:[%s2396_s24 + $0x2c] sm:$0xff]  ;;  %v1958_v37 = vld [vmem:[%s2396_s24 + $0x16] sm:$0xff]  ;;  %v1967_v62 = vld [vmem:[%s2396_s24 + $0x5e] sm:$0xff] }
  0x26   : > { %2078 = vmatmul.mubr.msk.bf16.vlgmr.msra.gmra.mrb[8].mxu1 %vm283_vm1, %v250_v21  ;;  %2099 = vmatprep.mubr.msk.bf16.mxu0 %vm2335_vm0, %v2334_v1  ;;  %v1909_v21 = vld [vmem:[%s2396_s24 + $0x34] sm:$0xff]  ;;  %v1949_v58 = vld [vmem:[%s2396_s24 + $0x5d] sm:$0xff] }
  0x27   : > { %2120 = vmatpush3.bf16.msra.mxu1 %v2304_v22  ;;  %2081 = vmatprep.mubr.msk.bf16.mxu1 %vm2335_vm0, %v2334_v1  ;;  %v975_v22 = vpack.c.bf16 %v1908_v20, %v1907_v16  ;;  %v852_v23 = vpack.c.bf16 %v1909_v21, %v1908_v20  ;;  %v976_v26 = vpack.c.bf16 %v1910_v24, %v1909_v21  ;;  %v1944_v45 = vld [vmem:[%s2396_s24 + $0x35] sm:$0xff] }
  0x28   : > { %2163 = vmatprep.subr.bf16.mxu1 %v2334_v1  ;;  %v1962_v49 = vld [vmem:[%s2396_s24 + $0x36] sm:$0xff] }
  0x2d   : > { %2100 = vmatmul.mubr.msk.bf16.vlgmr.msra.gmra.mrb[12].mxu0 %vm283_vm1, %v478_v27  ;;  %v853_v27 = vpack.c.bf16 %v1911_v25, %v1910_v24 }
  0x2e   : > { %2082 = vmatmul.mubr.msk.bf16.gmra.mrb[12].mxu1 %vm283_vm1, %v251_v28  ;;  %2142 = vmatpush3.bf16.msra.mxu0 %v2305_v29  ;;  %v1912_v28 = vld [vmem:[%s2396_s24 + $0x4c] sm:$0xff]  ;;  %v1913_v29 = vld [vmem:[%s2396_s24 + $0x54] sm:$0xff] }
  0x2f   : > { %2085 = vmatprep.mubr.msk.bf16.mxu1 %vm2335_vm0, %v2334_v1  ;;  %2103 = vmatprep.mubr.msk.bf16.mxu0 %vm2335_vm0, %v2334_v1  ;;  %v977_v30 = vpack.c.bf16 %v1912_v28, %v1911_v25  ;;  %v854_v31 = vpack.c.bf16 %v1913_v29, %v1912_v28 }
  0x30   : > { %2185 = vmatprep.subr.bf16.mxu0 %v2334_v1 }
  0x35   : > { %2104 = vmatmul.mubr.msk.bf16.gmra.mrb[16].mxu0 %vm283_vm1, %v479_v34  ;;  %v1941_v34 = vld [vmem:[%s2396_s24 + $0x1d] sm:$0xff] }
  0x36   : > { %2086 = vmatmul.mubr.msk.bf16.gmra.mrb[16].mxu1 %vm283_vm1, %v252_v35  ;;  %2107 = vmatprep.mubr.msk.bf16.mxu0 %vm2335_vm0, %v2334_v1  ;;  %v978_v35 = vpack.c.bf16 %v1931_v32, %v1913_v29  ;;  %v1098_v36 = vpack.c.bf16 %v1941_v34, %v1940_v33 }
  0x37   : > { %2089 = vmatprep.mubr.msk.bf16.mxu1 %vm2335_vm0, %v2334_v1 }
  0x3d   : > { %2108 = vmatmul.mubr.msk.bf16.gmra.mrb[20].mxu0 %vm283_vm1, %v480_v40  ;;  %v1943_v40 = vld [vmem:[%s2396_s24 + $0x2d] sm:$0xff] }
  0x3e   : > { %2090 = vmatmul.mubr.msk.bf16.gmra.mrb[20].mxu1 %vm283_vm1, %v253_v41  ;;  %2111 = vmatprep.mubr.msk.bf16.mxu0 %vm2335_vm0, %v2334_v1  ;;  %v1222_v41 = vpack.c.bf16 %v1959_v38, %v1958_v37  ;;  %v1099_v42 = vpack.c.bf16 %v1943_v40, %v1942_v39 }
  0x3f   : > { %2093 = vmatprep.mubr.msk.bf16.mxu1 %vm2335_vm0, %v2334_v1 }
  0x45   : > { %2112 = vmatmul.mubr.msk.bf16.gmra.mrb[24].mxu0 %vm283_vm1, %v481_v46  ;;  %v1945_v46 = vld [vmem:[%s2396_s24 + $0x3d] sm:$0xff] }
  0x46   : > { %2094 = vmatmul.mubr.msk.bf16.gmra.mrb[24].mxu1 %vm283_vm1, %v254_v47  ;;  %2115 = vmatprep.mubr.msk.bf16.mxu0 %vm2335_vm0, %v2334_v1  ;;  %v1223_v47 = vpack.c.bf16 %v1961_v44, %v1960_v43  ;;  %v1100_v48 = vpack.c.bf16 %v1945_v46, %v1944_v45 }
  0x47   : > { %2121 = vmatprep.mubr.msk.bf16.mxu1 %vm2335_vm0, %v2334_v1 }
  0x4d   : > { %2116 = vmatmul.mubr.msk.bf16.gmra.mrb[28].mxu0 %vm283_vm1, %v482_v50  ;;  %v1963_v50 = vld [vmem:[%s2396_s24 + $0x3e] sm:$0xff] }
  0x4e   : > { %2122 = vmatmul.mubr.msk.bf16.vlgmr.msra.gmra.mrb[28].mxu1 %vm283_vm1, %v602_v51  ;;  %2143 = vmatprep.mubr.msk.bf16.mxu0 %vm2335_vm0, %v2334_v1  ;;  %v1946_v51 = vld [vmem:[%s2396_s24 + $0x45] sm:$0xff]  ;;  %v1224_v53 = vpack.c.bf16 %v1963_v50, %v1962_v49 }
  0x4f   : > { %2164 = vmatpush3.bf16.msra.mxu1 %v2306_v52  ;;  %2125 = vmatprep.mubr.msk.bf16.mxu1 %vm2335_vm0, %v2334_v1  ;;  %v1947_v52 = vld [vmem:[%s2396_s24 + $0x4d] sm:$0xff] }
  0x50   : > { %2207 = vmatprep.subr.bf16.mxu1 %v2334_v1  ;;  %v1101_v54 = vpack.c.bf16 %v1947_v52, %v1946_v51 }
  0x55   : > { %2144 = vmatmul.mubr.msk.bf16.vlgmr.msra.gmra.mrb[32].mxu0 %vm283_vm1, %v726_v55  ;;  %v1964_v55 = vld [vmem:[%s2396_s24 + $0x46] sm:$0xff] }
  0x56   : > { %2126 = vmatmul.mubr.msk.bf16.gmra.mrb[32].mxu1 %vm283_vm1, %v603_v56  ;;  %2186 = vmatpush3.bf16.msra.mxu0 %v2307_v57  ;;  %v1965_v56 = vld [vmem:[%s2396_s24 + $0x4e] sm:$0xff] }
  0x57   : > { %2129 = vmatprep.mubr.msk.bf16.mxu1 %vm2335_vm0, %v2334_v1  ;;  %2147 = vmatprep.mubr.msk.bf16.mxu0 %vm2335_vm0, %v2334_v1  ;;  %v1948_v57 = vld [vmem:[%s2396_s24 + $0x55] sm:$0xff]  ;;  %v1225_v59 = vpack.c.bf16 %v1965_v56, %v1964_v55 }
  0x58   : > { %2229 = vmatprep.subr.bf16.mxu0 %v2334_v1 }
  0x5d   : > { %2148 = vmatmul.mubr.msk.bf16.gmra.mrb[36].mxu0 %vm283_vm1, %v727_v60  ;;  %v1102_v60 = vpack.c.bf16 %v1949_v58, %v1948_v57 }
  0x5e   : > { %2130 = vmatmul.mubr.msk.bf16.gmra.mrb[36].mxu1 %vm283_vm1, %v604_v61  ;;  %2151 = vmatprep.mubr.msk.bf16.mxu0 %vm2335_vm0, %v2334_v1  ;;  %v1966_v61 = vld [vmem:[%s2396_s24 + $0x56] sm:$0xff]  ;;  %s2804_s24 = scalar_lea.vmem %s2997_s3, %s2254_s21 }
  0x5f   : > { %2133 = vmatprep.mubr.msk.bf16.mxu1 %vm2335_vm0, %v2334_v1  ;;  %v1226_v63 = vpack.c.bf16 %v1967_v62, %v1966_v61 }
  0x65   : > { %2152 = vmatmul.mubr.msk.bf16.gmra.mrb[40].mxu0 %vm283_vm1, %v728_v0 }
  0x66   : > { %2134 = vmatmul.mubr.msk.bf16.gmra.mrb[40].mxu1 %vm283_vm1, %v605_v2  ;;  %2155 = vmatprep.mubr.msk.bf16.mxu0 %vm2335_vm0, %v2334_v1 }
  0x67   : > { %2137 = vmatprep.mubr.msk.bf16.mxu1 %vm2335_vm0, %v2334_v1 }
  0x6d   : > { %2156 = vmatmul.mubr.msk.bf16.gmra.mrb[44].mxu0 %vm283_vm1, %v729_v6 }
  0x6e   : > { %2138 = vmatmul.mubr.msk.bf16.gmra.mrb[44].mxu1 %vm283_vm1, %v606_v7  ;;  %2159 = vmatprep.mubr.msk.bf16.mxu0 %vm2335_vm0, %v2334_v1 }
  0x6f   : > { %2165 = vmatprep.mubr.msk.bf16.mxu1 %vm2335_vm0, %v2334_v1 }
  0x75   : > { %2160 = vmatmul.mubr.msk.bf16.gmra.mrb[48].mxu0 %vm283_vm1, %v730_v12 }
  0x76   : > { %2166 = vmatmul.mubr.msk.bf16.vlgmr.msra.gmra.mrb[48].mxu1 %vm283_vm1, %v850_v13  ;;  %2187 = vmatprep.mubr.msk.bf16.mxu0 %vm2335_vm0, %v2334_v1 }
  0x77   : > { %2208 = vmatpush3.bf16.msra.mxu1 %v2308_v14  ;;  %2169 = vmatprep.mubr.msk.bf16.mxu1 %vm2335_vm0, %v2334_v1 }
  0x7d   : > { %2188 = vmatmul.mubr.msk.bf16.vlgmr.msra.gmra.mrb[52].mxu0 %vm283_vm1, %v974_v17 }
  0x7e   : > { %2170 = vmatmul.mubr.msk.bf16.gmra.mrb[52].mxu1 %vm283_vm1, %v851_v18  ;;  %2230 = vmatpush3.bf16.msra.mxu0 %v2309_v19 }
  0x7f   : > { %2173 = vmatprep.mubr.msk.bf16.mxu1 %vm2335_vm0, %v2334_v1  ;;  %2191 = vmatprep.mubr.msk.bf16.mxu0 %vm2335_vm0, %v2334_v1 }
  0x85   : > { %2192 = vmatmul.mubr.msk.bf16.gmra.mrb[56].mxu0 %vm283_vm1, %v975_v22 }
  0x86   : > { %2174 = vmatmul.mubr.msk.bf16.gmra.mrb[56].mxu1 %vm283_vm1, %v852_v23  ;;  %2195 = vmatprep.mubr.msk.bf16.mxu0 %vm2335_vm0, %v2334_v1 }
  0x87   : > { %2177 = vmatprep.mubr.msk.bf16.mxu1 %vm2335_vm0, %v2334_v1 }
  0x8d   : > { %2196 = vmatmul.mubr.msk.bf16.gmra.mrb[60].mxu0 %vm283_vm1, %v976_v26 }
  0x8e   : > { %2178 = vmatmul.mubr.msk.bf16.gmra.mrb[60].mxu1 %vm283_vm1, %v853_v27  ;;  %2199 = vmatprep.mubr.msk.bf16.mxu0 %vm2335_vm0, %v2334_v1 }
  0x8f   : > { %2181 = vmatprep.mubr.msk.bf16.mxu1 %vm2335_vm0, %v2334_v1 }
  0x95   : > { %2200 = vmatmul.mubr.msk.bf16.gmra.mrb[64].mxu0 %vm283_vm1, %v977_v30 }
  0x96   : > { %2182 = vmatmul.mubr.msk.bf16.gmra.mrb[64].mxu1 %vm283_vm1, %v854_v31  ;;  %2203 = vmatprep.mubr.msk.bf16.mxu0 %vm2335_vm0, %v2334_v1 }
  0x97   : > { %2209 = vmatprep.mubr.msk.bf16.mxu1 %vm2335_vm0, %v2334_v1 }
  0x9d   : > { %2204 = vmatmul.mubr.msk.bf16.gmra.mrb[68].mxu0 %vm283_vm1, %v978_v35 }
  0x9e   : > { %2210 = vmatmul.mubr.msk.bf16.vlgmr.msra.gmra.mrb[68].mxu1 %vm283_vm1, %v1098_v36  ;;  %2231 = vmatprep.mubr.msk.bf16.mxu0 %vm2335_vm0, %v2334_v1 }
  0x9f   : > { %2213 = vmatprep.mubr.msk.bf16.mxu1 %vm2335_vm0, %v2334_v1 }
  0xa5   : > { %2232 = vmatmul.mubr.msk.bf16.vlgmr.msra.gmra.mrb[72].mxu0 %vm283_vm1, %v1222_v41 }
  0xa6   : > { %2214 = vmatmul.mubr.msk.bf16.gmra.mrb[72].mxu1 %vm283_vm1, %v1099_v42  ;;  %2235 = vmatprep.mubr.msk.bf16.mxu0 %vm2335_vm0, %v2334_v1 }
  0xa7   : > { %2217 = vmatprep.mubr.msk.bf16.mxu1 %vm2335_vm0, %v2334_v1 }
  0xad   : > { %2236 = vmatmul.mubr.msk.bf16.gmra.mrb[76].mxu0 %vm283_vm1, %v1223_v47 }
  0xae   : > { %2218 = vmatmul.mubr.msk.bf16.gmra.mrb[76].mxu1 %vm283_vm1, %v1100_v48  ;;  %2239 = vmatprep.mubr.msk.bf16.mxu0 %vm2335_vm0, %v2334_v1 }
  0xaf   : > { %2221 = vmatprep.mubr.msk.bf16.mxu1 %vm2335_vm0, %v2334_v1 }
  0xb5   : > { %2240 = vmatmul.mubr.msk.bf16.gmra.mrb[80].mxu0 %vm283_vm1, %v1224_v53 }
  0xb6   : > { %2222 = vmatmul.mubr.msk.bf16.gmra.mrb[80].mxu1 %vm283_vm1, %v1101_v54  ;;  %2243 = vmatprep.mubr.msk.bf16.mxu0 %vm2335_vm0, %v2334_v1 }
  0xb7   : > { %2225 = vmatprep.mubr.msk.bf16.mxu1 %vm2335_vm0, %v2334_v1 }
  0xbd   : > { %2244 = vmatmul.mubr.msk.bf16.gmra.mrb[84].mxu0 %vm283_vm1, %v1225_v59 }
  0xbe   : > { %2226 = vmatmul.mubr.msk.bf16.gmra.mrb[84].mxu1 %vm283_vm1, %v1102_v60  ;;  %2247 = vmatprep.mubr.msk.bf16.mxu0 %vm2335_vm0, %v2334_v1  ;;  %vm1391_vm0 = vcmask 60416  }
  0xc5   : > { %2248 = vmatmul.mubr.msk.bf16.gmra.mrb[88].mxu0 %vm283_vm1, %v1226_v63 }
  0xe8   : > { %v333_v0 = vpop.f32.mrb[0].mxu0 }
  0xe9   : > { %v2057_v2 = vpop.f32.mrb[1].mxu0  ;;  %v357_v3 = vpop.f32.mrb[0].mxu1 }
  0xea   : > { %v336_v4 = vpop.f32.mrb[2].mxu0  ;;  %v2069_v5 = vpop.f32.mrb[1].mxu1 }
  0xeb   : > { %v2058_v6 = vpop.f32.mrb[3].mxu0  ;;  %v360_v7 = vpop.f32.mrb[2].mxu1 }
  0xec   : > { %v2070_v8 = vpop.f32.mrb[3].mxu1 }
  0xf0   : > { %v341_v9 = vpop.f32.mrb[4].mxu0 }
  0xf1   : > { %v2061_v10 = vpop.f32.mrb[5].mxu0  ;;  %v365_v11 = vpop.f32.mrb[4].mxu1 }
  0xf2   : > { %v344_v12 = vpop.f32.mrb[6].mxu0  ;;  %v2073_v13 = vpop.f32.mrb[5].mxu1 }
  0xf3   : > { %v2062_v14 = vpop.f32.mrb[7].mxu0  ;;  %v368_v1 = vpop.f32.mrb[6].mxu1 }
  0xf4   : > { %v2074_v15 = vpop.f32.mrb[7].mxu1 }
  0xf8   : > { %v349_v16 = vpop.f32.mrb[8].mxu0 }
  0xf9   : > { %v427_v17 = vpop.f32.mrb[8].mxu1  ;;  %v2065_v18 = vpop.f32.mrb[9].mxu0 }
  0xfa   : > { %v428_v19 = vadd.f32 %v427_v17, %v333_v0  ;;  %v2079_v20 = vpop.f32.mrb[9].mxu1  ;;  %v352_v21 = vpop.f32.mrb[10].mxu0 }
  0xfb   : > { %v430_v22 = vpop.f32.mrb[10].mxu1  ;;  %v2066_v23 = vpop.f32.mrb[11].mxu0 }
  0xfc   : > { %v431_v24 = vadd.f32 %v430_v22, %v336_v4  ;;  %v2080_v25 = vpop.f32.mrb[11].mxu1 }
 0x100   : > { %v541_v26 = vpop.f32.mrb[12].mxu0 }
 0x101   : > { %v435_v27 = vpop.f32.mrb[12].mxu1  ;;  %v580_v28 = vadd.f32 %v541_v26, %v428_v19  ;;  %v2101_v29 = vpop.f32.mrb[13].mxu0 }
 0x102   : > { %v436_v30 = vadd.f32 %v435_v27, %v341_v9  ;;  %v2083_v31 = vpop.f32.mrb[13].mxu1  ;;  %v544_v32 = vpop.f32.mrb[14].mxu0 }
 0x103   : > { %v438_v33 = vpop.f32.mrb[14].mxu1  ;;  %v581_v34 = vadd.f32 %v544_v32, %v431_v24  ;;  %v2102_v35 = vpop.f32.mrb[15].mxu0 }
 0x104   : > { %v439_v36 = vadd.f32 %v438_v33, %v344_v12  ;;  %v2084_v37 = vpop.f32.mrb[15].mxu1 }
 0x108   : > { %v549_v38 = vpop.f32.mrb[16].mxu0 }
 0x109   : > { %v443_v39 = vpop.f32.mrb[16].mxu1  ;;  %v582_v40 = vadd.f32 %v549_v38, %v436_v30  ;;  %v2105_v41 = vpop.f32.mrb[17].mxu0 }
 0x10a   : > { %v444_v42 = vadd.f32 %v443_v39, %v349_v16  ;;  %v2087_v43 = vpop.f32.mrb[17].mxu1  ;;  %v552_v44 = vpop.f32.mrb[18].mxu0 }
 0x10b   : > { %v446_v45 = vpop.f32.mrb[18].mxu1  ;;  %v583_v46 = vadd.f32 %v552_v44, %v439_v36  ;;  %v2106_v47 = vpop.f32.mrb[19].mxu0 }
 0x10c   : > { %v447_v48 = vadd.f32 %v446_v45, %v352_v21  ;;  %v2088_v49 = vpop.f32.mrb[19].mxu1 }
 0x110   : > { %v557_v50 = vpop.f32.mrb[20].mxu0 }
 0x111   : > { %v451_v51 = vpop.f32.mrb[20].mxu1  ;;  %v584_v52 = vadd.f32 %v557_v50, %v444_v42  ;;  %v2109_v53 = vpop.f32.mrb[21].mxu0 }
 0x112   : > { %v452_v54 = vadd.f32 %v451_v51, %v357_v3  ;;  %v2091_v55 = vpop.f32.mrb[21].mxu1  ;;  %v560_v56 = vpop.f32.mrb[22].mxu0 }
 0x113   : > { %v454_v57 = vpop.f32.mrb[22].mxu1  ;;  %v585_v58 = vadd.f32 %v560_v56, %v447_v48  ;;  %v2110_v59 = vpop.f32.mrb[23].mxu0 }
 0x114   : > { %v455_v60 = vadd.f32 %v454_v57, %v360_v7  ;;  %v2092_v61 = vpop.f32.mrb[23].mxu1 }
 0x118   : > { %v565_v62 = vpop.f32.mrb[24].mxu0 }
 0x119   : > { %v459_v63 = vpop.f32.mrb[24].mxu1  ;;  %v586_v0 = vadd.f32 %v565_v62, %v452_v54  ;;  %v2113_v2 = vpop.f32.mrb[25].mxu0 }
 0x11a   : > { %v460_v4 = vadd.f32 %v459_v63, %v365_v11  ;;  %v2095_v5 = vpop.f32.mrb[25].mxu1  ;;  %v568_v6 = vpop.f32.mrb[26].mxu0 }
 0x11b   : > { %v462_v8 = vpop.f32.mrb[26].mxu1  ;;  %v587_v9 = vadd.f32 %v568_v6, %v455_v60  ;;  %v2114_v10 = vpop.f32.mrb[27].mxu0 }
 0x11c   : > { %v463_v12 = vadd.f32 %v462_v8, %v368_v1  ;;  %v2096_v13 = vpop.f32.mrb[27].mxu1 }
 0x120   : > { %v573_v3 = vpop.f32.mrb[28].mxu0 }
 0x121   : > { %v588_v14 = vadd.f32 %v573_v3, %v460_v4  ;;  %v665_v15 = vpop.f32.mrb[28].mxu1  ;;  %v2117_v16 = vpop.f32.mrb[29].mxu0 }
 0x122   : > { %v704_v17 = vadd.f32 %v665_v15, %v580_v28  ;;  %v2123_v18 = vpop.f32.mrb[29].mxu1  ;;  %v576_v7 = vpop.f32.mrb[30].mxu0 }
 0x123   : > { %v589_v19 = vadd.f32 %v576_v7, %v463_v12  ;;  %v668_v20 = vpop.f32.mrb[30].mxu1  ;;  %v2118_v21 = vpop.f32.mrb[31].mxu0 }
 0x124   : > { %v705_v22 = vadd.f32 %v668_v20, %v581_v34  ;;  %v2124_v23 = vpop.f32.mrb[31].mxu1  ;;  %v1402_v21 = vlaneseq }
 0x128   : > { %v789_v11 = vpop.f32.mrb[32].mxu0 }
 0x129   : > { %v673_v24 = vpop.f32.mrb[32].mxu1  ;;  %v828_v25 = vadd.f32 %v789_v11, %v704_v17  ;;  %v2145_v26 = vpop.f32.mrb[33].mxu0 }
 0x12a   : > { %v706_v27 = vadd.f32 %v673_v24, %v582_v40  ;;  %v2127_v29 = vpop.f32.mrb[33].mxu1  ;;  %v792_v1 = vpop.f32.mrb[34].mxu0 }
 0x12b   : > { %v676_v30 = vpop.f32.mrb[34].mxu1  ;;  %v829_v31 = vadd.f32 %v792_v1, %v705_v22  ;;  %v2146_v32 = vpop.f32.mrb[35].mxu0 }
 0x12c   : > { %v707_v33 = vadd.f32 %v676_v30, %v583_v46  ;;  %v2128_v35 = vpop.f32.mrb[35].mxu1  ;;  %v2643_v30 = vshrl.u32 %v1402_v21, 7 }
 0x130   : > { %v797_v28 = vpop.f32.mrb[36].mxu0 }
 0x131   : > { %v681_v36 = vpop.f32.mrb[36].mxu1  ;;  %v830_v37 = vadd.f32 %v797_v28, %v706_v27  ;;  %v2149_v38 = vpop.f32.mrb[37].mxu0 }
 0x132   : > { %v708_v39 = vadd.f32 %v681_v36, %v584_v52  ;;  %v2131_v41 = vpop.f32.mrb[37].mxu1  ;;  %v800_v34 = vpop.f32.mrb[38].mxu0 }
 0x133   : > { %v684_v42 = vpop.f32.mrb[38].mxu1  ;;  %v831_v43 = vadd.f32 %v800_v34, %v707_v33  ;;  %v2150_v44 = vpop.f32.mrb[39].mxu0 }
 0x134   : > { %v709_v45 = vadd.f32 %v684_v42, %v585_v58  ;;  %v2132_v47 = vpop.f32.mrb[39].mxu1  ;;  %v2649_v34 = vmul.u32.u64.low 3435973837, %v2643_v30  ;;  %v2650_v42 = vmul.u32.u64.high 3435973837, %v2643_v30, %v2649_v34  ;;  %v1405_v44 = vadd.s32 16, %v2643_v30 }
 0x138   : > { %v805_v40 = vpop.f32.mrb[40].mxu0 }
 0x139   : > { %v689_v48 = vpop.f32.mrb[40].mxu1  ;;  %v832_v49 = vadd.f32 %v805_v40, %v708_v39  ;;  %v2153_v50 = vpop.f32.mrb[41].mxu0 }
 0x13a   : > { %v710_v51 = vadd.f32 %v689_v48, %v586_v0  ;;  %v2135_v53 = vpop.f32.mrb[41].mxu1  ;;  %v808_v46 = vpop.f32.mrb[42].mxu0 }
 0x13b   : > { %v692_v54 = vpop.f32.mrb[42].mxu1  ;;  %v833_v55 = vadd.f32 %v808_v46, %v709_v45  ;;  %v2154_v56 = vpop.f32.mrb[43].mxu0  ;;  %v1406_v53 = vadd.s32 24, %v2643_v30 }
 0x13c   : > { %v711_v57 = vadd.f32 %v692_v54, %v587_v9  ;;  %v2136_v59 = vpop.f32.mrb[43].mxu1  ;;  %v2660_v46 = vmul.u32.u64.low 3435973837, %v1405_v44  ;;  %v2661_v54 = vmul.u32.u64.high 3435973837, %v1405_v44, %v2660_v46 }
 0x140   : > { %v813_v52 = vpop.f32.mrb[44].mxu0 }
 0x141   : > { %v697_v60 = vpop.f32.mrb[44].mxu1  ;;  %v2631_v61 = vadd.f32 %v813_v52, %v710_v51  ;;  %v2157_v62 = vpop.f32.mrb[45].mxu0 }
 0x142   : > { %v712_v63 = vadd.f32 %v697_v60, %v588_v14  ;;  %v2139_v58 = vpop.f32.mrb[45].mxu1  ;;  %v816_v2 = vpop.f32.mrb[46].mxu0 }
 0x143   : > { %v700_v4 = vpop.f32.mrb[46].mxu1  ;;  %v2633_v5 = vadd.f32 %v816_v2, %v711_v57  ;;  %v2158_v6 = vpop.f32.mrb[47].mxu0  ;;  %v2663_v57 = vmul.u32.u64.low 3435973837, %v1406_v53  ;;  %v2664_v59 = vmul.u32.u64.high 3435973837, %v1406_v53, %v2663_v57 }
 0x144   : > { %v713_v0 = vadd.f32 %v700_v4, %v589_v19  ;;  %v2140_v8 = vpop.f32.mrb[47].mxu1 }
 0x148   : > { %v821_v10 = vpop.f32.mrb[48].mxu0 }
 0x149   : > { %v2635_v12 = vadd.f32 %v821_v10, %v712_v63  ;;  %v913_v13 = vpop.f32.mrb[48].mxu1  ;;  %v2161_v9 = vpop.f32.mrb[49].mxu0  ;;  %v1419_v10 = vshrl.u32 %v2650_v42, 3 }
 0x14a   : > { %v952_v3 = vadd.f32 %v913_v13, %v828_v25  ;;  %v2167_v15 = vpop.f32.mrb[49].mxu1  ;;  %v824_v16 = vpop.f32.mrb[50].mxu0 }
 0x14b   : > { %v2637_v17 = vadd.f32 %v824_v16, %v713_v0  ;;  %v916_v18 = vpop.f32.mrb[50].mxu1  ;;  %v2162_v14 = vpop.f32.mrb[51].mxu0  ;;  %v2678_v15 = vadd.s32 40, %v2643_v30  ;;  %v1441_v16 = vshrl.u32 %v2661_v54, 3 }
 0x14c   : > { %v953_v7 = vadd.f32 %v916_v18, %v829_v31  ;;  %v2168_v20 = vpop.f32.mrb[51].mxu1  ;;  %v1404_v31 = vadd.s32 8, %v2643_v30  ;;  %v1420_v18 = vmul.u32 10, %v1419_v10 }
 0x14e   : > { %v2655_v40 = vmul.u32.u64.low 3435973837, %v1404_v31  ;;  %v2656_v48 = vmul.u32.u64.high 3435973837, %v1404_v31, %v2655_v40 }
 0x150   : > { %v1037_v22 = vpop.f32.mrb[52].mxu0  ;;  %v1430_v13 = vshrl.u32 %v2656_v48, 3 }
 0x151   : > { %v921_v23 = vpop.f32.mrb[52].mxu1  ;;  %v2639_v11 = vadd.f32 %v1037_v22, %v952_v3  ;;  %v2189_v19 = vpop.f32.mrb[53].mxu0 }
 0x152   : > { %v954_v24 = vadd.f32 %v921_v23, %v830_v37  ;;  %v2171_v26 = vpop.f32.mrb[53].mxu1  ;;  %v1040_v27 = vpop.f32.mrb[54].mxu0 }
 0x153   : > { %v924_v29 = vpop.f32.mrb[54].mxu1  ;;  %v2641_v1 = vadd.f32 %v1040_v27, %v953_v7  ;;  %v2190_v25 = vpop.f32.mrb[55].mxu0  ;;  %v1452_v7 = vshrl.u32 %v2664_v59, 3 }
 0x154   : > { %v955_v32 = vadd.f32 %v924_v29, %v831_v43  ;;  %v2172_v33 = vpop.f32.mrb[55].mxu1  ;;  %v1442_v29 = vmul.u32 10, %v1441_v16 }
 0x156   : > { %v2697_v42 = vsub.s32 %v1405_v44, %v1442_v29 }
 0x158   : > { %v1045_v35 = vpop.f32.mrb[56].mxu0  ;;  %vm1525_vm7 = vcmp.ne.s32.totalorder %v2697_v42, 0  ;;  %vm1535_vm9 = vcmp.lt.s32.totalorder %v2697_v42, 0  ;;  %v1555_v10 = vadd.s32 10, %v2697_v42 }
 0x159   : > { %v929_v28 = vpop.f32.mrb[56].mxu1  ;;  %v2646_v36 = vadd.f32 %v1045_v35, %v954_v24  ;;  %v2193_v38 = vpop.f32.mrb[57].mxu0  ;;  %v1421_v35 = vsub.s32 %v2643_v30, %v1420_v18  ;;  %vm2745_vm14 = vmand %vm1535_vm9, %vm1525_vm7 }
 0x15a   : > { %v956_v39 = vadd.f32 %v929_v28, %v832_v49  ;;  %v2175_v41 = vpop.f32.mrb[57].mxu1  ;;  %v1048_v37 = vpop.f32.mrb[58].mxu0  ;;  %v1407_v49 = vadd.s32 32, %v2643_v30 }
 0x15b   : > { %v932_v45 = vpop.f32.mrb[58].mxu1  ;;  %v2653_v47 = vadd.f32 %v1048_v37, %v955_v32  ;;  %v2194_v43 = vpop.f32.mrb[59].mxu0  ;;  %v1453_v41 = vmul.u32 10, %v1452_v7  ;;  %v2695_v37 = vadd.s32 48, %v2643_v30  ;;  %vm1523_vm2 = vcmp.ne.s32.totalorder %v1421_v35, 0 }
 0x15c   : > { %v957_v50 = vadd.f32 %v932_v45, %v833_v55  ;;  %v2176_v51 = vpop.f32.mrb[59].mxu1  ;;  %v2668_v63 = vmul.u32.u64.low 3435973837, %v1407_v49  ;;  %v2669_v58 = vmul.u32.u64.high 3435973837, %v1407_v49, %v2668_v63  ;;  %vm1533_vm3 = vcmp.lt.s32.totalorder %v1421_v35, 0 }
 0x15d   : > { %v2702_v43 = vsub.s32 %v1406_v53, %v1453_v41  ;;  %v1553_v44 = vadd.s32 10, %v1421_v35  ;;  %vm2716_vm6 = vmand %vm1533_vm3, %vm1523_vm2  ;;  %vm1613_vm3 = vcmask 64512  }
 0x15e   : > { %v1463_v23 = vshrl.u32 %v2669_v58, 3 }
 0x15f   : > { %vm1526_vm10 = vcmp.ne.s32.totalorder %v2702_v43, 0  ;;  %vm1536_vm11 = vcmp.lt.s32.totalorder %v2702_v43, 0 }
 0x160   : > { %v1053_v56 = vpop.f32.mrb[60].mxu0  ;;  %v1464_v34 = vmul.u32 10, %v1463_v23  ;;  %vm2756_vm15 = vmand %vm1536_vm11, %vm1526_vm10 }
 0x161   : > { %v937_v52 = vpop.f32.mrb[60].mxu1  ;;  %v2666_v60 = vadd.f32 %v1053_v56, %v956_v39  ;;  %v2197_v62 = vpop.f32.mrb[61].mxu0 }
 0x162   : > { %v958_v55 = vadd.f32 %v937_v52, %v2631_v61  ;;  %v2179_v2 = vpop.f32.mrb[61].mxu1  ;;  %v1056_v4 = vpop.f32.mrb[62].mxu0  ;;  %v1431_v61 = vmul.u32 10, %v1430_v13  ;;  %v2710_v51 = vsub.s32 %v1407_v49, %v1464_v34  ;;  %v1556_v13 = vadd.s32 10, %v2702_v43 }
 0x163   : > { %v940_v6 = vpop.f32.mrb[62].mxu1  ;;  %v2672_v0 = vadd.f32 %v1056_v4, %v957_v50  ;;  %v2198_v8 = vpop.f32.mrb[63].mxu0  ;;  %v1563_v4 = vsel %vm2716_vm6, %v1553_v44, %v1421_v35  ;;  %v2793_v35 = vadd.s32 72, %v2643_v30 }
 0x164   : > { %v959_v9 = vadd.f32 %v940_v6, %v2633_v5  ;;  %v2180_v3 = vpop.f32.mrb[63].mxu1  ;;  %v2686_v19 = vmul.u32.u64.low 3435973837, %v2678_v15  ;;  %v2687_v5 = vmul.u32.u64.high 3435973837, %v2678_v15, %v2686_v19  ;;  %v1432_v28 = vsub.s32 %v1404_v31, %v1431_v61 }
 0x165   : > { %vm1527_vm12 = vcmp.ne.s32.totalorder %v2710_v51, 0  ;;  %vm1537_vm13 = vcmp.lt.s32.totalorder %v2710_v51, 0  ;;  %v2761_v16 = vadd.s32 10, %v2710_v51  ;;  %vm2764_vm1 = vcmp.lt.s32.totalorder %v1563_v4, 8 }
 0x166   : > { %vm1524_vm4 = vcmp.ne.s32.totalorder %v1432_v28, 0  ;;  %vm1534_vm5 = vcmp.lt.s32.totalorder %v1432_v28, 0  ;;  %v1474_v46 = vshrl.u32 %v2687_v5, 3  ;;  %v1554_v59 = vadd.s32 10, %v1432_v28  ;;  %vm2770_vm2 = vmand %vm1537_vm13, %vm1527_vm12 }
 0x167   : > { %vm2725_vm8 = vmand %vm1534_vm5, %vm1524_vm4 }
 0x168   : > { %v1061_v14 = vpop.f32.mrb[64].mxu0  ;;  %v1475_v6 = vmul.u32 10, %v1474_v46  ;;  %v1564_v8 = vsel %vm2725_vm8, %v1554_v59, %v1432_v28 }
 0x169   : > { %v945_v20 = vpop.f32.mrb[64].mxu1  ;;  %v2682_v21 = vadd.f32 %v1061_v14, %v958_v55  ;;  %v2201_v22 = vpop.f32.mrb[65].mxu0  ;;  %vm2778_vm4 = vcmp.lt.s32.totalorder %v1564_v8, 8 }
 0x16a   : > { %v960_v24 = vadd.f32 %v945_v20, %v2635_v12  ;;  %v2183_v26 = vpop.f32.mrb[65].mxu1  ;;  %v1064_v27 = vpop.f32.mrb[66].mxu0  ;;  %v2700_v12 = vadd.s32 56, %v2643_v30  ;;  %v2776_v20 = vadd.s32 64, %v2643_v30 }
 0x16b   : > { %v948_v25 = vpop.f32.mrb[66].mxu1  ;;  %v2690_v32 = vadd.f32 %v1064_v27, %v959_v9  ;;  %v2202_v33 = vpop.f32.mrb[67].mxu0  ;;  %v2754_v9 = vld [vmem:[%s2996_s2] ss:$0 sm:$0xff] }
 0x16c   : > { %v961_v38 = vadd.f32 %v948_v25, %v2637_v17  ;;  %v2184_v39 = vpop.f32.mrb[67].mxu1  ;;  %v2705_v17 = vmul.u32.u64.low 3435973837, %v2695_v37  ;;  %v2706_v31 = vmul.u32.u64.high 3435973837, %v2695_v37, %v2705_v17  ;;  %v1565_v25 = vsel %vm2745_vm14, %v1555_v10, %v2697_v42 }
 0x16d   : > { %v1566_v33 = vsel %vm2756_vm15, %v1556_v13, %v2702_v43  ;;  %vm2834_vm7 = vcmp.lt.s32.totalorder %v1565_v25, 8 }
 0x16e   : > { %v1485_v7 = vshrl.u32 %v2706_v31, 3  ;;  %vm2838_vm8 = vcmp.lt.s32.totalorder %v1566_v33, 8 }
 0x170   : > { %v1069_v45 = vpop.f32.mrb[68].mxu0  ;;  %v1486_v42 = vmul.u32 10, %v1485_v7 }
 0x171   : > { %v2708_v40 = vadd.f32 %v1069_v45, %v960_v24  ;;  %v1161_v48 = vpop.f32.mrb[68].mxu1  ;;  %v2205_v50 = vpop.f32.mrb[69].mxu0  ;;  %v2783_v24 = vsub.s32 %v2678_v15, %v1475_v6  ;;  %v2808_v45 = vmul.u32.u64.low 3435973837, %v2776_v20  ;;  %v2809_v43 = vmul.u32.u64.high 3435973837, %v2776_v20, %v2808_v45 }
 0x172   : > { %v1200_v54 = vadd.f32 %v1161_v48, %v2639_v11  ;;  %v2211_v56 = vpop.f32.mrb[69].mxu1  ;;  %v1072_v57 = vpop.f32.mrb[70].mxu0  ;;  %v2731_v11 = vmul.u32.u64.low 3435973837, %v2700_v12  ;;  %v2732_v58 = vmul.u32.u64.high 3435973837, %v2700_v12, %v2731_v11 }
 0x173   : > { %v2721_v52 = vadd.f32 %v1072_v57, %v961_v38  ;;  %v1164_v62 = vpop.f32.mrb[70].mxu1  ;;  %v2206_v49 = vpop.f32.mrb[71].mxu0  ;;  %vm1528_vm5 = vcmp.ne.s32.totalorder %v2783_v24, 0  ;;  %vm1538_vm6 = vcmp.lt.s32.totalorder %v2783_v24, 0  ;;  %v1507_v5 = vshrl.u32 %v2809_v43, 3 }
 0x174   : > { %v1201_v55 = vadd.f32 %v1164_v62, %v2641_v1  ;;  %v2212_v2 = vpop.f32.mrb[71].mxu1  ;;  %v1496_v41 = vshrl.u32 %v2732_v58, 3  ;;  %v2830_v49 = vsub.s32 %v2695_v37, %v1486_v42  ;;  %vm2846_vm9 = vmand %vm1538_vm6, %vm1528_vm5 }
 0x176   : > { %v1497_v56 = vmul.u32 10, %v1496_v41  ;;  %vm1529_vm11 = vcmp.ne.s32.totalorder %v2830_v49, 0  ;;  %vm1539_vm12 = vcmp.lt.s32.totalorder %v2830_v49, 0  ;;  %v1559_v25 = vadd.s32 10, %v2830_v49 }
 0x177   : > { %vm2884_vm14 = vmand %vm1539_vm12, %vm1529_vm11 }
 0x178   : > { %v1285_v18 = vpop.f32.mrb[72].mxu0 }
 0x179   : > { %v1169_v22 = vpop.f32.mrb[72].mxu1  ;;  %v1324_v23 = vadd.f32 %v1285_v18, %v1200_v54  ;;  %v2233_v19 = vpop.f32.mrb[73].mxu0  ;;  %v2825_v54 = vadd.s32 10, %v2783_v24 }
 0x17a   : > { %v1202_v26 = vadd.f32 %v1169_v22, %v2646_v36  ;;  %v2215_v27 = vpop.f32.mrb[73].mxu1  ;;  %v1288_v29 = vpop.f32.mrb[74].mxu0  ;;  %v1567_v36 = vsel %vm2770_vm2, %v2761_v16, %v2710_v51  ;;  %v2859_v22 = vsub.s32 %v2700_v12, %v1497_v56 }
 0x17b   : > { %v1341_v28 = vadd.f32 %v2754_v9, %v1324_v23  ;;  %v1172_v38 = vpop.f32.mrb[74].mxu1  ;;  %v1325_v15 = vadd.f32 %v1288_v29, %v1201_v55  ;;  %v2234_v39 = vpop.f32.mrb[75].mxu0  ;;  %vm2853_vm10 = vcmp.lt.s32.totalorder %v1567_v36, 8 }
 0x17c   : > { %v1203_v30 = vadd.f32 %v1172_v38, %v2653_v47  ;;  %v2216_v34 = vpop.f32.mrb[75].mxu1  ;;  %v2817_v47 = vmul.u32.u64.low 3435973837, %v2793_v35  ;;  %v2818_v44 = vmul.u32.u64.high 3435973837, %v2793_v35, %v2817_v47  ;;  %vm1530_vm13 = vcmp.ne.s32.totalorder %v2859_v22, 0 }
 0x17d   : > { %v1989_v17 = vpack.c.bf16 %v1341_v28, %v1341_v28  ;;  %v1603_v31 = vsel %vm2764_vm1, %v1341_v28, 0.0  ;;  %v1342_v48 = vadd.f32 %v2754_v9, %v1325_v15  ;;  %v1508_v34 = vmul.u32 10, %v1507_v5 }
 0x17e   : > { %v1641_v50 = vmul.f32 %v1603_v31, %v1603_v31  ;;  %v1614_v57 = vsel %vm1613_vm3, %v1603_v31, 0.0  ;;  %vm1540_vm15 = vcmp.lt.s32.totalorder %v2859_v22, 0 }
 0x17f   : > { %1392 = vst.msk [vmem:[%s2804_s24] sm:$0xf] %vm1391_vm0, %v1989_v17  ;;  %v1990_v51 = vpack.c.bf16 %v1342_v48, %v1342_v48  ;;  %v1604_v46 = vsel %vm2778_vm4, %v1342_v48, 0.0  ;;  %vm2903_vm2 = vmand %vm1540_vm15, %vm1530_vm13 }
 0x180   : > { %v1615_v53 = vsel %vm1613_vm3, %v1604_v46, 0.0  ;;  %v1642_v59 = vmul.f32 %v1604_v46, %v1604_v46  ;;  %v1293_v62 = vpop.f32.mrb[76].mxu0  ;;  %v1651_v6 = vsel %vm1613_vm3, %v1641_v50, 0.0 }
 0x181   : > { %1393 = vst.msk [vmem:[%s2804_s24 + $0x4] sm:$0xf] %vm1391_vm0, %v1990_v51  ;;  %v1616_v63 = vadd.f32 %v1615_v53, %v1614_v57  ;;  %v1177_v11 = vpop.f32.mrb[76].mxu1  ;;  %v1326_v58 = vadd.f32 %v1293_v62, %v1202_v26  ;;  %v2237_v2 = vpop.f32.mrb[77].mxu0  ;;  %v1560_v51 = vadd.s32 10, %v2859_v22  ;;  %v1569_v62 = vsel %vm2884_vm14, %v1559_v25, %v2830_v49 }
 0x182   : > { %v1652_v8 = vsel %vm1613_vm3, %v1642_v59, 0.0  ;;  %v1204_v1 = vadd.f32 %v1177_v11, %v2666_v60  ;;  %v2219_v10 = vpop.f32.mrb[77].mxu1  ;;  %v1296_v13 = vpop.f32.mrb[78].mxu0  ;;  %v1568_v60 = vsel %vm2846_vm9, %v2825_v54, %v2783_v24  ;;  %v1518_v24 = vshrl.u32 %v2818_v44, 3 }
 0x183   : > { %v1653_v16 = vadd.f32 %v1652_v8, %v1651_v6  ;;  %v1343_v18 = vadd.f32 %v2754_v9, %v1326_v58  ;;  %v1180_v61 = vpop.f32.mrb[78].mxu1  ;;  %v1327_v14 = vadd.f32 %v1296_v13, %v1203_v30  ;;  %v2238_v7 = vpop.f32.mrb[79].mxu0  ;;  %vm1578_vm1 = vcmp.lt.s32.totalorder %v1568_v60, 8 }
 0x184   : > { %v1205_v23 = vadd.f32 %v1180_v61, %v2672_v0  ;;  %v2220_v19 = vpop.f32.mrb[79].mxu1  ;;  %v1519_v46 = vmul.u32 10, %v1518_v24  ;;  %v2908_v58 = vsub.s32 %v2776_v20, %v1508_v34  ;;  %vm2914_vm4 = vcmp.lt.s32.totalorder %v1569_v62, 8 }
 0x185   : > { %v1991_v26 = vpack.c.bf16 %v1343_v18, %v1343_v18  ;;  %v1605_v27 = vsel %vm2834_vm7, %v1343_v18, 0.0  ;;  %v1344_v29 = vadd.f32 %v2754_v9, %v1327_v14  ;;  %v1570_v10 = vsel %vm2903_vm2, %v1560_v51, %v2859_v22 }
 0x186   : > { %v1617_v0 = vsel %vm1613_vm3, %v1605_v27, 0.0  ;;  %v1643_v12 = vmul.f32 %v1605_v27, %v1605_v27  ;;  %v2919_v6 = vsub.s32 %v2793_v35, %v1519_v46  ;;  %vm1531_vm5 = vcmp.ne.s32.totalorder %v2908_v58, 0 }
 0x187   : > { %1394 = vst.msk [vmem:[%s2804_s24 + $0x8] sm:$0xf] %vm1391_vm0, %v1991_v26  ;;  %v1618_v33 = vadd.f32 %v1617_v0, %v1616_v63  ;;  %v1992_v28 = vpack.c.bf16 %v1344_v29, %v1344_v29  ;;  %v1606_v38 = vsel %vm2838_vm8, %v1344_v29, 0.0  ;;  %vm1541_vm6 = vcmp.lt.s32.totalorder %v2908_v58, 0 }
 0x188   : > { %v1654_v15 = vsel %vm1613_vm3, %v1643_v12, 0.0  ;;  %v1619_v39 = vsel %vm1613_vm3, %v1606_v38, 0.0  ;;  %v1644_v36 = vmul.f32 %v1606_v38, %v1606_v38  ;;  %v1301_v41 = vpop.f32.mrb[80].mxu0  ;;  %v1561_v26 = vadd.s32 10, %v2908_v58 }
 0x189   : > { %v1655_v42 = vadd.f32 %v1654_v15, %v1653_v16  ;;  %1395 = vst.msk [vmem:[%s2804_s24 + $0xc] sm:$0xf] %vm1391_vm0, %v1992_v28  ;;  %v1620_v45 = vadd.f32 %v1619_v39, %v1618_v33  ;;  %v1185_v43 = vpop.f32.mrb[80].mxu1  ;;  %v1328_v17 = vadd.f32 %v1301_v41, %v1204_v1  ;;  %v2241_v31 = vpop.f32.mrb[81].mxu0  ;;  %vm1532_vm7 = vcmp.ne.s32.totalorder %v2919_v6, 0 }
 0x18a   : > { %v1656_v48 = vsel %vm1613_vm3, %v1644_v36, 0.0  ;;  %v1206_v50 = vadd.f32 %v1185_v43, %v2682_v21  ;;  %v2223_v47 = vpop.f32.mrb[81].mxu1  ;;  %v1304_v44 = vpop.f32.mrb[82].mxu0  ;;  %vm1542_vm8 = vcmp.lt.s32.totalorder %v2919_v6, 0  ;;  %vm1580_vm9 = vcmp.lt.s32.totalorder %v1570_v10, 8 }
 0x18b   : > { %v1657_v54 = vadd.f32 %v1656_v48, %v1655_v42  ;;  %v1345_v56 = vadd.f32 %v2754_v9, %v1328_v17  ;;  %v1188_v57 = vpop.f32.mrb[82].mxu1  ;;  %v1329_v53 = vadd.f32 %v1304_v44, %v1205_v23  ;;  %v2242_v59 = vpop.f32.mrb[83].mxu0  ;;  %v1562_v39 = vadd.s32 10, %v2919_v6  ;;  %vm2954_vm11 = vmand %vm1542_vm8, %vm1532_vm7 }
 0x18c   : > { %v1207_v63 = vadd.f32 %v1188_v57, %v2690_v32  ;;  %v2224_v21 = vpop.f32.mrb[83].mxu1  ;;  %vm1639_vm14 = vcmask 57344  }
 0x18d   : > { %v1993_v55 = vpack.c.bf16 %v1345_v56, %v1345_v56  ;;  %v1607_v2 = vsel %vm2853_vm10, %v1345_v56, 0.0  ;;  %v1346_v49 = vadd.f32 %v2754_v9, %v1329_v53  ;;  %vm2943_vm10 = vmand %vm1541_vm6, %vm1531_vm5  ;;  %v1572_v46 = vsel %vm2954_vm11, %v1562_v39, %v2919_v6 }
 0x18e   : > { %v1621_v32 = vsel %vm1613_vm3, %v1607_v2, 0.0  ;;  %v1645_v4 = vmul.f32 %v1607_v2, %v1607_v2  ;;  %vm1582_vm13 = vcmp.lt.s32.totalorder %v1572_v46, 8 }
 0x18f   : > { %1396 = vst.msk [vmem:[%s2804_s24 + $0x10] sm:$0xf] %vm1391_vm0, %v1993_v55  ;;  %v1622_v20 = vadd.f32 %v1621_v32, %v1620_v45  ;;  %v1994_v8 = vpack.c.bf16 %v1346_v49, %v1346_v49  ;;  %v1608_v1 = vsel %vm1578_vm1, %v1346_v49, 0.0  ;;  %v1571_v45 = vsel %vm2943_vm10, %v1561_v26, %v2908_v58 }
 0x190   : > { %v1658_v13 = vsel %vm1613_vm3, %v1645_v4, 0.0  ;;  %v1623_v3 = vsel %vm1613_vm3, %v1608_v1, 0.0  ;;  %v1646_v16 = vmul.f32 %v1608_v1, %v1608_v1  ;;  %v1309_v18 = vpop.f32.mrb[84].mxu0  ;;  %vm1581_vm12 = vcmp.lt.s32.totalorder %v1571_v45, 8 }
 0x191   : > { %v1659_v61 = vadd.f32 %v1658_v13, %v1657_v54  ;;  %1397 = vst.msk [vmem:[%s2804_s24 + $0x14] sm:$0xf] %vm1391_vm0, %v1994_v8  ;;  %v1624_v35 = vadd.f32 %v1623_v3, %v1622_v20  ;;  %v1193_v14 = vpop.f32.mrb[84].mxu1  ;;  %v1330_v7 = vadd.f32 %v1309_v18, %v1206_v50  ;;  %v2245_v23 = vpop.f32.mrb[85].mxu0 }
 0x192   : > { %v1660_v19 = vsel %vm1613_vm3, %v1646_v16, 0.0  ;;  %v1208_v22 = vadd.f32 %v1193_v14, %v2708_v40  ;;  %v2227_v60 = vpop.f32.mrb[85].mxu1  ;;  %v1312_v5 = vpop.f32.mrb[86].mxu0 }
 0x193   : > { %v1661_v27 = vadd.f32 %v1660_v19, %v1659_v61  ;;  %v1347_v29 = vadd.f32 %v2754_v9, %v1330_v7  ;;  %v1196_v0 = vpop.f32.mrb[86].mxu1  ;;  %v1331_v12 = vadd.f32 %v1312_v5, %v1207_v63  ;;  %v2246_v25 = vpop.f32.mrb[87].mxu0 }
 0x194   : > { %v1209_v24 = vadd.f32 %v1196_v0, %v2721_v52  ;;  %v2228_v33 = vpop.f32.mrb[87].mxu1 }
 0x195   : > { %v1995_v28 = vpack.c.bf16 %v1347_v29, %v1347_v29  ;;  %v1609_v38 = vsel %vm2914_vm4, %v1347_v29, 0.0  ;;  %v1348_v15 = vadd.f32 %v2754_v9, %v1331_v12 }
 0x196   : > { %v1625_v52 = vsel %vm1613_vm3, %v1609_v38, 0.0  ;;  %v1647_v36 = vmul.f32 %v1609_v38, %v1609_v38 }
 0x197   : > { %1398 = vst.msk [vmem:[%s2804_s24 + $0x18] sm:$0xf] %vm1391_vm0, %v1995_v28  ;;  %v1626_v30 = vadd.f32 %v1625_v52, %v1624_v35  ;;  %v1996_v34 = vpack.c.bf16 %v1348_v15, %v1348_v15  ;;  %v1610_v42 = vsel %vm1580_vm9, %v1348_v15, 0.0 }
 0x198   : > { %v1662_v43 = vsel %vm1613_vm3, %v1647_v36, 0.0  ;;  %v1627_v17 = vsel %vm1613_vm3, %v1610_v42, 0.0  ;;  %v1648_v31 = vmul.f32 %v1610_v42, %v1610_v42  ;;  %v1317_v48 = vpop.f32.mrb[88].mxu0 }
 0x199   : > { %v1663_v50 = vadd.f32 %v1662_v43, %v1661_v27  ;;  %1399 = vst.msk [vmem:[%s2804_s24 + $0x1c] sm:$0xf] %vm1391_vm0, %v1996_v34  ;;  %v1628_v47 = vadd.f32 %v1627_v17, %v1626_v30  ;;  %v1332_v44 = vadd.f32 %v1317_v48, %v1208_v22  ;;  %v2249_v51 = vpop.f32.mrb[89].mxu0 }
 0x19a   : > { %v1664_v54 = vsel %vm1613_vm3, %v1648_v31, 0.0  ;;  %v1320_v56 = vpop.f32.mrb[90].mxu0 }
 0x19b   : > { %v1665_v57 = vadd.f32 %v1664_v54, %v1663_v50  ;;  %v1349_v53 = vadd.f32 %v2754_v9, %v1332_v44  ;;  %v1333_v59 = vadd.f32 %v1320_v56, %v1209_v24  ;;  %v2250_v62 = vpop.f32.mrb[91].mxu0 }
 0x19d   : > { %v1997_v63 = vpack.c.bf16 %v1349_v53, %v1349_v53  ;;  %v1611_v21 = vsel %vm1581_vm12, %v1349_v53, 0.0  ;;  %v1350_v11 = vadd.f32 %v2754_v9, %v1333_v59 }
 0x19e   : > { %v1629_v58 = vsel %vm1613_vm3, %v1611_v21, 0.0  ;;  %v1649_v55 = vmul.f32 %v1611_v21, %v1611_v21 }
 0x19f   : > { %1400 = vst.msk [vmem:[%s2804_s24 + $0x20] sm:$0xf] %vm1391_vm0, %v1997_v63  ;;  %v1630_v2 = vadd.f32 %v1629_v58, %v1628_v47  ;;  %v1998_v49 = vpack.c.bf16 %v1350_v11, %v1350_v11  ;;  %v1612_v32 = vsel %vm1582_vm13, %v1350_v11, 0.0 }
 0x1a0   : > { %v1666_v4 = vsel %vm1613_vm3, %v1649_v55, 0.0  ;;  %v1631_v37 = vsel %vm1613_vm3, %v1612_v32, 0.0  ;;  %v1650_v6 = vmul.f32 %v1612_v32, %v1612_v32 }
 0x1a1   : > { %v1667_v20 = vadd.f32 %v1666_v4, %v1665_v57  ;;  %1401 = vst.msk [vmem:[%s2804_s24 + $0x24] sm:$0xf] %vm1391_vm0, %v1998_v49  ;;  %v1632_v8 = vadd.f32 %v1631_v37, %v1630_v2 }
 0x1a2   : > { %v1668_v9 = vsel %vm1613_vm3, %v1650_v6, 0.0 }
 0x1a3   : > { %v1633_v1 = vrot.slane %v1632_v8, 4  ;;  %v1669_v10 = vadd.f32 %v1668_v9, %v1667_v20 }
 0x1a5   : > { %v1634_v13 = vadd.f32 %v1633_v1, %v1632_v8  ;;  %v1670_v3 = vrot.slane %v1669_v10, 4 }
 0x1a7   : > { %v1635_v16 = vrot.slane %v1634_v13, 2  ;;  %v1671_v18 = vadd.f32 %v1670_v3, %v1669_v10 }
 0x1a9   : > { %v1636_v61 = vadd.f32 %v1635_v16, %v1634_v13  ;;  %v1672_v35 = vrot.slane %v1671_v18, 2 }
 0x1ab   : > { %v1637_v14 = vrot.slane %v1636_v61, 1  ;;  %v1673_v7 = vadd.f32 %v1672_v35, %v1671_v18 }
 0x1ad   : > { %v1638_v23 = vadd.f32 %v1637_v14, %v1636_v61  ;;  %v1674_v19 = vrot.slane %v1673_v7, 1 }
 0x1af   : > { %1640 = vst.msk [vmem:[%s235_s28] sm:$0x1] %vm1639_vm14, %v1638_v23  ;;  %v1675_v22 = vadd.f32 %v1674_v19, %v1673_v7 }
 0x1b1   : > { %1676 = vst.msk [vmem:[%s235_s28 + $0x1] sm:$0x1] %vm1639_vm14, %v1675_v22 }
 0x1b2 PF: > { %s15_s17 = sadd.s32 1, %s2332_s17   ;;  %s3031_s15 = smov %s2328_s16 }
 0x1b3   : > { %p12_p5 = scmp.ge.s32.totalorder %s15_s17, 4   ;;  %s3032_s16 = smov %s3034_s18 }
 0x1b5   :  { %14 = sbr.rel (!%p12_p5) target bundleno = 2 (0x2), region = 91 }

// kernel: conv_autoencoder_forward.17
= control target key start
LH: loop header
LB: loop body
LE: loop exit
PB: predicated region body
PF: predicated region fallthrough
CT: control target
= control target key end

     0   :  { %s5072_s18 = smov 0   ;;  %s5074_s19 = smov 0   ;;  %s5990_s0 = inlined_call_operand.vmem [shape: f32[2,342,8], index: 0, kind: input, shape index: {}]   ;;  %s5991_s1 = inlined_call_operand.vmem [shape: bf16[9,8,128], index: 1, kind: input, shape index: {}]   ;;  %s5992_s2 = inlined_call_operand.vmem [shape: f32[1,128], index: 2, kind: input, shape index: {}]   ;;  %s5993_s3 = inlined_call_operand.vmem [shape: bf16[128,3], index: 3, kind: input, shape index: {}]   ;;  %s5994_s4 = inlined_call_operand.vmem [shape: f32[1,3], index: 4, kind: input, shape index: {}]   ;;  %s5995_s5 = inlined_call_operand.vmem [shape: f32[2,288,3], index: 5, kind: output, shape index: {}]  }
   0x1   :  { %s5076_s20 = smov 0  }
   0x2 LB: > { %s27_s21 = sadd.s32 1, %s5036_s19  ;;  %p3623_p0 = scmp.ge.s32.totalorder %s5040_s20, 1  ;;  %s5040_s20 = sphi %s5076_s20, %s15_s20   ;;  %s5036_s19 = sphi %s5074_s19, %s5997_s19   ;;  %s5032_s18 = sphi %s5072_s18, %s5996_s18  }
   0x3   : > { %p29_p1 = scmp.ge.s32.totalorder %s27_s21, 2  ;;  %p201_p2 = scmp.lt.s32.totalorder %s5040_s20, 3 }
   0x5   : > { %s5999_s21 = smov (%p29_p1, %s27_s21), 0  ;;  %p202_p3 = pnand %p3623_p0, %p201_p2 }
   0x6   : > { %vm419_vm0 = vcmask (!%p202_p3), 1043456   ;;  %v3845_v0 = vld [vmem:[%s5991_s1 + $0x10] sm:$0xf] (!%p202_p3)  ;;  %v3662_v1 = vld [vmem:[%s5991_s1 + $0x4] sm:$0xf] (!%p202_p3)  ;;  %p233_p4 = scmp.lt.s32.totalorder (!%p202_p3), %s5032_s18, 1 }
   0x7   : > { %205 = sbr.rel (%p202_p3) target bundleno = 817 (0x331), region = 40  ;;  %4979 = vmatprep.subr.msk.bf16.mxu0 (!%p202_p3), %vm419_vm0, %v3845_v0  ;;  %4975 = vmatprep.subr.msk.bf16.mxu1 (!%p202_p3), %vm419_vm0, %v3662_v1  ;;  %v1603_v2 = vsel (!%p202_p3), %vm419_vm0, %v3845_v0, 0  ;;  %v421_v3 = vsel (!%p202_p3), %vm419_vm0, %v3662_v1, 0  ;;  %v3900_v4 = vld [vmem:[%s5991_s1 + $0x14] sm:$0xf] (!%p202_p3)  ;;  %vm364_vm1 = vcmask (!%p202_p3), 64512  }
   0x8   : > { %4446 = vmatpush3.bf16.msra.mxu0 (!%p202_p3), %v1603_v2  ;;  %4294 = vmatpush3.bf16.msra.mxu1 (!%p202_p3), %v421_v3  ;;  %v305_v5 = vld [vmem:[%s5991_s1] sm:$0xf] (!%p202_p3)  ;;  %v1931_v20 = vsel (!%p202_p3), %vm419_vm0, %v3900_v4, 0  ;;  %v5136_v26 = vld [vmem:[%s5991_s1 + $0x18] sm:$0xf] (!%p202_p3)  ;;  %vm3475_vm2 = vcmask (!%p202_p3), 23552  }
   0x9   : > { %4980 = vmatprep.subr.msk.bf16.mxu0 (!%p202_p3), %vm419_vm0, %v3900_v4  ;;  %4976 = vmatprep.subr.msk.bf16.mxu1 (!%p202_p3), %vm419_vm0, %v305_v5  ;;  %v655_v18 = vsel (!%p202_p3), %vm419_vm0, %v305_v5, 0 }
   0xe   : > { %s6001_s18 = smov (!%p233_p4, %s5032_s18), 1 }
   0xf   : > { %s4984_s30 = smul.u32 344, %s6001_s18 }
  0x10   : > { %s4985_s16 = smul.u32 288, %s6001_s18 }
  0x11   : > { %s5114_s8 = scalar_lea.vmem %s5990_s0, %s4984_s30 }
  0x12   : > { %v3626_v6 = vld [vmem:[%s5114_s8 + $0x1] sm:$0xff]  ;;  %v3627_v7 = vld [vmem:[%s5114_s8 + $0x9] sm:$0xff]  ;;  %v3809_v8 = vld [vmem:[%s5114_s8 + $0x13] sm:$0xff]  ;;  %s5871_s25 = scalar_lea.vmem %s5995_s5, %s4985_s16 }
  0x13   : > { %v344_v9 = vpack.c.bf16 %v3627_v7, %v3626_v6  ;;  %v3810_v10 = vld [vmem:[%s5114_s8 + $0x1b] sm:$0xff]  ;;  %v3628_v11 = vld [vmem:[%s5114_s8 + $0x11] sm:$0xff]  ;;  %v3811_v15 = vld [vmem:[%s5114_s8 + $0x23] sm:$0xff] }
  0x14   : > { %v3629_v12 = vld [vmem:[%s5114_s8 + $0x19] sm:$0xff]  ;;  %v1528_v13 = vpack.c.bf16 %v3810_v10, %v3809_v8  ;;  %v3812_v16 = vld [vmem:[%s5114_s8 + $0x2b] sm:$0xff]  ;;  %v3630_v17 = vld [vmem:[%s5114_s8 + $0x21] sm:$0xff] }
  0x15   : > { %v345_v14 = vpack.c.bf16 %v3629_v12, %v3628_v11  ;;  %4295 = vmatprep.mubr.msk.bf16.mxu1 %vm364_vm1, %v344_v9  ;;  %v1529_v19 = vpack.c.bf16 %v3812_v16, %v3811_v15  ;;  %v3631_v21 = vld [vmem:[%s5114_s8 + $0x29] sm:$0xff]  ;;  %v3813_v22 = vld [vmem:[%s5114_s8 + $0x33] sm:$0xff]  ;;  %v3814_v23 = vld [vmem:[%s5114_s8 + $0x3b] sm:$0xff] }
  0x16   : > { %4447 = vmatprep.mubr.msk.bf16.mxu0 %vm364_vm1, %v1528_v13  ;;  %v346_v24 = vpack.c.bf16 %v3631_v21, %v3630_v17  ;;  %v1530_v25 = vpack.c.bf16 %v3814_v23, %v3813_v22  ;;  %v3632_v27 = vld [vmem:[%s5114_s8 + $0x31] sm:$0xff]  ;;  %v3633_v28 = vld [vmem:[%s5114_s8 + $0x39] sm:$0xff]  ;;  %v3815_v29 = vld [vmem:[%s5114_s8 + $0x43] sm:$0xff] }
  0x17   : > { %4296 = vmatmul.mubr.msk.bf16.vlgmr.msra.gmra.mrb[0].mxu1 %vm364_vm1, %v345_v14  ;;  %4448 = vmatmul.mubr.msk.bf16.vlgmr.msra.gmra.mrb[0].mxu0 %vm364_vm1, %v1529_v19  ;;  %v3816_v30 = vld [vmem:[%s5114_s8 + $0x4b] sm:$0xff]  ;;  %v3634_v31 = vld [vmem:[%s5114_s8 + $0x41] sm:$0xff]  ;;  %v3817_v33 = vld [vmem:[%s5114_s8 + $0x53] sm:$0xff]  ;;  %v347_v35 = vpack.c.bf16 %v3633_v28, %v3632_v27 }
  0x18   : > { %4332 = vmatpush3.bf16.msra.mxu1 %v655_v18  ;;  %4484 = vmatpush3.bf16.msra.mxu0 %v1931_v20  ;;  %v3635_v32 = vld [vmem:[%s5114_s8 + $0x49] sm:$0xff]  ;;  %v3818_v34 = vld [vmem:[%s5114_s8 + $0x5b] sm:$0xff]  ;;  %v1531_v36 = vpack.c.bf16 %v3816_v30, %v3815_v29  ;;  %v3636_v39 = vld [vmem:[%s5114_s8 + $0x51] sm:$0xff] }
  0x19   : > { %4299 = vmatprep.mubr.msk.bf16.mxu1 %vm364_vm1, %v346_v24  ;;  %4451 = vmatprep.mubr.msk.bf16.mxu0 %vm364_vm1, %v1530_v25  ;;  %v348_v37 = vpack.c.bf16 %v3635_v32, %v3634_v31  ;;  %v1532_v38 = vpack.c.bf16 %v3818_v34, %v3817_v33  ;;  %v3637_v40 = vld [vmem:[%s5114_s8 + $0x59] sm:$0xff]  ;;  %v3819_v41 = vld [vmem:[%s5114_s8 + $0x63] sm:$0xff]  ;;  %v3820_v42 = vld [vmem:[%s5114_s8 + $0x6b] sm:$0xff] }
  0x1a   : > { %4981 = vmatprep.subr.msk.bf16.mxu0 %vm419_vm0, %v5136_v26  ;;  %v3638_v43 = vld [vmem:[%s5114_s8 + $0x61] sm:$0xff]  ;;  %v3639_v44 = vld [vmem:[%s5114_s8 + $0x69] sm:$0xff]  ;;  %v3821_v45 = vld [vmem:[%s5114_s8 + $0x73] sm:$0xff]  ;;  %v349_v47 = vpack.c.bf16 %v3637_v40, %v3636_v39  ;;  %v1533_v48 = vpack.c.bf16 %v3820_v42, %v3819_v41 }
  0x1b   : > { %v3822_v46 = vld [vmem:[%s5114_s8 + $0x7b] sm:$0xff]  ;;  %v350_v49 = vpack.c.bf16 %v3639_v44, %v3638_v43  ;;  %v3640_v51 = vld [vmem:[%s5114_s8 + $0x71] sm:$0xff]  ;;  %v3823_v53 = vld [vmem:[%s5114_s8 + $0x83] sm:$0xff] }
  0x1c   : > { %v1534_v50 = vpack.c.bf16 %v3822_v46, %v3821_v45  ;;  %v3641_v52 = vld [vmem:[%s5114_s8 + $0x79] sm:$0xff]  ;;  %v3824_v54 = vld [vmem:[%s5114_s8 + $0x8b] sm:$0xff]  ;;  %v3642_v55 = vld [vmem:[%s5114_s8 + $0x81] sm:$0xff] }
  0x1d   : > { %v3643_v56 = vld [vmem:[%s5114_s8 + $0x89] sm:$0xff]  ;;  %v3825_v57 = vld [vmem:[%s5114_s8 + $0x93] sm:$0xff]  ;;  %v3826_v58 = vld [vmem:[%s5114_s8 + $0x9b] sm:$0xff]  ;;  %v351_v59 = vpack.c.bf16 %v3641_v52, %v3640_v51  ;;  %v1535_v60 = vpack.c.bf16 %v3824_v54, %v3823_v53 }
  0x1e   : > { %v352_v61 = vpack.c.bf16 %v3643_v56, %v3642_v55  ;;  %v1536_v62 = vpack.c.bf16 %v3826_v58, %v3825_v57  ;;  %v3644_v63 = vld [vmem:[%s5114_s8 + $0x91] sm:$0xff]  ;;  %v3645_v0 = vld [vmem:[%s5114_s8 + $0x99] sm:$0xff]  ;;  %v3827_v1 = vld [vmem:[%s5114_s8 + $0xa3] sm:$0xff] }
  0x1f   : > { %4300 = vmatmul.mubr.msk.bf16.gmra.mrb[4].mxu1 %vm364_vm1, %v347_v35  ;;  %4452 = vmatmul.mubr.msk.bf16.gmra.mrb[4].mxu0 %vm364_vm1, %v1531_v36  ;;  %v3828_v2 = vld [vmem:[%s5114_s8 + $0xab] sm:$0xff]  ;;  %v3646_v3 = vld [vmem:[%s5114_s8 + $0xa1] sm:$0xff]  ;;  %v3829_v5 = vld [vmem:[%s5114_s8 + $0xb3] sm:$0xff]  ;;  %v353_v7 = vpack.c.bf16 %v3645_v0, %v3644_v63 }
  0x20   : > { %4303 = vmatprep.mubr.msk.bf16.mxu1 %vm364_vm1, %v348_v37  ;;  %4455 = vmatprep.mubr.msk.bf16.mxu0 %vm364_vm1, %v1532_v38  ;;  %v3647_v4 = vld [vmem:[%s5114_s8 + $0xa9] sm:$0xff]  ;;  %v3830_v6 = vld [vmem:[%s5114_s8 + $0xbb] sm:$0xff]  ;;  %v1537_v8 = vpack.c.bf16 %v3828_v2, %v3827_v1  ;;  %v3648_v11 = vld [vmem:[%s5114_s8 + $0xb1] sm:$0xff] }
  0x21   : > { %v354_v9 = vpack.c.bf16 %v3647_v4, %v3646_v3  ;;  %v1538_v10 = vpack.c.bf16 %v3830_v6, %v3829_v5  ;;  %v3649_v12 = vld [vmem:[%s5114_s8 + $0xb9] sm:$0xff]  ;;  %v3831_v13 = vld [vmem:[%s5114_s8 + $0xc3] sm:$0xff]  ;;  %v3832_v14 = vld [vmem:[%s5114_s8 + $0xcb] sm:$0xff] }
  0x22   : > { %v3650_v15 = vld [vmem:[%s5114_s8 + $0xc1] sm:$0xff]  ;;  %v3651_v16 = vld [vmem:[%s5114_s8 + $0xc9] sm:$0xff]  ;;  %v3833_v17 = vld [vmem:[%s5114_s8 + $0xd3] sm:$0xff]  ;;  %v355_v19 = vpack.c.bf16 %v3649_v12, %v3648_v11  ;;  %v1539_v20 = vpack.c.bf16 %v3832_v14, %v3831_v13 }
  0x23   : > { %v3834_v18 = vld [vmem:[%s5114_s8 + $0xdb] sm:$0xff]  ;;  %v356_v21 = vpack.c.bf16 %v3651_v16, %v3650_v15  ;;  %v3652_v23 = vld [vmem:[%s5114_s8 + $0xd1] sm:$0xff]  ;;  %v3835_v25 = vld [vmem:[%s5114_s8 + $0xe3] sm:$0xff] }
  0x24   : > { %v1540_v22 = vpack.c.bf16 %v3834_v18, %v3833_v17  ;;  %v3653_v24 = vld [vmem:[%s5114_s8 + $0xd9] sm:$0xff]  ;;  %v3836_v27 = vld [vmem:[%s5114_s8 + $0xeb] sm:$0xff]  ;;  %v3654_v28 = vld [vmem:[%s5114_s8 + $0xe1] sm:$0xff] }
  0x25   : > { %v3655_v29 = vld [vmem:[%s5114_s8 + $0xe9] sm:$0xff]  ;;  %v3837_v30 = vld [vmem:[%s5114_s8 + $0xf3] sm:$0xff]  ;;  %v3838_v31 = vld [vmem:[%s5114_s8 + $0xfb] sm:$0xff]  ;;  %v357_v32 = vpack.c.bf16 %v3653_v24, %v3652_v23  ;;  %v1541_v34 = vpack.c.bf16 %v3836_v27, %v3835_v25 }
  0x26   : > { %v3735_v33 = vld [vmem:[%s5991_s1 + $0x8] sm:$0xf]  ;;  %v358_v35 = vpack.c.bf16 %v3655_v29, %v3654_v28  ;;  %v1542_v36 = vpack.c.bf16 %v3838_v31, %v3837_v30  ;;  %v3656_v37 = vld [vmem:[%s5114_s8 + $0xf1] sm:$0xff]  ;;  %v3657_v38 = vld [vmem:[%s5114_s8 + $0xf9] sm:$0xff] }
  0x27   : > { %4304 = vmatmul.mubr.msk.bf16.gmra.mrb[8].mxu1 %vm364_vm1, %v349_v47  ;;  %4456 = vmatmul.mubr.msk.bf16.gmra.mrb[8].mxu0 %vm364_vm1, %v1533_v48  ;;  %v3839_v39 = vld [vmem:[%s5114_s8 + $0x103] sm:$0xff]  ;;  %v3840_v40 = vld [vmem:[%s5114_s8 + $0x10b] sm:$0xff]  ;;  %v3841_v43 = vld [vmem:[%s5114_s8 + $0x113] sm:$0xff]  ;;  %v359_v45 = vpack.c.bf16 %v3657_v38, %v3656_v37 }
  0x28   : > { %4307 = vmatprep.mubr.msk.bf16.mxu1 %vm364_vm1, %v350_v49  ;;  %4459 = vmatprep.mubr.msk.bf16.mxu0 %vm364_vm1, %v1534_v50  ;;  %v3658_v41 = vld [vmem:[%s5114_s8 + $0x101] sm:$0xff]  ;;  %v3659_v42 = vld [vmem:[%s5114_s8 + $0x109] sm:$0xff]  ;;  %v1543_v46 = vpack.c.bf16 %v3840_v40, %v3839_v39  ;;  %v3660_v49 = vld [vmem:[%s5114_s8 + $0x111] sm:$0xff] }
  0x29   : > { %4977 = vmatprep.subr.msk.bf16.mxu1 %vm419_vm0, %v3735_v33  ;;  %v3842_v44 = vld [vmem:[%s5114_s8 + $0x11b] sm:$0xff]  ;;  %v360_v47 = vpack.c.bf16 %v3659_v42, %v3658_v41  ;;  %v3843_v51 = vld [vmem:[%s5114_s8 + $0x123] sm:$0xff]  ;;  %v3844_v52 = vld [vmem:[%s5114_s8 + $0x12b] sm:$0xff] }
  0x2a   : > { %v1544_v48 = vpack.c.bf16 %v3842_v44, %v3841_v43  ;;  %v3661_v50 = vld [vmem:[%s5114_s8 + $0x119] sm:$0xff]  ;;  %v252_v54 = vld [vmem:[%s5114_s8 + $0x8] sm:$0xff]  ;;  %v1545_v58 = vpack.c.bf16 %v3844_v52, %v3843_v51  ;;  %v257_v12 = vld [vmem:[%s5114_s8 + $0x30] sm:$0xff] }
  0x2b   : > { %v251_v53 = vld [vmem:[%s5114_s8] sm:$0xff]  ;;  %v3864_v55 = vld [vmem:[%s5114_s8 + $0x14] sm:$0xff]  ;;  %v361_v57 = vpack.c.bf16 %v3661_v50, %v3660_v49  ;;  %v3867_v0 = vld [vmem:[%s5114_s8 + $0x2c] sm:$0xff] }
  0x2c   : > { %v3865_v56 = vld [vmem:[%s5114_s8 + $0x1c] sm:$0xff]  ;;  %v3866_v63 = vld [vmem:[%s5114_s8 + $0x24] sm:$0xff]  ;;  %v3868_v3 = vld [vmem:[%s5114_s8 + $0x34] sm:$0xff] }
  0x2d   : > { %v255_v1 = vld [vmem:[%s5114_s8 + $0x20] sm:$0xff]  ;;  %v256_v2 = vld [vmem:[%s5114_s8 + $0x28] sm:$0xff]  ;;  %v5251_v6 = vpack.c.bf16 %v3867_v0, %v3866_v63  ;;  %v5262_v11 = vld [vmem:[%s5991_s1 + $0x1c] sm:$0xf] }
  0x2e   : > { %v3869_v4 = vld [vmem:[%s5114_s8 + $0x3c] sm:$0xff]  ;;  %v3870_v14 = vld [vmem:[%s5114_s8 + $0x44] sm:$0xff]  ;;  %v3872_v17 = vld [vmem:[%s5114_s8 + $0x54] sm:$0xff] }
  0x2f   : > { %4308 = vmatmul.mubr.msk.bf16.gmra.mrb[12].mxu1 %vm364_vm1, %v351_v59  ;;  %4460 = vmatmul.mubr.msk.bf16.gmra.mrb[12].mxu0 %vm364_vm1, %v1535_v60  ;;  %v287_v59 = vpack.c.bf16 %v252_v54, %v251_v53  ;;  %v1856_v60 = vpack.c.bf16 %v3865_v56, %v3864_v55  ;;  %v258_v13 = vld [vmem:[%s5114_s8 + $0x38] sm:$0xff]  ;;  %v259_v15 = vld [vmem:[%s5114_s8 + $0x40] sm:$0xff]  ;;  %v260_v16 = vld [vmem:[%s5114_s8 + $0x48] sm:$0xff] }
  0x30   : > { %4311 = vmatprep.mubr.msk.bf16.mxu1 %vm364_vm1, %v352_v61  ;;  %4463 = vmatprep.mubr.msk.bf16.mxu0 %vm364_vm1, %v1536_v62  ;;  %v253_v61 = vld [vmem:[%s5114_s8 + $0x10] sm:$0xff]  ;;  %v254_v62 = vld [vmem:[%s5114_s8 + $0x18] sm:$0xff]  ;;  %v3874_v25 = vld [vmem:[%s5114_s8 + $0x64] sm:$0xff] }
  0x31   : > { %v288_v5 = vpack.c.bf16 %v254_v62, %v253_v61  ;;  %v3873_v18 = vld [vmem:[%s5114_s8 + $0x5c] sm:$0xff]  ;;  %v261_v23 = vld [vmem:[%s5114_s8 + $0x50] sm:$0xff]  ;;  %v5293_v27 = vld [vmem:[%s5991_s1 + $0xc] sm:$0xf] }
  0x32   : > { %v262_v24 = vld [vmem:[%s5114_s8 + $0x58] sm:$0xff]  ;;  %v3875_v28 = vld [vmem:[%s5114_s8 + $0x6c] sm:$0xff]  ;;  %v263_v29 = vld [vmem:[%s5114_s8 + $0x60] sm:$0xff] }
  0x33   : > { %v264_v30 = vld [vmem:[%s5114_s8 + $0x68] sm:$0xff]  ;;  %v3876_v31 = vld [vmem:[%s5114_s8 + $0x74] sm:$0xff]  ;;  %v267_v41 = vld [vmem:[%s5114_s8 + $0x80] sm:$0xff] }
  0x34   : > { %v265_v37 = vld [vmem:[%s5114_s8 + $0x70] sm:$0xff]  ;;  %v266_v38 = vld [vmem:[%s5114_s8 + $0x78] sm:$0xff]  ;;  %v3878_v39 = vld [vmem:[%s5114_s8 + $0x84] sm:$0xff] }
  0x35   : > { %v3879_v40 = vld [vmem:[%s5114_s8 + $0x8c] sm:$0xff]  ;;  %v3880_v43 = vld [vmem:[%s5114_s8 + $0x94] sm:$0xff]  ;;  %v3881_v44 = vld [vmem:[%s5114_s8 + $0x9c] sm:$0xff] }
  0x36   : > { %v268_v42 = vld [vmem:[%s5114_s8 + $0x88] sm:$0xff]  ;;  %v269_v49 = vld [vmem:[%s5114_s8 + $0x90] sm:$0xff]  ;;  %v270_v50 = vld [vmem:[%s5114_s8 + $0x98] sm:$0xff] }
  0x37   : > { %4312 = vmatmul.mubr.msk.bf16.gmra.mrb[16].mxu1 %vm364_vm1, %v353_v7  ;;  %4464 = vmatmul.mubr.msk.bf16.gmra.mrb[16].mxu0 %vm364_vm1, %v1537_v8  ;;  %v289_v7 = vpack.c.bf16 %v256_v2, %v255_v1  ;;  %v5253_v8 = vpack.c.bf16 %v3869_v4, %v3868_v3  ;;  %v3882_v51 = vld [vmem:[%s5114_s8 + $0xa4] sm:$0xff]  ;;  %v3883_v52 = vld [vmem:[%s5114_s8 + $0xac] sm:$0xff]  ;;  %v3884_v55 = vld [vmem:[%s5114_s8 + $0xb4] sm:$0xff] }
  0x38   : > { %4315 = vmatprep.mubr.msk.bf16.mxu1 %vm364_vm1, %v354_v9  ;;  %4467 = vmatprep.mubr.msk.bf16.mxu0 %vm364_vm1, %v1538_v10  ;;  %v2259_v9 = vsel %vm419_vm0, %v5136_v26, 0  ;;  %v947_v10 = vsel %vm419_vm0, %v3735_v33, 0  ;;  %v3871_v26 = vld [vmem:[%s5114_s8 + $0x4c] sm:$0xff]  ;;  %v292_v33 = vpack.c.bf16 %v262_v24, %v261_v23  ;;  %v271_v53 = vld [vmem:[%s5114_s8 + $0xa0] sm:$0xff]  ;;  %v274_v62 = vld [vmem:[%s5114_s8 + $0xb8] sm:$0xff] }
  0x39   : > { %v272_v54 = vld [vmem:[%s5114_s8 + $0xa8] sm:$0xff]  ;;  %v3885_v56 = vld [vmem:[%s5114_s8 + $0xbc] sm:$0xff]  ;;  %v273_v61 = vld [vmem:[%s5114_s8 + $0xb0] sm:$0xff] }
  0x3a   : > { %v3886_v63 = vld [vmem:[%s5114_s8 + $0xc4] sm:$0xff]  ;;  %v3887_v0 = vld [vmem:[%s5114_s8 + $0xcc] sm:$0xff]  ;;  %v3888_v3 = vld [vmem:[%s5114_s8 + $0xd4] sm:$0xff] }
  0x3b   : > { %v275_v1 = vld [vmem:[%s5114_s8 + $0xc0] sm:$0xff]  ;;  %v276_v2 = vld [vmem:[%s5114_s8 + $0xc8] sm:$0xff] }
  0x3c   : > { %v3889_v4 = vld [vmem:[%s5114_s8 + $0xdc] sm:$0xff] }
  0x3f   : > { %4316 = vmatmul.mubr.msk.bf16.gmra.mrb[20].mxu1 %vm364_vm1, %v355_v19  ;;  %4468 = vmatmul.mubr.msk.bf16.gmra.mrb[20].mxu0 %vm364_vm1, %v1539_v20  ;;  %v290_v19 = vpack.c.bf16 %v258_v13, %v257_v12  ;;  %v5279_v20 = vpack.c.bf16 %v3871_v26, %v3870_v14  ;;  %v277_v12 = vld [vmem:[%s5114_s8 + $0xd0] sm:$0xff]  ;;  %v278_v13 = vld [vmem:[%s5114_s8 + $0xd8] sm:$0xff]  ;;  %v3890_v14 = vld [vmem:[%s5114_s8 + $0xe4] sm:$0xff] }
  0x40   : > { %4319 = vmatprep.mubr.msk.bf16.mxu1 %vm364_vm1, %v356_v21  ;;  %4471 = vmatprep.mubr.msk.bf16.mxu0 %vm364_vm1, %v1540_v22  ;;  %v291_v21 = vpack.c.bf16 %v260_v16, %v259_v15  ;;  %v5281_v22 = vpack.c.bf16 %v3873_v18, %v3872_v17  ;;  %v3891_v26 = vld [vmem:[%s5114_s8 + $0xec] sm:$0xff]  ;;  %v279_v15 = vld [vmem:[%s5114_s8 + $0xe0] sm:$0xff]  ;;  %v3892_v17 = vld [vmem:[%s5114_s8 + $0xf4] sm:$0xff] }
  0x41   : > { %v280_v16 = vld [vmem:[%s5114_s8 + $0xe8] sm:$0xff]  ;;  %v3893_v18 = vld [vmem:[%s5114_s8 + $0xfc] sm:$0xff] }
  0x42   : > { %v301_v23 = vpack.c.bf16 %v280_v16, %v279_v15  ;;  %v5378_v24 = vpack.c.bf16 %v3893_v18, %v3892_v17  ;;  %v3720_v15 = vld [vmem:[%s5114_s8 + $0xaa] sm:$0xff]  ;;  %v3723_v18 = vld [vmem:[%s5114_s8 + $0xc2] sm:$0xff] }
  0x47   : > { %4320 = vmatmul.mubr.msk.bf16.gmra.mrb[24].mxu1 %vm364_vm1, %v357_v32  ;;  %4472 = vmatmul.mubr.msk.bf16.gmra.mrb[24].mxu0 %vm364_vm1, %v1541_v34  ;;  %v3877_v32 = vld [vmem:[%s5114_s8 + $0x7c] sm:$0xff]  ;;  %v5304_v34 = vpack.c.bf16 %v3875_v28, %v3874_v25  ;;  %v281_v25 = vld [vmem:[%s5114_s8 + $0xf0] sm:$0xff] }
  0x48   : > { %4323 = vmatprep.mubr.msk.bf16.mxu1 %vm364_vm1, %v358_v35  ;;  %4475 = vmatprep.mubr.msk.bf16.mxu0 %vm364_vm1, %v1542_v36  ;;  %v293_v35 = vpack.c.bf16 %v264_v30, %v263_v29  ;;  %v5306_v36 = vpack.c.bf16 %v3877_v32, %v3876_v31  ;;  %v282_v28 = vld [vmem:[%s5114_s8 + $0xf8] sm:$0xff]  ;;  %v3894_v29 = vld [vmem:[%s5114_s8 + $0x104] sm:$0xff]  ;;  %v3895_v30 = vld [vmem:[%s5114_s8 + $0x10c] sm:$0xff] }
  0x49   : > { %v283_v31 = vld [vmem:[%s5114_s8 + $0x100] sm:$0xff]  ;;  %v284_v32 = vld [vmem:[%s5114_s8 + $0x108] sm:$0xff] }
  0x4f   : > { %4324 = vmatmul.mubr.msk.bf16.gmra.mrb[28].mxu1 %vm364_vm1, %v359_v45  ;;  %4476 = vmatmul.mubr.msk.bf16.gmra.mrb[28].mxu0 %vm364_vm1, %v1543_v46  ;;  %v294_v45 = vpack.c.bf16 %v266_v38, %v265_v37  ;;  %v5322_v46 = vpack.c.bf16 %v3879_v40, %v3878_v39  ;;  %v302_v37 = vpack.c.bf16 %v282_v28, %v281_v25  ;;  %v3727_v28 = vld [vmem:[%s5114_s8 + $0xe2] sm:$0xff] }
  0x50   : > { %4327 = vmatprep.mubr.msk.bf16.mxu1 %vm364_vm1, %v360_v47  ;;  %4479 = vmatprep.mubr.msk.bf16.mxu0 %vm364_vm1, %v1544_v48  ;;  %v295_v47 = vpack.c.bf16 %v268_v42, %v267_v41  ;;  %v5324_v48 = vpack.c.bf16 %v3881_v44, %v3880_v43  ;;  %v5394_v38 = vpack.c.bf16 %v3895_v30, %v3894_v29  ;;  %v285_v41 = vld [vmem:[%s5114_s8 + $0x110] sm:$0xff]  ;;  %v286_v42 = vld [vmem:[%s5114_s8 + $0x118] sm:$0xff]  ;;  %v3898_v43 = vld [vmem:[%s5114_s8 + $0x124] sm:$0xff] }
  0x51   : > { %v303_v39 = vpack.c.bf16 %v284_v32, %v283_v31  ;;  %v3899_v44 = vld [vmem:[%s5114_s8 + $0x12c] sm:$0xff]  ;;  %v3731_v32 = vld [vmem:[%s5114_s8 + $0x102] sm:$0xff] }
  0x52   : > { %v3728_v29 = vld [vmem:[%s5114_s8 + $0xea] sm:$0xff] }
  0x53   : > { %v5531_v31 = vpack.c.bf16 %v3728_v29, %v3727_v28  ;;  %v4006_v28 = vld [vmem:[%s5114_s8 + $0x125] sm:$0xff]  ;;  %v4007_v29 = vld [vmem:[%s5114_s8 + $0x12d] sm:$0xff] }
  0x57   : > { %4328 = vmatmul.mubr.msk.bf16.gmra.mrb[32].mxu1 %vm364_vm1, %v361_v57  ;;  %4480 = vmatmul.mubr.msk.bf16.gmra.mrb[32].mxu0 %vm364_vm1, %v1545_v58  ;;  %v296_v57 = vpack.c.bf16 %v270_v50, %v269_v49  ;;  %v5340_v58 = vpack.c.bf16 %v3883_v52, %v3882_v51  ;;  %v304_v49 = vpack.c.bf16 %v286_v42, %v285_v41  ;;  %v3701_v52 = vld [vmem:[%s5114_s8 + $0x12] sm:$0xff]  ;;  %v3954_v41 = vld [vmem:[%s5114_s8 + $0x13c] sm:$0xff]  ;;  %v3974_v42 = vld [vmem:[%s5114_s8 + $0x25] sm:$0xff] }
  0x58   : > { %4333 = vmatprep.mubr.msk.bf16.mxu1 %vm364_vm1, %v287_v59  ;;  %4485 = vmatprep.mubr.msk.bf16.mxu0 %vm364_vm1, %v1856_v60  ;;  %v297_v59 = vpack.c.bf16 %v272_v54, %v271_v53  ;;  %v5342_v60 = vpack.c.bf16 %v3885_v56, %v3884_v55  ;;  %v5410_v50 = vpack.c.bf16 %v3899_v44, %v3898_v43  ;;  %v3702_v53 = vld [vmem:[%s5114_s8 + $0x1a] sm:$0xff]  ;;  %v3703_v54 = vld [vmem:[%s5114_s8 + $0x22] sm:$0xff]  ;;  %v3704_v55 = vld [vmem:[%s5114_s8 + $0x2a] sm:$0xff] }
  0x59   : > { %v5422_v56 = vpack.c.bf16 %v3702_v53, %v3701_v52  ;;  %v3975_v43 = vld [vmem:[%s5114_s8 + $0x2d] sm:$0xff] }
  0x5f   : > { %4334 = vmatmul.mubr.msk.bf16.vlgmr.msra.gmra.mrb[0].mxu1 %vm364_vm1, %v288_v5  ;;  %4486 = vmatmul.mubr.msk.bf16.vlgmr.msra.gmra.mrb[0].mxu0 %vm364_vm1, %v5251_v6  ;;  %v298_v5 = vpack.c.bf16 %v274_v62, %v273_v61  ;;  %v1275_v61 = vsel %vm419_vm0, %v5293_v27, 0  ;;  %v3706_v62 = vld [vmem:[%s5114_s8 + $0x3a] sm:$0xff] }
  0x60   : > { %4337 = vmatprep.mubr.msk.bf16.mxu1 %vm364_vm1, %v289_v7  ;;  %4522 = vmatpush3.bf16.msra.mxu0 %v2259_v9  ;;  %v5358_v7 = vpack.c.bf16 %v3887_v0, %v3886_v63  ;;  %v299_v9 = vpack.c.bf16 %v276_v2, %v275_v1  ;;  %v3708_v63 = vld [vmem:[%s5114_s8 + $0x4a] sm:$0xff]  ;;  %v3710_v1 = vld [vmem:[%s5114_s8 + $0x5a] sm:$0xff]  ;;  %v3711_v2 = vld [vmem:[%s5114_s8 + $0x62] sm:$0xff] }
  0x61   : > { %4489 = vmatprep.mubr.msk.bf16.mxu0 %vm364_vm1, %v5253_v8  ;;  %4370 = vmatpush3.bf16.msra.mxu1 %v947_v10  ;;  %v5360_v10 = vpack.c.bf16 %v3889_v4, %v3888_v3  ;;  %v3712_v3 = vld [vmem:[%s5114_s8 + $0x6a] sm:$0xff] }
  0x62   : > { %4982 = vmatprep.subr.msk.bf16.mxu0 %vm419_vm0, %v5262_v11  ;;  %4978 = vmatprep.subr.msk.bf16.mxu1 %vm419_vm0, %v5293_v27  ;;  %v3707_v27 = vld [vmem:[%s5114_s8 + $0x42] sm:$0xff] }
  0x63   : > { %v5451_v0 = vpack.c.bf16 %v3708_v63, %v3707_v27  ;;  %v3986_v27 = vld [vmem:[%s5114_s8 + $0x85] sm:$0xff]  ;;  %v3987_v63 = vld [vmem:[%s5114_s8 + $0x8d] sm:$0xff] }
  0x67   : > { %4338 = vmatmul.mubr.msk.bf16.gmra.mrb[4].mxu1 %vm364_vm1, %v290_v19  ;;  %4490 = vmatmul.mubr.msk.bf16.gmra.mrb[4].mxu0 %vm364_vm1, %v5279_v20  ;;  %v300_v19 = vpack.c.bf16 %v278_v13, %v277_v12  ;;  %v3716_v12 = vld [vmem:[%s5114_s8 + $0x8a] sm:$0xff] }
  0x68   : > { %4341 = vmatprep.mubr.msk.bf16.mxu1 %vm364_vm1, %v291_v21  ;;  %4493 = vmatprep.mubr.msk.bf16.mxu0 %vm364_vm1, %v5281_v22  ;;  %v5376_v21 = vpack.c.bf16 %v3891_v26, %v3890_v14  ;;  %v3719_v26 = vld [vmem:[%s5114_s8 + $0xa2] sm:$0xff] }
  0x69   : > { %v5499_v17 = vpack.c.bf16 %v3720_v15, %v3719_v26  ;;  %v3998_v26 = vld [vmem:[%s5114_s8 + $0xe5] sm:$0xff]  ;;  %v3999_v15 = vld [vmem:[%s5114_s8 + $0xed] sm:$0xff] }
  0x6f   : > { %4342 = vmatmul.mubr.msk.bf16.gmra.mrb[8].mxu1 %vm364_vm1, %v292_v33  ;;  %4494 = vmatmul.mubr.msk.bf16.gmra.mrb[8].mxu0 %vm364_vm1, %v5304_v34  ;;  %v3896_v33 = vld [vmem:[%s5114_s8 + $0x114] sm:$0xff] }
  0x70   : > { %4345 = vmatprep.mubr.msk.bf16.mxu1 %vm364_vm1, %v293_v35  ;;  %4497 = vmatprep.mubr.msk.bf16.mxu0 %vm364_vm1, %v5306_v36  ;;  %v3897_v35 = vld [vmem:[%s5114_s8 + $0x11c] sm:$0xff] }
  0x71   : > { %v5396_v40 = vpack.c.bf16 %v3897_v35, %v3896_v33  ;;  %v3732_v33 = vld [vmem:[%s5114_s8 + $0x10a] sm:$0xff] }
  0x77   : > { %4346 = vmatmul.mubr.msk.bf16.gmra.mrb[12].mxu1 %vm364_vm1, %v294_v45  ;;  %4498 = vmatmul.mubr.msk.bf16.gmra.mrb[12].mxu0 %vm364_vm1, %v5322_v46  ;;  %v3699_v45 = vld [vmem:[%s5114_s8 + $0x2] sm:$0xff] }
  0x78   : > { %4349 = vmatprep.mubr.msk.bf16.mxu1 %vm364_vm1, %v295_v47  ;;  %4501 = vmatprep.mubr.msk.bf16.mxu0 %vm364_vm1, %v5324_v48  ;;  %v3700_v47 = vld [vmem:[%s5114_s8 + $0xa] sm:$0xff] }
  0x79   : > { %v872_v51 = vpack.c.bf16 %v3700_v47, %v3699_v45  ;;  %v3976_v47 = vld [vmem:[%s5114_s8 + $0x35] sm:$0xff] }
  0x7f   : > { %4350 = vmatmul.mubr.msk.bf16.gmra.mrb[16].mxu1 %vm364_vm1, %v296_v57  ;;  %4502 = vmatmul.mubr.msk.bf16.gmra.mrb[16].mxu0 %vm364_vm1, %v5340_v58  ;;  %v5424_v57 = vpack.c.bf16 %v3704_v55, %v3703_v54  ;;  %v3980_v55 = vld [vmem:[%s5114_s8 + $0x55] sm:$0xff] }
  0x80   : > { %4353 = vmatprep.mubr.msk.bf16.mxu1 %vm364_vm1, %v297_v59  ;;  %4505 = vmatprep.mubr.msk.bf16.mxu0 %vm364_vm1, %v5342_v60  ;;  %v2587_v59 = vsel %vm419_vm0, %v5262_v11, 0  ;;  %v3705_v11 = vld [vmem:[%s5114_s8 + $0x32] sm:$0xff] }
  0x87   : > { %4354 = vmatmul.mubr.msk.bf16.gmra.mrb[20].mxu1 %vm364_vm1, %v298_v5  ;;  %4506 = vmatmul.mubr.msk.bf16.gmra.mrb[20].mxu0 %vm364_vm1, %v5358_v7  ;;  %v5467_v5 = vpack.c.bf16 %v3712_v3, %v3711_v2  ;;  %v3990_v2 = vld [vmem:[%s5114_s8 + $0xa5] sm:$0xff]  ;;  %v3991_v3 = vld [vmem:[%s5114_s8 + $0xad] sm:$0xff] }
  0x88   : > { %4357 = vmatprep.mubr.msk.bf16.mxu1 %vm364_vm1, %v299_v9  ;;  %4509 = vmatprep.mubr.msk.bf16.mxu0 %vm364_vm1, %v5360_v10  ;;  %v3715_v9 = vld [vmem:[%s5114_s8 + $0x82] sm:$0xff] }
  0x89   : > { %v5483_v14 = vpack.c.bf16 %v3716_v12, %v3715_v9  ;;  %v3994_v9 = vld [vmem:[%s5114_s8 + $0xc5] sm:$0xff]  ;;  %v3995_v12 = vld [vmem:[%s5114_s8 + $0xcd] sm:$0xff] }
  0x8f   : > { %4358 = vmatmul.mubr.msk.bf16.gmra.mrb[24].mxu1 %vm364_vm1, %v300_v19  ;;  %4510 = vmatmul.mubr.msk.bf16.gmra.mrb[24].mxu0 %vm364_vm1, %v5376_v21  ;;  %v3724_v19 = vld [vmem:[%s5114_s8 + $0xca] sm:$0xff] }
  0x90   : > { %4361 = vmatprep.mubr.msk.bf16.mxu1 %vm364_vm1, %v301_v23  ;;  %4513 = vmatprep.mubr.msk.bf16.mxu0 %vm364_vm1, %v5378_v24  ;;  %v5515_v25 = vpack.c.bf16 %v3724_v19, %v3723_v18  ;;  %v4002_v18 = vld [vmem:[%s5114_s8 + $0x105] sm:$0xff]  ;;  %v4003_v19 = vld [vmem:[%s5114_s8 + $0x10d] sm:$0xff] }
  0x97   : > { %4362 = vmatmul.mubr.msk.bf16.gmra.mrb[28].mxu1 %vm364_vm1, %v302_v37  ;;  %4514 = vmatmul.mubr.msk.bf16.gmra.mrb[28].mxu0 %vm364_vm1, %v5394_v38  ;;  %v5547_v37 = vpack.c.bf16 %v3732_v33, %v3731_v32  ;;  %v4008_v32 = vld [vmem:[%s5114_s8 + $0x135] sm:$0xff]  ;;  %v4009_v33 = vld [vmem:[%s5114_s8 + $0x13d] sm:$0xff] }
  0x98   : > { %4365 = vmatprep.mubr.msk.bf16.mxu1 %vm364_vm1, %v303_v39  ;;  %4517 = vmatprep.mubr.msk.bf16.mxu0 %vm364_vm1, %v5396_v40  ;;  %v3953_v39 = vld [vmem:[%s5114_s8 + $0x134] sm:$0xff] }
  0x99   : > { %v2201_v45 = vpack.c.bf16 %v3954_v41, %v3953_v39  ;;  %v4031_v41 = vld [vmem:[%s5114_s8 + $0x36] sm:$0xff] }
  0x9f   : > { %4366 = vmatmul.mubr.msk.bf16.gmra.mrb[32].mxu1 %vm364_vm1, %v304_v49  ;;  %4518 = vmatmul.mubr.msk.bf16.gmra.mrb[32].mxu0 %vm364_vm1, %v5410_v50  ;;  %v3977_v49 = vld [vmem:[%s5114_s8 + $0x3d] sm:$0xff] }
  0xa0   : > { %4371 = vmatprep.mubr.msk.bf16.mxu1 %vm364_vm1, %v872_v51  ;;  %4523 = vmatprep.mubr.msk.bf16.mxu0 %vm364_vm1, %v5251_v6  ;;  %v5435_v6 = vld [vmem:[%s5991_s1 + $0x20] sm:$0xf]  ;;  %v3979_v51 = vld [vmem:[%s5114_s8 + $0x4d] sm:$0xff]  ;;  %v2513_v52 = vpack.c.bf16 %v3977_v49, %v3976_v47  ;;  %v4035_v47 = vld [vmem:[%s5114_s8 + $0x56] sm:$0xff] }
  0xa1   : > { %v2915_v54 = vsel %vm419_vm0, %v5435_v6, 0  ;;  %v4036_v49 = vld [vmem:[%s5114_s8 + $0x5e] sm:$0xff] }
  0xa7   : > { %4372 = vmatmul.mubr.msk.bf16.vlgmr.msra.gmra.mrb[0].mxu1 %vm364_vm1, %v5422_v56  ;;  %4524 = vmatmul.mubr.msk.bf16.vlgmr.msra.gmra.mrb[0].mxu0 %vm364_vm1, %v5253_v8  ;;  %v5449_v8 = vpack.c.bf16 %v3706_v62, %v3705_v11  ;;  %v3985_v62 = vld [vmem:[%s5114_s8 + $0x7d] sm:$0xff] }
  0xa8   : > { %4375 = vmatprep.mubr.msk.bf16.mxu1 %vm364_vm1, %v5424_v57  ;;  %4560 = vmatpush3.bf16.msra.mxu0 %v2587_v59  ;;  %v3982_v59 = vld [vmem:[%s5114_s8 + $0x65] sm:$0xff] }
  0xa9   : > { %4527 = vmatprep.mubr.msk.bf16.mxu0 %vm364_vm1, %v5279_v20  ;;  %4408 = vmatpush3.bf16.msra.mxu1 %v1275_v61  ;;  %v3709_v20 = vld [vmem:[%s5114_s8 + $0x52] sm:$0xff] }
  0xaa   : > { %4983 = vmatprep.subr.msk.bf16.mxu0 %vm419_vm0, %v5435_v6  ;;  %v5465_v4 = vpack.c.bf16 %v3710_v1, %v3709_v20  ;;  %v3983_v61 = vld [vmem:[%s5114_s8 + $0x6d] sm:$0xff]  ;;  %v2518_v20 = vpack.c.bf16 %v3987_v63, %v3986_v27  ;;  %v3989_v1 = vld [vmem:[%s5114_s8 + $0x9d] sm:$0xff] }
  0xab   : > { %v2516_v11 = vpack.c.bf16 %v3983_v61, %v3982_v59  ;;  %v4042_v59 = vld [vmem:[%s5114_s8 + $0x8e] sm:$0xff] }
  0xac   : > { %v4046_v27 = vld [vmem:[%s5114_s8 + $0xae] sm:$0xff] }
  0xaf   : > { %4376 = vmatmul.mubr.msk.bf16.gmra.mrb[4].mxu1 %vm364_vm1, %v5449_v8  ;;  %4528 = vmatmul.mubr.msk.bf16.gmra.mrb[4].mxu0 %vm364_vm1, %v5281_v22  ;;  %v3713_v22 = vld [vmem:[%s5114_s8 + $0x72] sm:$0xff] }
  0xb0   : > { %4379 = vmatprep.mubr.msk.bf16.mxu1 %vm364_vm1, %v5451_v0  ;;  %4531 = vmatprep.mubr.msk.bf16.mxu0 %vm364_vm1, %v5304_v34  ;;  %v3714_v34 = vld [vmem:[%s5114_s8 + $0x7a] sm:$0xff] }
  0xb1   : > { %v5481_v13 = vpack.c.bf16 %v3714_v34, %v3713_v22  ;;  %v2520_v22 = vpack.c.bf16 %v3991_v3, %v3990_v2  ;;  %v3993_v34 = vld [vmem:[%s5114_s8 + $0xbd] sm:$0xff]  ;;  %v4049_v2 = vld [vmem:[%s5114_s8 + $0xc6] sm:$0xff]  ;;  %v4050_v3 = vld [vmem:[%s5114_s8 + $0xce] sm:$0xff] }
  0xb7   : > { %4380 = vmatmul.mubr.msk.bf16.gmra.mrb[8].mxu1 %vm364_vm1, %v5465_v4  ;;  %4532 = vmatmul.mubr.msk.bf16.gmra.mrb[8].mxu0 %vm364_vm1, %v5306_v36  ;;  %v3717_v36 = vld [vmem:[%s5114_s8 + $0x92] sm:$0xff] }
  0xb8   : > { %4383 = vmatprep.mubr.msk.bf16.mxu1 %vm364_vm1, %v5467_v5  ;;  %4535 = vmatprep.mubr.msk.bf16.mxu0 %vm364_vm1, %v5322_v46  ;;  %v3718_v46 = vld [vmem:[%s5114_s8 + $0x9a] sm:$0xff] }
  0xb9   : > { %v5497_v16 = vpack.c.bf16 %v3718_v46, %v3717_v36  ;;  %v2522_v36 = vpack.c.bf16 %v3995_v12, %v3994_v9  ;;  %v3997_v46 = vld [vmem:[%s5114_s8 + $0xdd] sm:$0xff]  ;;  %v4053_v12 = vld [vmem:[%s5114_s8 + $0xe6] sm:$0xff] }
  0xba   : > { %v4052_v9 = vld [vmem:[%s5114_s8 + $0xde] sm:$0xff] }
  0xbf   : > { %4384 = vmatmul.mubr.msk.bf16.gmra.mrb[12].mxu1 %vm364_vm1, %v5481_v13  ;;  %4536 = vmatmul.mubr.msk.bf16.gmra.mrb[12].mxu0 %vm364_vm1, %v5324_v48  ;;  %v3721_v48 = vld [vmem:[%s5114_s8 + $0xb2] sm:$0xff] }
  0xc0   : > { %4387 = vmatprep.mubr.msk.bf16.mxu1 %vm364_vm1, %v5483_v14  ;;  %4539 = vmatprep.mubr.msk.bf16.mxu0 %vm364_vm1, %v5340_v58  ;;  %v3722_v58 = vld [vmem:[%s5114_s8 + $0xba] sm:$0xff] }
  0xc1   : > { %v5513_v23 = vpack.c.bf16 %v3722_v58, %v3721_v48  ;;  %v2524_v48 = vpack.c.bf16 %v3999_v15, %v3998_v26  ;;  %v4001_v58 = vld [vmem:[%s5114_s8 + $0xfd] sm:$0xff] }
  0xc2   : > { %v4055_v26 = vld [vmem:[%s5114_s8 + $0xf6] sm:$0xff]  ;;  %v4056_v15 = vld [vmem:[%s5114_s8 + $0xfe] sm:$0xff] }
  0xc7   : > { %4388 = vmatmul.mubr.msk.bf16.gmra.mrb[16].mxu1 %vm364_vm1, %v5497_v16  ;;  %4540 = vmatmul.mubr.msk.bf16.gmra.mrb[16].mxu0 %vm364_vm1, %v5342_v60  ;;  %v3725_v60 = vld [vmem:[%s5114_s8 + $0xd2] sm:$0xff] }
  0xc8   : > { %4391 = vmatprep.mubr.msk.bf16.mxu1 %vm364_vm1, %v5499_v17  ;;  %4543 = vmatprep.mubr.msk.bf16.mxu0 %vm364_vm1, %v5358_v7  ;;  %v3726_v7 = vld [vmem:[%s5114_s8 + $0xda] sm:$0xff] }
  0xc9   : > { %v5529_v30 = vpack.c.bf16 %v3726_v7, %v3725_v60  ;;  %v2526_v60 = vpack.c.bf16 %v4003_v19, %v4002_v18  ;;  %v4005_v7 = vld [vmem:[%s5114_s8 + $0x11d] sm:$0xff] }
  0xca   : > { %v5013_v18 = vld [vmem:[%s5993_s3 + $0x18] sm:$0xff]  }
  0xcb   : > { %v4059_v19 = vld [vmem:[%s5114_s8 + $0x116] sm:$0xff] }
  0xcf   : > { %4392 = vmatmul.mubr.msk.bf16.gmra.mrb[20].mxu1 %vm364_vm1, %v5513_v23  ;;  %4544 = vmatmul.mubr.msk.bf16.gmra.mrb[20].mxu0 %vm364_vm1, %v5360_v10  ;;  %v3729_v10 = vld [vmem:[%s5114_s8 + $0xf2] sm:$0xff] }
  0xd0   : > { %4395 = vmatprep.mubr.msk.bf16.mxu1 %vm364_vm1, %v5515_v25  ;;  %4547 = vmatprep.mubr.msk.bf16.mxu0 %vm364_vm1, %v5376_v21  ;;  %v3730_v21 = vld [vmem:[%s5114_s8 + $0xfa] sm:$0xff] }
  0xd1   : > { %v5545_v35 = vpack.c.bf16 %v3730_v21, %v3729_v10  ;;  %v2528_v10 = vpack.c.bf16 %v4007_v29, %v4006_v28  ;;  %v3789_v21 = vld [vmem:[%s5114_s8 + $0x12a] sm:$0xff]  ;;  %v4063_v29 = vld [vmem:[%s5114_s8 + $0x136] sm:$0xff] }
  0xd7   : > { %4396 = vmatmul.mubr.msk.bf16.gmra.mrb[24].mxu1 %vm364_vm1, %v5529_v30  ;;  %4548 = vmatmul.mubr.msk.bf16.gmra.mrb[24].mxu0 %vm364_vm1, %v5378_v24  ;;  %v3733_v24 = vld [vmem:[%s5114_s8 + $0x112] sm:$0xff] }
  0xd8   : > { %4399 = vmatprep.mubr.msk.bf16.mxu1 %vm364_vm1, %v5531_v31  ;;  %4551 = vmatprep.mubr.msk.bf16.mxu0 %vm364_vm1, %v5394_v38  ;;  %v3734_v38 = vld [vmem:[%s5114_s8 + $0x11a] sm:$0xff] }
  0xd9   : > { %v5563_v44 = vpack.c.bf16 %v3734_v38, %v3733_v24  ;;  %v4030_v24 = vld [vmem:[%s5114_s8 + $0x2e] sm:$0xff]  ;;  %v2529_v38 = vpack.c.bf16 %v4009_v33, %v4008_v32  ;;  %v5017_v33 = vld [vmem:[%s5993_s3 + $0x38] sm:$0xff]  }
  0xda   : > { %v5016_v32 = vld [vmem:[%s5993_s3 + $0x30] sm:$0xff]  }
  0xdf   : > { %4400 = vmatmul.mubr.msk.bf16.gmra.mrb[28].mxu1 %vm364_vm1, %v5545_v35  ;;  %4552 = vmatmul.mubr.msk.bf16.gmra.mrb[28].mxu0 %vm364_vm1, %v5396_v40  ;;  %v2512_v40 = vpack.c.bf16 %v3975_v43, %v3974_v42  ;;  %v4032_v42 = vld [vmem:[%s5114_s8 + $0x3e] sm:$0xff]  ;;  %v4033_v43 = vld [vmem:[%s5114_s8 + $0x46] sm:$0xff] }
  0xe0   : > { %4403 = vmatprep.mubr.msk.bf16.mxu1 %vm364_vm1, %v5547_v37  ;;  %4555 = vmatprep.mubr.msk.bf16.mxu0 %vm364_vm1, %v5410_v50  ;;  %v3978_v50 = vld [vmem:[%s5114_s8 + $0x45] sm:$0xff] }
  0xe1   : > { %v2514_v53 = vpack.c.bf16 %v3979_v51, %v3978_v50  ;;  %v4037_v50 = vld [vmem:[%s5114_s8 + $0x66] sm:$0xff]  ;;  %v4038_v51 = vld [vmem:[%s5114_s8 + $0x6e] sm:$0xff] }
  0xe7   : > { %4404 = vmatmul.mubr.msk.bf16.gmra.mrb[32].mxu1 %vm364_vm1, %v5563_v44  ;;  %4556 = vmatmul.mubr.msk.bf16.gmra.mrb[32].mxu0 %vm364_vm1, %v2201_v45  ;;  %v2841_v45 = vpack.c.bf16 %v4032_v42, %v4031_v41 }
  0xe8   : > { %4409 = vmatprep.mubr.msk.bf16.mxu1 %vm364_vm1, %v5422_v56  ;;  %4561 = vmatprep.mubr.msk.bf16.mxu0 %vm364_vm1, %v2512_v40  ;;  %v3981_v56 = vld [vmem:[%s5114_s8 + $0x5d] sm:$0xff] }
  0xe9   : > { %v2515_v6 = vpack.c.bf16 %v3981_v56, %v3980_v55  ;;  %v4040_v55 = vld [vmem:[%s5114_s8 + $0x7e] sm:$0xff]  ;;  %v4041_v56 = vld [vmem:[%s5114_s8 + $0x86] sm:$0xff] }
  0xef   : > { %4410 = vmatmul.mubr.msk.bf16.vlgmr.msra.gmra.mrb[0].mxu1 %vm364_vm1, %v5424_v57  ;;  %4562 = vmatmul.mubr.msk.bf16.vlgmr.msra.gmra.mrb[0].mxu0 %vm364_vm1, %v2513_v52  ;;  %v3984_v57 = vld [vmem:[%s5114_s8 + $0x75] sm:$0xff]  ;;  %v2843_v52 = vpack.c.bf16 %v4036_v49, %v4035_v47 }
  0xf0   : > { %4413 = vmatprep.mubr.msk.bf16.mxu1 %vm364_vm1, %v5449_v8  ;;  %4598 = vmatpush3.bf16.msra.mxu0 %v2915_v54  ;;  %v2517_v8 = vpack.c.bf16 %v3985_v62, %v3984_v57  ;;  %v4039_v54 = vld [vmem:[%s5114_s8 + $0x76] sm:$0xff]  ;;  %v4044_v57 = vld [vmem:[%s5114_s8 + $0x9e] sm:$0xff]  ;;  %v4045_v62 = vld [vmem:[%s5114_s8 + $0xa6] sm:$0xff] }
  0xf1   : > { %4565 = vmatprep.mubr.msk.bf16.mxu0 %vm364_vm1, %v2514_v53  ;;  %v2844_v53 = vpack.c.bf16 %v4038_v51, %v4037_v50  ;;  %v2845_v61 = vpack.c.bf16 %v4040_v55, %v4039_v54 }
  0xf7   : > { %4414 = vmatmul.mubr.msk.bf16.gmra.mrb[4].mxu1 %vm364_vm1, %v5451_v0  ;;  %4566 = vmatmul.mubr.msk.bf16.gmra.mrb[4].mxu0 %vm364_vm1, %v2515_v6  ;;  %v3988_v0 = vld [vmem:[%s5114_s8 + $0x95] sm:$0xff]  ;;  %v2846_v6 = vpack.c.bf16 %v4042_v59, %v4041_v56 }
  0xf8   : > { %4417 = vmatprep.mubr.msk.bf16.mxu1 %vm364_vm1, %v5465_v4  ;;  %4569 = vmatprep.mubr.msk.bf16.mxu0 %vm364_vm1, %v2516_v11  ;;  %v2519_v4 = vpack.c.bf16 %v3989_v1, %v3988_v0  ;;  %v4043_v11 = vld [vmem:[%s5114_s8 + $0x96] sm:$0xff]  ;;  %v4048_v1 = vld [vmem:[%s5114_s8 + $0xbe] sm:$0xff] }
  0xf9   : > { %v2847_v63 = vpack.c.bf16 %v4044_v57, %v4043_v11  ;;  %v4047_v0 = vld [vmem:[%s5114_s8 + $0xb6] sm:$0xff] }
  0xff   : > { %4418 = vmatmul.mubr.msk.bf16.gmra.mrb[8].mxu1 %vm364_vm1, %v5467_v5  ;;  %4570 = vmatmul.mubr.msk.bf16.gmra.mrb[8].mxu0 %vm364_vm1, %v2517_v8  ;;  %v3992_v5 = vld [vmem:[%s5114_s8 + $0xb5] sm:$0xff]  ;;  %v2848_v8 = vpack.c.bf16 %v4046_v27, %v4045_v62 }
 0x100   : > { %4421 = vmatprep.mubr.msk.bf16.mxu1 %vm364_vm1, %v5481_v13  ;;  %4573 = vmatprep.mubr.msk.bf16.mxu0 %vm364_vm1, %v2518_v20  ;;  %v2521_v13 = vpack.c.bf16 %v3993_v34, %v3992_v5  ;;  %v5010_v20 = vld [vmem:[%s5993_s3] sm:$0xff]   ;;  %v5011_v5 = vld [vmem:[%s5993_s3 + $0x8] sm:$0xff]   ;;  %v4051_v34 = vld [vmem:[%s5114_s8 + $0xd6] sm:$0xff] }
 0x101   : > { %4635 = vmatprep.subr.bf16.mxu1 %v5010_v20 }
 0x102   : > { %4636 = vmatpush3.bf16.msra.mxu1 %v5010_v20 }
 0x103   : > { %4637 = vmatprep.subr.bf16.mxu1 %v5011_v5 }
 0x106   : > { %4638 = vmatpush3.bf16.msra.mxu1 %v5011_v5 }
 0x107   : > { %4422 = vmatmul.mubr.msk.bf16.gmra.mrb[12].mxu1 %vm364_vm1, %v5483_v14  ;;  %4574 = vmatmul.mubr.msk.bf16.gmra.mrb[12].mxu0 %vm364_vm1, %v2519_v4  ;;  %v3996_v14 = vld [vmem:[%s5114_s8 + $0xd5] sm:$0xff]  ;;  %v2849_v4 = vpack.c.bf16 %v4048_v1, %v4047_v0 }
 0x108   : > { %4425 = vmatprep.mubr.msk.bf16.mxu1 %vm364_vm1, %v5497_v16  ;;  %4577 = vmatprep.mubr.msk.bf16.mxu0 %vm364_vm1, %v2520_v22  ;;  %v2523_v16 = vpack.c.bf16 %v3997_v46, %v3996_v14  ;;  %v2850_v22 = vpack.c.bf16 %v4050_v3, %v4049_v2  ;;  %v5012_v46 = vld [vmem:[%s5993_s3 + $0x10] sm:$0xff]  }
 0x109   : > { %4639 = vmatprep.subr.bf16.mxu1 %v5012_v46 }
 0x10a   : > { %4640 = vmatpush3.bf16.msra.mxu1 %v5012_v46 }
 0x10b   : > { %4641 = vmatprep.subr.bf16.mxu1 %v5013_v18 }
 0x10e   : > { %4642 = vmatpush3.bf16.msra.mxu1 %v5013_v18 }
 0x10f   : > { %4426 = vmatmul.mubr.msk.bf16.gmra.mrb[16].mxu1 %vm364_vm1, %v5499_v17  ;;  %4578 = vmatmul.mubr.msk.bf16.gmra.mrb[16].mxu0 %vm364_vm1, %v2521_v13  ;;  %v4000_v17 = vld [vmem:[%s5114_s8 + $0xf5] sm:$0xff] }
 0x110   : > { %4429 = vmatprep.mubr.msk.bf16.mxu1 %vm364_vm1, %v5513_v23  ;;  %4581 = vmatprep.mubr.msk.bf16.mxu0 %vm364_vm1, %v2522_v36  ;;  %v2525_v23 = vpack.c.bf16 %v4001_v58, %v4000_v17  ;;  %v4054_v13 = vld [vmem:[%s5114_s8 + $0xee] sm:$0xff]  ;;  %v2851_v36 = vpack.c.bf16 %v4052_v9, %v4051_v34  ;;  %v2853_v17 = vpack.c.bf16 %v4056_v15, %v4055_v26  ;;  %v5796_v34 = vld [vmem:[%s5992_s2] ss:$0 sm:$0xff] }
 0x111   : > { %v2852_v14 = vpack.c.bf16 %v4054_v13, %v4053_v12 }
 0x117   : > { %4430 = vmatmul.mubr.msk.bf16.gmra.mrb[20].mxu1 %vm364_vm1, %v5515_v25  ;;  %4582 = vmatmul.mubr.msk.bf16.gmra.mrb[20].mxu0 %vm364_vm1, %v2523_v16  ;;  %v4004_v25 = vld [vmem:[%s5114_s8 + $0x115] sm:$0xff]  ;;  %v4057_v16 = vld [vmem:[%s5114_s8 + $0x106] sm:$0xff] }
 0x118   : > { %4433 = vmatprep.mubr.msk.bf16.mxu1 %vm364_vm1, %v5529_v30  ;;  %4585 = vmatprep.mubr.msk.bf16.mxu0 %vm364_vm1, %v2524_v48  ;;  %v2527_v30 = vpack.c.bf16 %v4005_v7, %v4004_v25  ;;  %v4058_v48 = vld [vmem:[%s5114_s8 + $0x10e] sm:$0xff] }
 0x119   : > { %v2854_v58 = vpack.c.bf16 %v4058_v48, %v4057_v16  ;;  %v4062_v25 = vld [vmem:[%s5114_s8 + $0x12e] sm:$0xff] }
 0x11f   : > { %4434 = vmatmul.mubr.msk.bf16.gmra.mrb[24].mxu1 %vm364_vm1, %v5531_v31  ;;  %4586 = vmatmul.mubr.msk.bf16.gmra.mrb[24].mxu0 %vm364_vm1, %v2525_v23  ;;  %v3788_v31 = vld [vmem:[%s5114_s8 + $0x122] sm:$0xff] }
 0x120   : > { %4437 = vmatprep.mubr.msk.bf16.mxu1 %vm364_vm1, %v5545_v35  ;;  %4589 = vmatprep.mubr.msk.bf16.mxu0 %vm364_vm1, %v2526_v60  ;;  %v4029_v35 = vld [vmem:[%s5114_s8 + $0x26] sm:$0xff]  ;;  %v4060_v23 = vld [vmem:[%s5114_s8 + $0x11e] sm:$0xff] }
 0x121   : > { %v2840_v39 = vpack.c.bf16 %v4030_v24, %v4029_v35  ;;  %v4061_v60 = vld [vmem:[%s5114_s8 + $0x126] sm:$0xff]  ;;  %v2855_v7 = vpack.c.bf16 %v4060_v23, %v4059_v19 }
 0x122   : > { %v2856_v28 = vpack.c.bf16 %v4062_v25, %v4061_v60 }
 0x127   : > { %4438 = vmatmul.mubr.msk.bf16.gmra.mrb[28].mxu1 %vm364_vm1, %v5547_v37  ;;  %4590 = vmatmul.mubr.msk.bf16.gmra.mrb[28].mxu0 %vm364_vm1, %v2527_v30  ;;  %v1217_v37 = vpack.c.bf16 %v3789_v21, %v3788_v31  ;;  %v4064_v30 = vld [vmem:[%s5114_s8 + $0x13e] sm:$0xff]  ;;  %v5015_v21 = vld [vmem:[%s5993_s3 + $0x28] sm:$0xff]  }
 0x128   : > { %4441 = vmatprep.mubr.msk.bf16.mxu1 %vm364_vm1, %v5563_v44  ;;  %4593 = vmatprep.mubr.msk.bf16.mxu0 %vm364_vm1, %v2528_v10  ;;  %v4034_v44 = vld [vmem:[%s5114_s8 + $0x4e] sm:$0xff]  ;;  %v5014_v10 = vld [vmem:[%s5993_s3 + $0x20] sm:$0xff]   ;;  %v2857_v31 = vpack.c.bf16 %v4064_v30, %v4063_v29 }
 0x129   : > { %v2842_v40 = vpack.c.bf16 %v4034_v44, %v4033_v43  ;;  %4643 = vmatprep.subr.bf16.mxu1 %v5014_v10 }
 0x12a   : > { %4644 = vmatpush3.bf16.msra.mxu1 %v5014_v10 }
 0x12b   : > { %4645 = vmatprep.subr.bf16.mxu1 %v5015_v21 }
 0x12e   : > { %4646 = vmatpush3.bf16.msra.mxu1 %v5015_v21 }
 0x12f   : > { %4442 = vmatmul.mubr.msk.bf16.gmra.mrb[32].mxu1 %vm364_vm1, %v1217_v37  ;;  %4594 = vmatmul.mubr.msk.bf16.gmra.mrb[32].mxu0 %vm364_vm1, %v2529_v38 }
 0x130   : > { %4599 = vmatprep.mubr.msk.bf16.mxu0 %vm364_vm1, %v2840_v39  ;;  %4647 = vmatprep.subr.bf16.mxu1 %v5016_v32 }
 0x132   : > { %4648 = vmatpush3.bf16.msra.mxu1 %v5016_v32 }
 0x133   : > { %4649 = vmatprep.subr.bf16.mxu1 %v5017_v33 }
 0x136   : > { %4650 = vmatpush3.bf16.msra.mxu1 %v5017_v33 }
 0x137   : > { %4600 = vmatmul.mubr.msk.bf16.vlgmr.msra.gmra.mrb[0].mxu0 %vm364_vm1, %v2841_v45 }
 0x138   : > { %4603 = vmatprep.mubr.msk.bf16.mxu0 %vm364_vm1, %v2842_v40 }
 0x13f   : > { %4604 = vmatmul.mubr.msk.bf16.gmra.mrb[4].mxu0 %vm364_vm1, %v2843_v52 }
 0x140   : > { %4607 = vmatprep.mubr.msk.bf16.mxu0 %vm364_vm1, %v2844_v53 }
 0x147   : > { %4608 = vmatmul.mubr.msk.bf16.gmra.mrb[8].mxu0 %vm364_vm1, %v2845_v61 }
 0x148   : > { %4611 = vmatprep.mubr.msk.bf16.mxu0 %vm364_vm1, %v2846_v6 }
 0x14f   : > { %4612 = vmatmul.mubr.msk.bf16.gmra.mrb[12].mxu0 %vm364_vm1, %v2847_v63 }
 0x150   : > { %4615 = vmatprep.mubr.msk.bf16.mxu0 %vm364_vm1, %v2848_v8 }
 0x157   : > { %4616 = vmatmul.mubr.msk.bf16.gmra.mrb[16].mxu0 %vm364_vm1, %v2849_v4 }
 0x158   : > { %4619 = vmatprep.mubr.msk.bf16.mxu0 %vm364_vm1, %v2850_v22 }
 0x15f   : > { %4620 = vmatmul.mubr.msk.bf16.gmra.mrb[20].mxu0 %vm364_vm1, %v2851_v36 }
 0x160   : > { %4623 = vmatprep.mubr.msk.bf16.mxu0 %vm364_vm1, %v2852_v14 }
 0x167   : > { %4624 = vmatmul.mubr.msk.bf16.gmra.mrb[24].mxu0 %vm364_vm1, %v2853_v17 }
 0x168   : > { %4627 = vmatprep.mubr.msk.bf16.mxu0 %vm364_vm1, %v2854_v58 }
 0x16f   : > { %4628 = vmatmul.mubr.msk.bf16.gmra.mrb[28].mxu0 %vm364_vm1, %v2855_v7 }
 0x170   : > { %4631 = vmatprep.mubr.msk.bf16.mxu0 %vm364_vm1, %v2856_v28 }
 0x177   : > { %4632 = vmatmul.mubr.msk.bf16.gmra.mrb[32].mxu0 %vm364_vm1, %v2857_v31 }
 0x1c2   : > { %v4411_v35 = vpop.f32.mrb[0].mxu1 }
 0x1c3   : > { %v1311_v24 = vpop.f32.mrb[1].mxu1 }
 0x1c4   : > { %v4412_v37 = vpop.f32.mrb[2].mxu1 }
 0x1c5   : > { %v1314_v38 = vpop.f32.mrb[3].mxu1 }
 0x1ca   : > { %v4415_v39 = vpop.f32.mrb[4].mxu1 }
 0x1cb   : > { %v1327_v41 = vpop.f32.mrb[5].mxu1 }
 0x1cc   : > { %v4416_v42 = vpop.f32.mrb[6].mxu1 }
 0x1cd   : > { %v1330_v43 = vpop.f32.mrb[7].mxu1 }
 0x1d2   : > { %v5737_v44 = vpop.f32.mrb[8].mxu1 }
 0x1d3   : > { %v5739_v45 = vpop.f32.mrb[9].mxu1 }
 0x1d4   : > { %v5741_v40 = vpop.f32.mrb[10].mxu1 }
 0x1d5   : > { %v5743_v47 = vpop.f32.mrb[11].mxu1 }
 0x1da   : > { %v5745_v49 = vpop.f32.mrb[12].mxu1 }
 0x1db   : > { %v5747_v50 = vpop.f32.mrb[13].mxu1 }
 0x1dc   : > { %v5749_v51 = vpop.f32.mrb[14].mxu1 }
 0x1dd   : > { %v5751_v52 = vpop.f32.mrb[15].mxu1 }
 0x1e2   : > { %v5753_v53 = vpop.f32.mrb[16].mxu1 }
 0x1e3   : > { %v5755_v54 = vpop.f32.mrb[17].mxu1 }
 0x1e4   : > { %v5757_v55 = vpop.f32.mrb[18].mxu1 }
 0x1e5   : > { %v5759_v56 = vpop.f32.mrb[19].mxu1 }
 0x1ea   : > { %v5761_v59 = vpop.f32.mrb[20].mxu1 }
 0x1eb   : > { %v5763_v61 = vpop.f32.mrb[21].mxu1 }
 0x1ec   : > { %v5765_v6 = vpop.f32.mrb[22].mxu1 }
 0x1ed   : > { %v5767_v11 = vpop.f32.mrb[23].mxu1 }
 0x1f2   : > { %v5769_v57 = vpop.f32.mrb[24].mxu1 }
 0x1f3   : > { %v5771_v62 = vpop.f32.mrb[25].mxu1 }
 0x1f4   : > { %v5773_v27 = vpop.f32.mrb[26].mxu1 }
 0x1f5   : > { %v5775_v63 = vpop.f32.mrb[27].mxu1 }
 0x1fa   : > { %v5777_v8 = vpop.f32.mrb[28].mxu1 }
 0x1fb   : > { %v5779_v20 = vpop.f32.mrb[29].mxu1 }
 0x1fc   : > { %v5781_v0 = vpop.f32.mrb[30].mxu1 }
 0x1fd   : > { %v5783_v1 = vpop.f32.mrb[31].mxu1 }
 0x202   : > { %v5785_v2 = vpop.f32.mrb[32].mxu1 }
 0x203   : > { %v5787_v3 = vpop.f32.mrb[33].mxu1 }
 0x204   : > { %v5789_v4 = vpop.f32.mrb[34].mxu1 }
 0x205   : > { %v5791_v22 = vpop.f32.mrb[35].mxu1 }
 0x20a   : > { %v4601_v5 = vpop.f32.mrb[0].mxu0 }
 0x20b   : > { %v4687_v9 = vadd.f32 %v4601_v5, %v4411_v35  ;;  %v2951_v12 = vpop.f32.mrb[1].mxu0 }
 0x20c   : > { %v4688_v13 = vadd.f32 %v2951_v12, %v1311_v24  ;;  %v4602_v36 = vpop.f32.mrb[2].mxu0 }
 0x20d   : > { %v3139_v14 = vadd.f32 %v4687_v9, %v5796_v34  ;;  %v4689_v46 = vadd.f32 %v4602_v36, %v4412_v37  ;;  %v2954_v26 = vpop.f32.mrb[3].mxu0 }
 0x20e   : > { %v3137_v15 = vadd.f32 %v4688_v13, %v5796_v34  ;;  %v4690_v16 = vadd.f32 %v2954_v26, %v1314_v38 }
 0x20f   : > { %v3140_v48 = vadd.f32 %v4689_v46, %v5796_v34  ;;  %v3175_v58 = vmax.f32 %v3139_v14, 0.0 }
 0x210   : > { %v3138_v17 = vadd.f32 %v4690_v16, %v5796_v34  ;;  %v3173_v19 = vmax.f32 %v3137_v15, 0.0 }
 0x211   : > { %v3176_v18 = vmax.f32 %v3140_v48, 0.0 }
 0x212   : > { %v3174_v23 = vmax.f32 %v3138_v17, 0.0  ;;  %v4605_v60 = vpop.f32.mrb[4].mxu0 }
 0x213   : > { %v3210_v25 = vpack.c.bf16 %v3176_v18, %v3175_v58  ;;  %v4691_v7 = vadd.f32 %v4605_v60, %v4415_v39  ;;  %v2967_v28 = vpop.f32.mrb[5].mxu0 }
 0x214   : > { %v4692_v29 = vadd.f32 %v2967_v28, %v1327_v41  ;;  %v4606_v30 = vpop.f32.mrb[6].mxu0  ;;  %v3209_v10 = vpack.c.bf16 %v3174_v23, %v3173_v19 }
 0x215   : > { %v3143_v31 = vadd.f32 %v4691_v7, %v5796_v34  ;;  %v4693_v21 = vadd.f32 %v4606_v30, %v4416_v42  ;;  %v2970_v32 = vpop.f32.mrb[7].mxu0 }
 0x216   : > { %v3141_v33 = vadd.f32 %v4692_v29, %v5796_v34  ;;  %v4694_v35 = vadd.f32 %v2970_v32, %v1330_v43  ;;  %4651 = vmatprep.mubr.bf16.mxu1 %v3209_v10 }
 0x217   : > { %v3144_v24 = vadd.f32 %v4693_v21, %v5796_v34  ;;  %4652 = vmatmul.mubr.bf16.vlgmr.msra.gmra.mrb[36].mxu1 %v3210_v25  ;;  %v3179_v38 = vmax.f32 %v3143_v31, 0.0 }
 0x218   : > { %v3142_v37 = vadd.f32 %v4694_v35, %v5796_v34  ;;  %v3177_v39 = vmax.f32 %v3141_v33, 0.0 }
 0x219   : > { %v3180_v5 = vmax.f32 %v3144_v24, 0.0 }
 0x21a   : > { %v3178_v9 = vmax.f32 %v3142_v37, 0.0  ;;  %v4609_v41 = vpop.f32.mrb[8].mxu0 }
 0x21b   : > { %v4695_v12 = vadd.f32 %v4609_v41, %v5737_v44  ;;  %v2983_v13 = vpop.f32.mrb[9].mxu0  ;;  %v3212_v36 = vpack.c.bf16 %v3180_v5, %v3179_v38 }
 0x21c   : > { %v4696_v42 = vadd.f32 %v2983_v13, %v5739_v45  ;;  %v4610_v14 = vpop.f32.mrb[10].mxu0  ;;  %v3211_v46 = vpack.c.bf16 %v3178_v9, %v3177_v39 }
 0x21d   : > { %v3147_v43 = vadd.f32 %v4695_v12, %v5796_v34  ;;  %v4697_v26 = vadd.f32 %v4610_v14, %v5741_v40  ;;  %v2986_v15 = vpop.f32.mrb[11].mxu0 }
 0x21e   : > { %v3145_v16 = vadd.f32 %v4696_v42, %v5796_v34  ;;  %v4698_v48 = vadd.f32 %v2986_v15, %v5743_v47  ;;  %4655 = vmatprep.mubr.bf16.mxu1 %v3211_v46 }
 0x21f   : > { %v3148_v17 = vadd.f32 %v4697_v26, %v5796_v34  ;;  %4656 = vmatmul.mubr.bf16.gmra.mrb[40].mxu1 %v3212_v36  ;;  %v3183_v58 = vmax.f32 %v3147_v43, 0.0 }
 0x220   : > { %v3146_v44 = vadd.f32 %v4698_v48, %v5796_v34  ;;  %v3181_v45 = vmax.f32 %v3145_v16, 0.0 }
 0x221   : > { %v3184_v18 = vmax.f32 %v3148_v17, 0.0 }
 0x222   : > { %v3182_v19 = vmax.f32 %v3146_v44, 0.0  ;;  %v4613_v23 = vpop.f32.mrb[12].mxu0 }
 0x223   : > { %v4699_v60 = vadd.f32 %v4613_v23, %v5745_v49  ;;  %v2999_v25 = vpop.f32.mrb[13].mxu0  ;;  %v3214_v40 = vpack.c.bf16 %v3184_v18, %v3183_v58 }
 0x224   : > { %v4700_v7 = vadd.f32 %v2999_v25, %v5747_v50  ;;  %v4614_v28 = vpop.f32.mrb[14].mxu0  ;;  %v3213_v29 = vpack.c.bf16 %v3182_v19, %v3181_v45 }
 0x225   : > { %v3151_v47 = vadd.f32 %v4699_v60, %v5796_v34  ;;  %v4701_v30 = vadd.f32 %v4614_v28, %v5749_v51  ;;  %v3002_v10 = vpop.f32.mrb[15].mxu0 }
 0x226   : > { %v3149_v31 = vadd.f32 %v4700_v7, %v5796_v34  ;;  %v4702_v21 = vadd.f32 %v3002_v10, %v5751_v52  ;;  %4659 = vmatprep.mubr.bf16.mxu1 %v3213_v29 }
 0x227   : > { %v3152_v32 = vadd.f32 %v4701_v30, %v5796_v34  ;;  %4660 = vmatmul.mubr.bf16.gmra.mrb[44].mxu1 %v3214_v40  ;;  %v3187_v33 = vmax.f32 %v3151_v47, 0.0 }
 0x228   : > { %v3150_v49 = vadd.f32 %v4702_v21, %v5796_v34  ;;  %v3185_v50 = vmax.f32 %v3149_v31, 0.0 }
 0x229   : > { %v3188_v35 = vmax.f32 %v3152_v32, 0.0 }
 0x22a   : > { %v3186_v24 = vmax.f32 %v3150_v49, 0.0  ;;  %v4617_v37 = vpop.f32.mrb[16].mxu0 }
 0x22b   : > { %v4703_v38 = vadd.f32 %v4617_v37, %v5753_v53  ;;  %v3015_v5 = vpop.f32.mrb[17].mxu0  ;;  %v3216_v51 = vpack.c.bf16 %v3188_v35, %v3187_v33 }
 0x22c   : > { %v4704_v39 = vadd.f32 %v3015_v5, %v5755_v54  ;;  %v4618_v9 = vpop.f32.mrb[18].mxu0  ;;  %v3215_v41 = vpack.c.bf16 %v3186_v24, %v3185_v50 }
 0x22d   : > { %v3155_v52 = vadd.f32 %v4703_v38, %v5796_v34  ;;  %v4705_v12 = vadd.f32 %v4618_v9, %v5757_v55  ;;  %v3018_v13 = vpop.f32.mrb[19].mxu0 }
 0x22e   : > { %v3153_v36 = vadd.f32 %v4704_v39, %v5796_v34  ;;  %v4706_v42 = vadd.f32 %v3018_v13, %v5759_v56  ;;  %4663 = vmatprep.mubr.bf16.mxu1 %v3215_v41 }
 0x22f   : > { %v3156_v14 = vadd.f32 %v4705_v12, %v5796_v34  ;;  %4664 = vmatmul.mubr.bf16.gmra.mrb[48].mxu1 %v3216_v51  ;;  %v3191_v46 = vmax.f32 %v3155_v52, 0.0 }
 0x230   : > { %v3154_v53 = vadd.f32 %v4706_v42, %v5796_v34  ;;  %v3189_v54 = vmax.f32 %v3153_v36, 0.0 }
 0x231   : > { %v3192_v43 = vmax.f32 %v3156_v14, 0.0 }
 0x232   : > { %v3190_v26 = vmax.f32 %v3154_v53, 0.0  ;;  %v4621_v15 = vpop.f32.mrb[20].mxu0 }
 0x233   : > { %v4707_v16 = vadd.f32 %v4621_v15, %v5761_v59  ;;  %v3031_v48 = vpop.f32.mrb[21].mxu0  ;;  %v3218_v55 = vpack.c.bf16 %v3192_v43, %v3191_v46 }
 0x234   : > { %v4708_v17 = vadd.f32 %v3031_v48, %v5763_v61  ;;  %v4622_v44 = vpop.f32.mrb[22].mxu0  ;;  %v3217_v58 = vpack.c.bf16 %v3190_v26, %v3189_v54 }
 0x235   : > { %v3159_v56 = vadd.f32 %v4707_v16, %v5796_v34  ;;  %v4709_v18 = vadd.f32 %v4622_v44, %v5765_v6  ;;  %v3034_v45 = vpop.f32.mrb[23].mxu0 }
 0x236   : > { %v3157_v19 = vadd.f32 %v4708_v17, %v5796_v34  ;;  %v4710_v23 = vadd.f32 %v3034_v45, %v5767_v11  ;;  %4667 = vmatprep.mubr.bf16.mxu1 %v3217_v58 }
 0x237   : > { %v3160_v60 = vadd.f32 %v4709_v18, %v5796_v34  ;;  %4668 = vmatmul.mubr.bf16.gmra.mrb[52].mxu1 %v3218_v55  ;;  %v3195_v25 = vmax.f32 %v3159_v56, 0.0 }
 0x238   : > { %v3158_v59 = vadd.f32 %v4710_v23, %v5796_v34  ;;  %v3193_v61 = vmax.f32 %v3157_v19, 0.0 }
 0x239   : > { %v3196_v40 = vmax.f32 %v3160_v60, 0.0 }
 0x23a   : > { %v3194_v7 = vmax.f32 %v3158_v59, 0.0  ;;  %v4625_v28 = vpop.f32.mrb[24].mxu0 }
 0x23b   : > { %v4711_v29 = vadd.f32 %v4625_v28, %v5769_v57  ;;  %v3047_v47 = vpop.f32.mrb[25].mxu0  ;;  %v3220_v6 = vpack.c.bf16 %v3196_v40, %v3195_v25 }
 0x23c   : > { %v4712_v30 = vadd.f32 %v3047_v47, %v5771_v62  ;;  %v4626_v10 = vpop.f32.mrb[26].mxu0  ;;  %v3219_v31 = vpack.c.bf16 %v3194_v7, %v3193_v61 }
 0x23d   : > { %v3163_v11 = vadd.f32 %v4711_v29, %v5796_v34  ;;  %v4713_v21 = vadd.f32 %v4626_v10, %v5773_v27  ;;  %v3050_v32 = vpop.f32.mrb[27].mxu0 }
 0x23e   : > { %v3161_v49 = vadd.f32 %v4712_v30, %v5796_v34  ;;  %v4714_v33 = vadd.f32 %v3050_v32, %v5775_v63  ;;  %4671 = vmatprep.mubr.bf16.mxu1 %v3219_v31 }
 0x23f   : > { %v3164_v35 = vadd.f32 %v4713_v21, %v5796_v34  ;;  %4672 = vmatmul.mubr.bf16.gmra.mrb[56].mxu1 %v3220_v6  ;;  %v3199_v50 = vmax.f32 %v3163_v11, 0.0 }
 0x240   : > { %v3162_v57 = vadd.f32 %v4714_v33, %v5796_v34  ;;  %v3197_v62 = vmax.f32 %v3161_v49, 0.0 }
 0x241   : > { %v3200_v24 = vmax.f32 %v3164_v35, 0.0 }
 0x242   : > { %v3198_v37 = vmax.f32 %v3162_v57, 0.0  ;;  %v4629_v38 = vpop.f32.mrb[28].mxu0 }
 0x243   : > { %v4715_v5 = vadd.f32 %v4629_v38, %v5777_v8  ;;  %v3063_v51 = vpop.f32.mrb[29].mxu0  ;;  %v3222_v27 = vpack.c.bf16 %v3200_v24, %v3199_v50 }
 0x244   : > { %v4716_v39 = vadd.f32 %v3063_v51, %v5779_v20  ;;  %v4630_v9 = vpop.f32.mrb[30].mxu0  ;;  %v3221_v41 = vpack.c.bf16 %v3198_v37, %v3197_v62 }
 0x245   : > { %v3167_v63 = vadd.f32 %v4715_v5, %v5796_v34  ;;  %v4717_v52 = vadd.f32 %v4630_v9, %v5781_v0  ;;  %v3066_v12 = vpop.f32.mrb[31].mxu0 }
 0x246   : > { %v3165_v13 = vadd.f32 %v4716_v39, %v5796_v34  ;;  %v4718_v36 = vadd.f32 %v3066_v12, %v5783_v1  ;;  %4675 = vmatprep.mubr.bf16.mxu1 %v3221_v41 }
 0x247   : > { %v3168_v42 = vadd.f32 %v4717_v52, %v5796_v34  ;;  %4676 = vmatmul.mubr.bf16.gmra.mrb[60].mxu1 %v3222_v27  ;;  %v3203_v14 = vmax.f32 %v3167_v63, 0.0 }
 0x248   : > { %v3166_v8 = vadd.f32 %v4718_v36, %v5796_v34  ;;  %v3201_v20 = vmax.f32 %v3165_v13, 0.0 }
 0x249   : > { %v3204_v53 = vmax.f32 %v3168_v42, 0.0 }
 0x24a   : > { %v3202_v46 = vmax.f32 %v3166_v8, 0.0  ;;  %v4633_v43 = vpop.f32.mrb[32].mxu0 }
 0x24b   : > { %v4719_v54 = vadd.f32 %v4633_v43, %v5785_v2  ;;  %v3079_v26 = vpop.f32.mrb[33].mxu0  ;;  %v3224_v0 = vpack.c.bf16 %v3204_v53, %v3203_v14 }
 0x24c   : > { %v4720_v15 = vadd.f32 %v3079_v26, %v5787_v3  ;;  %v4634_v16 = vpop.f32.mrb[34].mxu0  ;;  %v3223_v48 = vpack.c.bf16 %v3202_v46, %v3201_v20 }
 0x24d   : > { %v3171_v1 = vadd.f32 %v4719_v54, %v5796_v34  ;;  %v4721_v55 = vadd.f32 %v4634_v16, %v5789_v4  ;;  %v3082_v17 = vpop.f32.mrb[35].mxu0  ;;  %v5866_v4 = vld [vmem:[%s5994_s4] ss:$0 sm:$0xff] }
 0x24e   : > { %v3169_v44 = vadd.f32 %v4720_v15, %v5796_v34  ;;  %v4722_v58 = vadd.f32 %v3082_v17, %v5791_v22  ;;  %4679 = vmatprep.mubr.bf16.mxu1 %v3223_v48 }
 0x24f   : > { %v3172_v56 = vadd.f32 %v4721_v55, %v5796_v34  ;;  %4680 = vmatmul.mubr.bf16.gmra.mrb[64].mxu1 %v3224_v0  ;;  %v3207_v18 = vmax.f32 %v3171_v1, 0.0 }
 0x250   : > { %v3170_v2 = vadd.f32 %v4722_v58, %v5796_v34  ;;  %v3205_v45 = vmax.f32 %v3169_v44, 0.0 }
 0x251   : > { %v3208_v3 = vmax.f32 %v3172_v56, 0.0 }
 0x252   : > { %v3206_v19 = vmax.f32 %v3170_v2, 0.0 }
 0x253   : > { %v3226_v23 = vpack.c.bf16 %v3208_v3, %v3207_v18 }
 0x254   : > { %v3225_v60 = vpack.c.bf16 %v3206_v19, %v3205_v45 }
 0x256   : > { %4683 = vmatprep.mubr.bf16.mxu1 %v3225_v60 }
 0x257   : > { %4684 = vmatmul.mubr.bf16.gmra.mrb[68].mxu1 %v3226_v23 }
 0x2ea   : > { %v4653_v22 = vpop.f32.mrb[36].mxu1 }
 0x2eb   : > { %v3341_v34 = vadd.f32 %v4653_v22, %v5866_v4  ;;  %v3332_v59 = vpop.f32.mrb[37].mxu1 }
 0x2ec   : > { %v3333_v25 = vadd.f32 %v5866_v4, %v3332_v59  ;;  %v4654_v40 = vpop.f32.mrb[38].mxu1 }
 0x2ed   : > { %3478 = vst.msk [vmem:[%s5871_s25 + $0x10] sm:$0xff] %vm3475_vm2, %v3341_v34  ;;  %v3344_v61 = vadd.f32 %v4654_v40, %v5866_v4  ;;  %v3335_v7 = vpop.f32.mrb[39].mxu1 }
 0x2ee   : > { %3476 = vst.msk [vmem:[%s5871_s25] sm:$0xff] %vm3475_vm2, %v3333_v25  ;;  %v3336_v28 = vadd.f32 %v5866_v4, %v3335_v7 }
 0x2ef   : > { %3479 = vst.msk [vmem:[%s5871_s25 + $0x18] sm:$0xff] %vm3475_vm2, %v3344_v61 }
 0x2f0   : > { %3477 = vst.msk [vmem:[%s5871_s25 + $0x8] sm:$0xff] %vm3475_vm2, %v3336_v28 }
 0x2f2   : > { %v4657_v29 = vpop.f32.mrb[40].mxu1 }
 0x2f3   : > { %v3357_v47 = vadd.f32 %v4657_v29, %v5866_v4  ;;  %v3348_v6 = vpop.f32.mrb[41].mxu1 }
 0x2f4   : > { %v3349_v30 = vadd.f32 %v5866_v4, %v3348_v6  ;;  %v4658_v10 = vpop.f32.mrb[42].mxu1 }
 0x2f5   : > { %3482 = vst.msk [vmem:[%s5871_s25 + $0x30] sm:$0xff] %vm3475_vm2, %v3357_v47  ;;  %v3360_v31 = vadd.f32 %v4658_v10, %v5866_v4  ;;  %v3351_v11 = vpop.f32.mrb[43].mxu1 }
 0x2f6   : > { %3480 = vst.msk [vmem:[%s5871_s25 + $0x20] sm:$0xff] %vm3475_vm2, %v3349_v30  ;;  %v3352_v21 = vadd.f32 %v5866_v4, %v3351_v11 }
 0x2f7   : > { %3483 = vst.msk [vmem:[%s5871_s25 + $0x38] sm:$0xff] %vm3475_vm2, %v3360_v31 }
 0x2f8   : > { %3481 = vst.msk [vmem:[%s5871_s25 + $0x28] sm:$0xff] %vm3475_vm2, %v3352_v21 }
 0x2fa   : > { %v4661_v32 = vpop.f32.mrb[44].mxu1 }
 0x2fb   : > { %v3373_v49 = vadd.f32 %v4661_v32, %v5866_v4  ;;  %v3364_v33 = vpop.f32.mrb[45].mxu1 }
 0x2fc   : > { %v3365_v35 = vadd.f32 %v5866_v4, %v3364_v33  ;;  %v4662_v57 = vpop.f32.mrb[46].mxu1 }
 0x2fd   : > { %3486 = vst.msk [vmem:[%s5871_s25 + $0x50] sm:$0xff] %vm3475_vm2, %v3373_v49  ;;  %v3376_v50 = vadd.f32 %v4662_v57, %v5866_v4  ;;  %v3367_v24 = vpop.f32.mrb[47].mxu1 }
 0x2fe   : > { %3484 = vst.msk [vmem:[%s5871_s25 + $0x40] sm:$0xff] %vm3475_vm2, %v3365_v35  ;;  %v3368_v62 = vadd.f32 %v5866_v4, %v3367_v24 }
 0x2ff   : > { %3487 = vst.msk [vmem:[%s5871_s25 + $0x58] sm:$0xff] %vm3475_vm2, %v3376_v50 }
 0x300   : > { %3485 = vst.msk [vmem:[%s5871_s25 + $0x48] sm:$0xff] %vm3475_vm2, %v3368_v62 }
 0x302   : > { %v4665_v37 = vpop.f32.mrb[48].mxu1 }
 0x303   : > { %v3389_v38 = vadd.f32 %v4665_v37, %v5866_v4  ;;  %v3380_v5 = vpop.f32.mrb[49].mxu1 }
 0x304   : > { %v3381_v51 = vadd.f32 %v5866_v4, %v3380_v5  ;;  %v4666_v27 = vpop.f32.mrb[50].mxu1 }
 0x305   : > { %3490 = vst.msk [vmem:[%s5871_s25 + $0x70] sm:$0xff] %vm3475_vm2, %v3389_v38  ;;  %v3392_v39 = vadd.f32 %v4666_v27, %v5866_v4  ;;  %v3383_v9 = vpop.f32.mrb[51].mxu1 }
 0x306   : > { %3488 = vst.msk [vmem:[%s5871_s25 + $0x60] sm:$0xff] %vm3475_vm2, %v3381_v51  ;;  %v3384_v41 = vadd.f32 %v5866_v4, %v3383_v9 }
 0x307   : > { %3491 = vst.msk [vmem:[%s5871_s25 + $0x78] sm:$0xff] %vm3475_vm2, %v3392_v39 }
 0x308   : > { %3489 = vst.msk [vmem:[%s5871_s25 + $0x68] sm:$0xff] %vm3475_vm2, %v3384_v41 }
 0x30a   : > { %v4669_v63 = vpop.f32.mrb[52].mxu1 }
 0x30b   : > { %v3405_v52 = vadd.f32 %v4669_v63, %v5866_v4  ;;  %v3396_v12 = vpop.f32.mrb[53].mxu1 }
 0x30c   : > { %v3397_v13 = vadd.f32 %v5866_v4, %v3396_v12  ;;  %v4670_v36 = vpop.f32.mrb[54].mxu1 }
 0x30d   : > { %3494 = vst.msk [vmem:[%s5871_s25 + $0x90] sm:$0xff] %vm3475_vm2, %v3405_v52  ;;  %v3408_v42 = vadd.f32 %v4670_v36, %v5866_v4  ;;  %v3399_v8 = vpop.f32.mrb[55].mxu1 }
 0x30e   : > { %3492 = vst.msk [vmem:[%s5871_s25 + $0x80] sm:$0xff] %vm3475_vm2, %v3397_v13  ;;  %v3400_v14 = vadd.f32 %v5866_v4, %v3399_v8 }
 0x30f   : > { %3495 = vst.msk [vmem:[%s5871_s25 + $0x98] sm:$0xff] %vm3475_vm2, %v3408_v42 }
 0x310   : > { %3493 = vst.msk [vmem:[%s5871_s25 + $0x88] sm:$0xff] %vm3475_vm2, %v3400_v14 }
 0x312   : > { %v4673_v53 = vpop.f32.mrb[56].mxu1 }
 0x313   : > { %v3421_v20 = vadd.f32 %v4673_v53, %v5866_v4  ;;  %v3412_v46 = vpop.f32.mrb[57].mxu1 }
 0x314   : > { %v3413_v43 = vadd.f32 %v5866_v4, %v3412_v46  ;;  %v4674_v54 = vpop.f32.mrb[58].mxu1 }
 0x315   : > { %3498 = vst.msk [vmem:[%s5871_s25 + $0xb0] sm:$0xff] %vm3475_vm2, %v3421_v20  ;;  %v3424_v26 = vadd.f32 %v4674_v54, %v5866_v4  ;;  %v3415_v0 = vpop.f32.mrb[59].mxu1 }
 0x316   : > { %3496 = vst.msk [vmem:[%s5871_s25 + $0xa0] sm:$0xff] %vm3475_vm2, %v3413_v43  ;;  %v3416_v15 = vadd.f32 %v5866_v4, %v3415_v0 }
 0x317   : > { %3499 = vst.msk [vmem:[%s5871_s25 + $0xb8] sm:$0xff] %vm3475_vm2, %v3424_v26 }
 0x318   : > { %3497 = vst.msk [vmem:[%s5871_s25 + $0xa8] sm:$0xff] %vm3475_vm2, %v3416_v15 }
 0x31a   : > { %v4677_v16 = vpop.f32.mrb[60].mxu1 }
 0x31b   : > { %v3437_v48 = vadd.f32 %v4677_v16, %v5866_v4  ;;  %v3428_v1 = vpop.f32.mrb[61].mxu1 }
 0x31c   : > { %v3429_v55 = vadd.f32 %v5866_v4, %v3428_v1  ;;  %v4678_v17 = vpop.f32.mrb[62].mxu1 }
 0x31d   : > { %3502 = vst.msk [vmem:[%s5871_s25 + $0xd0] sm:$0xff] %vm3475_vm2, %v3437_v48  ;;  %v3440_v44 = vadd.f32 %v4678_v17, %v5866_v4  ;;  %v3431_v58 = vpop.f32.mrb[63].mxu1 }
 0x31e   : > { %3500 = vst.msk [vmem:[%s5871_s25 + $0xc0] sm:$0xff] %vm3475_vm2, %v3429_v55  ;;  %v3432_v56 = vadd.f32 %v5866_v4, %v3431_v58 }
 0x31f   : > { %3503 = vst.msk [vmem:[%s5871_s25 + $0xd8] sm:$0xff] %vm3475_vm2, %v3440_v44 }
 0x320   : > { %3501 = vst.msk [vmem:[%s5871_s25 + $0xc8] sm:$0xff] %vm3475_vm2, %v3432_v56 }
 0x322   : > { %v4681_v2 = vpop.f32.mrb[64].mxu1 }
 0x323   : > { %v3453_v18 = vadd.f32 %v4681_v2, %v5866_v4  ;;  %v3444_v3 = vpop.f32.mrb[65].mxu1 }
 0x324   : > { %v3445_v45 = vadd.f32 %v5866_v4, %v3444_v3  ;;  %v4682_v19 = vpop.f32.mrb[66].mxu1 }
 0x325   : > { %3506 = vst.msk [vmem:[%s5871_s25 + $0xf0] sm:$0xff] %vm3475_vm2, %v3453_v18  ;;  %v3456_v23 = vadd.f32 %v4682_v19, %v5866_v4  ;;  %v3447_v60 = vpop.f32.mrb[67].mxu1 }
 0x326   : > { %3504 = vst.msk [vmem:[%s5871_s25 + $0xe0] sm:$0xff] %vm3475_vm2, %v3445_v45  ;;  %v3448_v22 = vadd.f32 %v5866_v4, %v3447_v60 }
 0x327   : > { %3507 = vst.msk [vmem:[%s5871_s25 + $0xf8] sm:$0xff] %vm3475_vm2, %v3456_v23 }
 0x328   : > { %3505 = vst.msk [vmem:[%s5871_s25 + $0xe8] sm:$0xff] %vm3475_vm2, %v3448_v22 }
 0x32a   : > { %v4685_v34 = vpop.f32.mrb[68].mxu1 }
 0x32b   : > { %v3469_v59 = vadd.f32 %v4685_v34, %v5866_v4  ;;  %v3460_v25 = vpop.f32.mrb[69].mxu1 }
 0x32c   : > { %v3461_v40 = vadd.f32 %v5866_v4, %v3460_v25  ;;  %v4686_v61 = vpop.f32.mrb[70].mxu1 }
 0x32d   : > { %3510 = vst.msk [vmem:[%s5871_s25 + $0x110] sm:$0xff] %vm3475_vm2, %v3469_v59  ;;  %v3472_v7 = vadd.f32 %v4686_v61, %v5866_v4  ;;  %v3463_v28 = vpop.f32.mrb[71].mxu1 }
 0x32e   : > { %3508 = vst.msk [vmem:[%s5871_s25 + $0x100] sm:$0xff] %vm3475_vm2, %v3461_v40  ;;  %v3464_v29 = vadd.f32 %v5866_v4, %v3463_v28 }
 0x32f   : > { %3511 = vst.msk [vmem:[%s5871_s25 + $0x118] sm:$0xff] %vm3475_vm2, %v3472_v7 }
 0x330   : > { %3509 = vst.msk [vmem:[%s5871_s25 + $0x108] sm:$0xff] %vm3475_vm2, %v3464_v29 }
 0x331 PF: > { %s15_s20 = sadd.s32 1, %s5040_s20   ;;  %s5996_s18 = smov %s5036_s19 }
 0x332   : > { %p12_p5 = scmp.ge.s32.totalorder %s15_s20, 4   ;;  %s5997_s19 = smov %s5999_s21 }
 0x334   :  { %14 = sbr.rel (!%p12_p5) target bundleno = 2 (0x2), region = 87 }

</bundles_post_ra>
